<compile_context>
chip_gen: v6e
topology: v6e:2x2x1
jax: 0.10.0
libtpu: 0.0.40
codegen_flags: <defaults>
</compile_context>

<pallas_src>
import functools

import jax
import jax.numpy as jnp
from jax.experimental import pallas as pl
from jax.experimental.pallas import tpu as pltpu


# ---------------------------------------------------------------------------
# Pallas kernel: tiled matmul + fused (bias [+ residual] [+ ReLU]) epilogue
# ---------------------------------------------------------------------------
def _mm_kernel(*refs, relu, has_res):
    if has_res:
        a_ref, w_ref, b_ref, r_ref, o_ref, acc_ref = refs
    else:
        a_ref, w_ref, b_ref, o_ref, acc_ref = refs
        r_ref = None

    @pl.when(pl.program_id(2) == 0)
    def _():
        acc_ref[...] = jnp.zeros_like(acc_ref)

    acc_ref[...] += jnp.dot(a_ref[...], w_ref[...],
                            preferred_element_type=jnp.float32)

    @pl.when(pl.program_id(2) == pl.num_programs(2) - 1)
    def _():
        out = acc_ref[...] + b_ref[...]          # (1, tn) broadcasts over rows
        if r_ref is not None:
            out = out + r_ref[...]               # fused residual add (f32)
        if relu:
            out = jnp.maximum(out, 0.0)
        o_ref[...] = out.astype(o_ref.dtype)


def _pick_tile(dim, align, max_tile):
    """Largest multiple of `align` that divides `dim` and is <= max_tile,
    otherwise the full dimension (legal when block == full array dim)."""
    if dim % align != 0:
        return dim
    best = align
    t = align
    while t <= min(dim, max_tile):
        if dim % t == 0:
            best = t
        t += align
    return best


def matmul_bias(a, w, b, residual=None, relu=False):
    """a: (M, K) bf16, w: (K, N) bf16 (pre-laid-out), b: (N,) f32,
    residual: optional (M, N) f32 added in the epilogue. Returns (M, N) f32."""
    M, K = a.shape
    K2, N = w.shape
    assert K == K2
    tm = _pick_tile(M, 8, 256)
    tn = _pick_tile(N, 128, 256)      # <=256 keeps >=2 j-blocks on 512-wide layers (v7x)
    tk = _pick_tile(K, 128, 1024)     # bf16 tiles stay far under v5e's 16 MiB VMEM budget
    # Guarantee >=2 blocks on a "parallel" axis when possible (v7x second core).
    if (M // tm) * (N // tn) == 1:
        if tn >= 256:
            tn //= 2
        elif tm >= 16 and tm % 16 == 0:
            tm //= 2
    grid = (M // tm, N // tn, K // tk)

    b2 = b.reshape(1, N)
    in_specs = [
        pl.BlockSpec((tm, tk), lambda i, j, k: (i, k)),
        pl.BlockSpec((tk, tn), lambda i, j, k: (k, j)),
        pl.BlockSpec((1, tn), lambda i, j, k: (0, j)),
    ]
    args = [a, w, b2]
    if residual is not None:
        # Block index is constant over k, so the residual tile is fetched once.
        in_specs.append(pl.BlockSpec((tm, tn), lambda i, j, k: (i, j)))
        args.append(residual.astype(jnp.float32))

    bytes_accessed = int(a.size * a.dtype.itemsize + w.size * w.dtype.itemsize
                         + b2.size * 4 + M * N * 4
                         + (M * N * 4 if residual is not None else 0))
    kernel = functools.partial(_mm_kernel, relu=relu, has_res=residual is not None)
    return pl.pallas_call(
        kernel,
        out_shape=jax.ShapeDtypeStruct((M, N), jnp.float32),
        grid_spec=pltpu.PrefetchScalarGridSpec(
            num_scalar_prefetch=0,
            grid=grid,
            in_specs=in_specs,
            out_specs=pl.BlockSpec((tm, tn), lambda i, j, k: (i, j)),
            scratch_shapes=[pltpu.VMEM((tm, tn), jnp.float32)],
        ),
        compiler_params=pltpu.CompilerParams(
            dimension_semantics=("parallel", "parallel", "arbitrary")),
        cost_estimate=pl.CostEstimate(flops=2 * M * N * K, transcendentals=0,
                                      bytes_accessed=bytes_accessed),
    )(*args)


# ---------------------------------------------------------------------------
# Conv (im2col glue + Pallas matmul) and pooling
# ---------------------------------------------------------------------------
def conv2d(x, p, stride, pad, residual=None, relu=True):
    """k x k conv with BN pre-folded into (w, b); optional fused residual + ReLU.
    x: (N, H, W, Cin) f32/NHWC (Cin already channel-padded to match p['w'])."""
    n, h, w_sp, cin = x.shape
    k = p['k']
    ho = (h + 2 * pad - k) // stride + 1
    wo = (w_sp + 2 * pad - k) // stride + 1
    xb = x.astype(jnp.bfloat16)                     # bf16 matmul inputs, f32 accumulate
    if k == 1:
        a = (xb if stride == 1 else xb[:, ::stride, ::stride, :]).reshape(n * ho * wo, cin)
    else:
        xp = jnp.pad(xb, ((0, 0), (pad, pad), (pad, pad), (0, 0))) if pad else xb
        # TODO(synk): im2col stays as XLA slices/concat (bf16, half traffic);
        # in-kernel tap accumulation via the matmul K grid axis not implemented.
        cols = []
        for ki in range(k):
            for kj in range(k):
                cols.append(xp[:, ki:ki + (ho - 1) * stride + 1:stride,
                               kj:kj + (wo - 1) * stride + 1:stride, :])
        a = jnp.concatenate(cols, axis=-1).reshape(n * ho * wo, k * k * cin)
    r = None if residual is None else residual.reshape(n * ho * wo, -1)
    y = matmul_bias(a, p['w'], p['b'], residual=r, relu=relu)
    return y.reshape(n, ho, wo, p['w'].shape[1])


def maxpool3x3s2(x):
    """ResNet stem maxpool (3x3, stride 2, pad 1) as one XLA reduce_window HLO."""
    return jax.lax.reduce_window(
        x, jnp.array(-jnp.inf, x.dtype), jax.lax.max,
        window_dimensions=(1, 3, 3, 1), window_strides=(1, 2, 2, 1),
        padding=((0, 0), (1, 1), (1, 1), (0, 0)))


def basic_block(x, blk):
    stride = blk['stride']
    identity = x
    out = conv2d(x, blk['conv1'], stride=stride, pad=1, relu=True)
    if 'down' in blk:
        identity = conv2d(x, blk['down'], stride=stride, pad=0, relu=False)
    # conv2 + folded BN + residual add + ReLU fused into one Pallas epilogue.
    return conv2d(out, blk['conv2'], stride=1, pad=1, residual=identity, relu=True)


# ---------------------------------------------------------------------------
# Parameter init: fold BN, pre-layout (k*k*Cin, Cout_pad128) bf16, f32 bias
# ---------------------------------------------------------------------------
RESNET18_CFG = [(64, 2, 1), (128, 2, 2), (256, 2, 2), (512, 2, 2)]  # (ch, blocks, stride)


def _pad_to_128(c):
    return ((c + 127) // 128) * 128


def _rand_conv_bn(key, cout, cin, k):
    k1, k2, k3, k4, k5 = jax.random.split(key, 5)
    fan = cin * k * k
    w = jax.random.normal(k1, (cout, cin, k, k), jnp.float32) * jnp.sqrt(2.0 / fan)
    gamma = 1.0 + 0.1 * jax.random.normal(k2, (cout,), jnp.float32)
    beta = 0.01 * jax.random.normal(k3, (cout,), jnp.float32)
    mean = 0.01 * jax.random.normal(k4, (cout,), jnp.float32)
    var = 1.0 + 0.1 * jnp.abs(jax.random.normal(k5, (cout,), jnp.float32))
    return w, gamma, beta, mean, var


def _fold_and_layout(w, gamma, beta, mean, var, cin_pad, cout_pad, eps=1e-5):
    """Eval-mode BN folded into the conv; weight pre-laid-out as
    (k*k*cin_pad, cout_pad) bf16 with zero padding; f32 bias."""
    cout, cin, kh, kw = w.shape
    scale = gamma / jnp.sqrt(var + eps)
    wf = w * scale[:, None, None, None]
    bf = beta - mean * scale
    wm = jnp.transpose(wf, (2, 3, 1, 0))                           # (kh, kw, cin, cout)
    wm = jnp.pad(wm, ((0, 0), (0, 0), (0, cin_pad - cin), (0, cout_pad - cout)))
    wm = wm.reshape(kh * kw * cin_pad, cout_pad).astype(jnp.bfloat16)
    bf = jnp.pad(bf, (0, cout_pad - cout)).astype(jnp.float32)
    return {'w': wm, 'b': bf, 'k': kh}


def init_params(key, num_class):
    params = {'num_class': num_class}
    keys = iter(jax.random.split(key, 64))
    # stem: conv1 7x7/2 (64ch) + bn1, folded; cout padded 64 -> 128.
    params['conv1'] = _fold_and_layout(*_rand_conv_bn(next(keys), 64, 3, 7),
                                       cin_pad=3, cout_pad=_pad_to_128(64))
    layers = []
    cin = 64
    for ch, nblocks, first_stride in RESNET18_CFG:
        stage = []
        for b in range(nblocks):
            stride = first_stride if b == 0 else 1
            cin_pad, cout_pad = _pad_to_128(cin), _pad_to_128(ch)
            blk = {'stride': stride}
            blk['conv1'] = _fold_and_layout(*_rand_conv_bn(next(keys), ch, cin, 3),
                                            cin_pad=cin_pad, cout_pad=cout_pad)
            blk['conv2'] = _fold_and_layout(*_rand_conv_bn(next(keys), ch, ch, 3),
                                            cin_pad=cout_pad, cout_pad=cout_pad)
            if stride != 1 or cin != ch:
                blk['down'] = _fold_and_layout(*_rand_conv_bn(next(keys), ch, cin, 1),
                                               cin_pad=cin_pad, cout_pad=cout_pad)
            stage.append(blk)
            cin = ch
        layers.append(stage)
    params['layers'] = layers
    # replaced fc: Linear(512 -> num_class), pre-laid-out (512, pad128) bf16 + f32 bias.
    kf1, kf2 = jax.random.split(next(keys))
    ncp = _pad_to_128(num_class)
    wfc = jax.random.normal(kf1, (num_class, 512), jnp.float32) / jnp.sqrt(512.0)
    bfc = 0.01 * jax.random.normal(kf2, (num_class,), jnp.float32)
    params['fc'] = {'w': jnp.pad(wfc.T, ((0, 0), (0, ncp - num_class))).astype(jnp.bfloat16),
                    'b': jnp.pad(bfc, (0, ncp - num_class)).astype(jnp.float32)}
    return params


# ---------------------------------------------------------------------------
# WrapResNet.forward(x, y)
# ---------------------------------------------------------------------------
def wrap_resnet_forward(params, x_nchw, y):
    """conv1 -> bn1 -> relu -> maxpool -> layer1..4 -> avgpool -> flatten -> fc.
    Returns (logits, y)."""
    x = jnp.transpose(x_nchw, (0, 2, 3, 1))                       # NCHW -> NHWC
    x = conv2d(x, params['conv1'], stride=2, pad=3, relu=True)    # conv1 + bn1 + relu
    x = maxpool3x3s2(x)
    for stage in params['layers']:
        for blk in stage:
            # TODO(synk): for_layerN[i] = DoNothing(generalization(rate, epsilon)); the
            # `generalization` module is not defined in the spec, so it is treated as an
            # identity on x (change_output=False path); y is passed through unchanged.
            x = basic_block(x, blk)
    x = jnp.mean(x, axis=(1, 2))                                  # AdaptiveAvgPool2d((1,1)) + flatten
    logits = matmul_bias(x.astype(jnp.bfloat16),
                         params['fc']['w'], params['fc']['b'], relu=False)
    logits = logits[:, :params['num_class']]                      # drop lane padding
    return logits, y


if __name__ == "__main__":
    key = jax.random.PRNGKey(0)
    kp, kx, ky = jax.random.split(key, 3)
    num_class = 10
    params = init_params(kp, num_class)
    x = jax.random.normal(kx, (2, 3, 32, 32), jnp.float32)        # small NCHW input
    y = jax.random.normal(ky, (2, 5), jnp.float32)                # passthrough second arg
    forward = jax.jit(functools.partial(wrap_resnet_forward, params))
    logits, y_out = forward(x, y)
    jax.block_until_ready((logits, y_out))
    assert logits.shape == (2, num_class)
    assert y_out.shape == y.shape
    print("KERNEL_OK")
</pallas_src>

<mosaic_0001>
module attributes {stable_mosaic.version = 11 : i64} {
  func.func @_mm_kernel(%arg0: i32, %arg1: i32, %arg2: i32, %arg3: memref<256x147xbf16, #tpu.memory_space<vmem>>, %arg4: memref<147x128xbf16, #tpu.memory_space<vmem>>, %arg5: memref<1x128xf32, #tpu.memory_space<vmem>>, %arg6: memref<256x128xf32, #tpu.memory_space<vmem>>, %arg7: memref<256x128xf32, #tpu.memory_space<vmem>>) attributes {dimension_semantics = [#tpu.dimension_semantics<parallel>, #tpu.dimension_semantics<parallel>, #tpu.dimension_semantics<arbitrary>], iteration_bounds = array<i64: 2, 1, 1>, scalar_prefetch = 0 : i64, scratch_operands = 1 : i64, tpu.core_type = #tpu.core_type<tc>, window_params = [{transform_indices = @transform_0, window_bounds = array<i64: 256, 147>}, {transform_indices = @transform_1, window_bounds = array<i64: 147, 128>}, {transform_indices = @transform_2, window_bounds = array<i64: 1, 128>}, {transform_indices = @transform_3, window_bounds = array<i64: 256, 128>}]} {
    %c0_i32 = arith.constant 0 : i32
    %0 = arith.cmpi eq, %arg2, %c0_i32 : i32
    %1 = arith.extui %0 : i1 to i32
    %c0_i32_0 = arith.constant 0 : i32
    %2 = arith.cmpi ne, %1, %c0_i32_0 : i32
    scf.if %2 {
      %cst_10 = arith.constant 0.000000e+00 : f32
      %12 = vector.broadcast %cst_10 : f32 to vector<256x128xf32>
      %c0_11 = arith.constant 0 : index
      %c0_12 = arith.constant 0 : index
      %13 = vector.load %arg7[%c0_11, %c0_12] : memref<256x128xf32, #tpu.memory_space<vmem>>, vector<256x128xf32>
      tpu.vector_store %arg7[%c0_11, %c0_12], %12 {strides = array<i32>} : memref<256x128xf32, #tpu.memory_space<vmem>>, vector<256x128xf32>,
    } else {
    }
    %c0 = arith.constant 0 : index
    %c0_1 = arith.constant 0 : index
    %3 = vector.load %arg7[%c0, %c0_1] : memref<256x128xf32, #tpu.memory_space<vmem>>, vector<256x128xf32>
    %c0_2 = arith.constant 0 : index
    %c0_3 = arith.constant 0 : index
    %4 = vector.load %arg3[%c0_2, %c0_3] : memref<256x147xbf16, #tpu.memory_space<vmem>>, vector<256x147xbf16>
    %c0_4 = arith.constant 0 : index
    %c0_5 = arith.constant 0 : index
    %5 = vector.load %arg4[%c0_4, %c0_5] : memref<147x128xbf16, #tpu.memory_space<vmem>>, vector<147x128xbf16>
    %cst = arith.constant dense<0.000000e+00> : vector<256x128xf32>
    %6 = tpu.matmul %4, %5, %cst {dimension_numbers = #tpu.dot_dimension_numbers<[1], [0], [0], [1], [0, 0, 1, 1], [], []>} : vector<256x147xbf16>, vector<147x128xbf16>, vector<256x128xf32> -> vector<256x128xf32>
    %7 = arith.addf %3, %6 : vector<256x128xf32>
    %c0_6 = arith.constant 0 : index
    %c0_7 = arith.constant 0 : index
    %8 = vector.load %arg7[%c0_6, %c0_7] : memref<256x128xf32, #tpu.memory_space<vmem>>, vector<256x128xf32>
    tpu.vector_store %arg7[%c0_6, %c0_7], %7 {strides = array<i32>} : memref<256x128xf32, #tpu.memory_space<vmem>>, vector<256x128xf32>,
    %c0_i32_8 = arith.constant 0 : i32
    %9 = arith.cmpi eq, %arg2, %c0_i32_8 : i32
    %10 = arith.extui %9 : i1 to i32
    %c0_i32_9 = arith.constant 0 : i32
    %11 = arith.cmpi ne, %10, %c0_i32_9 : i32
    scf.if %11 {
      %c0_10 = arith.constant 0 : index
      %c0_11 = arith.constant 0 : index
      %12 = vector.load %arg7[%c0_10, %c0_11] : memref<256x128xf32, #tpu.memory_space<vmem>>, vector<256x128xf32>
      %c0_12 = arith.constant 0 : index
      %c0_13 = arith.constant 0 : index
      %13 = vector.load %arg5[%c0_12, %c0_13] : memref<1x128xf32, #tpu.memory_space<vmem>>, vector<1x128xf32>
      %14 = vector.broadcast %13 : vector<1x128xf32> to vector<256x128xf32>
      %15 = arith.addf %12, %14 : vector<256x128xf32>
      %cst_14 = arith.constant 0.000000e+00 : f32
      %16 = vector.broadcast %cst_14 : f32 to vector<256x128xf32>
      %17 = arith.maximumf %15, %16 : vector<256x128xf32>
      %c0_15 = arith.constant 0 : index
      %c0_16 = arith.constant 0 : index
      %18 = vector.load %arg6[%c0_15, %c0_16] : memref<256x128xf32, #tpu.memory_space<vmem>>, vector<256x128xf32>
      tpu.vector_store %arg6[%c0_15, %c0_16], %17 {strides = array<i32>} : memref<256x128xf32, #tpu.memory_space<vmem>>, vector<256x128xf32>,
    } else {
    }
    return
  }
  func.func @transform_0(%arg0: i32, %arg1: i32, %arg2: i32) -> (i32, i32) {
    %c0_i32 = arith.constant 0 : i32
    return %arg0, %arg2 : i32, i32
  }
  func.func @transform_1(%arg0: i32, %arg1: i32, %arg2: i32) -> (i32, i32) {
    %c0_i32 = arith.constant 0 : i32
    return %arg2, %arg1 : i32, i32
  }
  func.func @transform_2(%arg0: i32, %arg1: i32, %arg2: i32) -> (i32, i32) {
    %c0_i32 = arith.constant 0 : i32
    %c0_i32_0 = arith.constant 0 : i32
    return %c0_i32, %arg1 : i32, i32
  }
  func.func @transform_3(%arg0: i32, %arg1: i32, %arg2: i32) -> (i32, i32) {
    %c0_i32 = arith.constant 0 : i32
    return %arg0, %arg1 : i32, i32
  }
}

module attributes {stable_mosaic.version = 11 : i64} {
  func.func @_mm_kernel(%arg0: i32, %arg1: i32, %arg2: i32, %arg3: memref<64x384xbf16, #tpu.memory_space<vmem>>, %arg4: memref<384x128xbf16, #tpu.memory_space<vmem>>, %arg5: memref<1x128xf32, #tpu.memory_space<vmem>>, %arg6: memref<64x128xf32, #tpu.memory_space<vmem>>, %arg7: memref<64x128xf32, #tpu.memory_space<vmem>>) attributes {dimension_semantics = [#tpu.dimension_semantics<parallel>, #tpu.dimension_semantics<parallel>, #tpu.dimension_semantics<arbitrary>], iteration_bounds = array<i64: 2, 1, 3>, scalar_prefetch = 0 : i64, scratch_operands = 1 : i64, tpu.core_type = #tpu.core_type<tc>, window_params = [{transform_indices = @transform_0, window_bounds = array<i64: 64, 384>}, {transform_indices = @transform_1, window_bounds = array<i64: 384, 128>}, {transform_indices = @transform_2, window_bounds = array<i64: 1, 128>}, {transform_indices = @transform_3, window_bounds = array<i64: 64, 128>}]} {
    %c0_i32 = arith.constant 0 : i32
    %0 = arith.cmpi eq, %arg2, %c0_i32 : i32
    %1 = arith.extui %0 : i1 to i32
    %c0_i32_0 = arith.constant 0 : i32
    %2 = arith.cmpi ne, %1, %c0_i32_0 : i32
    scf.if %2 {
      %cst_9 = arith.constant 0.000000e+00 : f32
      %12 = vector.broadcast %cst_9 : f32 to vector<64x128xf32>
      %c0_10 = arith.constant 0 : index
      %c0_11 = arith.constant 0 : index
      %13 = vector.load %arg7[%c0_10, %c0_11] : memref<64x128xf32, #tpu.memory_space<vmem>>, vector<64x128xf32>
      tpu.vector_store %arg7[%c0_10, %c0_11], %12 {strides = array<i32>} : memref<64x128xf32, #tpu.memory_space<vmem>>, vector<64x128xf32>,
    } else {
    }
    %c0 = arith.constant 0 : index
    %c0_1 = arith.constant 0 : index
    %3 = vector.load %arg7[%c0, %c0_1] : memref<64x128xf32, #tpu.memory_space<vmem>>, vector<64x128xf32>
    %c0_2 = arith.constant 0 : index
    %c0_3 = arith.constant 0 : index
    %4 = vector.load %arg3[%c0_2, %c0_3] : memref<64x384xbf16, #tpu.memory_space<vmem>>, vector<64x384xbf16>
    %c0_4 = arith.constant 0 : index
    %c0_5 = arith.constant 0 : index
    %5 = vector.load %arg4[%c0_4, %c0_5] : memref<384x128xbf16, #tpu.memory_space<vmem>>, vector<384x128xbf16>
    %cst = arith.constant dense<0.000000e+00> : vector<64x128xf32>
    %6 = tpu.matmul %4, %5, %cst {dimension_numbers = #tpu.dot_dimension_numbers<[1], [0], [0], [1], [0, 0, 1, 1], [], []>} : vector<64x384xbf16>, vector<384x128xbf16>, vector<64x128xf32> -> vector<64x128xf32>
    %7 = arith.addf %3, %6 : vector<64x128xf32>
    %c0_6 = arith.constant 0 : index
    %c0_7 = arith.constant 0 : index
    %8 = vector.load %arg7[%c0_6, %c0_7] : memref<64x128xf32, #tpu.memory_space<vmem>>, vector<64x128xf32>
    tpu.vector_store %arg7[%c0_6, %c0_7], %7 {strides = array<i32>} : memref<64x128xf32, #tpu.memory_space<vmem>>, vector<64x128xf32>,
    %c2_i32 = arith.constant 2 : i32
    %9 = arith.cmpi eq, %arg2, %c2_i32 : i32
    %10 = arith.extui %9 : i1 to i32
    %c0_i32_8 = arith.constant 0 : i32
    %11 = arith.cmpi ne, %10, %c0_i32_8 : i32
    scf.if %11 {
      %c0_9 = arith.constant 0 : index
      %c0_10 = arith.constant 0 : index
      %12 = vector.load %arg7[%c0_9, %c0_10] : memref<64x128xf32, #tpu.memory_space<vmem>>, vector<64x128xf32>
      %c0_11 = arith.constant 0 : index
      %c0_12 = arith.constant 0 : index
      %13 = vector.load %arg5[%c0_11, %c0_12] : memref<1x128xf32, #tpu.memory_space<vmem>>, vector<1x128xf32>
      %14 = vector.broadcast %13 : vector<1x128xf32> to vector<64x128xf32>
      %15 = arith.addf %12, %14 : vector<64x128xf32>
      %cst_13 = arith.constant 0.000000e+00 : f32
      %16 = vector.broadcast %cst_13 : f32 to vector<64x128xf32>
      %17 = arith.maximumf %15, %16 : vector<64x128xf32>
      %c0_14 = arith.constant 0 : index
      %c0_15 = arith.constant 0 : index
      %18 = vector.load %arg6[%c0_14, %c0_15] : memref<64x128xf32, #tpu.memory_space<vmem>>, vector<64x128xf32>
      tpu.vector_store %arg6[%c0_14, %c0_15], %17 {strides = array<i32>} : memref<64x128xf32, #tpu.memory_space<vmem>>, vector<64x128xf32>,
    } else {
    }
    return
  }
  func.func @transform_0(%arg0: i32, %arg1: i32, %arg2: i32) -> (i32, i32) {
    %c0_i32 = arith.constant 0 : i32
    return %arg0, %arg2 : i32, i32
  }
  func.func @transform_1(%arg0: i32, %arg1: i32, %arg2: i32) -> (i32, i32) {
    %c0_i32 = arith.constant 0 : i32
    return %arg2, %arg1 : i32, i32
  }
  func.func @transform_2(%arg0: i32, %arg1: i32, %arg2: i32) -> (i32, i32) {
    %c0_i32 = arith.constant 0 : i32
    %c0_i32_0 = arith.constant 0 : i32
    return %c0_i32, %arg1 : i32, i32
  }
  func.func @transform_3(%arg0: i32, %arg1: i32, %arg2: i32) -> (i32, i32) {
    %c0_i32 = arith.constant 0 : i32
    return %arg0, %arg1 : i32, i32
  }
}

module attributes {stable_mosaic.version = 11 : i64} {
  func.func @_mm_kernel(%arg0: i32, %arg1: i32, %arg2: i32, %arg3: memref<64x384xbf16, #tpu.memory_space<vmem>>, %arg4: memref<384x128xbf16, #tpu.memory_space<vmem>>, %arg5: memref<1x128xf32, #tpu.memory_space<vmem>>, %arg6: memref<64x128xf32, #tpu.memory_space<vmem>>, %arg7: memref<64x128xf32, #tpu.memory_space<vmem>>, %arg8: memref<64x128xf32, #tpu.memory_space<vmem>>) attributes {dimension_semantics = [#tpu.dimension_semantics<parallel>, #tpu.dimension_semantics<parallel>, #tpu.dimension_semantics<arbitrary>], iteration_bounds = array<i64: 2, 1, 3>, scalar_prefetch = 0 : i64, scratch_operands = 1 : i64, tpu.core_type = #tpu.core_type<tc>, window_params = [{transform_indices = @transform_0, window_bounds = array<i64: 64, 384>}, {transform_indices = @transform_1, window_bounds = array<i64: 384, 128>}, {transform_indices = @transform_2, window_bounds = array<i64: 1, 128>}, {transform_indices = @transform_3, window_bounds = array<i64: 64, 128>}, {transform_indices = @transform_4, window_bounds = array<i64: 64, 128>}]} {
    %c0_i32 = arith.constant 0 : i32
    %0 = arith.cmpi eq, %arg2, %c0_i32 : i32
    %1 = arith.extui %0 : i1 to i32
    %c0_i32_0 = arith.constant 0 : i32
    %2 = arith.cmpi ne, %1, %c0_i32_0 : i32
    scf.if %2 {
      %cst_9 = arith.constant 0.000000e+00 : f32
      %12 = vector.broadcast %cst_9 : f32 to vector<64x128xf32>
      %c0_10 = arith.constant 0 : index
      %c0_11 = arith.constant 0 : index
      %13 = vector.load %arg8[%c0_10, %c0_11] : memref<64x128xf32, #tpu.memory_space<vmem>>, vector<64x128xf32>
      tpu.vector_store %arg8[%c0_10, %c0_11], %12 {strides = array<i32>} : memref<64x128xf32, #tpu.memory_space<vmem>>, vector<64x128xf32>,
    } else {
    }
    %c0 = arith.constant 0 : index
    %c0_1 = arith.constant 0 : index
    %3 = vector.load %arg8[%c0, %c0_1] : memref<64x128xf32, #tpu.memory_space<vmem>>, vector<64x128xf32>
    %c0_2 = arith.constant 0 : index
    %c0_3 = arith.constant 0 : index
    %4 = vector.load %arg3[%c0_2, %c0_3] : memref<64x384xbf16, #tpu.memory_space<vmem>>, vector<64x384xbf16>
    %c0_4 = arith.constant 0 : index
    %c0_5 = arith.constant 0 : index
    %5 = vector.load %arg4[%c0_4, %c0_5] : memref<384x128xbf16, #tpu.memory_space<vmem>>, vector<384x128xbf16>
    %cst = arith.constant dense<0.000000e+00> : vector<64x128xf32>
    %6 = tpu.matmul %4, %5, %cst {dimension_numbers = #tpu.dot_dimension_numbers<[1], [0], [0], [1], [0, 0, 1, 1], [], []>} : vector<64x384xbf16>, vector<384x128xbf16>, vector<64x128xf32> -> vector<64x128xf32>
    %7 = arith.addf %3, %6 : vector<64x128xf32>
    %c0_6 = arith.constant 0 : index
    %c0_7 = arith.constant 0 : index
    %8 = vector.load %arg8[%c0_6, %c0_7] : memref<64x128xf32, #tpu.memory_space<vmem>>, vector<64x128xf32>
    tpu.vector_store %arg8[%c0_6, %c0_7], %7 {strides = array<i32>} : memref<64x128xf32, #tpu.memory_space<vmem>>, vector<64x128xf32>,
    %c2_i32 = arith.constant 2 : i32
    %9 = arith.cmpi eq, %arg2, %c2_i32 : i32
    %10 = arith.extui %9 : i1 to i32
    %c0_i32_8 = arith.constant 0 : i32
    %11 = arith.cmpi ne, %10, %c0_i32_8 : i32
    scf.if %11 {
      %c0_9 = arith.constant 0 : index
      %c0_10 = arith.constant 0 : index
      %12 = vector.load %arg8[%c0_9, %c0_10] : memref<64x128xf32, #tpu.memory_space<vmem>>, vector<64x128xf32>
      %c0_11 = arith.constant 0 : index
      %c0_12 = arith.constant 0 : index
      %13 = vector.load %arg5[%c0_11, %c0_12] : memref<1x128xf32, #tpu.memory_space<vmem>>, vector<1x128xf32>
      %14 = vector.broadcast %13 : vector<1x128xf32> to vector<64x128xf32>
      %15 = arith.addf %12, %14 : vector<64x128xf32>
      %c0_13 = arith.constant 0 : index
      %c0_14 = arith.constant 0 : index
      %16 = vector.load %arg6[%c0_13, %c0_14] : memref<64x128xf32, #tpu.memory_space<vmem>>, vector<64x128xf32>
      %17 = arith.addf %15, %16 : vector<64x128xf32>
      %cst_15 = arith.constant 0.000000e+00 : f32
      %18 = vector.broadcast %cst_15 : f32 to vector<64x128xf32>
      %19 = arith.maximumf %17, %18 : vector<64x128xf32>
      %c0_16 = arith.constant 0 : index
      %c0_17 = arith.constant 0 : index
      %20 = vector.load %arg7[%c0_16, %c0_17] : memref<64x128xf32, #tpu.memory_space<vmem>>, vector<64x128xf32>
      tpu.vector_store %arg7[%c0_16, %c0_17], %19 {strides = array<i32>} : memref<64x128xf32, #tpu.memory_space<vmem>>, vector<64x128xf32>,
    } else {
    }
    return
  }
  func.func @transform_0(%arg0: i32, %arg1: i32, %arg2: i32) -> (i32, i32) {
    %c0_i32 = arith.constant 0 : i32
    return %arg0, %arg2 : i32, i32
  }
  func.func @transform_1(%arg0: i32, %arg1: i32, %arg2: i32) -> (i32, i32) {
    %c0_i32 = arith.constant 0 : i32
    return %arg2, %arg1 : i32, i32
  }
  func.func @transform_2(%arg0: i32, %arg1: i32, %arg2: i32) -> (i32, i32) {
    %c0_i32 = arith.constant 0 : i32
    %c0_i32_0 = arith.constant 0 : i32
    return %c0_i32, %arg1 : i32, i32
  }
  func.func @transform_3(%arg0: i32, %arg1: i32, %arg2: i32) -> (i32, i32) {
    %c0_i32 = arith.constant 0 : i32
    return %arg0, %arg1 : i32, i32
  }
  func.func @transform_4(%arg0: i32, %arg1: i32, %arg2: i32) -> (i32, i32) {
    %c0_i32 = arith.constant 0 : i32
    return %arg0, %arg1 : i32, i32
  }
}

module attributes {stable_mosaic.version = 11 : i64} {
  func.func @_mm_kernel(%arg0: i32, %arg1: i32, %arg2: i32, %arg3: memref<16x384xbf16, #tpu.memory_space<vmem>>, %arg4: memref<384x128xbf16, #tpu.memory_space<vmem>>, %arg5: memref<1x128xf32, #tpu.memory_space<vmem>>, %arg6: memref<16x128xf32, #tpu.memory_space<vmem>>, %arg7: memref<16x128xf32, #tpu.memory_space<vmem>>) attributes {dimension_semantics = [#tpu.dimension_semantics<parallel>, #tpu.dimension_semantics<parallel>, #tpu.dimension_semantics<arbitrary>], iteration_bounds = array<i64: 2, 1, 3>, scalar_prefetch = 0 : i64, scratch_operands = 1 : i64, tpu.core_type = #tpu.core_type<tc>, window_params = [{transform_indices = @transform_0, window_bounds = array<i64: 16, 384>}, {transform_indices = @transform_1, window_bounds = array<i64: 384, 128>}, {transform_indices = @transform_2, window_bounds = array<i64: 1, 128>}, {transform_indices = @transform_3, window_bounds = array<i64: 16, 128>}]} {
    %c0_i32 = arith.constant 0 : i32
    %0 = arith.cmpi eq, %arg2, %c0_i32 : i32
    %1 = arith.extui %0 : i1 to i32
    %c0_i32_0 = arith.constant 0 : i32
    %2 = arith.cmpi ne, %1, %c0_i32_0 : i32
    scf.if %2 {
      %cst_9 = arith.constant 0.000000e+00 : f32
      %12 = vector.broadcast %cst_9 : f32 to vector<16x128xf32>
      %c0_10 = arith.constant 0 : index
      %c0_11 = arith.constant 0 : index
      %13 = vector.load %arg7[%c0_10, %c0_11] : memref<16x128xf32, #tpu.memory_space<vmem>>, vector<16x128xf32>
      tpu.vector_store %arg7[%c0_10, %c0_11], %12 {strides = array<i32>} : memref<16x128xf32, #tpu.memory_space<vmem>>, vector<16x128xf32>,
    } else {
    }
    %c0 = arith.constant 0 : index
    %c0_1 = arith.constant 0 : index
    %3 = vector.load %arg7[%c0, %c0_1] : memref<16x128xf32, #tpu.memory_space<vmem>>, vector<16x128xf32>
    %c0_2 = arith.constant 0 : index
    %c0_3 = arith.constant 0 : index
    %4 = vector.load %arg3[%c0_2, %c0_3] : memref<16x384xbf16, #tpu.memory_space<vmem>>, vector<16x384xbf16>
    %c0_4 = arith.constant 0 : index
    %c0_5 = arith.constant 0 : index
    %5 = vector.load %arg4[%c0_4, %c0_5] : memref<384x128xbf16, #tpu.memory_space<vmem>>, vector<384x128xbf16>
    %cst = arith.constant dense<0.000000e+00> : vector<16x128xf32>
    %6 = tpu.matmul %4, %5, %cst {dimension_numbers = #tpu.dot_dimension_numbers<[1], [0], [0], [1], [0, 0, 1, 1], [], []>} : vector<16x384xbf16>, vector<384x128xbf16>, vector<16x128xf32> -> vector<16x128xf32>
    %7 = arith.addf %3, %6 : vector<16x128xf32>
    %c0_6 = arith.constant 0 : index
    %c0_7 = arith.constant 0 : index
    %8 = vector.load %arg7[%c0_6, %c0_7] : memref<16x128xf32, #tpu.memory_space<vmem>>, vector<16x128xf32>
    tpu.vector_store %arg7[%c0_6, %c0_7], %7 {strides = array<i32>} : memref<16x128xf32, #tpu.memory_space<vmem>>, vector<16x128xf32>,
    %c2_i32 = arith.constant 2 : i32
    %9 = arith.cmpi eq, %arg2, %c2_i32 : i32
    %10 = arith.extui %9 : i1 to i32
    %c0_i32_8 = arith.constant 0 : i32
    %11 = arith.cmpi ne, %10, %c0_i32_8 : i32
    scf.if %11 {
      %c0_9 = arith.constant 0 : index
      %c0_10 = arith.constant 0 : index
      %12 = vector.load %arg7[%c0_9, %c0_10] : memref<16x128xf32, #tpu.memory_space<vmem>>, vector<16x128xf32>
      %c0_11 = arith.constant 0 : index
      %c0_12 = arith.constant 0 : index
      %13 = vector.load %arg5[%c0_11, %c0_12] : memref<1x128xf32, #tpu.memory_space<vmem>>, vector<1x128xf32>
      %14 = vector.broadcast %13 : vector<1x128xf32> to vector<16x128xf32>
      %15 = arith.addf %12, %14 : vector<16x128xf32>
      %cst_13 = arith.constant 0.000000e+00 : f32
      %16 = vector.broadcast %cst_13 : f32 to vector<16x128xf32>
      %17 = arith.maximumf %15, %16 : vector<16x128xf32>
      %c0_14 = arith.constant 0 : index
      %c0_15 = arith.constant 0 : index
      %18 = vector.load %arg6[%c0_14, %c0_15] : memref<16x128xf32, #tpu.memory_space<vmem>>, vector<16x128xf32>
      tpu.vector_store %arg6[%c0_14, %c0_15], %17 {strides = array<i32>} : memref<16x128xf32, #tpu.memory_space<vmem>>, vector<16x128xf32>,
    } else {
    }
    return
  }
  func.func @transform_0(%arg0: i32, %arg1: i32, %arg2: i32) -> (i32, i32) {
    %c0_i32 = arith.constant 0 : i32
    return %arg0, %arg2 : i32, i32
  }
  func.func @transform_1(%arg0: i32, %arg1: i32, %arg2: i32) -> (i32, i32) {
    %c0_i32 = arith.constant 0 : i32
    return %arg2, %arg1 : i32, i32
  }
  func.func @transform_2(%arg0: i32, %arg1: i32, %arg2: i32) -> (i32, i32) {
    %c0_i32 = arith.constant 0 : i32
    %c0_i32_0 = arith.constant 0 : i32
    return %c0_i32, %arg1 : i32, i32
  }
  func.func @transform_3(%arg0: i32, %arg1: i32, %arg2: i32) -> (i32, i32) {
    %c0_i32 = arith.constant 0 : i32
    return %arg0, %arg1 : i32, i32
  }
}

module attributes {stable_mosaic.version = 11 : i64} {
  func.func @_mm_kernel(%arg0: i32, %arg1: i32, %arg2: i32, %arg3: memref<16x128xbf16, #tpu.memory_space<vmem>>, %arg4: memref<128x128xbf16, #tpu.memory_space<vmem>>, %arg5: memref<1x128xf32, #tpu.memory_space<vmem>>, %arg6: memref<16x128xf32, #tpu.memory_space<vmem>>, %arg7: memref<16x128xf32, #tpu.memory_space<vmem>>) attributes {dimension_semantics = [#tpu.dimension_semantics<parallel>, #tpu.dimension_semantics<parallel>, #tpu.dimension_semantics<arbitrary>], iteration_bounds = array<i64: 2, 1, 1>, scalar_prefetch = 0 : i64, scratch_operands = 1 : i64, tpu.core_type = #tpu.core_type<tc>, window_params = [{transform_indices = @transform_0, window_bounds = array<i64: 16, 128>}, {transform_indices = @transform_1, window_bounds = array<i64: 128, 128>}, {transform_indices = @transform_2, window_bounds = array<i64: 1, 128>}, {transform_indices = @transform_3, window_bounds = array<i64: 16, 128>}]} {
    %c0_i32 = arith.constant 0 : i32
    %0 = arith.cmpi eq, %arg2, %c0_i32 : i32
    %1 = arith.extui %0 : i1 to i32
    %c0_i32_0 = arith.constant 0 : i32
    %2 = arith.cmpi ne, %1, %c0_i32_0 : i32
    scf.if %2 {
      %cst_10 = arith.constant 0.000000e+00 : f32
      %12 = vector.broadcast %cst_10 : f32 to vector<16x128xf32>
      %c0_11 = arith.constant 0 : index
      %c0_12 = arith.constant 0 : index
      %13 = vector.load %arg7[%c0_11, %c0_12] : memref<16x128xf32, #tpu.memory_space<vmem>>, vector<16x128xf32>
      tpu.vector_store %arg7[%c0_11, %c0_12], %12 {strides = array<i32>} : memref<16x128xf32, #tpu.memory_space<vmem>>, vector<16x128xf32>,
    } else {
    }
    %c0 = arith.constant 0 : index
    %c0_1 = arith.constant 0 : index
    %3 = vector.load %arg7[%c0, %c0_1] : memref<16x128xf32, #tpu.memory_space<vmem>>, vector<16x128xf32>
    %c0_2 = arith.constant 0 : index
    %c0_3 = arith.constant 0 : index
    %4 = vector.load %arg3[%c0_2, %c0_3] : memref<16x128xbf16, #tpu.memory_space<vmem>>, vector<16x128xbf16>
    %c0_4 = arith.constant 0 : index
    %c0_5 = arith.constant 0 : index
    %5 = vector.load %arg4[%c0_4, %c0_5] : memref<128x128xbf16, #tpu.memory_space<vmem>>, vector<128x128xbf16>
    %cst = arith.constant dense<0.000000e+00> : vector<16x128xf32>
    %6 = tpu.matmul %4, %5, %cst {dimension_numbers = #tpu.dot_dimension_numbers<[1], [0], [0], [1], [0, 0, 1, 1], [], []>} : vector<16x128xbf16>, vector<128x128xbf16>, vector<16x128xf32> -> vector<16x128xf32>
    %7 = arith.addf %3, %6 : vector<16x128xf32>
    %c0_6 = arith.constant 0 : index
    %c0_7 = arith.constant 0 : index
    %8 = vector.load %arg7[%c0_6, %c0_7] : memref<16x128xf32, #tpu.memory_space<vmem>>, vector<16x128xf32>
    tpu.vector_store %arg7[%c0_6, %c0_7], %7 {strides = array<i32>} : memref<16x128xf32, #tpu.memory_space<vmem>>, vector<16x128xf32>,
    %c0_i32_8 = arith.constant 0 : i32
    %9 = arith.cmpi eq, %arg2, %c0_i32_8 : i32
    %10 = arith.extui %9 : i1 to i32
    %c0_i32_9 = arith.constant 0 : i32
    %11 = arith.cmpi ne, %10, %c0_i32_9 : i32
    scf.if %11 {
      %c0_10 = arith.constant 0 : index
      %c0_11 = arith.constant 0 : index
      %12 = vector.load %arg7[%c0_10, %c0_11] : memref<16x128xf32, #tpu.memory_space<vmem>>, vector<16x128xf32>
      %c0_12 = arith.constant 0 : index
      %c0_13 = arith.constant 0 : index
      %13 = vector.load %arg5[%c0_12, %c0_13] : memref<1x128xf32, #tpu.memory_space<vmem>>, vector<1x128xf32>
      %14 = vector.broadcast %13 : vector<1x128xf32> to vector<16x128xf32>
      %15 = arith.addf %12, %14 : vector<16x128xf32>
      %c0_14 = arith.constant 0 : index
      %c0_15 = arith.constant 0 : index
      %16 = vector.load %arg6[%c0_14, %c0_15] : memref<16x128xf32, #tpu.memory_space<vmem>>, vector<16x128xf32>
      tpu.vector_store %arg6[%c0_14, %c0_15], %15 {strides = array<i32>} : memref<16x128xf32, #tpu.memory_space<vmem>>, vector<16x128xf32>,
    } else {
    }
    return
  }
  func.func @transform_0(%arg0: i32, %arg1: i32, %arg2: i32) -> (i32, i32) {
    %c0_i32 = arith.constant 0 : i32
    return %arg0, %arg2 : i32, i32
  }
  func.func @transform_1(%arg0: i32, %arg1: i32, %arg2: i32) -> (i32, i32) {
    %c0_i32 = arith.constant 0 : i32
    return %arg2, %arg1 : i32, i32
  }
  func.func @transform_2(%arg0: i32, %arg1: i32, %arg2: i32) -> (i32, i32) {
    %c0_i32 = arith.constant 0 : i32
    %c0_i32_0 = arith.constant 0 : i32
    return %c0_i32, %arg1 : i32, i32
  }
  func.func @transform_3(%arg0: i32, %arg1: i32, %arg2: i32) -> (i32, i32) {
    %c0_i32 = arith.constant 0 : i32
    return %arg0, %arg1 : i32, i32
  }
}

module attributes {stable_mosaic.version = 11 : i64} {
  func.func @_mm_kernel(%arg0: i32, %arg1: i32, %arg2: i32, %arg3: memref<16x384xbf16, #tpu.memory_space<vmem>>, %arg4: memref<384x128xbf16, #tpu.memory_space<vmem>>, %arg5: memref<1x128xf32, #tpu.memory_space<vmem>>, %arg6: memref<16x128xf32, #tpu.memory_space<vmem>>, %arg7: memref<16x128xf32, #tpu.memory_space<vmem>>, %arg8: memref<16x128xf32, #tpu.memory_space<vmem>>) attributes {dimension_semantics = [#tpu.dimension_semantics<parallel>, #tpu.dimension_semantics<parallel>, #tpu.dimension_semantics<arbitrary>], iteration_bounds = array<i64: 2, 1, 3>, scalar_prefetch = 0 : i64, scratch_operands = 1 : i64, tpu.core_type = #tpu.core_type<tc>, window_params = [{transform_indices = @transform_0, window_bounds = array<i64: 16, 384>}, {transform_indices = @transform_1, window_bounds = array<i64: 384, 128>}, {transform_indices = @transform_2, window_bounds = array<i64: 1, 128>}, {transform_indices = @transform_3, window_bounds = array<i64: 16, 128>}, {transform_indices = @transform_4, window_bounds = array<i64: 16, 128>}]} {
    %c0_i32 = arith.constant 0 : i32
    %0 = arith.cmpi eq, %arg2, %c0_i32 : i32
    %1 = arith.extui %0 : i1 to i32
    %c0_i32_0 = arith.constant 0 : i32
    %2 = arith.cmpi ne, %1, %c0_i32_0 : i32
    scf.if %2 {
      %cst_9 = arith.constant 0.000000e+00 : f32
      %12 = vector.broadcast %cst_9 : f32 to vector<16x128xf32>
      %c0_10 = arith.constant 0 : index
      %c0_11 = arith.constant 0 : index
      %13 = vector.load %arg8[%c0_10, %c0_11] : memref<16x128xf32, #tpu.memory_space<vmem>>, vector<16x128xf32>
      tpu.vector_store %arg8[%c0_10, %c0_11], %12 {strides = array<i32>} : memref<16x128xf32, #tpu.memory_space<vmem>>, vector<16x128xf32>,
    } else {
    }
    %c0 = arith.constant 0 : index
    %c0_1 = arith.constant 0 : index
    %3 = vector.load %arg8[%c0, %c0_1] : memref<16x128xf32, #tpu.memory_space<vmem>>, vector<16x128xf32>
    %c0_2 = arith.constant 0 : index
    %c0_3 = arith.constant 0 : index
    %4 = vector.load %arg3[%c0_2, %c0_3] : memref<16x384xbf16, #tpu.memory_space<vmem>>, vector<16x384xbf16>
    %c0_4 = arith.constant 0 : index
    %c0_5 = arith.constant 0 : index
    %5 = vector.load %arg4[%c0_4, %c0_5] : memref<384x128xbf16, #tpu.memory_space<vmem>>, vector<384x128xbf16>
    %cst = arith.constant dense<0.000000e+00> : vector<16x128xf32>
    %6 = tpu.matmul %4, %5, %cst {dimension_numbers = #tpu.dot_dimension_numbers<[1], [0], [0], [1], [0, 0, 1, 1], [], []>} : vector<16x384xbf16>, vector<384x128xbf16>, vector<16x128xf32> -> vector<16x128xf32>
    %7 = arith.addf %3, %6 : vector<16x128xf32>
    %c0_6 = arith.constant 0 : index
    %c0_7 = arith.constant 0 : index
    %8 = vector.load %arg8[%c0_6, %c0_7] : memref<16x128xf32, #tpu.memory_space<vmem>>, vector<16x128xf32>
    tpu.vector_store %arg8[%c0_6, %c0_7], %7 {strides = array<i32>} : memref<16x128xf32, #tpu.memory_space<vmem>>, vector<16x128xf32>,
    %c2_i32 = arith.constant 2 : i32
    %9 = arith.cmpi eq, %arg2, %c2_i32 : i32
    %10 = arith.extui %9 : i1 to i32
    %c0_i32_8 = arith.constant 0 : i32
    %11 = arith.cmpi ne, %10, %c0_i32_8 : i32
    scf.if %11 {
      %c0_9 = arith.constant 0 : index
      %c0_10 = arith.constant 0 : index
      %12 = vector.load %arg8[%c0_9, %c0_10] : memref<16x128xf32, #tpu.memory_space<vmem>>, vector<16x128xf32>
      %c0_11 = arith.constant 0 : index
      %c0_12 = arith.constant 0 : index
      %13 = vector.load %arg5[%c0_11, %c0_12] : memref<1x128xf32, #tpu.memory_space<vmem>>, vector<1x128xf32>
      %14 = vector.broadcast %13 : vector<1x128xf32> to vector<16x128xf32>
      %15 = arith.addf %12, %14 : vector<16x128xf32>
      %c0_13 = arith.constant 0 : index
      %c0_14 = arith.constant 0 : index
      %16 = vector.load %arg6[%c0_13, %c0_14] : memref<16x128xf32, #tpu.memory_space<vmem>>, vector<16x128xf32>
      %17 = arith.addf %15, %16 : vector<16x128xf32>
      %cst_15 = arith.constant 0.000000e+00 : f32
      %18 = vector.broadcast %cst_15 : f32 to vector<16x128xf32>
      %19 = arith.maximumf %17, %18 : vector<16x128xf32>
      %c0_16 = arith.constant 0 : index
      %c0_17 = arith.constant 0 : index
      %20 = vector.load %arg7[%c0_16, %c0_17] : memref<16x128xf32, #tpu.memory_space<vmem>>, vector<16x128xf32>
      tpu.vector_store %arg7[%c0_16, %c0_17], %19 {strides = array<i32>} : memref<16x128xf32, #tpu.memory_space<vmem>>, vector<16x128xf32>,
    } else {
    }
    return
  }
  func.func @transform_0(%arg0: i32, %arg1: i32, %arg2: i32) -> (i32, i32) {
    %c0_i32 = arith.constant 0 : i32
    return %arg0, %arg2 : i32, i32
  }
  func.func @transform_1(%arg0: i32, %arg1: i32, %arg2: i32) -> (i32, i32) {
    %c0_i32 = arith.constant 0 : i32
    return %arg2, %arg1 : i32, i32
  }
  func.func @transform_2(%arg0: i32, %arg1: i32, %arg2: i32) -> (i32, i32) {
    %c0_i32 = arith.constant 0 : i32
    %c0_i32_0 = arith.constant 0 : i32
    return %c0_i32, %arg1 : i32, i32
  }
  func.func @transform_3(%arg0: i32, %arg1: i32, %arg2: i32) -> (i32, i32) {
    %c0_i32 = arith.constant 0 : i32
    return %arg0, %arg1 : i32, i32
  }
  func.func @transform_4(%arg0: i32, %arg1: i32, %arg2: i32) -> (i32, i32) {
    %c0_i32 = arith.constant 0 : i32
    return %arg0, %arg1 : i32, i32
  }
}

module attributes {stable_mosaic.version = 11 : i64} {
  func.func @_mm_kernel(%arg0: i32, %arg1: i32, %arg2: i32, %arg3: memref<8x384xbf16, #tpu.memory_space<vmem>>, %arg4: memref<384x128xbf16, #tpu.memory_space<vmem>>, %arg5: memref<1x128xf32, #tpu.memory_space<vmem>>, %arg6: memref<8x128xf32, #tpu.memory_space<vmem>>, %arg7: memref<8x128xf32, #tpu.memory_space<vmem>>) attributes {dimension_semantics = [#tpu.dimension_semantics<parallel>, #tpu.dimension_semantics<parallel>, #tpu.dimension_semantics<arbitrary>], iteration_bounds = array<i64: 1, 2, 3>, scalar_prefetch = 0 : i64, scratch_operands = 1 : i64, tpu.core_type = #tpu.core_type<tc>, window_params = [{transform_indices = @transform_0, window_bounds = array<i64: 8, 384>}, {transform_indices = @transform_1, window_bounds = array<i64: 384, 128>}, {transform_indices = @transform_2, window_bounds = array<i64: 1, 128>}, {transform_indices = @transform_3, window_bounds = array<i64: 8, 128>}]} {
    %c0_i32 = arith.constant 0 : i32
    %0 = arith.cmpi eq, %arg2, %c0_i32 : i32
    %1 = arith.extui %0 : i1 to i32
    %c0_i32_0 = arith.constant 0 : i32
    %2 = arith.cmpi ne, %1, %c0_i32_0 : i32
    scf.if %2 {
      %cst_9 = arith.constant 0.000000e+00 : f32
      %12 = vector.broadcast %cst_9 : f32 to vector<8x128xf32>
      %c0_10 = arith.constant 0 : index
      %c0_11 = arith.constant 0 : index
      %13 = vector.load %arg7[%c0_10, %c0_11] : memref<8x128xf32, #tpu.memory_space<vmem>>, vector<8x128xf32>
      tpu.vector_store %arg7[%c0_10, %c0_11], %12 {strides = array<i32>} : memref<8x128xf32, #tpu.memory_space<vmem>>, vector<8x128xf32>,
    } else {
    }
    %c0 = arith.constant 0 : index
    %c0_1 = arith.constant 0 : index
    %3 = vector.load %arg7[%c0, %c0_1] : memref<8x128xf32, #tpu.memory_space<vmem>>, vector<8x128xf32>
    %c0_2 = arith.constant 0 : index
    %c0_3 = arith.constant 0 : index
    %4 = vector.load %arg3[%c0_2, %c0_3] : memref<8x384xbf16, #tpu.memory_space<vmem>>, vector<8x384xbf16>
    %c0_4 = arith.constant 0 : index
    %c0_5 = arith.constant 0 : index
    %5 = vector.load %arg4[%c0_4, %c0_5] : memref<384x128xbf16, #tpu.memory_space<vmem>>, vector<384x128xbf16>
    %cst = arith.constant dense<0.000000e+00> : vector<8x128xf32>
    %6 = tpu.matmul %4, %5, %cst {dimension_numbers = #tpu.dot_dimension_numbers<[1], [0], [0], [1], [0, 0, 1, 1], [], []>} : vector<8x384xbf16>, vector<384x128xbf16>, vector<8x128xf32> -> vector<8x128xf32>
    %7 = arith.addf %3, %6 : vector<8x128xf32>
    %c0_6 = arith.constant 0 : index
    %c0_7 = arith.constant 0 : index
    %8 = vector.load %arg7[%c0_6, %c0_7] : memref<8x128xf32, #tpu.memory_space<vmem>>, vector<8x128xf32>
    tpu.vector_store %arg7[%c0_6, %c0_7], %7 {strides = array<i32>} : memref<8x128xf32, #tpu.memory_space<vmem>>, vector<8x128xf32>,
    %c2_i32 = arith.constant 2 : i32
    %9 = arith.cmpi eq, %arg2, %c2_i32 : i32
    %10 = arith.extui %9 : i1 to i32
    %c0_i32_8 = arith.constant 0 : i32
    %11 = arith.cmpi ne, %10, %c0_i32_8 : i32
    scf.if %11 {
      %c0_9 = arith.constant 0 : index
      %c0_10 = arith.constant 0 : index
      %12 = vector.load %arg7[%c0_9, %c0_10] : memref<8x128xf32, #tpu.memory_space<vmem>>, vector<8x128xf32>
      %c0_11 = arith.constant 0 : index
      %c0_12 = arith.constant 0 : index
      %13 = vector.load %arg5[%c0_11, %c0_12] : memref<1x128xf32, #tpu.memory_space<vmem>>, vector<1x128xf32>
      %14 = vector.broadcast %13 : vector<1x128xf32> to vector<8x128xf32>
      %15 = arith.addf %12, %14 : vector<8x128xf32>
      %cst_13 = arith.constant 0.000000e+00 : f32
      %16 = vector.broadcast %cst_13 : f32 to vector<8x128xf32>
      %17 = arith.maximumf %15, %16 : vector<8x128xf32>
      %c0_14 = arith.constant 0 : index
      %c0_15 = arith.constant 0 : index
      %18 = vector.load %arg6[%c0_14, %c0_15] : memref<8x128xf32, #tpu.memory_space<vmem>>, vector<8x128xf32>
      tpu.vector_store %arg6[%c0_14, %c0_15], %17 {strides = array<i32>} : memref<8x128xf32, #tpu.memory_space<vmem>>, vector<8x128xf32>,
    } else {
    }
    return
  }
  func.func @transform_0(%arg0: i32, %arg1: i32, %arg2: i32) -> (i32, i32) {
    %c0_i32 = arith.constant 0 : i32
    return %arg0, %arg2 : i32, i32
  }
  func.func @transform_1(%arg0: i32, %arg1: i32, %arg2: i32) -> (i32, i32) {
    %c0_i32 = arith.constant 0 : i32
    return %arg2, %arg1 : i32, i32
  }
  func.func @transform_2(%arg0: i32, %arg1: i32, %arg2: i32) -> (i32, i32) {
    %c0_i32 = arith.constant 0 : i32
    %c0_i32_0 = arith.constant 0 : i32
    return %c0_i32, %arg1 : i32, i32
  }
  func.func @transform_3(%arg0: i32, %arg1: i32, %arg2: i32) -> (i32, i32) {
    %c0_i32 = arith.constant 0 : i32
    return %arg0, %arg1 : i32, i32
  }
}

module attributes {stable_mosaic.version = 11 : i64} {
  func.func @_mm_kernel(%arg0: i32, %arg1: i32, %arg2: i32, %arg3: memref<8x768xbf16, #tpu.memory_space<vmem>>, %arg4: memref<768x128xbf16, #tpu.memory_space<vmem>>, %arg5: memref<1x128xf32, #tpu.memory_space<vmem>>, %arg6: memref<8x128xf32, #tpu.memory_space<vmem>>, %arg7: memref<8x128xf32, #tpu.memory_space<vmem>>, %arg8: memref<8x128xf32, #tpu.memory_space<vmem>>) attributes {dimension_semantics = [#tpu.dimension_semantics<parallel>, #tpu.dimension_semantics<parallel>, #tpu.dimension_semantics<arbitrary>], iteration_bounds = array<i64: 1, 2, 3>, scalar_prefetch = 0 : i64, scratch_operands = 1 : i64, tpu.core_type = #tpu.core_type<tc>, window_params = [{transform_indices = @transform_0, window_bounds = array<i64: 8, 768>}, {transform_indices = @transform_1, window_bounds = array<i64: 768, 128>}, {transform_indices = @transform_2, window_bounds = array<i64: 1, 128>}, {transform_indices = @transform_3, window_bounds = array<i64: 8, 128>}, {transform_indices = @transform_4, window_bounds = array<i64: 8, 128>}]} {
    %c0_i32 = arith.constant 0 : i32
    %0 = arith.cmpi eq, %arg2, %c0_i32 : i32
    %1 = arith.extui %0 : i1 to i32
    %c0_i32_0 = arith.constant 0 : i32
    %2 = arith.cmpi ne, %1, %c0_i32_0 : i32
    scf.if %2 {
      %cst_9 = arith.constant 0.000000e+00 : f32
      %12 = vector.broadcast %cst_9 : f32 to vector<8x128xf32>
      %c0_10 = arith.constant 0 : index
      %c0_11 = arith.constant 0 : index
      %13 = vector.load %arg8[%c0_10, %c0_11] : memref<8x128xf32, #tpu.memory_space<vmem>>, vector<8x128xf32>
      tpu.vector_store %arg8[%c0_10, %c0_11], %12 {strides = array<i32>} : memref<8x128xf32, #tpu.memory_space<vmem>>, vector<8x128xf32>,
    } else {
    }
    %c0 = arith.constant 0 : index
    %c0_1 = arith.constant 0 : index
    %3 = vector.load %arg8[%c0, %c0_1] : memref<8x128xf32, #tpu.memory_space<vmem>>, vector<8x128xf32>
    %c0_2 = arith.constant 0 : index
    %c0_3 = arith.constant 0 : index
    %4 = vector.load %arg3[%c0_2, %c0_3] : memref<8x768xbf16, #tpu.memory_space<vmem>>, vector<8x768xbf16>
    %c0_4 = arith.constant 0 : index
    %c0_5 = arith.constant 0 : index
    %5 = vector.load %arg4[%c0_4, %c0_5] : memref<768x128xbf16, #tpu.memory_space<vmem>>, vector<768x128xbf16>
    %cst = arith.constant dense<0.000000e+00> : vector<8x128xf32>
    %6 = tpu.matmul %4, %5, %cst {dimension_numbers = #tpu.dot_dimension_numbers<[1], [0], [0], [1], [0, 0, 1, 1], [], []>} : vector<8x768xbf16>, vector<768x128xbf16>, vector<8x128xf32> -> vector<8x128xf32>
    %7 = arith.addf %3, %6 : vector<8x128xf32>
    %c0_6 = arith.constant 0 : index
    %c0_7 = arith.constant 0 : index
    %8 = vector.load %arg8[%c0_6, %c0_7] : memref<8x128xf32, #tpu.memory_space<vmem>>, vector<8x128xf32>
    tpu.vector_store %arg8[%c0_6, %c0_7], %7 {strides = array<i32>} : memref<8x128xf32, #tpu.memory_space<vmem>>, vector<8x128xf32>,
    %c2_i32 = arith.constant 2 : i32
    %9 = arith.cmpi eq, %arg2, %c2_i32 : i32
    %10 = arith.extui %9 : i1 to i32
    %c0_i32_8 = arith.constant 0 : i32
    %11 = arith.cmpi ne, %10, %c0_i32_8 : i32
    scf.if %11 {
      %c0_9 = arith.constant 0 : index
      %c0_10 = arith.constant 0 : index
      %12 = vector.load %arg8[%c0_9, %c0_10] : memref<8x128xf32, #tpu.memory_space<vmem>>, vector<8x128xf32>
      %c0_11 = arith.constant 0 : index
      %c0_12 = arith.constant 0 : index
      %13 = vector.load %arg5[%c0_11, %c0_12] : memref<1x128xf32, #tpu.memory_space<vmem>>, vector<1x128xf32>
      %14 = vector.broadcast %13 : vector<1x128xf32> to vector<8x128xf32>
      %15 = arith.addf %12, %14 : vector<8x128xf32>
      %c0_13 = arith.constant 0 : index
      %c0_14 = arith.constant 0 : index
      %16 = vector.load %arg6[%c0_13, %c0_14] : memref<8x128xf32, #tpu.memory_space<vmem>>, vector<8x128xf32>
      %17 = arith.addf %15, %16 : vector<8x128xf32>
      %cst_15 = arith.constant 0.000000e+00 : f32
      %18 = vector.broadcast %cst_15 : f32 to vector<8x128xf32>
      %19 = arith.maximumf %17, %18 : vector<8x128xf32>
      %c0_16 = arith.constant 0 : index
      %c0_17 = arith.constant 0 : index
      %20 = vector.load %arg7[%c0_16, %c0_17] : memref<8x128xf32, #tpu.memory_space<vmem>>, vector<8x128xf32>
      tpu.vector_store %arg7[%c0_16, %c0_17], %19 {strides = array<i32>} : memref<8x128xf32, #tpu.memory_space<vmem>>, vector<8x128xf32>,
    } else {
    }
    return
  }
  func.func @transform_0(%arg0: i32, %arg1: i32, %arg2: i32) -> (i32, i32) {
    %c0_i32 = arith.constant 0 : i32
    return %arg0, %arg2 : i32, i32
  }
  func.func @transform_1(%arg0: i32, %arg1: i32, %arg2: i32) -> (i32, i32) {
    %c0_i32 = arith.constant 0 : i32
    return %arg2, %arg1 : i32, i32
  }
  func.func @transform_2(%arg0: i32, %arg1: i32, %arg2: i32) -> (i32, i32) {
    %c0_i32 = arith.constant 0 : i32
    %c0_i32_0 = arith.constant 0 : i32
    return %c0_i32, %arg1 : i32, i32
  }
  func.func @transform_3(%arg0: i32, %arg1: i32, %arg2: i32) -> (i32, i32) {
    %c0_i32 = arith.constant 0 : i32
    return %arg0, %arg1 : i32, i32
  }
  func.func @transform_4(%arg0: i32, %arg1: i32, %arg2: i32) -> (i32, i32) {
    %c0_i32 = arith.constant 0 : i32
    return %arg0, %arg1 : i32, i32
  }
}

module attributes {stable_mosaic.version = 11 : i64} {
  func.func @_mm_kernel(%arg0: i32, %arg1: i32, %arg2: i32, %arg3: memref<8x768xbf16, #tpu.memory_space<vmem>>, %arg4: memref<768x128xbf16, #tpu.memory_space<vmem>>, %arg5: memref<1x128xf32, #tpu.memory_space<vmem>>, %arg6: memref<8x128xf32, #tpu.memory_space<vmem>>, %arg7: memref<8x128xf32, #tpu.memory_space<vmem>>) attributes {dimension_semantics = [#tpu.dimension_semantics<parallel>, #tpu.dimension_semantics<parallel>, #tpu.dimension_semantics<arbitrary>], iteration_bounds = array<i64: 1, 2, 3>, scalar_prefetch = 0 : i64, scratch_operands = 1 : i64, tpu.core_type = #tpu.core_type<tc>, window_params = [{transform_indices = @transform_0, window_bounds = array<i64: 8, 768>}, {transform_indices = @transform_1, window_bounds = array<i64: 768, 128>}, {transform_indices = @transform_2, window_bounds = array<i64: 1, 128>}, {transform_indices = @transform_3, window_bounds = array<i64: 8, 128>}]} {
    %c0_i32 = arith.constant 0 : i32
    %0 = arith.cmpi eq, %arg2, %c0_i32 : i32
    %1 = arith.extui %0 : i1 to i32
    %c0_i32_0 = arith.constant 0 : i32
    %2 = arith.cmpi ne, %1, %c0_i32_0 : i32
    scf.if %2 {
      %cst_9 = arith.constant 0.000000e+00 : f32
      %12 = vector.broadcast %cst_9 : f32 to vector<8x128xf32>
      %c0_10 = arith.constant 0 : index
      %c0_11 = arith.constant 0 : index
      %13 = vector.load %arg7[%c0_10, %c0_11] : memref<8x128xf32, #tpu.memory_space<vmem>>, vector<8x128xf32>
      tpu.vector_store %arg7[%c0_10, %c0_11], %12 {strides = array<i32>} : memref<8x128xf32, #tpu.memory_space<vmem>>, vector<8x128xf32>,
    } else {
    }
    %c0 = arith.constant 0 : index
    %c0_1 = arith.constant 0 : index
    %3 = vector.load %arg7[%c0, %c0_1] : memref<8x128xf32, #tpu.memory_space<vmem>>, vector<8x128xf32>
    %c0_2 = arith.constant 0 : index
    %c0_3 = arith.constant 0 : index
    %4 = vector.load %arg3[%c0_2, %c0_3] : memref<8x768xbf16, #tpu.memory_space<vmem>>, vector<8x768xbf16>
    %c0_4 = arith.constant 0 : index
    %c0_5 = arith.constant 0 : index
    %5 = vector.load %arg4[%c0_4, %c0_5] : memref<768x128xbf16, #tpu.memory_space<vmem>>, vector<768x128xbf16>
    %cst = arith.constant dense<0.000000e+00> : vector<8x128xf32>
    %6 = tpu.matmul %4, %5, %cst {dimension_numbers = #tpu.dot_dimension_numbers<[1], [0], [0], [1], [0, 0, 1, 1], [], []>} : vector<8x768xbf16>, vector<768x128xbf16>, vector<8x128xf32> -> vector<8x128xf32>
    %7 = arith.addf %3, %6 : vector<8x128xf32>
    %c0_6 = arith.constant 0 : index
    %c0_7 = arith.constant 0 : index
    %8 = vector.load %arg7[%c0_6, %c0_7] : memref<8x128xf32, #tpu.memory_space<vmem>>, vector<8x128xf32>
    tpu.vector_store %arg7[%c0_6, %c0_7], %7 {strides = array<i32>} : memref<8x128xf32, #tpu.memory_space<vmem>>, vector<8x128xf32>,
    %c2_i32 = arith.constant 2 : i32
    %9 = arith.cmpi eq, %arg2, %c2_i32 : i32
    %10 = arith.extui %9 : i1 to i32
    %c0_i32_8 = arith.constant 0 : i32
    %11 = arith.cmpi ne, %10, %c0_i32_8 : i32
    scf.if %11 {
      %c0_9 = arith.constant 0 : index
      %c0_10 = arith.constant 0 : index
      %12 = vector.load %arg7[%c0_9, %c0_10] : memref<8x128xf32, #tpu.memory_space<vmem>>, vector<8x128xf32>
      %c0_11 = arith.constant 0 : index
      %c0_12 = arith.constant 0 : index
      %13 = vector.load %arg5[%c0_11, %c0_12] : memref<1x128xf32, #tpu.memory_space<vmem>>, vector<1x128xf32>
      %14 = vector.broadcast %13 : vector<1x128xf32> to vector<8x128xf32>
      %15 = arith.addf %12, %14 : vector<8x128xf32>
      %cst_13 = arith.constant 0.000000e+00 : f32
      %16 = vector.broadcast %cst_13 : f32 to vector<8x128xf32>
      %17 = arith.maximumf %15, %16 : vector<8x128xf32>
      %c0_14 = arith.constant 0 : index
      %c0_15 = arith.constant 0 : index
      %18 = vector.load %arg6[%c0_14, %c0_15] : memref<8x128xf32, #tpu.memory_space<vmem>>, vector<8x128xf32>
      tpu.vector_store %arg6[%c0_14, %c0_15], %17 {strides = array<i32>} : memref<8x128xf32, #tpu.memory_space<vmem>>, vector<8x128xf32>,
    } else {
    }
    return
  }
  func.func @transform_0(%arg0: i32, %arg1: i32, %arg2: i32) -> (i32, i32) {
    %c0_i32 = arith.constant 0 : i32
    return %arg0, %arg2 : i32, i32
  }
  func.func @transform_1(%arg0: i32, %arg1: i32, %arg2: i32) -> (i32, i32) {
    %c0_i32 = arith.constant 0 : i32
    return %arg2, %arg1 : i32, i32
  }
  func.func @transform_2(%arg0: i32, %arg1: i32, %arg2: i32) -> (i32, i32) {
    %c0_i32 = arith.constant 0 : i32
    %c0_i32_0 = arith.constant 0 : i32
    return %c0_i32, %arg1 : i32, i32
  }
  func.func @transform_3(%arg0: i32, %arg1: i32, %arg2: i32) -> (i32, i32) {
    %c0_i32 = arith.constant 0 : i32
    return %arg0, %arg1 : i32, i32
  }
}

module attributes {stable_mosaic.version = 11 : i64} {
  func.func @_mm_kernel(%arg0: i32, %arg1: i32, %arg2: i32, %arg3: memref<8x128xbf16, #tpu.memory_space<vmem>>, %arg4: memref<128x128xbf16, #tpu.memory_space<vmem>>, %arg5: memref<1x128xf32, #tpu.memory_space<vmem>>, %arg6: memref<8x128xf32, #tpu.memory_space<vmem>>, %arg7: memref<8x128xf32, #tpu.memory_space<vmem>>) attributes {dimension_semantics = [#tpu.dimension_semantics<parallel>, #tpu.dimension_semantics<parallel>, #tpu.dimension_semantics<arbitrary>], iteration_bounds = array<i64: 1, 2, 1>, scalar_prefetch = 0 : i64, scratch_operands = 1 : i64, tpu.core_type = #tpu.core_type<tc>, window_params = [{transform_indices = @transform_0, window_bounds = array<i64: 8, 128>}, {transform_indices = @transform_1, window_bounds = array<i64: 128, 128>}, {transform_indices = @transform_2, window_bounds = array<i64: 1, 128>}, {transform_indices = @transform_3, window_bounds = array<i64: 8, 128>}]} {
    %c0_i32 = arith.constant 0 : i32
    %0 = arith.cmpi eq, %arg2, %c0_i32 : i32
    %1 = arith.extui %0 : i1 to i32
    %c0_i32_0 = arith.constant 0 : i32
    %2 = arith.cmpi ne, %1, %c0_i32_0 : i32
    scf.if %2 {
      %cst_10 = arith.constant 0.000000e+00 : f32
      %12 = vector.broadcast %cst_10 : f32 to vector<8x128xf32>
      %c0_11 = arith.constant 0 : index
      %c0_12 = arith.constant 0 : index
      %13 = vector.load %arg7[%c0_11, %c0_12] : memref<8x128xf32, #tpu.memory_space<vmem>>, vector<8x128xf32>
      tpu.vector_store %arg7[%c0_11, %c0_12], %12 {strides = array<i32>} : memref<8x128xf32, #tpu.memory_space<vmem>>, vector<8x128xf32>,
    } else {
    }
    %c0 = arith.constant 0 : index
    %c0_1 = arith.constant 0 : index
    %3 = vector.load %arg7[%c0, %c0_1] : memref<8x128xf32, #tpu.memory_space<vmem>>, vector<8x128xf32>
    %c0_2 = arith.constant 0 : index
    %c0_3 = arith.constant 0 : index
    %4 = vector.load %arg3[%c0_2, %c0_3] : memref<8x128xbf16, #tpu.memory_space<vmem>>, vector<8x128xbf16>
    %c0_4 = arith.constant 0 : index
    %c0_5 = arith.constant 0 : index
    %5 = vector.load %arg4[%c0_4, %c0_5] : memref<128x128xbf16, #tpu.memory_space<vmem>>, vector<128x128xbf16>
    %cst = arith.constant dense<0.000000e+00> : vector<8x128xf32>
    %6 = tpu.matmul %4, %5, %cst {dimension_numbers = #tpu.dot_dimension_numbers<[1], [0], [0], [1], [0, 0, 1, 1], [], []>} : vector<8x128xbf16>, vector<128x128xbf16>, vector<8x128xf32> -> vector<8x128xf32>
    %7 = arith.addf %3, %6 : vector<8x128xf32>
    %c0_6 = arith.constant 0 : index
    %c0_7 = arith.constant 0 : index
    %8 = vector.load %arg7[%c0_6, %c0_7] : memref<8x128xf32, #tpu.memory_space<vmem>>, vector<8x128xf32>
    tpu.vector_store %arg7[%c0_6, %c0_7], %7 {strides = array<i32>} : memref<8x128xf32, #tpu.memory_space<vmem>>, vector<8x128xf32>,
    %c0_i32_8 = arith.constant 0 : i32
    %9 = arith.cmpi eq, %arg2, %c0_i32_8 : i32
    %10 = arith.extui %9 : i1 to i32
    %c0_i32_9 = arith.constant 0 : i32
    %11 = arith.cmpi ne, %10, %c0_i32_9 : i32
    scf.if %11 {
      %c0_10 = arith.constant 0 : index
      %c0_11 = arith.constant 0 : index
      %12 = vector.load %arg7[%c0_10, %c0_11] : memref<8x128xf32, #tpu.memory_space<vmem>>, vector<8x128xf32>
      %c0_12 = arith.constant 0 : index
      %c0_13 = arith.constant 0 : index
      %13 = vector.load %arg5[%c0_12, %c0_13] : memref<1x128xf32, #tpu.memory_space<vmem>>, vector<1x128xf32>
      %14 = vector.broadcast %13 : vector<1x128xf32> to vector<8x128xf32>
      %15 = arith.addf %12, %14 : vector<8x128xf32>
      %c0_14 = arith.constant 0 : index
      %c0_15 = arith.constant 0 : index
      %16 = vector.load %arg6[%c0_14, %c0_15] : memref<8x128xf32, #tpu.memory_space<vmem>>, vector<8x128xf32>
      tpu.vector_store %arg6[%c0_14, %c0_15], %15 {strides = array<i32>} : memref<8x128xf32, #tpu.memory_space<vmem>>, vector<8x128xf32>,
    } else {
    }
    return
  }
  func.func @transform_0(%arg0: i32, %arg1: i32, %arg2: i32) -> (i32, i32) {
    %c0_i32 = arith.constant 0 : i32
    return %arg0, %arg2 : i32, i32
  }
  func.func @transform_1(%arg0: i32, %arg1: i32, %arg2: i32) -> (i32, i32) {
    %c0_i32 = arith.constant 0 : i32
    return %arg2, %arg1 : i32, i32
  }
  func.func @transform_2(%arg0: i32, %arg1: i32, %arg2: i32) -> (i32, i32) {
    %c0_i32 = arith.constant 0 : i32
    %c0_i32_0 = arith.constant 0 : i32
    return %c0_i32, %arg1 : i32, i32
  }
  func.func @transform_3(%arg0: i32, %arg1: i32, %arg2: i32) -> (i32, i32) {
    %c0_i32 = arith.constant 0 : i32
    return %arg0, %arg1 : i32, i32
  }
}

module attributes {stable_mosaic.version = 11 : i64} {
  func.func @_mm_kernel(%arg0: i32, %arg1: i32, %arg2: i32, %arg3: memref<2x768xbf16, #tpu.memory_space<vmem>>, %arg4: memref<768x256xbf16, #tpu.memory_space<vmem>>, %arg5: memref<1x256xf32, #tpu.memory_space<vmem>>, %arg6: memref<2x256xf32, #tpu.memory_space<vmem>>, %arg7: memref<2x256xf32, #tpu.memory_space<vmem>>) attributes {dimension_semantics = [#tpu.dimension_semantics<parallel>, #tpu.dimension_semantics<parallel>, #tpu.dimension_semantics<arbitrary>], iteration_bounds = array<i64: 1, 2, 3>, scalar_prefetch = 0 : i64, scratch_operands = 1 : i64, tpu.core_type = #tpu.core_type<tc>, window_params = [{transform_indices = @transform_0, window_bounds = array<i64: 2, 768>}, {transform_indices = @transform_1, window_bounds = array<i64: 768, 256>}, {transform_indices = @transform_2, window_bounds = array<i64: 1, 256>}, {transform_indices = @transform_3, window_bounds = array<i64: 2, 256>}]} {
    %c0_i32 = arith.constant 0 : i32
    %0 = arith.cmpi eq, %arg2, %c0_i32 : i32
    %1 = arith.extui %0 : i1 to i32
    %c0_i32_0 = arith.constant 0 : i32
    %2 = arith.cmpi ne, %1, %c0_i32_0 : i32
    scf.if %2 {
      %cst_9 = arith.constant 0.000000e+00 : f32
      %12 = vector.broadcast %cst_9 : f32 to vector<2x256xf32>
      %c0_10 = arith.constant 0 : index
      %c0_11 = arith.constant 0 : index
      %13 = vector.load %arg7[%c0_10, %c0_11] : memref<2x256xf32, #tpu.memory_space<vmem>>, vector<2x256xf32>
      tpu.vector_store %arg7[%c0_10, %c0_11], %12 {strides = array<i32>} : memref<2x256xf32, #tpu.memory_space<vmem>>, vector<2x256xf32>,
    } else {
    }
    %c0 = arith.constant 0 : index
    %c0_1 = arith.constant 0 : index
    %3 = vector.load %arg7[%c0, %c0_1] : memref<2x256xf32, #tpu.memory_space<vmem>>, vector<2x256xf32>
    %c0_2 = arith.constant 0 : index
    %c0_3 = arith.constant 0 : index
    %4 = vector.load %arg3[%c0_2, %c0_3] : memref<2x768xbf16, #tpu.memory_space<vmem>>, vector<2x768xbf16>
    %c0_4 = arith.constant 0 : index
    %c0_5 = arith.constant 0 : index
    %5 = vector.load %arg4[%c0_4, %c0_5] : memref<768x256xbf16, #tpu.memory_space<vmem>>, vector<768x256xbf16>
    %cst = arith.constant dense<0.000000e+00> : vector<2x256xf32>
    %6 = tpu.matmul %4, %5, %cst {dimension_numbers = #tpu.dot_dimension_numbers<[1], [0], [0], [1], [0, 0, 1, 1], [], []>} : vector<2x768xbf16>, vector<768x256xbf16>, vector<2x256xf32> -> vector<2x256xf32>
    %7 = arith.addf %3, %6 : vector<2x256xf32>
    %c0_6 = arith.constant 0 : index
    %c0_7 = arith.constant 0 : index
    %8 = vector.load %arg7[%c0_6, %c0_7] : memref<2x256xf32, #tpu.memory_space<vmem>>, vector<2x256xf32>
    tpu.vector_store %arg7[%c0_6, %c0_7], %7 {strides = array<i32>} : memref<2x256xf32, #tpu.memory_space<vmem>>, vector<2x256xf32>,
    %c2_i32 = arith.constant 2 : i32
    %9 = arith.cmpi eq, %arg2, %c2_i32 : i32
    %10 = arith.extui %9 : i1 to i32
    %c0_i32_8 = arith.constant 0 : i32
    %11 = arith.cmpi ne, %10, %c0_i32_8 : i32
    scf.if %11 {
      %c0_9 = arith.constant 0 : index
      %c0_10 = arith.constant 0 : index
      %12 = vector.load %arg7[%c0_9, %c0_10] : memref<2x256xf32, #tpu.memory_space<vmem>>, vector<2x256xf32>
      %c0_11 = arith.constant 0 : index
      %c0_12 = arith.constant 0 : index
      %13 = vector.load %arg5[%c0_11, %c0_12] : memref<1x256xf32, #tpu.memory_space<vmem>>, vector<1x256xf32>
      %14 = vector.broadcast %13 : vector<1x256xf32> to vector<2x256xf32>
      %15 = arith.addf %12, %14 : vector<2x256xf32>
      %cst_13 = arith.constant 0.000000e+00 : f32
      %16 = vector.broadcast %cst_13 : f32 to vector<2x256xf32>
      %17 = arith.maximumf %15, %16 : vector<2x256xf32>
      %c0_14 = arith.constant 0 : index
      %c0_15 = arith.constant 0 : index
      %18 = vector.load %arg6[%c0_14, %c0_15] : memref<2x256xf32, #tpu.memory_space<vmem>>, vector<2x256xf32>
      tpu.vector_store %arg6[%c0_14, %c0_15], %17 {strides = array<i32>} : memref<2x256xf32, #tpu.memory_space<vmem>>, vector<2x256xf32>,
    } else {
    }
    return
  }
  func.func @transform_0(%arg0: i32, %arg1: i32, %arg2: i32) -> (i32, i32) {
    %c0_i32 = arith.constant 0 : i32
    return %arg0, %arg2 : i32, i32
  }
  func.func @transform_1(%arg0: i32, %arg1: i32, %arg2: i32) -> (i32, i32) {
    %c0_i32 = arith.constant 0 : i32
    return %arg2, %arg1 : i32, i32
  }
  func.func @transform_2(%arg0: i32, %arg1: i32, %arg2: i32) -> (i32, i32) {
    %c0_i32 = arith.constant 0 : i32
    %c0_i32_0 = arith.constant 0 : i32
    return %c0_i32, %arg1 : i32, i32
  }
  func.func @transform_3(%arg0: i32, %arg1: i32, %arg2: i32) -> (i32, i32) {
    %c0_i32 = arith.constant 0 : i32
    return %arg0, %arg1 : i32, i32
  }
}

module attributes {stable_mosaic.version = 11 : i64} {
  func.func @_mm_kernel(%arg0: i32, %arg1: i32, %arg2: i32, %arg3: memref<2x256xbf16, #tpu.memory_space<vmem>>, %arg4: memref<256x256xbf16, #tpu.memory_space<vmem>>, %arg5: memref<1x256xf32, #tpu.memory_space<vmem>>, %arg6: memref<2x256xf32, #tpu.memory_space<vmem>>, %arg7: memref<2x256xf32, #tpu.memory_space<vmem>>) attributes {dimension_semantics = [#tpu.dimension_semantics<parallel>, #tpu.dimension_semantics<parallel>, #tpu.dimension_semantics<arbitrary>], iteration_bounds = array<i64: 1, 2, 1>, scalar_prefetch = 0 : i64, scratch_operands = 1 : i64, tpu.core_type = #tpu.core_type<tc>, window_params = [{transform_indices = @transform_0, window_bounds = array<i64: 2, 256>}, {transform_indices = @transform_1, window_bounds = array<i64: 256, 256>}, {transform_indices = @transform_2, window_bounds = array<i64: 1, 256>}, {transform_indices = @transform_3, window_bounds = array<i64: 2, 256>}]} {
    %c0_i32 = arith.constant 0 : i32
    %0 = arith.cmpi eq, %arg2, %c0_i32 : i32
    %1 = arith.extui %0 : i1 to i32
    %c0_i32_0 = arith.constant 0 : i32
    %2 = arith.cmpi ne, %1, %c0_i32_0 : i32
    scf.if %2 {
      %cst_10 = arith.constant 0.000000e+00 : f32
      %12 = vector.broadcast %cst_10 : f32 to vector<2x256xf32>
      %c0_11 = arith.constant 0 : index
      %c0_12 = arith.constant 0 : index
      %13 = vector.load %arg7[%c0_11, %c0_12] : memref<2x256xf32, #tpu.memory_space<vmem>>, vector<2x256xf32>
      tpu.vector_store %arg7[%c0_11, %c0_12], %12 {strides = array<i32>} : memref<2x256xf32, #tpu.memory_space<vmem>>, vector<2x256xf32>,
    } else {
    }
    %c0 = arith.constant 0 : index
    %c0_1 = arith.constant 0 : index
    %3 = vector.load %arg7[%c0, %c0_1] : memref<2x256xf32, #tpu.memory_space<vmem>>, vector<2x256xf32>
    %c0_2 = arith.constant 0 : index
    %c0_3 = arith.constant 0 : index
    %4 = vector.load %arg3[%c0_2, %c0_3] : memref<2x256xbf16, #tpu.memory_space<vmem>>, vector<2x256xbf16>
    %c0_4 = arith.constant 0 : index
    %c0_5 = arith.constant 0 : index
    %5 = vector.load %arg4[%c0_4, %c0_5] : memref<256x256xbf16, #tpu.memory_space<vmem>>, vector<256x256xbf16>
    %cst = arith.constant dense<0.000000e+00> : vector<2x256xf32>
    %6 = tpu.matmul %4, %5, %cst {dimension_numbers = #tpu.dot_dimension_numbers<[1], [0], [0], [1], [0, 0, 1, 1], [], []>} : vector<2x256xbf16>, vector<256x256xbf16>, vector<2x256xf32> -> vector<2x256xf32>
    %7 = arith.addf %3, %6 : vector<2x256xf32>
    %c0_6 = arith.constant 0 : index
    %c0_7 = arith.constant 0 : index
    %8 = vector.load %arg7[%c0_6, %c0_7] : memref<2x256xf32, #tpu.memory_space<vmem>>, vector<2x256xf32>
    tpu.vector_store %arg7[%c0_6, %c0_7], %7 {strides = array<i32>} : memref<2x256xf32, #tpu.memory_space<vmem>>, vector<2x256xf32>,
    %c0_i32_8 = arith.constant 0 : i32
    %9 = arith.cmpi eq, %arg2, %c0_i32_8 : i32
    %10 = arith.extui %9 : i1 to i32
    %c0_i32_9 = arith.constant 0 : i32
    %11 = arith.cmpi ne, %10, %c0_i32_9 : i32
    scf.if %11 {
      %c0_10 = arith.constant 0 : index
      %c0_11 = arith.constant 0 : index
      %12 = vector.load %arg7[%c0_10, %c0_11] : memref<2x256xf32, #tpu.memory_space<vmem>>, vector<2x256xf32>
      %c0_12 = arith.constant 0 : index
      %c0_13 = arith.constant 0 : index
      %13 = vector.load %arg5[%c0_12, %c0_13] : memref<1x256xf32, #tpu.memory_space<vmem>>, vector<1x256xf32>
      %14 = vector.broadcast %13 : vector<1x256xf32> to vector<2x256xf32>
      %15 = arith.addf %12, %14 : vector<2x256xf32>
      %c0_14 = arith.constant 0 : index
      %c0_15 = arith.constant 0 : index
      %16 = vector.load %arg6[%c0_14, %c0_15] : memref<2x256xf32, #tpu.memory_space<vmem>>, vector<2x256xf32>
      tpu.vector_store %arg6[%c0_14, %c0_15], %15 {strides = array<i32>} : memref<2x256xf32, #tpu.memory_space<vmem>>, vector<2x256xf32>,
    } else {
    }
    return
  }
  func.func @transform_0(%arg0: i32, %arg1: i32, %arg2: i32) -> (i32, i32) {
    %c0_i32 = arith.constant 0 : i32
    return %arg0, %arg2 : i32, i32
  }
  func.func @transform_1(%arg0: i32, %arg1: i32, %arg2: i32) -> (i32, i32) {
    %c0_i32 = arith.constant 0 : i32
    return %arg2, %arg1 : i32, i32
  }
  func.func @transform_2(%arg0: i32, %arg1: i32, %arg2: i32) -> (i32, i32) {
    %c0_i32 = arith.constant 0 : i32
    %c0_i32_0 = arith.constant 0 : i32
    return %c0_i32, %arg1 : i32, i32
  }
  func.func @transform_3(%arg0: i32, %arg1: i32, %arg2: i32) -> (i32, i32) {
    %c0_i32 = arith.constant 0 : i32
    return %arg0, %arg1 : i32, i32
  }
}

module attributes {stable_mosaic.version = 11 : i64} {
  func.func @_mm_kernel(%arg0: i32, %arg1: i32, %arg2: i32, %arg3: memref<2x768xbf16, #tpu.memory_space<vmem>>, %arg4: memref<768x256xbf16, #tpu.memory_space<vmem>>, %arg5: memref<1x256xf32, #tpu.memory_space<vmem>>, %arg6: memref<2x256xf32, #tpu.memory_space<vmem>>, %arg7: memref<2x256xf32, #tpu.memory_space<vmem>>, %arg8: memref<2x256xf32, #tpu.memory_space<vmem>>) attributes {dimension_semantics = [#tpu.dimension_semantics<parallel>, #tpu.dimension_semantics<parallel>, #tpu.dimension_semantics<arbitrary>], iteration_bounds = array<i64: 1, 2, 6>, scalar_prefetch = 0 : i64, scratch_operands = 1 : i64, tpu.core_type = #tpu.core_type<tc>, window_params = [{transform_indices = @transform_0, window_bounds = array<i64: 2, 768>}, {transform_indices = @transform_1, window_bounds = array<i64: 768, 256>}, {transform_indices = @transform_2, window_bounds = array<i64: 1, 256>}, {transform_indices = @transform_3, window_bounds = array<i64: 2, 256>}, {transform_indices = @transform_4, window_bounds = array<i64: 2, 256>}]} {
    %c0_i32 = arith.constant 0 : i32
    %0 = arith.cmpi eq, %arg2, %c0_i32 : i32
    %1 = arith.extui %0 : i1 to i32
    %c0_i32_0 = arith.constant 0 : i32
    %2 = arith.cmpi ne, %1, %c0_i32_0 : i32
    scf.if %2 {
      %cst_9 = arith.constant 0.000000e+00 : f32
      %12 = vector.broadcast %cst_9 : f32 to vector<2x256xf32>
      %c0_10 = arith.constant 0 : index
      %c0_11 = arith.constant 0 : index
      %13 = vector.load %arg8[%c0_10, %c0_11] : memref<2x256xf32, #tpu.memory_space<vmem>>, vector<2x256xf32>
      tpu.vector_store %arg8[%c0_10, %c0_11], %12 {strides = array<i32>} : memref<2x256xf32, #tpu.memory_space<vmem>>, vector<2x256xf32>,
    } else {
    }
    %c0 = arith.constant 0 : index
    %c0_1 = arith.constant 0 : index
    %3 = vector.load %arg8[%c0, %c0_1] : memref<2x256xf32, #tpu.memory_space<vmem>>, vector<2x256xf32>
    %c0_2 = arith.constant 0 : index
    %c0_3 = arith.constant 0 : index
    %4 = vector.load %arg3[%c0_2, %c0_3] : memref<2x768xbf16, #tpu.memory_space<vmem>>, vector<2x768xbf16>
    %c0_4 = arith.constant 0 : index
    %c0_5 = arith.constant 0 : index
    %5 = vector.load %arg4[%c0_4, %c0_5] : memref<768x256xbf16, #tpu.memory_space<vmem>>, vector<768x256xbf16>
    %cst = arith.constant dense<0.000000e+00> : vector<2x256xf32>
    %6 = tpu.matmul %4, %5, %cst {dimension_numbers = #tpu.dot_dimension_numbers<[1], [0], [0], [1], [0, 0, 1, 1], [], []>} : vector<2x768xbf16>, vector<768x256xbf16>, vector<2x256xf32> -> vector<2x256xf32>
    %7 = arith.addf %3, %6 : vector<2x256xf32>
    %c0_6 = arith.constant 0 : index
    %c0_7 = arith.constant 0 : index
    %8 = vector.load %arg8[%c0_6, %c0_7] : memref<2x256xf32, #tpu.memory_space<vmem>>, vector<2x256xf32>
    tpu.vector_store %arg8[%c0_6, %c0_7], %7 {strides = array<i32>} : memref<2x256xf32, #tpu.memory_space<vmem>>, vector<2x256xf32>,
    %c5_i32 = arith.constant 5 : i32
    %9 = arith.cmpi eq, %arg2, %c5_i32 : i32
    %10 = arith.extui %9 : i1 to i32
    %c0_i32_8 = arith.constant 0 : i32
    %11 = arith.cmpi ne, %10, %c0_i32_8 : i32
    scf.if %11 {
      %c0_9 = arith.constant 0 : index
      %c0_10 = arith.constant 0 : index
      %12 = vector.load %arg8[%c0_9, %c0_10] : memref<2x256xf32, #tpu.memory_space<vmem>>, vector<2x256xf32>
      %c0_11 = arith.constant 0 : index
      %c0_12 = arith.constant 0 : index
      %13 = vector.load %arg5[%c0_11, %c0_12] : memref<1x256xf32, #tpu.memory_space<vmem>>, vector<1x256xf32>
      %14 = vector.broadcast %13 : vector<1x256xf32> to vector<2x256xf32>
      %15 = arith.addf %12, %14 : vector<2x256xf32>
      %c0_13 = arith.constant 0 : index
      %c0_14 = arith.constant 0 : index
      %16 = vector.load %arg6[%c0_13, %c0_14] : memref<2x256xf32, #tpu.memory_space<vmem>>, vector<2x256xf32>
      %17 = arith.addf %15, %16 : vector<2x256xf32>
      %cst_15 = arith.constant 0.000000e+00 : f32
      %18 = vector.broadcast %cst_15 : f32 to vector<2x256xf32>
      %19 = arith.maximumf %17, %18 : vector<2x256xf32>
      %c0_16 = arith.constant 0 : index
      %c0_17 = arith.constant 0 : index
      %20 = vector.load %arg7[%c0_16, %c0_17] : memref<2x256xf32, #tpu.memory_space<vmem>>, vector<2x256xf32>
      tpu.vector_store %arg7[%c0_16, %c0_17], %19 {strides = array<i32>} : memref<2x256xf32, #tpu.memory_space<vmem>>, vector<2x256xf32>,
    } else {
    }
    return
  }
  func.func @transform_0(%arg0: i32, %arg1: i32, %arg2: i32) -> (i32, i32) {
    %c0_i32 = arith.constant 0 : i32
    return %arg0, %arg2 : i32, i32
  }
  func.func @transform_1(%arg0: i32, %arg1: i32, %arg2: i32) -> (i32, i32) {
    %c0_i32 = arith.constant 0 : i32
    return %arg2, %arg1 : i32, i32
  }
  func.func @transform_2(%arg0: i32, %arg1: i32, %arg2: i32) -> (i32, i32) {
    %c0_i32 = arith.constant 0 : i32
    %c0_i32_0 = arith.constant 0 : i32
    return %c0_i32, %arg1 : i32, i32
  }
  func.func @transform_3(%arg0: i32, %arg1: i32, %arg2: i32) -> (i32, i32) {
    %c0_i32 = arith.constant 0 : i32
    return %arg0, %arg1 : i32, i32
  }
  func.func @transform_4(%arg0: i32, %arg1: i32, %arg2: i32) -> (i32, i32) {
    %c0_i32 = arith.constant 0 : i32
    return %arg0, %arg1 : i32, i32
  }
}

module attributes {stable_mosaic.version = 11 : i64} {
  func.func @_mm_kernel(%arg0: i32, %arg1: i32, %arg2: i32, %arg3: memref<2x768xbf16, #tpu.memory_space<vmem>>, %arg4: memref<768x256xbf16, #tpu.memory_space<vmem>>, %arg5: memref<1x256xf32, #tpu.memory_space<vmem>>, %arg6: memref<2x256xf32, #tpu.memory_space<vmem>>, %arg7: memref<2x256xf32, #tpu.memory_space<vmem>>) attributes {dimension_semantics = [#tpu.dimension_semantics<parallel>, #tpu.dimension_semantics<parallel>, #tpu.dimension_semantics<arbitrary>], iteration_bounds = array<i64: 1, 2, 6>, scalar_prefetch = 0 : i64, scratch_operands = 1 : i64, tpu.core_type = #tpu.core_type<tc>, window_params = [{transform_indices = @transform_0, window_bounds = array<i64: 2, 768>}, {transform_indices = @transform_1, window_bounds = array<i64: 768, 256>}, {transform_indices = @transform_2, window_bounds = array<i64: 1, 256>}, {transform_indices = @transform_3, window_bounds = array<i64: 2, 256>}]} {
    %c0_i32 = arith.constant 0 : i32
    %0 = arith.cmpi eq, %arg2, %c0_i32 : i32
    %1 = arith.extui %0 : i1 to i32
    %c0_i32_0 = arith.constant 0 : i32
    %2 = arith.cmpi ne, %1, %c0_i32_0 : i32
    scf.if %2 {
      %cst_9 = arith.constant 0.000000e+00 : f32
      %12 = vector.broadcast %cst_9 : f32 to vector<2x256xf32>
      %c0_10 = arith.constant 0 : index
      %c0_11 = arith.constant 0 : index
      %13 = vector.load %arg7[%c0_10, %c0_11] : memref<2x256xf32, #tpu.memory_space<vmem>>, vector<2x256xf32>
      tpu.vector_store %arg7[%c0_10, %c0_11], %12 {strides = array<i32>} : memref<2x256xf32, #tpu.memory_space<vmem>>, vector<2x256xf32>,
    } else {
    }
    %c0 = arith.constant 0 : index
    %c0_1 = arith.constant 0 : index
    %3 = vector.load %arg7[%c0, %c0_1] : memref<2x256xf32, #tpu.memory_space<vmem>>, vector<2x256xf32>
    %c0_2 = arith.constant 0 : index
    %c0_3 = arith.constant 0 : index
    %4 = vector.load %arg3[%c0_2, %c0_3] : memref<2x768xbf16, #tpu.memory_space<vmem>>, vector<2x768xbf16>
    %c0_4 = arith.constant 0 : index
    %c0_5 = arith.constant 0 : index
    %5 = vector.load %arg4[%c0_4, %c0_5] : memref<768x256xbf16, #tpu.memory_space<vmem>>, vector<768x256xbf16>
    %cst = arith.constant dense<0.000000e+00> : vector<2x256xf32>
    %6 = tpu.matmul %4, %5, %cst {dimension_numbers = #tpu.dot_dimension_numbers<[1], [0], [0], [1], [0, 0, 1, 1], [], []>} : vector<2x768xbf16>, vector<768x256xbf16>, vector<2x256xf32> -> vector<2x256xf32>
    %7 = arith.addf %3, %6 : vector<2x256xf32>
    %c0_6 = arith.constant 0 : index
    %c0_7 = arith.constant 0 : index
    %8 = vector.load %arg7[%c0_6, %c0_7] : memref<2x256xf32, #tpu.memory_space<vmem>>, vector<2x256xf32>
    tpu.vector_store %arg7[%c0_6, %c0_7], %7 {strides = array<i32>} : memref<2x256xf32, #tpu.memory_space<vmem>>, vector<2x256xf32>,
    %c5_i32 = arith.constant 5 : i32
    %9 = arith.cmpi eq, %arg2, %c5_i32 : i32
    %10 = arith.extui %9 : i1 to i32
    %c0_i32_8 = arith.constant 0 : i32
    %11 = arith.cmpi ne, %10, %c0_i32_8 : i32
    scf.if %11 {
      %c0_9 = arith.constant 0 : index
      %c0_10 = arith.constant 0 : index
      %12 = vector.load %arg7[%c0_9, %c0_10] : memref<2x256xf32, #tpu.memory_space<vmem>>, vector<2x256xf32>
      %c0_11 = arith.constant 0 : index
      %c0_12 = arith.constant 0 : index
      %13 = vector.load %arg5[%c0_11, %c0_12] : memref<1x256xf32, #tpu.memory_space<vmem>>, vector<1x256xf32>
      %14 = vector.broadcast %13 : vector<1x256xf32> to vector<2x256xf32>
      %15 = arith.addf %12, %14 : vector<2x256xf32>
      %cst_13 = arith.constant 0.000000e+00 : f32
      %16 = vector.broadcast %cst_13 : f32 to vector<2x256xf32>
      %17 = arith.maximumf %15, %16 : vector<2x256xf32>
      %c0_14 = arith.constant 0 : index
      %c0_15 = arith.constant 0 : index
      %18 = vector.load %arg6[%c0_14, %c0_15] : memref<2x256xf32, #tpu.memory_space<vmem>>, vector<2x256xf32>
      tpu.vector_store %arg6[%c0_14, %c0_15], %17 {strides = array<i32>} : memref<2x256xf32, #tpu.memory_space<vmem>>, vector<2x256xf32>,
    } else {
    }
    return
  }
  func.func @transform_0(%arg0: i32, %arg1: i32, %arg2: i32) -> (i32, i32) {
    %c0_i32 = arith.constant 0 : i32
    return %arg0, %arg2 : i32, i32
  }
  func.func @transform_1(%arg0: i32, %arg1: i32, %arg2: i32) -> (i32, i32) {
    %c0_i32 = arith.constant 0 : i32
    return %arg2, %arg1 : i32, i32
  }
  func.func @transform_2(%arg0: i32, %arg1: i32, %arg2: i32) -> (i32, i32) {
    %c0_i32 = arith.constant 0 : i32
    %c0_i32_0 = arith.constant 0 : i32
    return %c0_i32, %arg1 : i32, i32
  }
  func.func @transform_3(%arg0: i32, %arg1: i32, %arg2: i32) -> (i32, i32) {
    %c0_i32 = arith.constant 0 : i32
    return %arg0, %arg1 : i32, i32
  }
}

module attributes {stable_mosaic.version = 11 : i64} {
  func.func @_mm_kernel(%arg0: i32, %arg1: i32, %arg2: i32, %arg3: memref<2x512xbf16, #tpu.memory_space<vmem>>, %arg4: memref<512x128xbf16, #tpu.memory_space<vmem>>, %arg5: memref<1x128xf32, #tpu.memory_space<vmem>>, %arg6: memref<2x128xf32, #tpu.memory_space<vmem>>, %arg7: memref<2x128xf32, #tpu.memory_space<vmem>>) attributes {dimension_semantics = [#tpu.dimension_semantics<parallel>, #tpu.dimension_semantics<parallel>, #tpu.dimension_semantics<arbitrary>], iteration_bounds = array<i64: 1, 1, 1>, scalar_prefetch = 0 : i64, scratch_operands = 1 : i64, tpu.core_type = #tpu.core_type<tc>, window_params = [{transform_indices = @transform_0, window_bounds = array<i64: 2, 512>}, {transform_indices = @transform_1, window_bounds = array<i64: 512, 128>}, {transform_indices = @transform_2, window_bounds = array<i64: 1, 128>}, {transform_indices = @transform_3, window_bounds = array<i64: 2, 128>}]} {
    %c0_i32 = arith.constant 0 : i32
    %0 = arith.cmpi eq, %arg2, %c0_i32 : i32
    %1 = arith.extui %0 : i1 to i32
    %c0_i32_0 = arith.constant 0 : i32
    %2 = arith.cmpi ne, %1, %c0_i32_0 : i32
    scf.if %2 {
      %cst_10 = arith.constant 0.000000e+00 : f32
      %12 = vector.broadcast %cst_10 : f32 to vector<2x128xf32>
      %c0_11 = arith.constant 0 : index
      %c0_12 = arith.constant 0 : index
      %13 = vector.load %arg7[%c0_11, %c0_12] : memref<2x128xf32, #tpu.memory_space<vmem>>, vector<2x128xf32>
      tpu.vector_store %arg7[%c0_11, %c0_12], %12 {strides = array<i32>} : memref<2x128xf32, #tpu.memory_space<vmem>>, vector<2x128xf32>,
    } else {
    }
    %c0 = arith.constant 0 : index
    %c0_1 = arith.constant 0 : index
    %3 = vector.load %arg7[%c0, %c0_1] : memref<2x128xf32, #tpu.memory_space<vmem>>, vector<2x128xf32>
    %c0_2 = arith.constant 0 : index
    %c0_3 = arith.constant 0 : index
    %4 = vector.load %arg3[%c0_2, %c0_3] : memref<2x512xbf16, #tpu.memory_space<vmem>>, vector<2x512xbf16>
    %c0_4 = arith.constant 0 : index
    %c0_5 = arith.constant 0 : index
    %5 = vector.load %arg4[%c0_4, %c0_5] : memref<512x128xbf16, #tpu.memory_space<vmem>>, vector<512x128xbf16>
    %cst = arith.constant dense<0.000000e+00> : vector<2x128xf32>
    %6 = tpu.matmul %4, %5, %cst {dimension_numbers = #tpu.dot_dimension_numbers<[1], [0], [0], [1], [0, 0, 1, 1], [], []>} : vector<2x512xbf16>, vector<512x128xbf16>, vector<2x128xf32> -> vector<2x128xf32>
    %7 = arith.addf %3, %6 : vector<2x128xf32>
    %c0_6 = arith.constant 0 : index
    %c0_7 = arith.constant 0 : index
    %8 = vector.load %arg7[%c0_6, %c0_7] : memref<2x128xf32, #tpu.memory_space<vmem>>, vector<2x128xf32>
    tpu.vector_store %arg7[%c0_6, %c0_7], %7 {strides = array<i32>} : memref<2x128xf32, #tpu.memory_space<vmem>>, vector<2x128xf32>,
    %c0_i32_8 = arith.constant 0 : i32
    %9 = arith.cmpi eq, %arg2, %c0_i32_8 : i32
    %10 = arith.extui %9 : i1 to i32
    %c0_i32_9 = arith.constant 0 : i32
    %11 = arith.cmpi ne, %10, %c0_i32_9 : i32
    scf.if %11 {
      %c0_10 = arith.constant 0 : index
      %c0_11 = arith.constant 0 : index
      %12 = vector.load %arg7[%c0_10, %c0_11] : memref<2x128xf32, #tpu.memory_space<vmem>>, vector<2x128xf32>
      %c0_12 = arith.constant 0 : index
      %c0_13 = arith.constant 0 : index
      %13 = vector.load %arg5[%c0_12, %c0_13] : memref<1x128xf32, #tpu.memory_space<vmem>>, vector<1x128xf32>
      %14 = vector.broadcast %13 : vector<1x128xf32> to vector<2x128xf32>
      %15 = arith.addf %12, %14 : vector<2x128xf32>
      %c0_14 = arith.constant 0 : index
      %c0_15 = arith.constant 0 : index
      %16 = vector.load %arg6[%c0_14, %c0_15] : memref<2x128xf32, #tpu.memory_space<vmem>>, vector<2x128xf32>
      tpu.vector_store %arg6[%c0_14, %c0_15], %15 {strides = array<i32>} : memref<2x128xf32, #tpu.memory_space<vmem>>, vector<2x128xf32>,
    } else {
    }
    return
  }
  func.func @transform_0(%arg0: i32, %arg1: i32, %arg2: i32) -> (i32, i32) {
    %c0_i32 = arith.constant 0 : i32
    return %arg0, %arg2 : i32, i32
  }
  func.func @transform_1(%arg0: i32, %arg1: i32, %arg2: i32) -> (i32, i32) {
    %c0_i32 = arith.constant 0 : i32
    return %arg2, %arg1 : i32, i32
  }
  func.func @transform_2(%arg0: i32, %arg1: i32, %arg2: i32) -> (i32, i32) {
    %c0_i32 = arith.constant 0 : i32
    %c0_i32_0 = arith.constant 0 : i32
    return %c0_i32, %arg1 : i32, i32
  }
  func.func @transform_3(%arg0: i32, %arg1: i32, %arg2: i32) -> (i32, i32) {
    %c0_i32 = arith.constant 0 : i32
    return %arg0, %arg1 : i32, i32
  }
}

</mosaic_0001>

<bundles_post_ra>
// kernel: wrap_resnet_forward.22
= control target key start
LH: loop header
LB: loop body
LE: loop exit
PB: predicated region body
PF: predicated region fallthrough
CT: control target
= control target key end

     0   :  { %s1238_s12 = smov 0   ;;  %s1240_s13 = smov 0   ;;  %s1403_s0 = inlined_call_operand.vmem [shape: bf16[128,1152], index: 0, kind: input, shape index: {}]   ;;  %s1404_s1 = inlined_call_operand.vmem [shape: bf16[1152,128], index: 1, kind: input, shape index: {}]   ;;  %s1405_s2 = inlined_call_operand.vmem [shape: f32[1,128], index: 2, kind: input, shape index: {}]   ;;  %s1406_s3 = inlined_call_operand.vmem [shape: f32[128,128], index: 3, kind: output, shape index: {}]  }
   0x1   :  { %s1242_s14 = smov 0   ;;  %s1244_s15 = smov 0  }
   0x2   :  { %s1246_s16 = smov 0   ;;  %s1248_s17 = smov 0  }
   0x3   :  { %s1250_s18 = smov 0  }
   0x4 LB: > { %s25_s19 = sadd.s32 1, %s1207_s16  ;;  %s32_s20 = sadd.s32 1, %s1211_s17  ;;  %s1215_s18 = sphi %s1250_s18, %s13_s18   ;;  %s1211_s17 = sphi %s1248_s17, %s1412_s17   ;;  %s1207_s16 = sphi %s1246_s16, %s1411_s16   ;;  %s1203_s15 = sphi %s1244_s15, %s1410_s15   ;;  %s1199_s14 = sphi %s1242_s14, %s1409_s14   ;;  %s1195_s13 = sphi %s1240_s13, %s1408_s13   ;;  %s1191_s12 = sphi %s1238_s12, %s1407_s12  }
   0x5   : > { %p26_p0 = scmp.ge.s32.totalorder %s25_s19, 3  ;;  %p48_p1 = scmp.ne.s32.totalorder %s1195_s13, %s1191_s12 }
   0x6   : > { %p49_p2 = scmp.eq.s32.totalorder %s1215_s18, 0  ;;  %s41_s24 = sadd.s32 1, %s1195_s13 }
   0x7   : > { %s1414_s19 = smov (%p26_p0, %s25_s19), 0  ;;  %s1416_s20 = smov (!%p26_p0, %s32_s20), %s1211_s17 }
   0x8   : > { %p50_p3 = por %p49_p2, %p48_p1  ;;  %p34_p4 = scmp.ge.s32.totalorder %s1416_s20, 2 }
   0x9   : > { %s37_s21 = ssub.s32 %s1207_s16, %s1414_s19  ;;  %p920_p6 = scmp.ge.s32.totalorder %s1215_s18, 6 }
   0xa   : > { %s1418_s20 = smov (%p34_p4, %s1416_s20), 0 }
   0xb   : > { %s36_s22 = ssub.s32 %s1211_s17, %s1418_s20  ;;  %162 = sbr.rel (%p920_p6) target bundleno = 34 (0x22), region = 20 }
   0xc   : > { %s38_s23 = sor.u32 %s37_s21, %s36_s22 }
   0xd   : > { %p39_p5 = scmp.eq.s32.totalorder %s38_s23, 0 }
   0xf   : > { %s1289_s25 = scalar_select %p39_p5, %s1195_s13, %s41_s24  }
  0x10   : > { %165 = sbr.rel (!%p50_p3) target bundleno = 34 (0x22), region = 24  ;;  %s167_s26 = sand.u32 (%p50_p3), 1, %s1195_s13  }
  0x11   : > { %s171_s27 = smul.u32 (%p50_p3), 3, %s1207_s16 }
  0x12   : > { %s1061_s28 = smul.u32 (%p50_p3), 96, %s167_s26 }
  0x13   : > { %s1062_s29 = smul.u32 (%p50_p3), 72, %s1211_s17 }
  0x14   : > { %s169_s8 = scalar_lea.vmem (%p50_p3), [#allocation3], %s1061_s28 }
  0x15   : > { %s173_s30 = sadd.s32 %s1062_s29, %s171_s27 }
  0x16   : > { %s923_s4 = sshll.u32 %s173_s30, 2 }
  0x17   : > { %s1298_s7 = scalar_lea.vmem %s1403_s0, %s923_s4 }
  0x18   : > { %v190_v0 = vld [vmem:[%s1298_s7] sm:$0xff]  ;;  %v194_v2 = vld [vmem:[%s1298_s7 + $0x48] sm:$0xff]  ;;  %v198_v4 = vld [vmem:[%s1298_s7 + $0x90] sm:$0xff] }
  0x19   : > { %v192_v1 = vld [vmem:[%s1298_s7 + $0x24] sm:$0xff]  ;;  %191 = vst [vmem:[%s169_s8] sm:$0xff] %v190_v0  ;;  %195 = vst [vmem:[%s169_s8 + $0x18] sm:$0xff] %v194_v2  ;;  %v196_v3 = vld [vmem:[%s1298_s7 + $0x6c] sm:$0xff] }
  0x1a   : > { %193 = vst [vmem:[%s169_s8 + $0xc] sm:$0xff] %v192_v1  ;;  %v200_v5 = vld [vmem:[%s1298_s7 + $0xb4] sm:$0xff]  ;;  %197 = vst [vmem:[%s169_s8 + $0x24] sm:$0xff] %v196_v3  ;;  %v204_v7 = vld [vmem:[%s1298_s7 + $0xfc] sm:$0xff] }
  0x1b   : > { %199 = vst [vmem:[%s169_s8 + $0x30] sm:$0xff] %v198_v4  ;;  %201 = vst [vmem:[%s169_s8 + $0x3c] sm:$0xff] %v200_v5  ;;  %v202_v6 = vld [vmem:[%s1298_s7 + $0xd8] sm:$0xff]  ;;  %v924_v8 = vld [vmem:[%s1298_s7 + $0x8] sm:$0xf] }
  0x1c   : > { %203 = vst [vmem:[%s169_s8 + $0x48] sm:$0xff] %v202_v6  ;;  %205 = vst [vmem:[%s169_s8 + $0x54] sm:$0xff] %v204_v7  ;;  %v926_v9 = vld [vmem:[%s1298_s7 + $0x2c] sm:$0xf]  ;;  %v928_v10 = vld [vmem:[%s1298_s7 + $0x50] sm:$0xf] }
  0x1d   : > { %925 = vst [vmem:[%s169_s8 + $0x8] sm:$0xf] %v924_v8  ;;  %v930_v11 = vld [vmem:[%s1298_s7 + $0x74] sm:$0xf]  ;;  %927 = vst [vmem:[%s169_s8 + $0x14] sm:$0xf] %v926_v9 }
  0x1e   : > { %929 = vst [vmem:[%s169_s8 + $0x20] sm:$0xf] %v928_v10  ;;  %931 = vst [vmem:[%s169_s8 + $0x2c] sm:$0xf] %v930_v11  ;;  %v932_v12 = vld [vmem:[%s1298_s7 + $0x98] sm:$0xf] }
  0x1f   : > { %v934_v13 = vld [vmem:[%s1298_s7 + $0xbc] sm:$0xf]  ;;  %v936_v14 = vld [vmem:[%s1298_s7 + $0xe0] sm:$0xf]  ;;  %933 = vst [vmem:[%s169_s8 + $0x38] sm:$0xf] %v932_v12 }
  0x20   : > { %935 = vst [vmem:[%s169_s8 + $0x44] sm:$0xf] %v934_v13  ;;  %937 = vst [vmem:[%s169_s8 + $0x50] sm:$0xf] %v936_v14  ;;  %v938_v15 = vld [vmem:[%s1298_s7 + $0x104] sm:$0xf] }
  0x21   : > { %939 = vst [vmem:[%s169_s8 + $0x5c] sm:$0xf] %v938_v15 }
  0x22 PF: > { %p940_p7 = scmp.ge.s32.totalorder %s1215_s18, 1  ;;  %p246_p8 = scmp.lt.s32.totalorder %s1215_s18, 7 }
  0x24   : > { %p247_p9 = pnand %p940_p7, %p246_p8 }
  0x25   : > { %s253_s9 = sand.u32 (!%p247_p9), 1, %s1191_s12   ;;  %s292_s10 = smul.u32 (!%p247_p9), 48, %s1199_s14 }
  0x26   : > { %250 = sbr.rel (%p247_p9) target bundleno = 331 (0x14b), region = 54  ;;  %s942_s21 = sshll.u32 (!%p247_p9), %s1203_s15, 3 }
  0x27   : > { %s1063_s11 = smul.u32 (!%p247_p9), 96, %s253_s9  ;;  %p293_p10 = scmp.lt.s32.totalorder (!%p247_p9), %s292_s10, 143 }
  0x28   : > { %p305_p11 = scmp.lt.s32.totalorder (!%p247_p9), %s942_s21, 15  ;;  %p944_p12 = scmp.ne.s32.totalorder (!%p247_p9), %s1199_s14, 0 }
  0x29   : > { %s1331_s12 = scalar_lea.vmem (!%p247_p9), [#allocation3], %s1063_s11 }
  0x2b   : > { %s1420_s10 = smov (!%p293_p10, %s292_s10), 143  ;;  %s1422_s21 = smov (!%p305_p11, %s942_s21), 15 }
  0x2c   : > { %s941_s22 = sshll.u32 %s1420_s10, 2  ;;  %s943_s27 = sshll.u32 %s1422_s21, 3 }
  0x2d   : > { %s1324_s26 = scalar_lea.vmem %s1404_s1, %s941_s22  ;;  %s1329_s30 = scalar_lea.vmem %s1406_s3, %s943_s27 }
  0x2e   : > { %317 = sbr.rel (%p944_p12) target bundleno = 56 (0x38), region = 62 }
  0x33   : > { %v1217_v16 = vmov 0.0  }
  0x34   : > { %318 = vst [vmem:[#allocation2 + $0x30] sm:$0xff] %v1217_v16  ;;  %319 = vst [vmem:[#allocation2] sm:$0xff] %v1217_v16 }
  0x35   : > { %320 = vst [vmem:[#allocation2 + $0x18] sm:$0xff] %v1217_v16  ;;  %321 = vst [vmem:[#allocation2 + $0x10] sm:$0xff] %v1217_v16 }
  0x36   : > { %322 = vst [vmem:[#allocation2 + $0x8] sm:$0xff] %v1217_v16  ;;  %323 = vst [vmem:[#allocation2 + $0x20] sm:$0xff] %v1217_v16 }
  0x37   : > { %324 = vst [vmem:[#allocation2 + $0x28] sm:$0xff] %v1217_v16  ;;  %325 = vst [vmem:[#allocation2 + $0x38] sm:$0xff] %v1217_v16 }
  0x38 PF: > { %v1121_v17 = vld [vmem:[%s1324_s26 + $0x78] sm:$0xff]   ;;  %v1124_v20 = vld [vmem:[%s1324_s26 + $0x70] sm:$0xff]   ;;  %v1127_v23 = vld [vmem:[%s1324_s26 + $0x68] sm:$0xff]   ;;  %p981_p13 = scmp.ne.s32.totalorder %s1199_s14, 2 }
  0x39   : > { %v1122_v18 = vld [vmem:[%s1324_s26 + $0x38] sm:$0xff]   ;;  %985 = vmatprep.subr.bf16.mxu0 %v1121_v17  ;;  %v1125_v21 = vld [vmem:[%s1324_s26 + $0x30] sm:$0xff]   ;;  %v1128_v24 = vld [vmem:[%s1324_s26 + $0x28] sm:$0xff]  }
  0x3a   : > { %v1123_v19 = vld [vmem:[%s1324_s26 + $0xb8] sm:$0xff]   ;;  %986 = vmatpush3.bf16.msra.mxu0 %v1122_v18  ;;  %v1126_v22 = vld [vmem:[%s1324_s26 + $0xb0] sm:$0xff]   ;;  %v1129_v25 = vld [vmem:[%s1324_s26 + $0xa8] sm:$0xff]  }
  0x3b   : > { %1037 = vmatprep.subr.bf16.mxu1 %v1123_v19  ;;  %987 = vmatprep.subr.bf16.mxu0 %v1124_v20  ;;  %v1130_v26 = vld [vmem:[%s1324_s26 + $0x60] sm:$0xff]   ;;  %v1133_v29 = vld [vmem:[%s1324_s26 + $0x58] sm:$0xff]   ;;  %v1136_v32 = vld [vmem:[%s1324_s26 + $0x50] sm:$0xff]  }
  0x3c   : > { %1038 = vmatpush3.bf16.msra.mxu1 %v1123_v19  ;;  %v1131_v27 = vld [vmem:[%s1324_s26 + $0x20] sm:$0xff]   ;;  %v1135_v30 = vld [vmem:[%s1324_s26 + $0x98] sm:$0xff]   ;;  %v1138_v33 = vld [vmem:[%s1324_s26 + $0x90] sm:$0xff]  }
  0x3d   : > { %1039 = vmatprep.subr.bf16.mxu1 %v1126_v22  ;;  %v1132_v28 = vld [vmem:[%s1324_s26 + $0xa0] sm:$0xff]   ;;  %v1134_v31 = vld [vmem:[%s1324_s26 + $0x18] sm:$0xff]   ;;  %v1137_v34 = vld [vmem:[%s1324_s26 + $0x10] sm:$0xff]  }
  0x3e   : > { %988 = vmatpush3.bf16.msra.mxu0 %v1125_v21  ;;  %v1139_v35 = vld [vmem:[%s1324_s26 + $0x48] sm:$0xff]   ;;  %v1142_v38 = vld [vmem:[%s1324_s26 + $0x40] sm:$0xff]   ;;  %v1157_v49 = vld [vmem:[%s1331_s12 + $0x50] ss:$12 sps:$4 sm:$0xff]  }
  0x3f   : > { %989 = vmatprep.subr.bf16.mxu0 %v1127_v23  ;;  %v1140_v36 = vld [vmem:[%s1324_s26 + $0x8] sm:$0xff]   ;;  %v1144_v39 = vld [vmem:[%s1324_s26 + $0x80] sm:$0xff]   ;;  %v1155_v50 = vld [vmem:[%s1331_s12 + $0x30] ss:$12 sps:$4 sm:$0xff]  }
  0x40   : > { %1040 = vmatpush3.bf16.msra.mxu1 %v1126_v22  ;;  %v1141_v37 = vld [vmem:[%s1324_s26 + $0x88] sm:$0xff]   ;;  %v1147_v40 = vld [vmem:[%s1331_s12 + $0x4] ss:$12 sps:$4 sm:$0xff]   ;;  %v1153_v48 = vld [vmem:[%s1331_s12 + $0x34] ss:$12 sps:$4 sm:$0xff]  }
  0x41   : > { %1041 = vmatprep.subr.bf16.mxu1 %v1129_v25  ;;  %v1148_v41 = vld [vmem:[%s1331_s12 + $0x8] ss:$12 sps:$4 sm:$0xff]   ;;  %v1143_v42 = vld [vmem:[%s1324_s26] sm:$0xff]   ;;  %638 = vmatprep.mubr.bf16.mxu0 %v1147_v40  ;;  %v1158_v51 = vld [vmem:[%s1331_s12 + $0x4c] ss:$12 sps:$4 sm:$0xff]  }
  0x42   : > { %990 = vmatpush3.bf16.msra.mxu0 %v1128_v24  ;;  %1053 = vmatprep.mubr.bf16.mxu1 %v1148_v41  ;;  %v1145_v43 = vld [vmem:[%s1331_s12] ss:$12 sps:$4 sm:$0xff]   ;;  %v1150_v44 = vld [vmem:[%s1331_s12 + $0x1c] ss:$12 sps:$4 sm:$0xff]   ;;  %v1156_v46 = vld [vmem:[%s1331_s12 + $0x38] ss:$12 sps:$4 sm:$0xff]  }
  0x43   : > { %991 = vmatprep.subr.bf16.mxu0 %v1130_v26  ;;  %v1149_v45 = vld [vmem:[%s1331_s12 + $0x20] ss:$12 sps:$4 sm:$0xff]   ;;  %v1152_v47 = vld [vmem:[%s1331_s12 + $0x18] ss:$12 sps:$4 sm:$0xff]   ;;  %v1160_v52 = vld [vmem:[%s1331_s12 + $0x48] ss:$12 sps:$4 sm:$0xff]  }
  0x44   : > { %1042 = vmatpush3.bf16.msra.mxu1 %v1129_v25  ;;  %v326_v58 = vld [vmem:[#allocation2 + $0x30] sm:$0xff]  ;;  %v327_v2 = vld [vmem:[#allocation2] sm:$0xff]  ;;  %v328_v9 = vld [vmem:[#allocation2 + $0x18] sm:$0xff] }
  0x45   : > { %1043 = vmatprep.subr.bf16.mxu1 %v1132_v28  ;;  %v329_v16 = vld [vmem:[#allocation2 + $0x10] sm:$0xff]  ;;  %v330_v24 = vld [vmem:[#allocation2 + $0x8] sm:$0xff] }
  0x46   : > { %992 = vmatpush3.bf16.msra.mxu0 %v1131_v27 }
  0x47   : > { %993 = vmatprep.subr.bf16.mxu0 %v1133_v29 }
  0x48   : > { %1044 = vmatpush3.bf16.msra.mxu1 %v1132_v28 }
  0x49   : > { %1045 = vmatprep.subr.bf16.mxu1 %v1135_v30 }
  0x4a   : > { %994 = vmatpush3.bf16.msra.mxu0 %v1134_v31  ;;  %v331_v31 = vld [vmem:[#allocation2 + $0x20] sm:$0xff] }
  0x4b   : > { %995 = vmatprep.subr.bf16.mxu0 %v1136_v32 }
  0x4c   : > { %1046 = vmatpush3.bf16.msra.mxu1 %v1135_v30 }
  0x4d   : > { %1047 = vmatprep.subr.bf16.mxu1 %v1138_v33 }
  0x4e   : > { %996 = vmatpush3.bf16.msra.mxu0 %v1137_v34 }
  0x4f   : > { %997 = vmatprep.subr.bf16.mxu0 %v1139_v35 }
  0x50   : > { %1048 = vmatpush3.bf16.msra.mxu1 %v1138_v33 }
  0x51   : > { %1049 = vmatprep.subr.bf16.mxu1 %v1141_v37 }
  0x52   : > { %998 = vmatpush3.bf16.msra.mxu0 %v1140_v36  ;;  %v332_v36 = vld [vmem:[#allocation2 + $0x28] sm:$0xff] }
  0x53   : > { %999 = vmatprep.subr.bf16.mxu0 %v1142_v38 }
  0x54   : > { %1050 = vmatpush3.bf16.msra.mxu1 %v1141_v37 }
  0x55   : > { %1051 = vmatprep.subr.bf16.mxu1 %v1144_v39 }
  0x56   : > { %1000 = vmatpush3.bf16.msra.mxu0 %v1143_v42  ;;  %v333_v42 = vld [vmem:[#allocation2 + $0x38] sm:$0xff] }
  0x58   : > { %1052 = vmatpush3.bf16.msra.mxu1 %v1144_v39 }
  0x59   : > { %639 = vmatmul.mubr.bf16.vlgmr.msra.gmra.mxu0 %v1145_v43 }
  0x5a   : > { %646 = vmatprep.mubr.bf16.mxu0 %v1150_v44 }
  0x5b   : > { %1054 = vmatmul.mubr.bf16.vlgmr.msra.gmra.mxu1 %v1149_v45 }
  0x5c   : > { %1057 = vmatprep.mubr.bf16.mxu1 %v1156_v46 }
  0x61   : > { %647 = vmatmul.mubr.bf16.gmra.mxu0 %v1152_v47 }
  0x62   : > { %654 = vmatprep.mubr.bf16.mxu0 %v1153_v48 }
  0x63   : > { %1058 = vmatmul.mubr.bf16.gmra.mxu1 %v1157_v49 }
  0x69   : > { %655 = vmatmul.mubr.bf16.gmra.mxu0 %v1155_v50 }
  0x6a   : > { %662 = vmatprep.mubr.bf16.mxu0 %v1158_v51 }
  0x71   : > { %663 = vmatmul.mubr.bf16.gmra.mxu0 %v1160_v52 }
 0x119   : > { %v1001_v53 = vpop.f32.mrf.mxu0 }
 0x11b   : > { %v1002_v54 = vpop.f32.mrf.mxu0  ;;  %v1055_v55 = vpop.f32.mrf.mxu1 }
 0x11c   : > { %v1003_v56 = vadd.f32 %v1002_v54, %v1001_v53 }
 0x11d   : > { %v1004_v57 = vpop.f32.mrf.mxu0  ;;  %v705_v59 = vpop.f32.mrf.mxu1 }
 0x11e   : > { %v706_v60 = vadd.f32 %v1003_v56, %v705_v59 }
 0x11f   : > { %v1005_v61 = vpop.f32.mrf.mxu0  ;;  %v1056_v62 = vpop.f32.mrf.mxu1 }
 0x120   : > { %v736_v63 = vadd.f32 %v706_v60, %v326_v58  ;;  %v1006_v0 = vadd.f32 %v1005_v61, %v1004_v57 }
 0x121   : > { %v1007_v1 = vpop.f32.mrf.mxu0  ;;  %v708_v3 = vpop.f32.mrf.mxu1 }
 0x122   : > { %744 = vst [vmem:[#allocation2 + $0x30] sm:$0xff] %v736_v63  ;;  %v709_v4 = vadd.f32 %v1006_v0, %v708_v3 }
 0x123   : > { %v1008_v5 = vpop.f32.mrf.mxu0  ;;  %v1059_v6 = vpop.f32.mrf.mxu1 }
 0x124   : > { %v737_v7 = vadd.f32 %v709_v4, %v327_v2  ;;  %v1009_v8 = vadd.f32 %v1008_v5, %v1007_v1 }
 0x125   : > { %v1010_v10 = vpop.f32.mrf.mxu0  ;;  %v721_v13 = vpop.f32.mrf.mxu1 }
 0x126   : > { %745 = vst [vmem:[#allocation2] sm:$0xff] %v737_v7  ;;  %v714_v11 = vadd.f32 %v1055_v55, %v1009_v8 }
 0x127   : > { %v1011_v12 = vpop.f32.mrf.mxu0  ;;  %v1060_v20 = vpop.f32.mrf.mxu1 }
 0x128   : > { %v738_v14 = vadd.f32 %v714_v11, %v328_v9  ;;  %v1012_v15 = vadd.f32 %v1011_v12, %v1010_v10 }
 0x129   : > { %v1013_v17 = vpop.f32.mrf.mxu0  ;;  %v724_v27 = vpop.f32.mrf.mxu1 }
 0x12a   : > { %746 = vst [vmem:[#allocation2 + $0x18] sm:$0xff] %v738_v14  ;;  %v717_v18 = vadd.f32 %v1056_v62, %v1012_v15 }
 0x12b   : > { %v1014_v19 = vpop.f32.mrf.mxu0 }
 0x12c   : > { %v739_v21 = vadd.f32 %v717_v18, %v329_v16  ;;  %v1015_v22 = vadd.f32 %v1014_v19, %v1013_v17 }
 0x12d   : > { %v1016_v23 = vpop.f32.mrf.mxu0 }
 0x12e   : > { %747 = vst [vmem:[#allocation2 + $0x10] sm:$0xff] %v739_v21  ;;  %v722_v25 = vadd.f32 %v1015_v22, %v721_v13 }
 0x12f   : > { %v1017_v26 = vpop.f32.mrf.mxu0 }
 0x130   : > { %v740_v28 = vadd.f32 %v722_v25, %v330_v24  ;;  %v1018_v29 = vadd.f32 %v1017_v26, %v1016_v23 }
 0x131   : > { %v1019_v30 = vpop.f32.mrf.mxu0 }
 0x132   : > { %748 = vst [vmem:[#allocation2 + $0x8] sm:$0xff] %v740_v28  ;;  %v725_v32 = vadd.f32 %v1018_v29, %v724_v27 }
 0x133   : > { %v1020_v33 = vpop.f32.mrf.mxu0 }
 0x134   : > { %v741_v34 = vadd.f32 %v725_v32, %v331_v31  ;;  %v1021_v35 = vadd.f32 %v1020_v33, %v1019_v30 }
 0x135   : > { %v1022_v37 = vpop.f32.mrf.mxu0 }
 0x136   : > { %749 = vst [vmem:[#allocation2 + $0x20] sm:$0xff] %v741_v34  ;;  %v730_v38 = vadd.f32 %v1059_v6, %v1021_v35 }
 0x137   : > { %v1023_v39 = vpop.f32.mrf.mxu0 }
 0x138   : > { %v742_v40 = vadd.f32 %v730_v38, %v332_v36  ;;  %v1024_v41 = vadd.f32 %v1023_v39, %v1022_v37 }
 0x13a   : > { %750 = vst [vmem:[#allocation2 + $0x28] sm:$0xff] %v742_v40  ;;  %v733_v43 = vadd.f32 %v1060_v20, %v1024_v41  ;;  %755 = sbr.rel (%p981_p13) target bundleno = 331 (0x14b), region = 66 }
 0x13c   : > { %v743_v44 = vadd.f32 %v733_v43, %v333_v42 }
 0x13e   : > { %751 = vst [vmem:[#allocation2 + $0x38] sm:$0xff] %v743_v44 }
 0x13f   : > { %v756_v45 = vld [vmem:[#allocation2 + $0x30] sm:$0xff]  ;;  %v982_v46 = vld [vmem:[%s1405_s2] ss:$0 sm:$0xff]  ;;  %v758_v50 = vld [vmem:[#allocation2 + $0x18] sm:$0xff] }
 0x140   : > { %v757_v47 = vld [vmem:[#allocation2] sm:$0xff]  ;;  %v771_v48 = vadd.f32 %v982_v46, %v756_v45  ;;  %v759_v51 = vld [vmem:[#allocation2 + $0x10] sm:$0xff]  ;;  %v760_v52 = vld [vmem:[#allocation2 + $0x8] sm:$0xff]  ;;  %v773_v53 = vadd.f32 %v982_v46, %v758_v50 }
 0x141   : > { %v772_v49 = vadd.f32 %v982_v46, %v757_v47  ;;  %v774_v54 = vadd.f32 %v982_v46, %v759_v51  ;;  %v775_v55 = vadd.f32 %v982_v46, %v760_v52  ;;  %v761_v56 = vld [vmem:[#allocation2 + $0x20] sm:$0xff]  ;;  %v762_v57 = vld [vmem:[#allocation2 + $0x28] sm:$0xff] }
 0x142   : > { %v779_v59 = vmax.f32 %v771_v48, 0.0  ;;  %v776_v61 = vadd.f32 %v982_v46, %v761_v56  ;;  %v777_v62 = vadd.f32 %v982_v46, %v762_v57  ;;  %v781_v63 = vmax.f32 %v773_v53, 0.0 }
 0x143   : > { %v780_v60 = vmax.f32 %v772_v49, 0.0  ;;  %v782_v0 = vmax.f32 %v774_v54, 0.0  ;;  %v783_v1 = vmax.f32 %v775_v55, 0.0 }
 0x144   : > { %787 = vst [vmem:[%s1329_s30] sm:$0xff] %v779_v59  ;;  %v784_v3 = vmax.f32 %v776_v61, 0.0  ;;  %v785_v4 = vmax.f32 %v777_v62, 0.0  ;;  %789 = vst [vmem:[%s1329_s30 + $0x10] sm:$0xff] %v781_v63 }
 0x145   : > { %v763_v58 = vld [vmem:[#allocation2 + $0x38] sm:$0xff]  ;;  %788 = vst [vmem:[%s1329_s30 + $0x8] sm:$0xff] %v780_v60  ;;  %790 = vst [vmem:[%s1329_s30 + $0x18] sm:$0xff] %v782_v0 }
 0x146   : > { %v778_v2 = vadd.f32 %v982_v46, %v763_v58  ;;  %791 = vst [vmem:[%s1329_s30 + $0x20] sm:$0xff] %v783_v1  ;;  %792 = vst [vmem:[%s1329_s30 + $0x28] sm:$0xff] %v784_v3 }
 0x147   : > { %793 = vst [vmem:[%s1329_s30 + $0x30] sm:$0xff] %v785_v4 }
 0x148   : > { %v786_v5 = vmax.f32 %v778_v2, 0.0 }
 0x14a   : > { %794 = vst [vmem:[%s1329_s30 + $0x38] sm:$0xff] %v786_v5 }
 0x14b PF: > { %s13_s18 = sadd.s32 1, %s1215_s18   ;;  %s1407_s12 = smov %s1195_s13 }
 0x14c   : > { %p10_p0 = scmp.ge.s32.totalorder %s13_s18, 8   ;;  %s1408_s13 = smov %s1289_s25 }
 0x14d   : > { %s1409_s14 = smov %s1207_s16  ;;  %s1410_s15 = smov %s1211_s17 }
 0x14e   : > { %s1411_s16 = smov %s1414_s19  ;;  %s1412_s17 = smov %s1418_s20 }
 0x14f   :  { %12 = sbr.rel (!%p10_p0) target bundleno = 4 (0x4), region = 113 }

// kernel: wrap_resnet_forward.21
= control target key start
LH: loop header
LB: loop body
LE: loop exit
PB: predicated region body
PF: predicated region fallthrough
CT: control target
= control target key end

     0   :  { %s1345_s12 = smov 0   ;;  %s1347_s13 = smov 0   ;;  %s1536_s0 = inlined_call_operand.vmem [shape: bf16[512,147], index: 0, kind: input, shape index: {}]   ;;  %s1537_s1 = inlined_call_operand.vmem [shape: bf16[147,128], index: 1, kind: input, shape index: {}]   ;;  %s1538_s2 = inlined_call_operand.vmem [shape: f32[1,128], index: 2, kind: input, shape index: {}]   ;;  %s1539_s3 = inlined_call_operand.vmem [shape: f32[512,128], index: 3, kind: output, shape index: {}]  }
   0x1   :  { %s1349_s14 = smov 0  }
   0x2 LB: > { %s32_s15 = sadd.s32 1, %s1317_s13  ;;  %p1127_p0 = scmp.ge.s32.totalorder %s1321_s14, 1  ;;  %s1321_s14 = sphi %s1349_s14, %s13_s14   ;;  %s1317_s13 = sphi %s1347_s13, %s1541_s13   ;;  %s1313_s12 = sphi %s1345_s12, %s1540_s12  }
   0x3   : > { %p34_p1 = scmp.ge.s32.totalorder %s32_s15, 2  ;;  %p191_p2 = scmp.lt.s32.totalorder %s1321_s14, 3 }
   0x5   : > { %s1543_s15 = smov (%p34_p1, %s32_s15), 0  ;;  %p192_p3 = pnand %p1127_p0, %p191_p2 }
   0x6   : > { %s1128_s22 = sshll.u32 (!%p192_p3), %s1313_s12, 5 }
   0x7   : > { %195 = sbr.rel (%p192_p3) target bundleno = 311 (0x137), region = 32  ;;  %p236_p4 = scmp.lt.s32.totalorder (!%p192_p3), %s1128_s22, 63 }
   0xc   : > { %v1241_v0 = vld [vmem:[%s1537_s1 + $0x38] sm:$0xff]   ;;  %v1323_v1 = vmov 0   ;;  %v1242_v2 = vld [vmem:[%s1537_s1 + $0x30] sm:$0xff]   ;;  %v1243_v3 = vld [vmem:[%s1537_s1 + $0x28] sm:$0xff]   ;;  %s1545_s22 = smov (!%p236_p4, %s1128_s22), 63  ;;  %vm588_vm0 = vcmask 154624  }
   0xd   : > { %644 = vmatprep.subr.bf16.mxu0 %v1323_v1  ;;  %1195 = vmatprep.subr.bf16.mxu1 %v1323_v1  ;;  %v1244_v4 = vld [vmem:[%s1537_s1 + $0x20] sm:$0xff]   ;;  %s1194_s25 = sshll.u32 %s1545_s22, 3  ;;  %v1245_v5 = vld [vmem:[%s1537_s1 + $0x18] sm:$0xff]   ;;  %v1246_v8 = vld [vmem:[%s1537_s1 + $0x10] sm:$0xff]   ;;  %vm637_vm1 = vcmask 1040384   ;;  %vm638_vm2 = vcmask 1041408  }
   0xe   : > { %645 = vmatpush1.bf16.msra.mxu0 %v1241_v0  ;;  %1205 = vmatpush1.bf16.msra.mxu1 %v1241_v0  ;;  %s1383_s28 = scalar_lea.vmem %s1536_s0, %s1194_s25  ;;  %v1247_v9 = vld [vmem:[%s1537_s1 + $0x8] sm:$0xff]   ;;  %v1324_v10 = vmov 65535   ;;  %v1248_v12 = vld [vmem:[%s1537_s1] sm:$0xff]   ;;  %s1463_s21 = scalar_lea.vmem %s1539_s3, %s1194_s25 }
   0xf   : > { %646 = vmatprep.subr.bf16.mxu0 %v1323_v1  ;;  %1196 = vmatprep.subr.bf16.mxu1 %v1323_v1  ;;  %v1253_v6 = vld [vmem:[%s1383_s28 + $0x4] ss:$8 sps:$4 sm:$0xff]   ;;  %v639_v11 = vsel %vm637_vm1, 4294967295, %v1324_v10  ;;  %v1249_v13 = vld [vmem:[%s1537_s1 + $0x48] ss:$0 sps:$4 sm:$0x33]  }
  0x10   : > { %v1256_v7 = vld [vmem:[%s1383_s28 + $0x84] ss:$8 sps:$4 sm:$0xff]   ;;  %1175 = vmatprep.mubr.msk.bf16.mxu0 %vm588_vm0, %v1253_v6  ;;  %v640_v14 = vsel %vm638_vm2, %v639_v11, 0  ;;  %v1251_v17 = vld [vmem:[%s1383_s28] ss:$8 sps:$4 sm:$0xff]  }
  0x11   : > { %1183 = vmatprep.mubr.msk.bf16.mxu1 %vm588_vm0, %v1256_v7  ;;  %v642_v15 = vand.u32 %v1249_v13, %v640_v14  ;;  %v1250_v16 = vld [vmem:[%s1537_s1 + $0x40] sm:$0xff]   ;;  %v1257_v19 = vld [vmem:[%s1383_s28 + $0x14] ss:$8 sps:$4 sm:$0xff]   ;;  %v1261_v21 = vld [vmem:[%s1383_s28 + $0x10] ss:$8 sps:$4 sm:$0xff]  }
  0x12   : > { %647 = vmatpush1.bf16.msra.mxu0 %v1242_v2  ;;  %1206 = vmatpush1.bf16.msra.mxu1 %v1242_v2  ;;  %v1254_v18 = vld [vmem:[%s1383_s28 + $0x80] ss:$8 sps:$4 sm:$0xff]   ;;  %v1259_v20 = vld [vmem:[%s1383_s28 + $0x94] ss:$8 sps:$4 sm:$0xff]   ;;  %v1262_v22 = vld [vmem:[%s1383_s28 + $0x90] ss:$8 sps:$4 sm:$0xff]  }
  0x13   : > { %648 = vmatprep.subr.bf16.mxu0 %v1323_v1  ;;  %1197 = vmatprep.subr.bf16.mxu1 %v1323_v1  ;;  %v1263_v23 = vld [vmem:[%s1383_s28 + $0x24] ss:$8 sps:$4 sm:$0xff]   ;;  %v1267_v25 = vld [vmem:[%s1383_s28 + $0x20] ss:$8 sps:$4 sm:$0xff]   ;;  %v1269_v27 = vld [vmem:[%s1383_s28 + $0x34] ss:$8 sps:$4 sm:$0xff]  }
  0x14   : > { %v1265_v24 = vld [vmem:[%s1383_s28 + $0xa4] ss:$8 sps:$4 sm:$0xff]   ;;  %v1268_v26 = vld [vmem:[%s1383_s28 + $0xa0] ss:$8 sps:$4 sm:$0xff]   ;;  %v1271_v28 = vld [vmem:[%s1383_s28 + $0xb4] ss:$8 sps:$4 sm:$0xff]  }
  0x15   : > { %v1273_v29 = vld [vmem:[%s1383_s28 + $0x30] ss:$8 sps:$4 sm:$0xff]   ;;  %v1275_v31 = vld [vmem:[%s1383_s28 + $0x44] ss:$8 sps:$4 sm:$0xff]   ;;  %v1279_v33 = vld [vmem:[%s1383_s28 + $0x40] ss:$8 sps:$4 sm:$0xff]  }
  0x16   : > { %649 = vmatpush1.bf16.msra.mxu0 %v1243_v3  ;;  %1207 = vmatpush1.bf16.msra.mxu1 %v1243_v3  ;;  %v1274_v30 = vld [vmem:[%s1383_s28 + $0xb0] ss:$8 sps:$4 sm:$0xff]   ;;  %v1277_v32 = vld [vmem:[%s1383_s28 + $0xc4] ss:$8 sps:$4 sm:$0xff]   ;;  %v1280_v34 = vld [vmem:[%s1383_s28 + $0xc0] ss:$8 sps:$4 sm:$0xff]  }
  0x17   : > { %650 = vmatprep.subr.bf16.mxu0 %v1323_v1  ;;  %1198 = vmatprep.subr.bf16.mxu1 %v1323_v1  ;;  %v1281_v35 = vld [vmem:[%s1383_s28 + $0x54] ss:$8 sps:$4 sm:$0xff]   ;;  %v1285_v37 = vld [vmem:[%s1383_s28 + $0x50] ss:$8 sps:$4 sm:$0xff]   ;;  %v1287_v39 = vld [vmem:[%s1383_s28 + $0x64] ss:$8 sps:$4 sm:$0xff]  }
  0x18   : > { %v1283_v36 = vld [vmem:[%s1383_s28 + $0xd4] ss:$8 sps:$4 sm:$0xff]   ;;  %v1286_v38 = vld [vmem:[%s1383_s28 + $0xd0] ss:$8 sps:$4 sm:$0xff]   ;;  %v1289_v40 = vld [vmem:[%s1383_s28 + $0xe4] ss:$8 sps:$4 sm:$0xff]  }
  0x19   : > { %v1291_v41 = vld [vmem:[%s1383_s28 + $0x60] ss:$8 sps:$4 sm:$0xff]   ;;  %v1293_v43 = vld [vmem:[%s1383_s28 + $0x74] ss:$8 sps:$4 sm:$0xff]   ;;  %v1297_v45 = vld [vmem:[%s1383_s28 + $0x70] ss:$8 sps:$4 sm:$0xff]  }
  0x1a   : > { %651 = vmatpush1.bf16.msra.mxu0 %v1244_v4  ;;  %1208 = vmatpush1.bf16.msra.mxu1 %v1244_v4  ;;  %v1292_v42 = vld [vmem:[%s1383_s28 + $0xe0] ss:$8 sps:$4 sm:$0xff]   ;;  %v1295_v44 = vld [vmem:[%s1383_s28 + $0xf4] ss:$8 sps:$4 sm:$0xff]   ;;  %v1298_v46 = vld [vmem:[%s1383_s28 + $0xf0] ss:$8 sps:$4 sm:$0xff]  }
  0x1b   : > { %652 = vmatprep.subr.bf16.mxu0 %v1323_v1  ;;  %1199 = vmatprep.subr.bf16.mxu1 %v1323_v1  ;;  %v1454_v47 = vld [vmem:[%s1538_s2] ss:$0 sm:$0xff] }
  0x1e   : > { %653 = vmatpush1.bf16.msra.mxu0 %v1245_v5  ;;  %1209 = vmatpush1.bf16.msra.mxu1 %v1245_v5 }
  0x1f   : > { %654 = vmatprep.subr.bf16.mxu0 %v1323_v1  ;;  %1200 = vmatprep.subr.bf16.mxu1 %v1323_v1 }
  0x22   : > { %655 = vmatpush1.bf16.msra.mxu0 %v1246_v8  ;;  %1210 = vmatpush1.bf16.msra.mxu1 %v1246_v8 }
  0x23   : > { %656 = vmatprep.subr.bf16.mxu0 %v1323_v1  ;;  %1201 = vmatprep.subr.bf16.mxu1 %v1323_v1 }
  0x26   : > { %657 = vmatpush1.bf16.msra.mxu0 %v1247_v9  ;;  %1211 = vmatpush1.bf16.msra.mxu1 %v1247_v9 }
  0x27   : > { %658 = vmatprep.subr.bf16.mxu0 %v1323_v1  ;;  %1202 = vmatprep.subr.bf16.mxu1 %v1323_v1 }
  0x2a   : > { %659 = vmatpush1.bf16.msra.mxu0 %v1248_v12  ;;  %1212 = vmatpush1.bf16.msra.mxu1 %v1248_v12 }
  0x2b   : > { %672 = vmatprep.subr.bf16.mxu0 %v1323_v1  ;;  %1203 = vmatprep.subr.bf16.mxu1 %v1323_v1 }
  0x2e   : > { %673 = vmatpush2.bf16.msra.mxu0 %v642_v15  ;;  %1213 = vmatpush2.bf16.msra.mxu1 %v642_v15 }
  0x2f   : > { %674 = vmatprep.subr.bf16.mxu0 %v1323_v1  ;;  %1204 = vmatprep.subr.bf16.mxu1 %v1323_v1 }
  0x32   : > { %675 = vmatpush2.bf16.msra.mxu0 %v1250_v16  ;;  %1214 = vmatpush2.bf16.msra.mxu1 %v1250_v16 }
  0x35   : > { %677 = vmatmul.mubr.bf16.vlgmr.msra.gmra.mxu0 %v1251_v17  ;;  %741 = vmatmul.mubr.bf16.vlgmr.msra.gmra.mxu1 %v1254_v18 }
  0x36   : > { %1176 = vmatprep.mubr.msk.bf16.mxu0 %vm588_vm0, %v1257_v19  ;;  %1184 = vmatprep.mubr.msk.bf16.mxu1 %vm588_vm0, %v1259_v20 }
  0x3d   : > { %685 = vmatmul.mubr.bf16.gmra.mxu0 %v1261_v21  ;;  %749 = vmatmul.mubr.bf16.gmra.mxu1 %v1262_v22 }
  0x3e   : > { %1177 = vmatprep.mubr.msk.bf16.mxu0 %vm588_vm0, %v1263_v23  ;;  %1185 = vmatprep.mubr.msk.bf16.mxu1 %vm588_vm0, %v1265_v24 }
  0x45   : > { %693 = vmatmul.mubr.bf16.gmra.mxu0 %v1267_v25  ;;  %757 = vmatmul.mubr.bf16.gmra.mxu1 %v1268_v26 }
  0x46   : > { %1178 = vmatprep.mubr.msk.bf16.mxu0 %vm588_vm0, %v1269_v27  ;;  %1186 = vmatprep.mubr.msk.bf16.mxu1 %vm588_vm0, %v1271_v28 }
  0x4d   : > { %701 = vmatmul.mubr.bf16.gmra.mxu0 %v1273_v29  ;;  %765 = vmatmul.mubr.bf16.gmra.mxu1 %v1274_v30 }
  0x4e   : > { %1179 = vmatprep.mubr.msk.bf16.mxu0 %vm588_vm0, %v1275_v31  ;;  %1187 = vmatprep.mubr.msk.bf16.mxu1 %vm588_vm0, %v1277_v32 }
  0x55   : > { %709 = vmatmul.mubr.bf16.gmra.mxu0 %v1279_v33  ;;  %773 = vmatmul.mubr.bf16.gmra.mxu1 %v1280_v34 }
  0x56   : > { %1180 = vmatprep.mubr.msk.bf16.mxu0 %vm588_vm0, %v1281_v35  ;;  %1188 = vmatprep.mubr.msk.bf16.mxu1 %vm588_vm0, %v1283_v36 }
  0x5d   : > { %717 = vmatmul.mubr.bf16.gmra.mxu0 %v1285_v37  ;;  %781 = vmatmul.mubr.bf16.gmra.mxu1 %v1286_v38 }
  0x5e   : > { %1181 = vmatprep.mubr.msk.bf16.mxu0 %vm588_vm0, %v1287_v39  ;;  %1189 = vmatprep.mubr.msk.bf16.mxu1 %vm588_vm0, %v1289_v40 }
  0x65   : > { %725 = vmatmul.mubr.bf16.gmra.mxu0 %v1291_v41  ;;  %789 = vmatmul.mubr.bf16.gmra.mxu1 %v1292_v42 }
  0x66   : > { %1182 = vmatprep.mubr.msk.bf16.mxu0 %vm588_vm0, %v1293_v43  ;;  %1190 = vmatprep.mubr.msk.bf16.mxu1 %vm588_vm0, %v1295_v44 }
  0x6d   : > { %733 = vmatmul.mubr.bf16.gmra.mxu0 %v1297_v45  ;;  %797 = vmatmul.mubr.bf16.gmra.mxu1 %v1298_v46 }
  0xf5   : > { %v678_v48 = vpop.f32.mrf.mxu0  ;;  %v742_v49 = vpop.f32.mrf.mxu1 }
  0xf6   : > { %v911_v50 = vadd.f32 %v1454_v47, %v678_v48  ;;  %v927_v51 = vadd.f32 %v1454_v47, %v742_v49 }
  0xf7   : > { %v680_v52 = vpop.f32.mrf.mxu0  ;;  %v744_v53 = vpop.f32.mrf.mxu1 }
  0xf8   : > { %v943_v54 = vmax.f32 %v911_v50, 0.0  ;;  %v959_v55 = vmax.f32 %v927_v51, 0.0 }
  0xf9   : > { %v681_v56 = vpop.f32.mrf.mxu0  ;;  %v745_v57 = vpop.f32.mrf.mxu1 }
  0xfa   : > { %975 = vst [vmem:[%s1463_s21] sm:$0xff] %v943_v54  ;;  %991 = vst [vmem:[%s1463_s21 + $0x80] sm:$0xff] %v959_v55  ;;  %v912_v58 = vadd.f32 %v1454_v47, %v681_v56  ;;  %v928_v59 = vadd.f32 %v1454_v47, %v745_v57 }
  0xfb   : > { %v683_v60 = vpop.f32.mrf.mxu0  ;;  %v747_v61 = vpop.f32.mrf.mxu1 }
  0xfc   : > { %v944_v62 = vmax.f32 %v912_v58, 0.0  ;;  %v960_v63 = vmax.f32 %v928_v59, 0.0 }
  0xfd   : > { %v686_v0 = vpop.f32.mrf.mxu0  ;;  %v750_v1 = vpop.f32.mrf.mxu1 }
  0xfe   : > { %976 = vst [vmem:[%s1463_s21 + $0x8] sm:$0xff] %v944_v62  ;;  %992 = vst [vmem:[%s1463_s21 + $0x88] sm:$0xff] %v960_v63  ;;  %v913_v2 = vadd.f32 %v1454_v47, %v686_v0  ;;  %v929_v3 = vadd.f32 %v1454_v47, %v750_v1 }
  0xff   : > { %v688_v4 = vpop.f32.mrf.mxu0  ;;  %v752_v5 = vpop.f32.mrf.mxu1 }
 0x100   : > { %v945_v6 = vmax.f32 %v913_v2, 0.0  ;;  %v961_v7 = vmax.f32 %v929_v3, 0.0 }
 0x101   : > { %v689_v8 = vpop.f32.mrf.mxu0  ;;  %v753_v9 = vpop.f32.mrf.mxu1 }
 0x102   : > { %977 = vst [vmem:[%s1463_s21 + $0x10] sm:$0xff] %v945_v6  ;;  %993 = vst [vmem:[%s1463_s21 + $0x90] sm:$0xff] %v961_v7  ;;  %v914_v10 = vadd.f32 %v1454_v47, %v689_v8  ;;  %v930_v11 = vadd.f32 %v1454_v47, %v753_v9 }
 0x103   : > { %v691_v12 = vpop.f32.mrf.mxu0  ;;  %v755_v13 = vpop.f32.mrf.mxu1 }
 0x104   : > { %v946_v14 = vmax.f32 %v914_v10, 0.0  ;;  %v962_v15 = vmax.f32 %v930_v11, 0.0 }
 0x105   : > { %v694_v16 = vpop.f32.mrf.mxu0  ;;  %v758_v17 = vpop.f32.mrf.mxu1 }
 0x106   : > { %978 = vst [vmem:[%s1463_s21 + $0x18] sm:$0xff] %v946_v14  ;;  %994 = vst [vmem:[%s1463_s21 + $0x98] sm:$0xff] %v962_v15  ;;  %v915_v18 = vadd.f32 %v1454_v47, %v694_v16  ;;  %v931_v19 = vadd.f32 %v1454_v47, %v758_v17 }
 0x107   : > { %v696_v20 = vpop.f32.mrf.mxu0  ;;  %v760_v21 = vpop.f32.mrf.mxu1 }
 0x108   : > { %v947_v22 = vmax.f32 %v915_v18, 0.0  ;;  %v963_v23 = vmax.f32 %v931_v19, 0.0 }
 0x109   : > { %v697_v24 = vpop.f32.mrf.mxu0  ;;  %v761_v25 = vpop.f32.mrf.mxu1 }
 0x10a   : > { %979 = vst [vmem:[%s1463_s21 + $0x20] sm:$0xff] %v947_v22  ;;  %995 = vst [vmem:[%s1463_s21 + $0xa0] sm:$0xff] %v963_v23  ;;  %v916_v26 = vadd.f32 %v1454_v47, %v697_v24  ;;  %v932_v27 = vadd.f32 %v1454_v47, %v761_v25 }
 0x10b   : > { %v699_v28 = vpop.f32.mrf.mxu0  ;;  %v763_v29 = vpop.f32.mrf.mxu1 }
 0x10c   : > { %v948_v30 = vmax.f32 %v916_v26, 0.0  ;;  %v964_v31 = vmax.f32 %v932_v27, 0.0 }
 0x10d   : > { %v702_v32 = vpop.f32.mrf.mxu0  ;;  %v766_v33 = vpop.f32.mrf.mxu1 }
 0x10e   : > { %980 = vst [vmem:[%s1463_s21 + $0x28] sm:$0xff] %v948_v30  ;;  %996 = vst [vmem:[%s1463_s21 + $0xa8] sm:$0xff] %v964_v31  ;;  %v917_v34 = vadd.f32 %v1454_v47, %v702_v32  ;;  %v933_v35 = vadd.f32 %v1454_v47, %v766_v33 }
 0x10f   : > { %v704_v36 = vpop.f32.mrf.mxu0  ;;  %v768_v37 = vpop.f32.mrf.mxu1 }
 0x110   : > { %v949_v38 = vmax.f32 %v917_v34, 0.0  ;;  %v965_v39 = vmax.f32 %v933_v35, 0.0 }
 0x111   : > { %v705_v40 = vpop.f32.mrf.mxu0  ;;  %v769_v41 = vpop.f32.mrf.mxu1 }
 0x112   : > { %981 = vst [vmem:[%s1463_s21 + $0x30] sm:$0xff] %v949_v38  ;;  %997 = vst [vmem:[%s1463_s21 + $0xb0] sm:$0xff] %v965_v39  ;;  %v918_v42 = vadd.f32 %v1454_v47, %v705_v40  ;;  %v934_v43 = vadd.f32 %v1454_v47, %v769_v41 }
 0x113   : > { %v707_v44 = vpop.f32.mrf.mxu0  ;;  %v771_v45 = vpop.f32.mrf.mxu1 }
 0x114   : > { %v950_v46 = vmax.f32 %v918_v42, 0.0  ;;  %v966_v48 = vmax.f32 %v934_v43, 0.0 }
 0x115   : > { %v710_v49 = vpop.f32.mrf.mxu0  ;;  %v774_v50 = vpop.f32.mrf.mxu1 }
 0x116   : > { %982 = vst [vmem:[%s1463_s21 + $0x38] sm:$0xff] %v950_v46  ;;  %998 = vst [vmem:[%s1463_s21 + $0xb8] sm:$0xff] %v966_v48  ;;  %v919_v51 = vadd.f32 %v1454_v47, %v710_v49  ;;  %v935_v52 = vadd.f32 %v1454_v47, %v774_v50 }
 0x117   : > { %v712_v53 = vpop.f32.mrf.mxu0  ;;  %v776_v54 = vpop.f32.mrf.mxu1 }
 0x118   : > { %v951_v55 = vmax.f32 %v919_v51, 0.0  ;;  %v967_v56 = vmax.f32 %v935_v52, 0.0 }
 0x119   : > { %v713_v57 = vpop.f32.mrf.mxu0  ;;  %v777_v58 = vpop.f32.mrf.mxu1 }
 0x11a   : > { %983 = vst [vmem:[%s1463_s21 + $0x40] sm:$0xff] %v951_v55  ;;  %999 = vst [vmem:[%s1463_s21 + $0xc0] sm:$0xff] %v967_v56  ;;  %v920_v59 = vadd.f32 %v1454_v47, %v713_v57  ;;  %v936_v60 = vadd.f32 %v1454_v47, %v777_v58 }
 0x11b   : > { %v715_v61 = vpop.f32.mrf.mxu0  ;;  %v779_v62 = vpop.f32.mrf.mxu1 }
 0x11c   : > { %v952_v63 = vmax.f32 %v920_v59, 0.0  ;;  %v968_v0 = vmax.f32 %v936_v60, 0.0 }
 0x11d   : > { %v718_v1 = vpop.f32.mrf.mxu0  ;;  %v782_v2 = vpop.f32.mrf.mxu1 }
 0x11e   : > { %984 = vst [vmem:[%s1463_s21 + $0x48] sm:$0xff] %v952_v63  ;;  %1000 = vst [vmem:[%s1463_s21 + $0xc8] sm:$0xff] %v968_v0  ;;  %v921_v3 = vadd.f32 %v1454_v47, %v718_v1  ;;  %v937_v4 = vadd.f32 %v1454_v47, %v782_v2 }
 0x11f   : > { %v720_v5 = vpop.f32.mrf.mxu0  ;;  %v784_v6 = vpop.f32.mrf.mxu1 }
 0x120   : > { %v953_v7 = vmax.f32 %v921_v3, 0.0  ;;  %v969_v8 = vmax.f32 %v937_v4, 0.0 }
 0x121   : > { %v721_v9 = vpop.f32.mrf.mxu0  ;;  %v785_v10 = vpop.f32.mrf.mxu1 }
 0x122   : > { %985 = vst [vmem:[%s1463_s21 + $0x50] sm:$0xff] %v953_v7  ;;  %1001 = vst [vmem:[%s1463_s21 + $0xd0] sm:$0xff] %v969_v8  ;;  %v922_v11 = vadd.f32 %v1454_v47, %v721_v9  ;;  %v938_v12 = vadd.f32 %v1454_v47, %v785_v10 }
 0x123   : > { %v723_v13 = vpop.f32.mrf.mxu0  ;;  %v787_v14 = vpop.f32.mrf.mxu1 }
 0x124   : > { %v954_v15 = vmax.f32 %v922_v11, 0.0  ;;  %v970_v16 = vmax.f32 %v938_v12, 0.0 }
 0x125   : > { %v726_v17 = vpop.f32.mrf.mxu0  ;;  %v790_v18 = vpop.f32.mrf.mxu1 }
 0x126   : > { %986 = vst [vmem:[%s1463_s21 + $0x58] sm:$0xff] %v954_v15  ;;  %1002 = vst [vmem:[%s1463_s21 + $0xd8] sm:$0xff] %v970_v16  ;;  %v923_v19 = vadd.f32 %v1454_v47, %v726_v17  ;;  %v939_v20 = vadd.f32 %v1454_v47, %v790_v18 }
 0x127   : > { %v728_v21 = vpop.f32.mrf.mxu0  ;;  %v792_v22 = vpop.f32.mrf.mxu1 }
 0x128   : > { %v955_v23 = vmax.f32 %v923_v19, 0.0  ;;  %v971_v24 = vmax.f32 %v939_v20, 0.0 }
 0x129   : > { %v729_v25 = vpop.f32.mrf.mxu0  ;;  %v793_v26 = vpop.f32.mrf.mxu1 }
 0x12a   : > { %987 = vst [vmem:[%s1463_s21 + $0x60] sm:$0xff] %v955_v23  ;;  %1003 = vst [vmem:[%s1463_s21 + $0xe0] sm:$0xff] %v971_v24  ;;  %v924_v27 = vadd.f32 %v1454_v47, %v729_v25  ;;  %v940_v28 = vadd.f32 %v1454_v47, %v793_v26 }
 0x12b   : > { %v731_v29 = vpop.f32.mrf.mxu0  ;;  %v795_v30 = vpop.f32.mrf.mxu1 }
 0x12c   : > { %v956_v31 = vmax.f32 %v924_v27, 0.0  ;;  %v972_v32 = vmax.f32 %v940_v28, 0.0 }
 0x12d   : > { %v734_v33 = vpop.f32.mrf.mxu0  ;;  %v798_v34 = vpop.f32.mrf.mxu1 }
 0x12e   : > { %988 = vst [vmem:[%s1463_s21 + $0x68] sm:$0xff] %v956_v31  ;;  %1004 = vst [vmem:[%s1463_s21 + $0xe8] sm:$0xff] %v972_v32  ;;  %v925_v35 = vadd.f32 %v1454_v47, %v734_v33  ;;  %v941_v36 = vadd.f32 %v1454_v47, %v798_v34 }
 0x12f   : > { %v736_v37 = vpop.f32.mrf.mxu0  ;;  %v800_v38 = vpop.f32.mrf.mxu1 }
 0x130   : > { %v957_v39 = vmax.f32 %v925_v35, 0.0  ;;  %v973_v40 = vmax.f32 %v941_v36, 0.0 }
 0x131   : > { %v737_v41 = vpop.f32.mrf.mxu0  ;;  %v801_v42 = vpop.f32.mrf.mxu1 }
 0x132   : > { %989 = vst [vmem:[%s1463_s21 + $0x70] sm:$0xff] %v957_v39  ;;  %1005 = vst [vmem:[%s1463_s21 + $0xf0] sm:$0xff] %v973_v40  ;;  %v926_v43 = vadd.f32 %v1454_v47, %v737_v41  ;;  %v942_v44 = vadd.f32 %v1454_v47, %v801_v42 }
 0x133   : > { %v739_v45 = vpop.f32.mrf.mxu0  ;;  %v803_v46 = vpop.f32.mrf.mxu1 }
 0x134   : > { %v958_v48 = vmax.f32 %v926_v43, 0.0  ;;  %v974_v49 = vmax.f32 %v942_v44, 0.0 }
 0x136   : > { %990 = vst [vmem:[%s1463_s21 + $0x78] sm:$0xff] %v958_v48  ;;  %1006 = vst [vmem:[%s1463_s21 + $0xf8] sm:$0xff] %v974_v49 }
 0x137 PF: > { %s13_s14 = sadd.s32 1, %s1321_s14   ;;  %s1540_s12 = smov %s1317_s13 }
 0x138   : > { %p10_p5 = scmp.ge.s32.totalorder %s13_s14, 4   ;;  %s1541_s13 = smov %s1543_s15 }
 0x13a   :  { %12 = sbr.rel (!%p10_p5) target bundleno = 2 (0x2), region = 76 }

// kernel: wrap_resnet_forward.23
= control target key start
LH: loop header
LB: loop body
LE: loop exit
PB: predicated region body
PF: predicated region fallthrough
CT: control target
= control target key end

     0   :  { %s1336_s15 = smov 0   ;;  %s1338_s16 = smov 0   ;;  %s1514_s0 = inlined_call_operand.vmem [shape: bf16[128,1152], index: 0, kind: input, shape index: {}]   ;;  %s1515_s1 = inlined_call_operand.vmem [shape: bf16[1152,128], index: 1, kind: input, shape index: {}]   ;;  %s1516_s2 = inlined_call_operand.vmem [shape: f32[1,128], index: 2, kind: input, shape index: {}]   ;;  %s1517_s3 = inlined_call_operand.vmem [shape: f32[128,128], index: 3, kind: input, shape index: {}]   ;;  %s1518_s4 = inlined_call_operand.vmem [shape: f32[128,128], index: 4, kind: output, shape index: {}]  }
   0x1   :  { %s1340_s17 = smov 0   ;;  %s1342_s18 = smov 0  }
   0x2   :  { %s1344_s19 = smov 0   ;;  %s1346_s20 = smov 0  }
   0x3   :  { %s1348_s21 = smov 0  }
   0x4 LB: > { %s26_s22 = sadd.s32 1, %s1300_s19  ;;  %s33_s23 = sadd.s32 1, %s1304_s20  ;;  %s1308_s21 = sphi %s1348_s21, %s14_s21   ;;  %s1304_s20 = sphi %s1346_s20, %s1524_s20   ;;  %s1300_s19 = sphi %s1344_s19, %s1523_s19   ;;  %s1296_s18 = sphi %s1342_s18, %s1522_s18   ;;  %s1292_s17 = sphi %s1340_s17, %s1521_s17   ;;  %s1288_s16 = sphi %s1338_s16, %s1520_s16   ;;  %s1284_s15 = sphi %s1336_s15, %s1519_s15  }
   0x5   : > { %p27_p0 = scmp.ge.s32.totalorder %s26_s22, 3  ;;  %p49_p1 = scmp.ne.s32.totalorder %s1288_s16, %s1284_s15 }
   0x6   : > { %p50_p2 = scmp.eq.s32.totalorder %s1308_s21, 0  ;;  %s42_s27 = sadd.s32 1, %s1288_s16 }
   0x7   : > { %s1526_s22 = smov (%p27_p0, %s26_s22), 0  ;;  %s1528_s23 = smov (!%p27_p0, %s33_s23), %s1304_s20 }
   0x8   : > { %p51_p3 = por %p50_p2, %p49_p1  ;;  %p35_p4 = scmp.ge.s32.totalorder %s1528_s23, 2 }
   0x9   : > { %s38_s24 = ssub.s32 %s1300_s19, %s1526_s22  ;;  %p1011_p6 = scmp.ge.s32.totalorder %s1308_s21, 6 }
   0xa   : > { %s1530_s23 = smov (%p35_p4, %s1528_s23), 0 }
   0xb   : > { %s37_s25 = ssub.s32 %s1304_s20, %s1530_s23  ;;  %191 = sbr.rel (%p1011_p6) target bundleno = 34 (0x22), region = 20 }
   0xc   : > { %s39_s26 = sor.u32 %s38_s24, %s37_s25 }
   0xd   : > { %p40_p5 = scmp.eq.s32.totalorder %s39_s26, 0 }
   0xf   : > { %s1387_s28 = scalar_select %p40_p5, %s1288_s16, %s42_s27  }
  0x10   : > { %194 = sbr.rel (!%p51_p3) target bundleno = 34 (0x22), region = 24  ;;  %s196_s29 = sand.u32 (%p51_p3), 1, %s1288_s16  }
  0x11   : > { %s200_s30 = smul.u32 (%p51_p3), 3, %s1300_s19 }
  0x12   : > { %s1154_s5 = smul.u32 (%p51_p3), 96, %s196_s29 }
  0x13   : > { %s1155_s6 = smul.u32 (%p51_p3), 72, %s1304_s20 }
  0x14   : > { %s198_s12 = scalar_lea.vmem (%p51_p3), [#allocation3], %s1154_s5 }
  0x15   : > { %s202_s7 = sadd.s32 %s1155_s6, %s200_s30 }
  0x16   : > { %s1014_s8 = sshll.u32 %s202_s7, 2 }
  0x17   : > { %s1396_s11 = scalar_lea.vmem %s1514_s0, %s1014_s8 }
  0x18   : > { %v219_v0 = vld [vmem:[%s1396_s11] sm:$0xff]  ;;  %v223_v2 = vld [vmem:[%s1396_s11 + $0x48] sm:$0xff]  ;;  %v227_v4 = vld [vmem:[%s1396_s11 + $0x90] sm:$0xff] }
  0x19   : > { %v221_v1 = vld [vmem:[%s1396_s11 + $0x24] sm:$0xff]  ;;  %220 = vst [vmem:[%s198_s12] sm:$0xff] %v219_v0  ;;  %224 = vst [vmem:[%s198_s12 + $0x18] sm:$0xff] %v223_v2  ;;  %v225_v3 = vld [vmem:[%s1396_s11 + $0x6c] sm:$0xff] }
  0x1a   : > { %222 = vst [vmem:[%s198_s12 + $0xc] sm:$0xff] %v221_v1  ;;  %v229_v5 = vld [vmem:[%s1396_s11 + $0xb4] sm:$0xff]  ;;  %226 = vst [vmem:[%s198_s12 + $0x24] sm:$0xff] %v225_v3  ;;  %v233_v7 = vld [vmem:[%s1396_s11 + $0xfc] sm:$0xff] }
  0x1b   : > { %228 = vst [vmem:[%s198_s12 + $0x30] sm:$0xff] %v227_v4  ;;  %230 = vst [vmem:[%s198_s12 + $0x3c] sm:$0xff] %v229_v5  ;;  %v231_v6 = vld [vmem:[%s1396_s11 + $0xd8] sm:$0xff]  ;;  %v1015_v8 = vld [vmem:[%s1396_s11 + $0x8] sm:$0xf] }
  0x1c   : > { %232 = vst [vmem:[%s198_s12 + $0x48] sm:$0xff] %v231_v6  ;;  %234 = vst [vmem:[%s198_s12 + $0x54] sm:$0xff] %v233_v7  ;;  %v1017_v9 = vld [vmem:[%s1396_s11 + $0x2c] sm:$0xf]  ;;  %v1019_v10 = vld [vmem:[%s1396_s11 + $0x50] sm:$0xf] }
  0x1d   : > { %1016 = vst [vmem:[%s198_s12 + $0x8] sm:$0xf] %v1015_v8  ;;  %v1021_v11 = vld [vmem:[%s1396_s11 + $0x74] sm:$0xf]  ;;  %1018 = vst [vmem:[%s198_s12 + $0x14] sm:$0xf] %v1017_v9 }
  0x1e   : > { %1020 = vst [vmem:[%s198_s12 + $0x20] sm:$0xf] %v1019_v10  ;;  %1022 = vst [vmem:[%s198_s12 + $0x2c] sm:$0xf] %v1021_v11  ;;  %v1023_v12 = vld [vmem:[%s1396_s11 + $0x98] sm:$0xf] }
  0x1f   : > { %v1025_v13 = vld [vmem:[%s1396_s11 + $0xbc] sm:$0xf]  ;;  %v1027_v14 = vld [vmem:[%s1396_s11 + $0xe0] sm:$0xf]  ;;  %1024 = vst [vmem:[%s198_s12 + $0x38] sm:$0xf] %v1023_v12 }
  0x20   : > { %1026 = vst [vmem:[%s198_s12 + $0x44] sm:$0xf] %v1025_v13  ;;  %1028 = vst [vmem:[%s198_s12 + $0x50] sm:$0xf] %v1027_v14  ;;  %v1029_v15 = vld [vmem:[%s1396_s11 + $0x104] sm:$0xf] }
  0x21   : > { %1030 = vst [vmem:[%s198_s12 + $0x5c] sm:$0xf] %v1029_v15 }
  0x22 PF: > { %p1031_p7 = scmp.ge.s32.totalorder %s1308_s21, 1  ;;  %p287_p8 = scmp.lt.s32.totalorder %s1308_s21, 7 }
  0x24   : > { %p288_p9 = pnand %p1031_p7, %p287_p8 }
  0x25   : > { %s294_s13 = sand.u32 (!%p288_p9), 1, %s1284_s15   ;;  %s343_s14 = smul.u32 (!%p288_p9), 48, %s1292_s17 }
  0x26   : > { %291 = sbr.rel (%p288_p9) target bundleno = 333 (0x14d), region = 58  ;;  %s1033_s25 = sshll.u32 (!%p288_p9), %s1296_s18, 3 }
  0x27   : > { %s1156_s24 = smul.u32 (!%p288_p9), 96, %s294_s13  ;;  %p344_p10 = scmp.lt.s32.totalorder (!%p288_p9), %s343_s14, 143 }
  0x28   : > { %p356_p11 = scmp.lt.s32.totalorder (!%p288_p9), %s1033_s25, 15  ;;  %p1037_p12 = scmp.ne.s32.totalorder (!%p288_p9), %s1292_s17, 0 }
  0x29   : > { %s1434_s10 = scalar_lea.vmem (!%p288_p9), [#allocation3], %s1156_s24 }
  0x2b   : > { %s1532_s14 = smov (!%p344_p10, %s343_s14), 143  ;;  %s1534_s25 = smov (!%p356_p11, %s1033_s25), 15 }
  0x2c   : > { %s1032_s26 = sshll.u32 %s1532_s14, 2  ;;  %s1034_s5 = sshll.u32 %s1534_s25, 3 }
  0x2d   : > { %s1422_s30 = scalar_lea.vmem %s1515_s1, %s1032_s26  ;;  %s1427_s8 = scalar_lea.vmem %s1517_s3, %s1034_s5 }
  0x2e   : > { %s1432_s18 = scalar_lea.vmem %s1518_s4, %s1034_s5  ;;  %377 = sbr.rel (%p1037_p12) target bundleno = 56 (0x38), region = 66 }
  0x33   : > { %v1310_v16 = vmov 0.0  }
  0x34   : > { %378 = vst [vmem:[#allocation2 + $0x30] sm:$0xff] %v1310_v16  ;;  %379 = vst [vmem:[#allocation2] sm:$0xff] %v1310_v16 }
  0x35   : > { %380 = vst [vmem:[#allocation2 + $0x18] sm:$0xff] %v1310_v16  ;;  %381 = vst [vmem:[#allocation2 + $0x10] sm:$0xff] %v1310_v16 }
  0x36   : > { %382 = vst [vmem:[#allocation2 + $0x8] sm:$0xff] %v1310_v16  ;;  %383 = vst [vmem:[#allocation2 + $0x20] sm:$0xff] %v1310_v16 }
  0x37   : > { %384 = vst [vmem:[#allocation2 + $0x28] sm:$0xff] %v1310_v16  ;;  %385 = vst [vmem:[#allocation2 + $0x38] sm:$0xff] %v1310_v16 }
  0x38 PF: > { %v1214_v17 = vld [vmem:[%s1422_s30 + $0x78] sm:$0xff]   ;;  %v1217_v20 = vld [vmem:[%s1422_s30 + $0x70] sm:$0xff]   ;;  %v1220_v23 = vld [vmem:[%s1422_s30 + $0x68] sm:$0xff]   ;;  %p1074_p13 = scmp.ne.s32.totalorder %s1292_s17, 2 }
  0x39   : > { %v1215_v18 = vld [vmem:[%s1422_s30 + $0x38] sm:$0xff]   ;;  %1078 = vmatprep.subr.bf16.mxu0 %v1214_v17  ;;  %v1218_v21 = vld [vmem:[%s1422_s30 + $0x30] sm:$0xff]   ;;  %v1221_v24 = vld [vmem:[%s1422_s30 + $0x28] sm:$0xff]  }
  0x3a   : > { %v1216_v19 = vld [vmem:[%s1422_s30 + $0xb8] sm:$0xff]   ;;  %1079 = vmatpush3.bf16.msra.mxu0 %v1215_v18  ;;  %v1219_v22 = vld [vmem:[%s1422_s30 + $0xb0] sm:$0xff]   ;;  %v1222_v25 = vld [vmem:[%s1422_s30 + $0xa8] sm:$0xff]  }
  0x3b   : > { %1130 = vmatprep.subr.bf16.mxu1 %v1216_v19  ;;  %1080 = vmatprep.subr.bf16.mxu0 %v1217_v20  ;;  %v1223_v26 = vld [vmem:[%s1422_s30 + $0x60] sm:$0xff]   ;;  %v1226_v29 = vld [vmem:[%s1422_s30 + $0x58] sm:$0xff]   ;;  %v1229_v32 = vld [vmem:[%s1422_s30 + $0x50] sm:$0xff]  }
  0x3c   : > { %1131 = vmatpush3.bf16.msra.mxu1 %v1216_v19  ;;  %v1224_v27 = vld [vmem:[%s1422_s30 + $0x20] sm:$0xff]   ;;  %v1228_v30 = vld [vmem:[%s1422_s30 + $0x98] sm:$0xff]   ;;  %v1231_v33 = vld [vmem:[%s1422_s30 + $0x90] sm:$0xff]  }
  0x3d   : > { %1132 = vmatprep.subr.bf16.mxu1 %v1219_v22  ;;  %v1225_v28 = vld [vmem:[%s1422_s30 + $0xa0] sm:$0xff]   ;;  %v1227_v31 = vld [vmem:[%s1422_s30 + $0x18] sm:$0xff]   ;;  %v1230_v34 = vld [vmem:[%s1422_s30 + $0x10] sm:$0xff]  }
  0x3e   : > { %1081 = vmatpush3.bf16.msra.mxu0 %v1218_v21  ;;  %v1232_v35 = vld [vmem:[%s1422_s30 + $0x48] sm:$0xff]   ;;  %v1235_v38 = vld [vmem:[%s1422_s30 + $0x40] sm:$0xff]   ;;  %v1250_v49 = vld [vmem:[%s1434_s10 + $0x50] ss:$12 sps:$4 sm:$0xff]  }
  0x3f   : > { %1082 = vmatprep.subr.bf16.mxu0 %v1220_v23  ;;  %v1233_v36 = vld [vmem:[%s1422_s30 + $0x8] sm:$0xff]   ;;  %v1237_v39 = vld [vmem:[%s1422_s30 + $0x80] sm:$0xff]   ;;  %v1248_v50 = vld [vmem:[%s1434_s10 + $0x30] ss:$12 sps:$4 sm:$0xff]  }
  0x40   : > { %1133 = vmatpush3.bf16.msra.mxu1 %v1219_v22  ;;  %v1234_v37 = vld [vmem:[%s1422_s30 + $0x88] sm:$0xff]   ;;  %v1240_v40 = vld [vmem:[%s1434_s10 + $0x4] ss:$12 sps:$4 sm:$0xff]   ;;  %v1246_v48 = vld [vmem:[%s1434_s10 + $0x34] ss:$12 sps:$4 sm:$0xff]  }
  0x41   : > { %1134 = vmatprep.subr.bf16.mxu1 %v1222_v25  ;;  %v1241_v41 = vld [vmem:[%s1434_s10 + $0x8] ss:$12 sps:$4 sm:$0xff]   ;;  %v1236_v42 = vld [vmem:[%s1422_s30] sm:$0xff]   ;;  %698 = vmatprep.mubr.bf16.mxu0 %v1240_v40  ;;  %v1251_v51 = vld [vmem:[%s1434_s10 + $0x4c] ss:$12 sps:$4 sm:$0xff]  }
  0x42   : > { %1083 = vmatpush3.bf16.msra.mxu0 %v1221_v24  ;;  %1146 = vmatprep.mubr.bf16.mxu1 %v1241_v41  ;;  %v1238_v43 = vld [vmem:[%s1434_s10] ss:$12 sps:$4 sm:$0xff]   ;;  %v1243_v44 = vld [vmem:[%s1434_s10 + $0x1c] ss:$12 sps:$4 sm:$0xff]   ;;  %v1249_v46 = vld [vmem:[%s1434_s10 + $0x38] ss:$12 sps:$4 sm:$0xff]  }
  0x43   : > { %1084 = vmatprep.subr.bf16.mxu0 %v1223_v26  ;;  %v1242_v45 = vld [vmem:[%s1434_s10 + $0x20] ss:$12 sps:$4 sm:$0xff]   ;;  %v1245_v47 = vld [vmem:[%s1434_s10 + $0x18] ss:$12 sps:$4 sm:$0xff]   ;;  %v1253_v52 = vld [vmem:[%s1434_s10 + $0x48] ss:$12 sps:$4 sm:$0xff]  }
  0x44   : > { %1135 = vmatpush3.bf16.msra.mxu1 %v1222_v25  ;;  %v386_v58 = vld [vmem:[#allocation2 + $0x30] sm:$0xff]  ;;  %v387_v2 = vld [vmem:[#allocation2] sm:$0xff]  ;;  %v388_v9 = vld [vmem:[#allocation2 + $0x18] sm:$0xff] }
  0x45   : > { %1136 = vmatprep.subr.bf16.mxu1 %v1225_v28  ;;  %v389_v16 = vld [vmem:[#allocation2 + $0x10] sm:$0xff]  ;;  %v390_v24 = vld [vmem:[#allocation2 + $0x8] sm:$0xff] }
  0x46   : > { %1085 = vmatpush3.bf16.msra.mxu0 %v1224_v27 }
  0x47   : > { %1086 = vmatprep.subr.bf16.mxu0 %v1226_v29 }
  0x48   : > { %1137 = vmatpush3.bf16.msra.mxu1 %v1225_v28 }
  0x49   : > { %1138 = vmatprep.subr.bf16.mxu1 %v1228_v30 }
  0x4a   : > { %1087 = vmatpush3.bf16.msra.mxu0 %v1227_v31  ;;  %v391_v31 = vld [vmem:[#allocation2 + $0x20] sm:$0xff] }
  0x4b   : > { %1088 = vmatprep.subr.bf16.mxu0 %v1229_v32 }
  0x4c   : > { %1139 = vmatpush3.bf16.msra.mxu1 %v1228_v30 }
  0x4d   : > { %1140 = vmatprep.subr.bf16.mxu1 %v1231_v33 }
  0x4e   : > { %1089 = vmatpush3.bf16.msra.mxu0 %v1230_v34 }
  0x4f   : > { %1090 = vmatprep.subr.bf16.mxu0 %v1232_v35 }
  0x50   : > { %1141 = vmatpush3.bf16.msra.mxu1 %v1231_v33 }
  0x51   : > { %1142 = vmatprep.subr.bf16.mxu1 %v1234_v37 }
  0x52   : > { %1091 = vmatpush3.bf16.msra.mxu0 %v1233_v36  ;;  %v392_v36 = vld [vmem:[#allocation2 + $0x28] sm:$0xff] }
  0x53   : > { %1092 = vmatprep.subr.bf16.mxu0 %v1235_v38 }
  0x54   : > { %1143 = vmatpush3.bf16.msra.mxu1 %v1234_v37 }
  0x55   : > { %1144 = vmatprep.subr.bf16.mxu1 %v1237_v39 }
  0x56   : > { %1093 = vmatpush3.bf16.msra.mxu0 %v1236_v42  ;;  %v393_v42 = vld [vmem:[#allocation2 + $0x38] sm:$0xff] }
  0x58   : > { %1145 = vmatpush3.bf16.msra.mxu1 %v1237_v39 }
  0x59   : > { %699 = vmatmul.mubr.bf16.vlgmr.msra.gmra.mxu0 %v1238_v43 }
  0x5a   : > { %706 = vmatprep.mubr.bf16.mxu0 %v1243_v44 }
  0x5b   : > { %1147 = vmatmul.mubr.bf16.vlgmr.msra.gmra.mxu1 %v1242_v45 }
  0x5c   : > { %1150 = vmatprep.mubr.bf16.mxu1 %v1249_v46 }
  0x61   : > { %707 = vmatmul.mubr.bf16.gmra.mxu0 %v1245_v47 }
  0x62   : > { %714 = vmatprep.mubr.bf16.mxu0 %v1246_v48 }
  0x63   : > { %1151 = vmatmul.mubr.bf16.gmra.mxu1 %v1250_v49 }
  0x69   : > { %715 = vmatmul.mubr.bf16.gmra.mxu0 %v1248_v50 }
  0x6a   : > { %722 = vmatprep.mubr.bf16.mxu0 %v1251_v51 }
  0x71   : > { %723 = vmatmul.mubr.bf16.gmra.mxu0 %v1253_v52 }
 0x119   : > { %v1094_v53 = vpop.f32.mrf.mxu0 }
 0x11b   : > { %v1095_v54 = vpop.f32.mrf.mxu0  ;;  %v1148_v55 = vpop.f32.mrf.mxu1 }
 0x11c   : > { %v1096_v56 = vadd.f32 %v1095_v54, %v1094_v53 }
 0x11d   : > { %v1097_v57 = vpop.f32.mrf.mxu0  ;;  %v765_v59 = vpop.f32.mrf.mxu1 }
 0x11e   : > { %v766_v60 = vadd.f32 %v1096_v56, %v765_v59 }
 0x11f   : > { %v1098_v61 = vpop.f32.mrf.mxu0  ;;  %v1149_v62 = vpop.f32.mrf.mxu1 }
 0x120   : > { %v796_v63 = vadd.f32 %v766_v60, %v386_v58  ;;  %v1099_v0 = vadd.f32 %v1098_v61, %v1097_v57 }
 0x121   : > { %v1100_v1 = vpop.f32.mrf.mxu0  ;;  %v768_v3 = vpop.f32.mrf.mxu1 }
 0x122   : > { %804 = vst [vmem:[#allocation2 + $0x30] sm:$0xff] %v796_v63  ;;  %v769_v4 = vadd.f32 %v1099_v0, %v768_v3 }
 0x123   : > { %v1101_v5 = vpop.f32.mrf.mxu0  ;;  %v1152_v6 = vpop.f32.mrf.mxu1 }
 0x124   : > { %v797_v7 = vadd.f32 %v769_v4, %v387_v2  ;;  %v1102_v8 = vadd.f32 %v1101_v5, %v1100_v1 }
 0x125   : > { %v1103_v10 = vpop.f32.mrf.mxu0  ;;  %v781_v13 = vpop.f32.mrf.mxu1 }
 0x126   : > { %805 = vst [vmem:[#allocation2] sm:$0xff] %v797_v7  ;;  %v774_v11 = vadd.f32 %v1148_v55, %v1102_v8 }
 0x127   : > { %v1104_v12 = vpop.f32.mrf.mxu0  ;;  %v1153_v20 = vpop.f32.mrf.mxu1 }
 0x128   : > { %v798_v14 = vadd.f32 %v774_v11, %v388_v9  ;;  %v1105_v15 = vadd.f32 %v1104_v12, %v1103_v10 }
 0x129   : > { %v1106_v17 = vpop.f32.mrf.mxu0  ;;  %v784_v27 = vpop.f32.mrf.mxu1 }
 0x12a   : > { %806 = vst [vmem:[#allocation2 + $0x18] sm:$0xff] %v798_v14  ;;  %v777_v18 = vadd.f32 %v1149_v62, %v1105_v15 }
 0x12b   : > { %v1107_v19 = vpop.f32.mrf.mxu0 }
 0x12c   : > { %v799_v21 = vadd.f32 %v777_v18, %v389_v16  ;;  %v1108_v22 = vadd.f32 %v1107_v19, %v1106_v17 }
 0x12d   : > { %v1109_v23 = vpop.f32.mrf.mxu0 }
 0x12e   : > { %807 = vst [vmem:[#allocation2 + $0x10] sm:$0xff] %v799_v21  ;;  %v782_v25 = vadd.f32 %v1108_v22, %v781_v13 }
 0x12f   : > { %v1110_v26 = vpop.f32.mrf.mxu0 }
 0x130   : > { %v800_v28 = vadd.f32 %v782_v25, %v390_v24  ;;  %v1111_v29 = vadd.f32 %v1110_v26, %v1109_v23 }
 0x131   : > { %v1112_v30 = vpop.f32.mrf.mxu0 }
 0x132   : > { %808 = vst [vmem:[#allocation2 + $0x8] sm:$0xff] %v800_v28  ;;  %v785_v32 = vadd.f32 %v1111_v29, %v784_v27 }
 0x133   : > { %v1113_v33 = vpop.f32.mrf.mxu0 }
 0x134   : > { %v801_v34 = vadd.f32 %v785_v32, %v391_v31  ;;  %v1114_v35 = vadd.f32 %v1113_v33, %v1112_v30 }
 0x135   : > { %v1115_v37 = vpop.f32.mrf.mxu0 }
 0x136   : > { %809 = vst [vmem:[#allocation2 + $0x20] sm:$0xff] %v801_v34  ;;  %v790_v38 = vadd.f32 %v1152_v6, %v1114_v35 }
 0x137   : > { %v1116_v39 = vpop.f32.mrf.mxu0 }
 0x138   : > { %v802_v40 = vadd.f32 %v790_v38, %v392_v36  ;;  %v1117_v41 = vadd.f32 %v1116_v39, %v1115_v37 }
 0x13a   : > { %810 = vst [vmem:[#allocation2 + $0x28] sm:$0xff] %v802_v40  ;;  %v793_v43 = vadd.f32 %v1153_v20, %v1117_v41  ;;  %815 = sbr.rel (%p1074_p13) target bundleno = 333 (0x14d), region = 70 }
 0x13c   : > { %v803_v44 = vadd.f32 %v793_v43, %v393_v42 }
 0x13e   : > { %811 = vst [vmem:[#allocation2 + $0x38] sm:$0xff] %v803_v44 }
 0x13f   : > { %v816_v45 = vld [vmem:[#allocation2 + $0x30] sm:$0xff]  ;;  %v1075_v46 = vld [vmem:[%s1516_s2] ss:$0 sm:$0xff]  ;;  %v840_v50 = vld [vmem:[%s1427_s8 + $0x8] sm:$0xff] }
 0x140   : > { %v839_v47 = vld [vmem:[%s1427_s8] sm:$0xff]  ;;  %v831_v48 = vadd.f32 %v1075_v46, %v816_v45  ;;  %v818_v51 = vld [vmem:[#allocation2 + $0x18] sm:$0xff]  ;;  %v841_v54 = vld [vmem:[%s1427_s8 + $0x10] sm:$0xff] }
 0x141   : > { %v817_v49 = vld [vmem:[#allocation2] sm:$0xff]  ;;  %v833_v53 = vadd.f32 %v1075_v46, %v818_v51  ;;  %v819_v55 = vld [vmem:[#allocation2 + $0x10] sm:$0xff]  ;;  %v842_v56 = vld [vmem:[%s1427_s8 + $0x18] sm:$0xff] }
 0x142   : > { %v832_v52 = vadd.f32 %v1075_v46, %v817_v49  ;;  %v847_v57 = vadd.f32 %v839_v47, %v831_v48  ;;  %v834_v58 = vadd.f32 %v1075_v46, %v819_v55  ;;  %v820_v59 = vld [vmem:[#allocation2 + $0x8] sm:$0xff]  ;;  %v843_v60 = vld [vmem:[%s1427_s8 + $0x20] sm:$0xff]  ;;  %v845_v4 = vld [vmem:[%s1427_s8 + $0x30] sm:$0xff] }
 0x143   : > { %v821_v61 = vld [vmem:[#allocation2 + $0x20] sm:$0xff]  ;;  %v849_v63 = vadd.f32 %v841_v54, %v833_v53  ;;  %v835_v0 = vadd.f32 %v1075_v46, %v820_v59  ;;  %v844_v2 = vld [vmem:[%s1427_s8 + $0x28] sm:$0xff]  ;;  %v846_v13 = vld [vmem:[%s1427_s8 + $0x38] sm:$0xff] }
 0x144   : > { %v848_v62 = vadd.f32 %v840_v50, %v832_v52  ;;  %v836_v1 = vadd.f32 %v1075_v46, %v821_v61  ;;  %v822_v3 = vld [vmem:[#allocation2 + $0x28] sm:$0xff]  ;;  %v855_v5 = vmax.f32 %v847_v57, 0.0  ;;  %v850_v6 = vadd.f32 %v842_v56, %v834_v58 }
 0x145   : > { %v837_v7 = vadd.f32 %v1075_v46, %v822_v3  ;;  %v823_v8 = vld [vmem:[#allocation2 + $0x38] sm:$0xff]  ;;  %v857_v10 = vmax.f32 %v849_v63, 0.0  ;;  %v851_v11 = vadd.f32 %v843_v60, %v835_v0 }
 0x146   : > { %v856_v9 = vmax.f32 %v848_v62, 0.0  ;;  %v852_v12 = vadd.f32 %v844_v2, %v836_v1  ;;  %863 = vst [vmem:[%s1432_s18] sm:$0xff] %v855_v5  ;;  %v858_v14 = vmax.f32 %v850_v6, 0.0  ;;  %v838_v16 = vadd.f32 %v1075_v46, %v823_v8 }
 0x147   : > { %v853_v15 = vadd.f32 %v845_v4, %v837_v7  ;;  %865 = vst [vmem:[%s1432_s18 + $0x10] sm:$0xff] %v857_v10  ;;  %v859_v17 = vmax.f32 %v851_v11, 0.0 }
 0x148   : > { %864 = vst [vmem:[%s1432_s18 + $0x8] sm:$0xff] %v856_v9  ;;  %v860_v18 = vmax.f32 %v852_v12, 0.0  ;;  %866 = vst [vmem:[%s1432_s18 + $0x18] sm:$0xff] %v858_v14  ;;  %v854_v20 = vadd.f32 %v846_v13, %v838_v16 }
 0x149   : > { %v861_v19 = vmax.f32 %v853_v15, 0.0  ;;  %867 = vst [vmem:[%s1432_s18 + $0x20] sm:$0xff] %v859_v17 }
 0x14a   : > { %868 = vst [vmem:[%s1432_s18 + $0x28] sm:$0xff] %v860_v18  ;;  %v862_v21 = vmax.f32 %v854_v20, 0.0 }
 0x14b   : > { %869 = vst [vmem:[%s1432_s18 + $0x30] sm:$0xff] %v861_v19 }
 0x14c   : > { %870 = vst [vmem:[%s1432_s18 + $0x38] sm:$0xff] %v862_v21 }
 0x14d PF: > { %s14_s21 = sadd.s32 1, %s1308_s21   ;;  %s1519_s15 = smov %s1288_s16 }
 0x14e   : > { %p11_p0 = scmp.ge.s32.totalorder %s14_s21, 8   ;;  %s1520_s16 = smov %s1387_s28 }
 0x14f   : > { %s1521_s17 = smov %s1300_s19  ;;  %s1522_s18 = smov %s1304_s20 }
 0x150   : > { %s1523_s19 = smov %s1526_s22  ;;  %s1524_s20 = smov %s1530_s23 }
 0x151   :  { %13 = sbr.rel (!%p11_p0) target bundleno = 4 (0x4), region = 120 }

// kernel: wrap_resnet_forward.26
= control target key start
LH: loop header
LB: loop body
LE: loop exit
PB: predicated region body
PF: predicated region fallthrough
CT: control target
= control target key end

     0   :  { %s1004_s12 = smov 0   ;;  %s1006_s13 = smov 0   ;;  %s1136_s0 = inlined_call_operand.vmem [shape: bf16[32,1152], index: 0, kind: input, shape index: {}]   ;;  %s1137_s1 = inlined_call_operand.vmem [shape: bf16[1152,128], index: 1, kind: input, shape index: {}]   ;;  %s1138_s2 = inlined_call_operand.vmem [shape: f32[1,128], index: 2, kind: input, shape index: {}]   ;;  %s1139_s3 = inlined_call_operand.vmem [shape: f32[32,128], index: 3, kind: output, shape index: {}]  }
   0x1   :  { %s1008_s14 = smov 0   ;;  %s1010_s15 = smov 0  }
   0x2   :  { %s1012_s16 = smov 0   ;;  %s1014_s17 = smov 0  }
   0x3   :  { %s1016_s18 = smov 0  }
   0x4 LB: > { %s25_s19 = sadd.s32 1, %s971_s16  ;;  %s32_s20 = sadd.s32 1, %s975_s17  ;;  %s979_s18 = sphi %s1016_s18, %s13_s18   ;;  %s975_s17 = sphi %s1014_s17, %s1145_s17   ;;  %s971_s16 = sphi %s1012_s16, %s1144_s16   ;;  %s967_s15 = sphi %s1010_s15, %s1143_s15   ;;  %s963_s14 = sphi %s1008_s14, %s1142_s14   ;;  %s959_s13 = sphi %s1006_s13, %s1141_s13   ;;  %s955_s12 = sphi %s1004_s12, %s1140_s12  }
   0x5   : > { %p26_p0 = scmp.ge.s32.totalorder %s25_s19, 3  ;;  %p48_p1 = scmp.ne.s32.totalorder %s959_s13, %s955_s12 }
   0x6   : > { %p49_p2 = scmp.eq.s32.totalorder %s979_s18, 0  ;;  %s41_s24 = sadd.s32 1, %s959_s13 }
   0x7   : > { %s1147_s19 = smov (%p26_p0, %s25_s19), 0  ;;  %s1149_s20 = smov (!%p26_p0, %s32_s20), %s975_s17 }
   0x8   : > { %p50_p3 = por %p49_p2, %p48_p1  ;;  %p34_p4 = scmp.ge.s32.totalorder %s1149_s20, 2 }
   0x9   : > { %s37_s21 = ssub.s32 %s971_s16, %s1147_s19  ;;  %p740_p6 = scmp.ge.s32.totalorder %s979_s18, 6 }
   0xa   : > { %s1151_s20 = smov (%p34_p4, %s1149_s20), 0 }
   0xb   : > { %s36_s22 = ssub.s32 %s975_s17, %s1151_s20  ;;  %162 = sbr.rel (%p740_p6) target bundleno = 27 (0x1b), region = 20 }
   0xc   : > { %s38_s23 = sor.u32 %s37_s21, %s36_s22 }
   0xd   : > { %p39_p5 = scmp.eq.s32.totalorder %s38_s23, 0 }
   0xf   : > { %s1055_s25 = scalar_select %p39_p5, %s959_s13, %s41_s24  }
  0x10   : > { %165 = sbr.rel (!%p50_p3) target bundleno = 27 (0x1b), region = 24  ;;  %s167_s26 = sand.u32 (%p50_p3), 1, %s959_s13  }
  0x11   : > { %s171_s27 = smul.u32 (%p50_p3), 3, %s971_s16 }
  0x12   : > { %s835_s28 = smul.u32 (%p50_p3), 24, %s167_s26 }
  0x13   : > { %s836_s29 = smul.u32 (%p50_p3), 18, %s975_s17 }
  0x14   : > { %s169_s8 = scalar_lea.vmem (%p50_p3), [#allocation3], %s835_s28 }
  0x15   : > { %s173_s30 = sadd.s32 %s836_s29, %s171_s27 }
  0x16   : > { %s743_s4 = sshll.u32 %s173_s30, 2 }
  0x17   : > { %s175_s7 = scalar_lea.vmem %s1136_s0, %s743_s4 }
  0x18   : > { %v190_v0 = vld [vmem:[%s175_s7] sm:$0xff]  ;;  %v744_v2 = vld [vmem:[%s175_s7 + $0x8] sm:$0xf]  ;;  %v746_v3 = vld [vmem:[%s175_s7 + $0x2c] sm:$0xf] }
  0x19   : > { %v192_v1 = vld [vmem:[%s175_s7 + $0x24] sm:$0xff]  ;;  %191 = vst [vmem:[%s169_s8] sm:$0xff] %v190_v0  ;;  %745 = vst [vmem:[%s169_s8 + $0x8] sm:$0xf] %v744_v2 }
  0x1a   : > { %193 = vst [vmem:[%s169_s8 + $0xc] sm:$0xff] %v192_v1  ;;  %747 = vst [vmem:[%s169_s8 + $0x14] sm:$0xf] %v746_v3 }
  0x1b PF: > { %p748_p7 = scmp.ge.s32.totalorder %s979_s18, 1  ;;  %p222_p8 = scmp.lt.s32.totalorder %s979_s18, 7 }
  0x1d   : > { %p223_p9 = pnand %p748_p7, %p222_p8 }
  0x1e   : > { %s229_s9 = sand.u32 (!%p223_p9), 1, %s955_s12   ;;  %s268_s10 = smul.u32 (!%p223_p9), 48, %s963_s14 }
  0x1f   : > { %226 = sbr.rel (%p223_p9) target bundleno = 298 (0x12a), region = 54  ;;  %s750_s21 = sshll.u32 (!%p223_p9), %s967_s15, 1 }
  0x20   : > { %s837_s11 = smul.u32 (!%p223_p9), 24, %s229_s9  ;;  %p269_p10 = scmp.lt.s32.totalorder (!%p223_p9), %s268_s10, 143 }
  0x21   : > { %p281_p11 = scmp.lt.s32.totalorder (!%p223_p9), %s750_s21, 3  ;;  %p752_p12 = scmp.ne.s32.totalorder (!%p223_p9), %s963_s14, 0 }
  0x22   : > { %s1079_s12 = scalar_lea.vmem (!%p223_p9), [#allocation3], %s837_s11 }
  0x24   : > { %s1153_s10 = smov (!%p269_p10, %s268_s10), 143  ;;  %s1155_s21 = smov (!%p281_p11, %s750_s21), 3 }
  0x25   : > { %s749_s22 = sshll.u32 %s1153_s10, 2  ;;  %s751_s27 = sshll.u32 %s1155_s21, 3 }
  0x26   : > { %s1072_s26 = scalar_lea.vmem %s1137_s1, %s749_s22  ;;  %s1077_s30 = scalar_lea.vmem %s1139_s3, %s751_s27 }
  0x27   : > { %293 = sbr.rel (%p752_p12) target bundleno = 46 (0x2e), region = 62 }
  0x2c   : > { %v981_v4 = vmov 0.0  }
  0x2d   : > { %294 = vst [vmem:[#allocation2] sm:$0xff] %v981_v4  ;;  %295 = vst [vmem:[#allocation2 + $0x8] sm:$0xff] %v981_v4 }
  0x2e PF: > { %v897_v5 = vld [vmem:[%s1072_s26 + $0x78] sm:$0xff]   ;;  %v982_v6 = vmov 0.0   ;;  %vm983_vm0 = vmmov 0   ;;  %v900_v9 = vld [vmem:[%s1072_s26 + $0x70] sm:$0xff]   ;;  %v903_v12 = vld [vmem:[%s1072_s26 + $0x68] sm:$0xff]   ;;  %p780_p13 = scmp.ne.s32.totalorder %s963_s14, 2 }
  0x2f   : > { %815 = vmatprep.subr.bf16.mxu1 %v982_v6  ;;  %v898_v7 = vld [vmem:[%s1072_s26 + $0xb8] sm:$0xff]   ;;  %784 = vmatprep.subr.bf16.mxu0 %v897_v5  ;;  %v901_v10 = vld [vmem:[%s1072_s26 + $0xb0] sm:$0xff]   ;;  %v904_v13 = vld [vmem:[%s1072_s26 + $0xa8] sm:$0xff]  }
  0x30   : > { %v899_v8 = vld [vmem:[%s1072_s26 + $0x38] sm:$0xff]   ;;  %831 = vmatprep.mubr.msk.bf16.mxu1 %vm983_vm0, %v982_v6  ;;  %816 = vmatpush3.bf16.msra.mxu1 %v898_v7  ;;  %v902_v11 = vld [vmem:[%s1072_s26 + $0x30] sm:$0xff]   ;;  %v905_v14 = vld [vmem:[%s1072_s26 + $0x28] sm:$0xff]  }
  0x31   : > { %785 = vmatpush3.bf16.msra.mxu0 %v899_v8  ;;  %817 = vmatprep.subr.bf16.mxu1 %v982_v6  ;;  %v906_v15 = vld [vmem:[%s1072_s26 + $0x60] sm:$0xff]   ;;  %v909_v18 = vld [vmem:[%s1072_s26 + $0x58] sm:$0xff]   ;;  %v912_v21 = vld [vmem:[%s1072_s26 + $0x50] sm:$0xff]  }
  0x32   : > { %786 = vmatprep.subr.bf16.mxu0 %v900_v9  ;;  %v907_v16 = vld [vmem:[%s1072_s26 + $0xa0] sm:$0xff]   ;;  %v910_v19 = vld [vmem:[%s1072_s26 + $0x98] sm:$0xff]   ;;  %v913_v22 = vld [vmem:[%s1072_s26 + $0x90] sm:$0xff]  }
  0x33   : > { %v908_v17 = vld [vmem:[%s1072_s26 + $0x20] sm:$0xff]   ;;  %v911_v20 = vld [vmem:[%s1072_s26 + $0x18] sm:$0xff]   ;;  %v914_v23 = vld [vmem:[%s1072_s26 + $0x10] sm:$0xff]  }
  0x34   : > { %818 = vmatpush3.bf16.msra.mxu1 %v901_v10  ;;  %v915_v24 = vld [vmem:[%s1072_s26 + $0x48] sm:$0xff]   ;;  %v918_v27 = vld [vmem:[%s1072_s26 + $0x40] sm:$0xff]  }
  0x35   : > { %787 = vmatpush3.bf16.msra.mxu0 %v902_v11  ;;  %819 = vmatprep.subr.bf16.mxu1 %v982_v6  ;;  %v916_v25 = vld [vmem:[%s1072_s26 + $0x88] sm:$0xff]   ;;  %v919_v29 = vld [vmem:[%s1072_s26 + $0x80] sm:$0xff]  }
  0x36   : > { %788 = vmatprep.subr.bf16.mxu0 %v903_v12  ;;  %v917_v26 = vld [vmem:[%s1072_s26 + $0x8] sm:$0xff]   ;;  %v920_v30 = vld [vmem:[%s1072_s26] sm:$0xff]  }
  0x37   : > { %v923_v28 = vld [vmem:[%s1079_s12 + $0x4] ss:$12 sps:$4 sm:$0xff]   ;;  %v924_v31 = vld [vmem:[%s1079_s12 + $0x8] ss:$12 sps:$4 sm:$0xff]   ;;  %v921_v32 = vld [vmem:[%s1079_s12] ss:$12 sps:$4 sm:$0xff]  }
  0x38   : > { %820 = vmatpush3.bf16.msra.mxu1 %v904_v13  ;;  %542 = vmatprep.mubr.bf16.mxu0 %v923_v28  ;;  %v296_v39 = vld [vmem:[#allocation2] sm:$0xff]  ;;  %v297_v46 = vld [vmem:[#allocation2 + $0x8] sm:$0xff] }
  0x39   : > { %789 = vmatpush3.bf16.msra.mxu0 %v905_v14  ;;  %821 = vmatprep.subr.bf16.mxu1 %v982_v6 }
  0x3a   : > { %790 = vmatprep.subr.bf16.mxu0 %v906_v15 }
  0x3c   : > { %822 = vmatpush3.bf16.msra.mxu1 %v907_v16 }
  0x3d   : > { %791 = vmatpush3.bf16.msra.mxu0 %v908_v17  ;;  %823 = vmatprep.subr.bf16.mxu1 %v982_v6 }
  0x3e   : > { %792 = vmatprep.subr.bf16.mxu0 %v909_v18 }
  0x40   : > { %824 = vmatpush3.bf16.msra.mxu1 %v910_v19 }
  0x41   : > { %793 = vmatpush3.bf16.msra.mxu0 %v911_v20  ;;  %825 = vmatprep.subr.bf16.mxu1 %v982_v6 }
  0x42   : > { %794 = vmatprep.subr.bf16.mxu0 %v912_v21 }
  0x44   : > { %826 = vmatpush3.bf16.msra.mxu1 %v913_v22 }
  0x45   : > { %795 = vmatpush3.bf16.msra.mxu0 %v914_v23  ;;  %827 = vmatprep.subr.bf16.mxu1 %v982_v6 }
  0x46   : > { %796 = vmatprep.subr.bf16.mxu0 %v915_v24 }
  0x48   : > { %828 = vmatpush3.bf16.msra.mxu1 %v916_v25 }
  0x49   : > { %797 = vmatpush3.bf16.msra.mxu0 %v917_v26  ;;  %829 = vmatprep.subr.bf16.mxu1 %v982_v6 }
  0x4a   : > { %798 = vmatprep.subr.bf16.mxu0 %v918_v27 }
  0x4c   : > { %830 = vmatpush3.bf16.msra.mxu1 %v919_v29 }
  0x4d   : > { %799 = vmatpush3.bf16.msra.mxu0 %v920_v30 }
  0x4f   : > { %832 = vmatmul.mubr.bf16.vlgmr.msra.gmra.mxu1 %v924_v31 }
  0x50   : > { %543 = vmatmul.mubr.bf16.vlgmr.msra.gmra.mxu0 %v921_v32 }
 0x10f   : > { %v585_v33 = vpop.f32.mrf.mxu1 }
 0x110   : > { %v800_v34 = vpop.f32.mrf.mxu0 }
 0x111   : > { %v833_v35 = vpop.f32.mrf.mxu1 }
 0x112   : > { %v801_v36 = vpop.f32.mrf.mxu0 }
 0x113   : > { %v802_v37 = vadd.f32 %v801_v36, %v800_v34  ;;  %v588_v38 = vpop.f32.mrf.mxu1 }
 0x114   : > { %v803_v40 = vpop.f32.mrf.mxu0 }
 0x115   : > { %v586_v41 = vadd.f32 %v802_v37, %v585_v33  ;;  %v834_v42 = vpop.f32.mrf.mxu1 }
 0x116   : > { %v804_v43 = vpop.f32.mrf.mxu0 }
 0x117   : > { %v592_v44 = vadd.f32 %v586_v41, %v296_v39  ;;  %v805_v45 = vadd.f32 %v804_v43, %v803_v40 }
 0x119   : > { %594 = vst [vmem:[#allocation2] sm:$0xff] %v592_v44  ;;  %v589_v47 = vadd.f32 %v805_v45, %v588_v38  ;;  %599 = sbr.rel (%p780_p13) target bundleno = 298 (0x12a), region = 66 }
 0x11b   : > { %v593_v48 = vadd.f32 %v589_v47, %v297_v46 }
 0x11d   : > { %595 = vst [vmem:[#allocation2 + $0x8] sm:$0xff] %v593_v48 }
 0x11e   : > { %v781_v50 = vld [vmem:[%s1138_s2] ss:$0 sm:$0xff] }
 0x120   : > { %v600_v49 = vld [vmem:[#allocation2] sm:$0xff] }
 0x121   : > { %v609_v52 = vadd.f32 %v781_v50, %v600_v49 }
 0x123   : > { %v611_v54 = vmax.f32 %v609_v52, 0.0 }
 0x124   : > { %v601_v51 = vld [vmem:[#allocation2 + $0x8] sm:$0xff] }
 0x125   : > { %v610_v53 = vadd.f32 %v781_v50, %v601_v51  ;;  %613 = vst [vmem:[%s1077_s30] sm:$0xff] %v611_v54 }
 0x127   : > { %v612_v55 = vmax.f32 %v610_v53, 0.0 }
 0x129   : > { %614 = vst [vmem:[%s1077_s30 + $0x8] sm:$0xff] %v612_v55 }
 0x12a PF: > { %s13_s18 = sadd.s32 1, %s979_s18   ;;  %s1140_s12 = smov %s959_s13 }
 0x12b   : > { %p10_p0 = scmp.ge.s32.totalorder %s13_s18, 8   ;;  %s1141_s13 = smov %s1055_s25 }
 0x12c   : > { %s1142_s14 = smov %s971_s16  ;;  %s1143_s15 = smov %s975_s17 }
 0x12d   : > { %s1144_s16 = smov %s1147_s19  ;;  %s1145_s17 = smov %s1151_s20 }
 0x12e   :  { %12 = sbr.rel (!%p10_p0) target bundleno = 4 (0x4), region = 113 }

// kernel: wrap_resnet_forward.27
= control target key start
LH: loop header
LB: loop body
LE: loop exit
PB: predicated region body
PF: predicated region fallthrough
CT: control target
= control target key end

     0   :  { %s645_s12 = smov 0   ;;  %s647_s13 = smov 0   ;;  %s705_s0 = inlined_call_operand.vmem [shape: bf16[32,128], index: 0, kind: input, shape index: {}]   ;;  %s706_s1 = inlined_call_operand.vmem [shape: bf16[128,128], index: 1, kind: input, shape index: {}]   ;;  %s707_s2 = inlined_call_operand.vmem [shape: f32[1,128], index: 2, kind: input, shape index: {}]   ;;  %s708_s3 = inlined_call_operand.vmem [shape: f32[32,128], index: 3, kind: output, shape index: {}]  }
   0x1   :  { %s649_s14 = smov 0  }
   0x2 LB: > { %s32_s15 = sadd.s32 1, %s617_s13  ;;  %p518_p0 = scmp.ge.s32.totalorder %s621_s14, 1  ;;  %s621_s14 = sphi %s649_s14, %s13_s14   ;;  %s617_s13 = sphi %s647_s13, %s710_s13   ;;  %s613_s12 = sphi %s645_s12, %s709_s12  }
   0x3   : > { %p34_p1 = scmp.ge.s32.totalorder %s32_s15, 2  ;;  %p188_p2 = scmp.lt.s32.totalorder %s621_s14, 3 }
   0x5   : > { %s712_s15 = smov (%p34_p1, %s32_s15), 0  ;;  %p189_p3 = pnand %p518_p0, %p188_p2 }
   0x6   : > { %s519_s20 = sshll.u32 (!%p189_p3), %s613_s12, 1 }
   0x7   : > { %192 = sbr.rel (%p189_p3) target bundleno = 245 (0xf5), region = 32  ;;  %p230_p4 = scmp.lt.s32.totalorder (!%p189_p3), %s519_s20, 3 }
   0xc   : > { %v590_v0 = vld [vmem:[%s706_s1 + $0x38] sm:$0xff]   ;;  %v623_v1 = vmov 0.0   ;;  %v591_v2 = vld [vmem:[%s706_s1 + $0x30] sm:$0xff]   ;;  %vm624_vm0 = vmmov 0   ;;  %s714_s20 = smov (!%p230_p4, %s519_s20), 3  ;;  %v592_v3 = vld [vmem:[%s706_s1 + $0x28] sm:$0xff]  }
   0xd   : > { %544 = vmatprep.subr.bf16.mxu0 %v623_v1  ;;  %560 = vmatprep.mubr.msk.bf16.mxu0 %vm624_vm0, %v623_v1  ;;  %s520_s23 = sshll.u32 %s714_s20, 2  ;;  %v593_v4 = vld [vmem:[%s706_s1 + $0x20] sm:$0xff]   ;;  %v594_v5 = vld [vmem:[%s706_s1 + $0x18] sm:$0xff]   ;;  %v595_v6 = vld [vmem:[%s706_s1 + $0x10] sm:$0xff]   ;;  %s522_s10 = sshll.u32 %s714_s20, 3 }
   0xe   : > { %545 = vmatpush3.bf16.msra.mxu0 %v590_v0  ;;  %s236_s26 = scalar_lea.vmem %s705_s0, %s520_s23  ;;  %v596_v7 = vld [vmem:[%s706_s1 + $0x8] sm:$0xff]   ;;  %v597_v8 = vld [vmem:[%s706_s1] sm:$0xff]   ;;  %s257_s18 = scalar_lea.vmem %s708_s3, %s522_s10 }
   0xf   : > { %546 = vmatprep.subr.bf16.mxu0 %v623_v1  ;;  %v598_v9 = vld [vmem:[%s236_s26] sm:$0xff]  }
  0x10   : > { %v532_v10 = vld [vmem:[%s707_s2] ss:$0 sm:$0xff] }
  0x12   : > { %547 = vmatpush3.bf16.msra.mxu0 %v591_v2 }
  0x13   : > { %548 = vmatprep.subr.bf16.mxu0 %v623_v1 }
  0x16   : > { %549 = vmatpush3.bf16.msra.mxu0 %v592_v3 }
  0x17   : > { %550 = vmatprep.subr.bf16.mxu0 %v623_v1 }
  0x1a   : > { %551 = vmatpush3.bf16.msra.mxu0 %v593_v4 }
  0x1b   : > { %552 = vmatprep.subr.bf16.mxu0 %v623_v1 }
  0x1e   : > { %553 = vmatpush3.bf16.msra.mxu0 %v594_v5 }
  0x1f   : > { %554 = vmatprep.subr.bf16.mxu0 %v623_v1 }
  0x22   : > { %555 = vmatpush3.bf16.msra.mxu0 %v595_v6 }
  0x23   : > { %556 = vmatprep.subr.bf16.mxu0 %v623_v1 }
  0x26   : > { %557 = vmatpush3.bf16.msra.mxu0 %v596_v7 }
  0x27   : > { %558 = vmatprep.subr.bf16.mxu0 %v623_v1 }
  0x2a   : > { %559 = vmatpush3.bf16.msra.mxu0 %v597_v8 }
  0x2d   : > { %561 = vmatmul.mubr.bf16.vlgmr.msra.gmra.mxu0 %v598_v9 }
  0xed   : > { %v374_v11 = vpop.f32.mrf.mxu0 }
  0xee   : > { %v397_v12 = vadd.f32 %v532_v10, %v374_v11 }
  0xef   : > { %v562_v13 = vpop.f32.mrf.mxu0 }
  0xf0   : > { %399 = vst [vmem:[%s257_s18] sm:$0xff] %v397_v12 }
  0xf1   : > { %v377_v14 = vpop.f32.mrf.mxu0 }
  0xf2   : > { %v398_v15 = vadd.f32 %v532_v10, %v377_v14 }
  0xf3   : > { %v563_v16 = vpop.f32.mrf.mxu0 }
  0xf4   : > { %400 = vst [vmem:[%s257_s18 + $0x8] sm:$0xff] %v398_v15 }
  0xf5 PF: > { %s13_s14 = sadd.s32 1, %s621_s14   ;;  %s709_s12 = smov %s617_s13 }
  0xf6   : > { %p10_p5 = scmp.ge.s32.totalorder %s13_s14, 4   ;;  %s710_s13 = smov %s712_s15 }
  0xf8   :  { %12 = sbr.rel (!%p10_p5) target bundleno = 2 (0x2), region = 76 }

// kernel: wrap_resnet_forward.28
= control target key start
LH: loop header
LB: loop body
LE: loop exit
PB: predicated region body
PF: predicated region fallthrough
CT: control target
= control target key end

     0   :  { %s1090_s15 = smov 0   ;;  %s1092_s16 = smov 0   ;;  %s1229_s0 = inlined_call_operand.vmem [shape: bf16[32,1152], index: 0, kind: input, shape index: {}]   ;;  %s1230_s1 = inlined_call_operand.vmem [shape: bf16[1152,128], index: 1, kind: input, shape index: {}]   ;;  %s1231_s2 = inlined_call_operand.vmem [shape: f32[1,128], index: 2, kind: input, shape index: {}]   ;;  %s1232_s3 = inlined_call_operand.vmem [shape: f32[32,128], index: 3, kind: input, shape index: {}]   ;;  %s1233_s4 = inlined_call_operand.vmem [shape: f32[32,128], index: 4, kind: output, shape index: {}]  }
   0x1   :  { %s1094_s17 = smov 0   ;;  %s1096_s18 = smov 0  }
   0x2   :  { %s1098_s19 = smov 0   ;;  %s1100_s20 = smov 0  }
   0x3   :  { %s1102_s21 = smov 0  }
   0x4 LB: > { %s26_s22 = sadd.s32 1, %s1052_s19  ;;  %s33_s23 = sadd.s32 1, %s1056_s20  ;;  %s1060_s21 = sphi %s1102_s21, %s14_s21   ;;  %s1056_s20 = sphi %s1100_s20, %s1239_s20   ;;  %s1052_s19 = sphi %s1098_s19, %s1238_s19   ;;  %s1048_s18 = sphi %s1096_s18, %s1237_s18   ;;  %s1044_s17 = sphi %s1094_s17, %s1236_s17   ;;  %s1040_s16 = sphi %s1092_s16, %s1235_s16   ;;  %s1036_s15 = sphi %s1090_s15, %s1234_s15  }
   0x5   : > { %p27_p0 = scmp.ge.s32.totalorder %s26_s22, 3  ;;  %p49_p1 = scmp.ne.s32.totalorder %s1040_s16, %s1036_s15 }
   0x6   : > { %p50_p2 = scmp.eq.s32.totalorder %s1060_s21, 0  ;;  %s42_s27 = sadd.s32 1, %s1040_s16 }
   0x7   : > { %s1241_s22 = smov (%p27_p0, %s26_s22), 0  ;;  %s1243_s23 = smov (!%p27_p0, %s33_s23), %s1056_s20 }
   0x8   : > { %p51_p3 = por %p50_p2, %p49_p1  ;;  %p35_p4 = scmp.ge.s32.totalorder %s1243_s23, 2 }
   0x9   : > { %s38_s24 = ssub.s32 %s1052_s19, %s1241_s22  ;;  %p819_p6 = scmp.ge.s32.totalorder %s1060_s21, 6 }
   0xa   : > { %s1245_s23 = smov (%p35_p4, %s1243_s23), 0 }
   0xb   : > { %s37_s25 = ssub.s32 %s1056_s20, %s1245_s23  ;;  %191 = sbr.rel (%p819_p6) target bundleno = 27 (0x1b), region = 20 }
   0xc   : > { %s39_s26 = sor.u32 %s38_s24, %s37_s25 }
   0xd   : > { %p40_p5 = scmp.eq.s32.totalorder %s39_s26, 0 }
   0xf   : > { %s1141_s28 = scalar_select %p40_p5, %s1040_s16, %s42_s27  }
  0x10   : > { %194 = sbr.rel (!%p51_p3) target bundleno = 27 (0x1b), region = 24  ;;  %s196_s29 = sand.u32 (%p51_p3), 1, %s1040_s16  }
  0x11   : > { %s200_s30 = smul.u32 (%p51_p3), 3, %s1052_s19 }
  0x12   : > { %s916_s5 = smul.u32 (%p51_p3), 24, %s196_s29 }
  0x13   : > { %s917_s6 = smul.u32 (%p51_p3), 18, %s1056_s20 }
  0x14   : > { %s198_s12 = scalar_lea.vmem (%p51_p3), [#allocation3], %s916_s5 }
  0x15   : > { %s202_s7 = sadd.s32 %s917_s6, %s200_s30 }
  0x16   : > { %s822_s8 = sshll.u32 %s202_s7, 2 }
  0x17   : > { %s204_s11 = scalar_lea.vmem %s1229_s0, %s822_s8 }
  0x18   : > { %v219_v0 = vld [vmem:[%s204_s11] sm:$0xff]  ;;  %v823_v2 = vld [vmem:[%s204_s11 + $0x8] sm:$0xf]  ;;  %v825_v3 = vld [vmem:[%s204_s11 + $0x2c] sm:$0xf] }
  0x19   : > { %v221_v1 = vld [vmem:[%s204_s11 + $0x24] sm:$0xff]  ;;  %220 = vst [vmem:[%s198_s12] sm:$0xff] %v219_v0  ;;  %824 = vst [vmem:[%s198_s12 + $0x8] sm:$0xf] %v823_v2 }
  0x1a   : > { %222 = vst [vmem:[%s198_s12 + $0xc] sm:$0xff] %v221_v1  ;;  %826 = vst [vmem:[%s198_s12 + $0x14] sm:$0xf] %v825_v3 }
  0x1b PF: > { %p827_p7 = scmp.ge.s32.totalorder %s1060_s21, 1  ;;  %p263_p8 = scmp.lt.s32.totalorder %s1060_s21, 7 }
  0x1d   : > { %p264_p9 = pnand %p827_p7, %p263_p8 }
  0x1e   : > { %s270_s13 = sand.u32 (!%p264_p9), 1, %s1036_s15   ;;  %s319_s14 = smul.u32 (!%p264_p9), 48, %s1044_s17 }
  0x1f   : > { %267 = sbr.rel (%p264_p9) target bundleno = 300 (0x12c), region = 58  ;;  %s829_s25 = sshll.u32 (!%p264_p9), %s1048_s18, 1 }
  0x20   : > { %s918_s24 = smul.u32 (!%p264_p9), 24, %s270_s13  ;;  %p320_p10 = scmp.lt.s32.totalorder (!%p264_p9), %s319_s14, 143 }
  0x21   : > { %p332_p11 = scmp.lt.s32.totalorder (!%p264_p9), %s829_s25, 3  ;;  %p833_p12 = scmp.ne.s32.totalorder (!%p264_p9), %s1044_s17, 0 }
  0x22   : > { %s1170_s10 = scalar_lea.vmem (!%p264_p9), [#allocation3], %s918_s24 }
  0x24   : > { %s1247_s14 = smov (!%p320_p10, %s319_s14), 143  ;;  %s1249_s25 = smov (!%p332_p11, %s829_s25), 3 }
  0x25   : > { %s828_s26 = sshll.u32 %s1247_s14, 2  ;;  %s830_s5 = sshll.u32 %s1249_s25, 3 }
  0x26   : > { %s1158_s30 = scalar_lea.vmem %s1230_s1, %s828_s26  ;;  %s1163_s8 = scalar_lea.vmem %s1232_s3, %s830_s5 }
  0x27   : > { %s1168_s18 = scalar_lea.vmem %s1233_s4, %s830_s5  ;;  %353 = sbr.rel (%p833_p12) target bundleno = 46 (0x2e), region = 66 }
  0x2c   : > { %v1062_v4 = vmov 0.0  }
  0x2d   : > { %354 = vst [vmem:[#allocation2] sm:$0xff] %v1062_v4  ;;  %355 = vst [vmem:[#allocation2 + $0x8] sm:$0xff] %v1062_v4 }
  0x2e PF: > { %v978_v5 = vld [vmem:[%s1158_s30 + $0x78] sm:$0xff]   ;;  %v1063_v6 = vmov 0.0   ;;  %vm1064_vm0 = vmmov 0   ;;  %v981_v9 = vld [vmem:[%s1158_s30 + $0x70] sm:$0xff]   ;;  %v984_v12 = vld [vmem:[%s1158_s30 + $0x68] sm:$0xff]   ;;  %p861_p13 = scmp.ne.s32.totalorder %s1044_s17, 2 }
  0x2f   : > { %896 = vmatprep.subr.bf16.mxu1 %v1063_v6  ;;  %v979_v7 = vld [vmem:[%s1158_s30 + $0xb8] sm:$0xff]   ;;  %865 = vmatprep.subr.bf16.mxu0 %v978_v5  ;;  %v982_v10 = vld [vmem:[%s1158_s30 + $0xb0] sm:$0xff]   ;;  %v985_v13 = vld [vmem:[%s1158_s30 + $0xa8] sm:$0xff]  }
  0x30   : > { %v980_v8 = vld [vmem:[%s1158_s30 + $0x38] sm:$0xff]   ;;  %912 = vmatprep.mubr.msk.bf16.mxu1 %vm1064_vm0, %v1063_v6  ;;  %897 = vmatpush3.bf16.msra.mxu1 %v979_v7  ;;  %v983_v11 = vld [vmem:[%s1158_s30 + $0x30] sm:$0xff]   ;;  %v986_v14 = vld [vmem:[%s1158_s30 + $0x28] sm:$0xff]  }
  0x31   : > { %866 = vmatpush3.bf16.msra.mxu0 %v980_v8  ;;  %898 = vmatprep.subr.bf16.mxu1 %v1063_v6  ;;  %v987_v15 = vld [vmem:[%s1158_s30 + $0x60] sm:$0xff]   ;;  %v990_v18 = vld [vmem:[%s1158_s30 + $0x58] sm:$0xff]   ;;  %v993_v21 = vld [vmem:[%s1158_s30 + $0x50] sm:$0xff]  }
  0x32   : > { %867 = vmatprep.subr.bf16.mxu0 %v981_v9  ;;  %v988_v16 = vld [vmem:[%s1158_s30 + $0xa0] sm:$0xff]   ;;  %v991_v19 = vld [vmem:[%s1158_s30 + $0x98] sm:$0xff]   ;;  %v994_v22 = vld [vmem:[%s1158_s30 + $0x90] sm:$0xff]  }
  0x33   : > { %v989_v17 = vld [vmem:[%s1158_s30 + $0x20] sm:$0xff]   ;;  %v992_v20 = vld [vmem:[%s1158_s30 + $0x18] sm:$0xff]   ;;  %v995_v23 = vld [vmem:[%s1158_s30 + $0x10] sm:$0xff]  }
  0x34   : > { %899 = vmatpush3.bf16.msra.mxu1 %v982_v10  ;;  %v996_v24 = vld [vmem:[%s1158_s30 + $0x48] sm:$0xff]   ;;  %v999_v27 = vld [vmem:[%s1158_s30 + $0x40] sm:$0xff]  }
  0x35   : > { %868 = vmatpush3.bf16.msra.mxu0 %v983_v11  ;;  %900 = vmatprep.subr.bf16.mxu1 %v1063_v6  ;;  %v997_v25 = vld [vmem:[%s1158_s30 + $0x88] sm:$0xff]   ;;  %v1000_v29 = vld [vmem:[%s1158_s30 + $0x80] sm:$0xff]  }
  0x36   : > { %869 = vmatprep.subr.bf16.mxu0 %v984_v12  ;;  %v998_v26 = vld [vmem:[%s1158_s30 + $0x8] sm:$0xff]   ;;  %v1001_v30 = vld [vmem:[%s1158_s30] sm:$0xff]  }
  0x37   : > { %v1004_v28 = vld [vmem:[%s1170_s10 + $0x4] ss:$12 sps:$4 sm:$0xff]   ;;  %v1005_v31 = vld [vmem:[%s1170_s10 + $0x8] ss:$12 sps:$4 sm:$0xff]   ;;  %v1002_v32 = vld [vmem:[%s1170_s10] ss:$12 sps:$4 sm:$0xff]  }
  0x38   : > { %901 = vmatpush3.bf16.msra.mxu1 %v985_v13  ;;  %602 = vmatprep.mubr.bf16.mxu0 %v1004_v28  ;;  %v356_v39 = vld [vmem:[#allocation2] sm:$0xff]  ;;  %v357_v46 = vld [vmem:[#allocation2 + $0x8] sm:$0xff] }
  0x39   : > { %870 = vmatpush3.bf16.msra.mxu0 %v986_v14  ;;  %902 = vmatprep.subr.bf16.mxu1 %v1063_v6 }
  0x3a   : > { %871 = vmatprep.subr.bf16.mxu0 %v987_v15 }
  0x3c   : > { %903 = vmatpush3.bf16.msra.mxu1 %v988_v16 }
  0x3d   : > { %872 = vmatpush3.bf16.msra.mxu0 %v989_v17  ;;  %904 = vmatprep.subr.bf16.mxu1 %v1063_v6 }
  0x3e   : > { %873 = vmatprep.subr.bf16.mxu0 %v990_v18 }
  0x40   : > { %905 = vmatpush3.bf16.msra.mxu1 %v991_v19 }
  0x41   : > { %874 = vmatpush3.bf16.msra.mxu0 %v992_v20  ;;  %906 = vmatprep.subr.bf16.mxu1 %v1063_v6 }
  0x42   : > { %875 = vmatprep.subr.bf16.mxu0 %v993_v21 }
  0x44   : > { %907 = vmatpush3.bf16.msra.mxu1 %v994_v22 }
  0x45   : > { %876 = vmatpush3.bf16.msra.mxu0 %v995_v23  ;;  %908 = vmatprep.subr.bf16.mxu1 %v1063_v6 }
  0x46   : > { %877 = vmatprep.subr.bf16.mxu0 %v996_v24 }
  0x48   : > { %909 = vmatpush3.bf16.msra.mxu1 %v997_v25 }
  0x49   : > { %878 = vmatpush3.bf16.msra.mxu0 %v998_v26  ;;  %910 = vmatprep.subr.bf16.mxu1 %v1063_v6 }
  0x4a   : > { %879 = vmatprep.subr.bf16.mxu0 %v999_v27 }
  0x4c   : > { %911 = vmatpush3.bf16.msra.mxu1 %v1000_v29 }
  0x4d   : > { %880 = vmatpush3.bf16.msra.mxu0 %v1001_v30 }
  0x4f   : > { %913 = vmatmul.mubr.bf16.vlgmr.msra.gmra.mxu1 %v1005_v31 }
  0x50   : > { %603 = vmatmul.mubr.bf16.vlgmr.msra.gmra.mxu0 %v1002_v32 }
 0x10f   : > { %v645_v33 = vpop.f32.mrf.mxu1 }
 0x110   : > { %v881_v34 = vpop.f32.mrf.mxu0 }
 0x111   : > { %v914_v35 = vpop.f32.mrf.mxu1 }
 0x112   : > { %v882_v36 = vpop.f32.mrf.mxu0 }
 0x113   : > { %v883_v37 = vadd.f32 %v882_v36, %v881_v34  ;;  %v648_v38 = vpop.f32.mrf.mxu1 }
 0x114   : > { %v884_v40 = vpop.f32.mrf.mxu0 }
 0x115   : > { %v646_v41 = vadd.f32 %v883_v37, %v645_v33  ;;  %v915_v42 = vpop.f32.mrf.mxu1 }
 0x116   : > { %v885_v43 = vpop.f32.mrf.mxu0 }
 0x117   : > { %v652_v44 = vadd.f32 %v646_v41, %v356_v39  ;;  %v886_v45 = vadd.f32 %v885_v43, %v884_v40 }
 0x119   : > { %654 = vst [vmem:[#allocation2] sm:$0xff] %v652_v44  ;;  %v649_v47 = vadd.f32 %v886_v45, %v648_v38  ;;  %659 = sbr.rel (%p861_p13) target bundleno = 300 (0x12c), region = 70 }
 0x11b   : > { %v653_v48 = vadd.f32 %v649_v47, %v357_v46 }
 0x11d   : > { %655 = vst [vmem:[#allocation2 + $0x8] sm:$0xff] %v653_v48 }
 0x11e   : > { %v862_v50 = vld [vmem:[%s1231_s2] ss:$0 sm:$0xff]  ;;  %v672_v54 = vld [vmem:[%s1163_s8 + $0x8] sm:$0xff] }
 0x11f   : > { %v671_v51 = vld [vmem:[%s1163_s8] sm:$0xff] }
 0x120   : > { %v660_v49 = vld [vmem:[#allocation2] sm:$0xff] }
 0x121   : > { %v669_v52 = vadd.f32 %v862_v50, %v660_v49 }
 0x123   : > { %v673_v56 = vadd.f32 %v671_v51, %v669_v52 }
 0x124   : > { %v661_v53 = vld [vmem:[#allocation2 + $0x8] sm:$0xff] }
 0x125   : > { %v670_v55 = vadd.f32 %v862_v50, %v661_v53  ;;  %v675_v58 = vmax.f32 %v673_v56, 0.0 }
 0x127   : > { %v674_v57 = vadd.f32 %v672_v54, %v670_v55  ;;  %677 = vst [vmem:[%s1168_s18] sm:$0xff] %v675_v58 }
 0x129   : > { %v676_v59 = vmax.f32 %v674_v57, 0.0 }
 0x12b   : > { %678 = vst [vmem:[%s1168_s18 + $0x8] sm:$0xff] %v676_v59 }
 0x12c PF: > { %s14_s21 = sadd.s32 1, %s1060_s21   ;;  %s1234_s15 = smov %s1040_s16 }
 0x12d   : > { %p11_p0 = scmp.ge.s32.totalorder %s14_s21, 8   ;;  %s1235_s16 = smov %s1141_s28 }
 0x12e   : > { %s1236_s17 = smov %s1052_s19  ;;  %s1237_s18 = smov %s1056_s20 }
 0x12f   : > { %s1238_s19 = smov %s1241_s22  ;;  %s1239_s20 = smov %s1245_s23 }
 0x130   :  { %13 = sbr.rel (!%p11_p0) target bundleno = 4 (0x4), region = 120 }

// kernel: wrap_resnet_forward.31
= control target key start
LH: loop header
LB: loop body
LE: loop exit
PB: predicated region body
PF: predicated region fallthrough
CT: control target
= control target key end

     0   :  { %s1172_s12 = smov 0   ;;  %s1174_s13 = smov 0   ;;  %s1412_s0 = inlined_call_operand.vmem [shape: bf16[8,1152], index: 0, kind: input, shape index: {}]   ;;  %s1413_s1 = inlined_call_operand.vmem [shape: bf16[1152,256], index: 1, kind: input, shape index: {}]   ;;  %s1414_s2 = inlined_call_operand.vmem [shape: f32[1,256], index: 2, kind: input, shape index: {}]   ;;  %s1415_s3 = inlined_call_operand.vmem [shape: f32[8,256], index: 3, kind: output, shape index: {}]  }
   0x1   :  { %s1176_s14 = smov 0   ;;  %s1178_s15 = smov 0  }
   0x2   :  { %s1180_s16 = smov 0   ;;  %s1182_s17 = smov 0  }
   0x3   :  { %s1184_s18 = smov 0  }
   0x4 LB: > { %s25_s19 = sadd.s32 1, %s1139_s16  ;;  %s28_s20 = sadd.s32 1, %s1143_s17  ;;  %s1147_s18 = sphi %s1184_s18, %s13_s18   ;;  %s1143_s17 = sphi %s1182_s17, %s1421_s17   ;;  %s1139_s16 = sphi %s1180_s16, %s1420_s16   ;;  %s1135_s15 = sphi %s1178_s15, %s1419_s15   ;;  %s1131_s14 = sphi %s1176_s14, %s1418_s14   ;;  %s1127_s13 = sphi %s1174_s13, %s1417_s13   ;;  %s1123_s12 = sphi %s1172_s12, %s1416_s12  }
   0x5   : > { %p26_p0 = scmp.ge.s32.totalorder %s25_s19, 3  ;;  %p76_p1 = scmp.ne.s32.totalorder %s1127_s13, %s1123_s12 }
   0x6   : > { %p77_p2 = scmp.eq.s32.totalorder %s1147_s18, 0  ;;  %s69_s24 = sadd.s32 1, %s1127_s13 }
   0x7   : > { %s1423_s19 = smov (%p26_p0, %s25_s19), 0  ;;  %s1425_s20 = smov (!%p26_p0, %s28_s20), %s1143_s17 }
   0x8   : > { %p78_p3 = por %p77_p2, %p76_p1  ;;  %p30_p4 = scmp.ge.s32.totalorder %s1425_s20, 2 }
   0x9   : > { %s64_s21 = ssub.s32 %s1139_s16, %s1423_s19  ;;  %p915_p6 = scmp.ge.s32.totalorder %s1147_s18, 6 }
   0xa   : > { %s1427_s20 = smov (%p30_p4, %s1425_s20), 0 }
   0xb   : > { %s65_s22 = ssub.s32 %s1143_s17, %s1427_s20  ;;  %156 = sbr.rel (%p915_p6) target bundleno = 55 (0x37), region = 16 }
   0xc   : > { %s66_s23 = sor.u32 %s65_s22, %s64_s21 }
   0xd   : > { %p67_p5 = scmp.eq.s32.totalorder %s66_s23, 0 }
   0xf   : > { %s1223_s25 = scalar_select %p67_p5, %s1127_s13, %s69_s24  }
  0x10   : > { %172 = sbr.rel (!%p78_p3) target bundleno = 55 (0x37), region = 24  ;;  %s174_s26 = sand.u32 (%p78_p3), 1, %s1127_s13  }
  0x11   : > { %s953_s27 = smul.u32 (%p78_p3), 96, %s1139_s16 }
  0x12   : > { %s1005_s28 = smul.u32 (%p78_p3), 192, %s174_s26 }
  0x13   : > { %s179_s29 = sadd.s32 (%p78_p3), %s1143_s17, %s953_s27 }
  0x14   : > { %s917_s30 = sshll.u32 (%p78_p3), %s179_s29, 2  ;;  %s1237_s7 = scalar_lea.vmem (%p78_p3), [#allocation3], %s1005_s28 }
  0x15   : > { %s1232_s6 = scalar_lea.vmem %s1413_s1, %s917_s30 }
  0x16   : > { %v198_v0 = vld [vmem:[%s1232_s6] sm:$0xf]  ;;  %v200_v1 = vld [vmem:[%s1232_s6 + $0x8] sm:$0xf]  ;;  %v202_v2 = vld [vmem:[%s1232_s6 + $0x10] sm:$0xf] }
  0x17   : > { %199 = vst [vmem:[%s1237_s7] sm:$0xf] %v198_v0  ;;  %201 = vst [vmem:[%s1237_s7 + $0x4] sm:$0xf] %v200_v1  ;;  %v204_v3 = vld [vmem:[%s1232_s6 + $0x18] sm:$0xf] }
  0x18   : > { %203 = vst [vmem:[%s1237_s7 + $0x8] sm:$0xf] %v202_v2  ;;  %v206_v4 = vld [vmem:[%s1232_s6 + $0x20] sm:$0xf]  ;;  %v208_v5 = vld [vmem:[%s1232_s6 + $0x28] sm:$0xf] }
  0x19   : > { %205 = vst [vmem:[%s1237_s7 + $0xc] sm:$0xf] %v204_v3  ;;  %207 = vst [vmem:[%s1237_s7 + $0x10] sm:$0xf] %v206_v4  ;;  %v210_v6 = vld [vmem:[%s1232_s6 + $0x30] sm:$0xf] }
  0x1a   : > { %209 = vst [vmem:[%s1237_s7 + $0x14] sm:$0xf] %v208_v5  ;;  %v212_v7 = vld [vmem:[%s1232_s6 + $0x38] sm:$0xf]  ;;  %v214_v8 = vld [vmem:[%s1232_s6 + $0x40] sm:$0xf] }
  0x1b   : > { %211 = vst [vmem:[%s1237_s7 + $0x18] sm:$0xf] %v210_v6  ;;  %213 = vst [vmem:[%s1237_s7 + $0x1c] sm:$0xf] %v212_v7  ;;  %v216_v9 = vld [vmem:[%s1232_s6 + $0x48] sm:$0xf] }
  0x1c   : > { %215 = vst [vmem:[%s1237_s7 + $0x20] sm:$0xf] %v214_v8  ;;  %v218_v10 = vld [vmem:[%s1232_s6 + $0x50] sm:$0xf]  ;;  %v220_v11 = vld [vmem:[%s1232_s6 + $0x58] sm:$0xf] }
  0x1d   : > { %217 = vst [vmem:[%s1237_s7 + $0x24] sm:$0xf] %v216_v9  ;;  %219 = vst [vmem:[%s1237_s7 + $0x28] sm:$0xf] %v218_v10  ;;  %v222_v12 = vld [vmem:[%s1232_s6 + $0x60] sm:$0xf] }
  0x1e   : > { %221 = vst [vmem:[%s1237_s7 + $0x2c] sm:$0xf] %v220_v11  ;;  %v224_v13 = vld [vmem:[%s1232_s6 + $0x68] sm:$0xf]  ;;  %v226_v14 = vld [vmem:[%s1232_s6 + $0x70] sm:$0xf] }
  0x1f   : > { %223 = vst [vmem:[%s1237_s7 + $0x30] sm:$0xf] %v222_v12  ;;  %225 = vst [vmem:[%s1237_s7 + $0x34] sm:$0xf] %v224_v13  ;;  %v228_v15 = vld [vmem:[%s1232_s6 + $0x78] sm:$0xf] }
  0x20   : > { %227 = vst [vmem:[%s1237_s7 + $0x38] sm:$0xf] %v226_v14  ;;  %v230_v16 = vld [vmem:[%s1232_s6 + $0x80] sm:$0xf]  ;;  %v232_v17 = vld [vmem:[%s1232_s6 + $0x88] sm:$0xf] }
  0x21   : > { %229 = vst [vmem:[%s1237_s7 + $0x3c] sm:$0xf] %v228_v15  ;;  %231 = vst [vmem:[%s1237_s7 + $0x40] sm:$0xf] %v230_v16  ;;  %v234_v18 = vld [vmem:[%s1232_s6 + $0x90] sm:$0xf] }
  0x22   : > { %233 = vst [vmem:[%s1237_s7 + $0x44] sm:$0xf] %v232_v17  ;;  %v236_v19 = vld [vmem:[%s1232_s6 + $0x98] sm:$0xf]  ;;  %v238_v20 = vld [vmem:[%s1232_s6 + $0xa0] sm:$0xf] }
  0x23   : > { %235 = vst [vmem:[%s1237_s7 + $0x48] sm:$0xf] %v234_v18  ;;  %237 = vst [vmem:[%s1237_s7 + $0x4c] sm:$0xf] %v236_v19  ;;  %v240_v21 = vld [vmem:[%s1232_s6 + $0xa8] sm:$0xf] }
  0x24   : > { %239 = vst [vmem:[%s1237_s7 + $0x50] sm:$0xf] %v238_v20  ;;  %v242_v22 = vld [vmem:[%s1232_s6 + $0xb0] sm:$0xf]  ;;  %v244_v23 = vld [vmem:[%s1232_s6 + $0xb8] sm:$0xf] }
  0x25   : > { %241 = vst [vmem:[%s1237_s7 + $0x54] sm:$0xf] %v240_v21  ;;  %243 = vst [vmem:[%s1237_s7 + $0x58] sm:$0xf] %v242_v22  ;;  %v246_v24 = vld [vmem:[%s1232_s6 + $0xc0] sm:$0xf] }
  0x26   : > { %245 = vst [vmem:[%s1237_s7 + $0x5c] sm:$0xf] %v244_v23  ;;  %v248_v25 = vld [vmem:[%s1232_s6 + $0xc8] sm:$0xf]  ;;  %v250_v26 = vld [vmem:[%s1232_s6 + $0xd0] sm:$0xf] }
  0x27   : > { %247 = vst [vmem:[%s1237_s7 + $0x60] sm:$0xf] %v246_v24  ;;  %249 = vst [vmem:[%s1237_s7 + $0x64] sm:$0xf] %v248_v25  ;;  %v252_v27 = vld [vmem:[%s1232_s6 + $0xd8] sm:$0xf] }
  0x28   : > { %251 = vst [vmem:[%s1237_s7 + $0x68] sm:$0xf] %v250_v26  ;;  %v254_v28 = vld [vmem:[%s1232_s6 + $0xe0] sm:$0xf]  ;;  %v256_v29 = vld [vmem:[%s1232_s6 + $0xe8] sm:$0xf] }
  0x29   : > { %253 = vst [vmem:[%s1237_s7 + $0x6c] sm:$0xf] %v252_v27  ;;  %255 = vst [vmem:[%s1237_s7 + $0x70] sm:$0xf] %v254_v28  ;;  %v258_v30 = vld [vmem:[%s1232_s6 + $0xf0] sm:$0xf] }
  0x2a   : > { %257 = vst [vmem:[%s1237_s7 + $0x74] sm:$0xf] %v256_v29  ;;  %v260_v31 = vld [vmem:[%s1232_s6 + $0xf8] sm:$0xf]  ;;  %v262_v32 = vld [vmem:[%s1232_s6 + $0x100] sm:$0xf] }
  0x2b   : > { %259 = vst [vmem:[%s1237_s7 + $0x78] sm:$0xf] %v258_v30  ;;  %261 = vst [vmem:[%s1237_s7 + $0x7c] sm:$0xf] %v260_v31  ;;  %v264_v33 = vld [vmem:[%s1232_s6 + $0x108] sm:$0xf] }
  0x2c   : > { %263 = vst [vmem:[%s1237_s7 + $0x80] sm:$0xf] %v262_v32  ;;  %v266_v34 = vld [vmem:[%s1232_s6 + $0x110] sm:$0xf]  ;;  %v268_v35 = vld [vmem:[%s1232_s6 + $0x118] sm:$0xf] }
  0x2d   : > { %265 = vst [vmem:[%s1237_s7 + $0x84] sm:$0xf] %v264_v33  ;;  %267 = vst [vmem:[%s1237_s7 + $0x88] sm:$0xf] %v266_v34  ;;  %v270_v36 = vld [vmem:[%s1232_s6 + $0x120] sm:$0xf] }
  0x2e   : > { %269 = vst [vmem:[%s1237_s7 + $0x8c] sm:$0xf] %v268_v35  ;;  %v272_v37 = vld [vmem:[%s1232_s6 + $0x128] sm:$0xf]  ;;  %v274_v38 = vld [vmem:[%s1232_s6 + $0x130] sm:$0xf] }
  0x2f   : > { %271 = vst [vmem:[%s1237_s7 + $0x90] sm:$0xf] %v270_v36  ;;  %273 = vst [vmem:[%s1237_s7 + $0x94] sm:$0xf] %v272_v37  ;;  %v276_v39 = vld [vmem:[%s1232_s6 + $0x138] sm:$0xf] }
  0x30   : > { %275 = vst [vmem:[%s1237_s7 + $0x98] sm:$0xf] %v274_v38  ;;  %v278_v40 = vld [vmem:[%s1232_s6 + $0x140] sm:$0xf]  ;;  %v280_v41 = vld [vmem:[%s1232_s6 + $0x148] sm:$0xf] }
  0x31   : > { %277 = vst [vmem:[%s1237_s7 + $0x9c] sm:$0xf] %v276_v39  ;;  %279 = vst [vmem:[%s1237_s7 + $0xa0] sm:$0xf] %v278_v40  ;;  %v282_v42 = vld [vmem:[%s1232_s6 + $0x150] sm:$0xf] }
  0x32   : > { %281 = vst [vmem:[%s1237_s7 + $0xa4] sm:$0xf] %v280_v41  ;;  %v284_v43 = vld [vmem:[%s1232_s6 + $0x158] sm:$0xf]  ;;  %v286_v44 = vld [vmem:[%s1232_s6 + $0x160] sm:$0xf] }
  0x33   : > { %283 = vst [vmem:[%s1237_s7 + $0xa8] sm:$0xf] %v282_v42  ;;  %285 = vst [vmem:[%s1237_s7 + $0xac] sm:$0xf] %v284_v43  ;;  %v288_v45 = vld [vmem:[%s1232_s6 + $0x168] sm:$0xf] }
  0x34   : > { %287 = vst [vmem:[%s1237_s7 + $0xb0] sm:$0xf] %v286_v44  ;;  %v290_v46 = vld [vmem:[%s1232_s6 + $0x170] sm:$0xf]  ;;  %v292_v47 = vld [vmem:[%s1232_s6 + $0x178] sm:$0xf] }
  0x35   : > { %289 = vst [vmem:[%s1237_s7 + $0xb4] sm:$0xf] %v288_v45  ;;  %291 = vst [vmem:[%s1237_s7 + $0xb8] sm:$0xf] %v290_v46 }
  0x36   : > { %293 = vst [vmem:[%s1237_s7 + $0xbc] sm:$0xf] %v292_v47 }
  0x37 PF: > { %p918_p7 = scmp.ge.s32.totalorder %s1147_s18, 1  ;;  %p418_p8 = scmp.lt.s32.totalorder %s1147_s18, 7 }
  0x39   : > { %p419_p9 = pnand %p918_p7, %p418_p8 }
  0x3a   : > { %s425_s8 = sand.u32 (!%p419_p9), 1, %s1123_s12   ;;  %s463_s9 = smul.u32 (!%p419_p9), 3, %s1131_s14 }
  0x3b   : > { %422 = sbr.rel (%p419_p9) target bundleno = 322 (0x142), region = 69  ;;  %p474_p10 = scmp.lt.s32.totalorder (!%p419_p9), %s1135_s15, 1 }
  0x3c   : > { %s1006_s10 = smul.u32 (!%p419_p9), 192, %s425_s8  ;;  %p466_p11 = scmp.lt.s32.totalorder (!%p419_p9), %s463_s9, 8 }
  0x3d   : > { %p921_p12 = scmp.ne.s32.totalorder (!%p419_p9), %s1131_s14, 0 }
  0x3e   : > { %s1355_s4 = scalar_lea.vmem (!%p419_p9), [#allocation3], %s1006_s10 }
  0x40   : > { %s1429_s9 = smov (!%p466_p11, %s463_s9), 8  ;;  %s1431_s15 = smov (!%p474_p10, %s1135_s15), 1 }
  0x41   : > { %s919_s11 = sshll.u32 %s1429_s9, 2  ;;  %s476_s27 = scalar_lea.vmem %s1414_s2, %s1431_s15 }
  0x42   : > { %s1343_s23 = scalar_lea.vmem %s1412_s0, %s919_s11  ;;  %s920_s12 = sshll.u32 %s1431_s15, 3 }
  0x43   : > { %s1353_s30 = scalar_lea.vmem %s1415_s3, %s920_s12  ;;  %489 = sbr.rel (%p921_p12) target bundleno = 74 (0x4a), region = 77 }
  0x48   : > { %v1149_v48 = vmov 0.0  }
  0x49   : > { %490 = vst [vmem:[#allocation2] sm:$0xff] %v1149_v48 }
  0x4a PF: > { %v1066_v49 = vld [vmem:[%s1355_s4 + $0x78] sm:$0xff]   ;;  %v1150_v50 = vmov 0.0   ;;  %vm1151_vm0 = vmmov 0   ;;  %v1069_v53 = vld [vmem:[%s1355_s4 + $0x70] sm:$0xff]   ;;  %v1072_v56 = vld [vmem:[%s1355_s4 + $0x68] sm:$0xff]   ;;  %p949_p13 = scmp.ne.s32.totalorder %s1131_s14, 2 }
  0x4b   : > { %985 = vmatprep.subr.bf16.mxu1 %v1150_v50  ;;  %v1067_v51 = vld [vmem:[%s1355_s4 + $0xb8] sm:$0xff]   ;;  %954 = vmatprep.subr.bf16.mxu0 %v1066_v49  ;;  %v1070_v54 = vld [vmem:[%s1355_s4 + $0xb0] sm:$0xff]   ;;  %v1073_v57 = vld [vmem:[%s1355_s4 + $0xa8] sm:$0xff]  }
  0x4c   : > { %v1068_v52 = vld [vmem:[%s1355_s4 + $0x38] sm:$0xff]   ;;  %1001 = vmatprep.mubr.msk.bf16.mxu1 %vm1151_vm0, %v1150_v50  ;;  %986 = vmatpush3.bf16.msra.mxu1 %v1067_v51  ;;  %v1071_v55 = vld [vmem:[%s1355_s4 + $0x30] sm:$0xff]   ;;  %v1074_v58 = vld [vmem:[%s1355_s4 + $0x28] sm:$0xff]  }
  0x4d   : > { %955 = vmatpush3.bf16.msra.mxu0 %v1068_v52  ;;  %987 = vmatprep.subr.bf16.mxu1 %v1150_v50  ;;  %v1075_v59 = vld [vmem:[%s1355_s4 + $0x60] sm:$0xff]   ;;  %v1078_v62 = vld [vmem:[%s1355_s4 + $0x58] sm:$0xff]   ;;  %v1081_v1 = vld [vmem:[%s1355_s4 + $0x50] sm:$0xff]  }
  0x4e   : > { %956 = vmatprep.subr.bf16.mxu0 %v1069_v53  ;;  %v1076_v60 = vld [vmem:[%s1355_s4 + $0xa0] sm:$0xff]   ;;  %v1079_v63 = vld [vmem:[%s1355_s4 + $0x98] sm:$0xff]   ;;  %v1082_v2 = vld [vmem:[%s1355_s4 + $0x90] sm:$0xff]  }
  0x4f   : > { %v1077_v61 = vld [vmem:[%s1355_s4 + $0x20] sm:$0xff]   ;;  %v1080_v0 = vld [vmem:[%s1355_s4 + $0x18] sm:$0xff]   ;;  %v1083_v3 = vld [vmem:[%s1355_s4 + $0x10] sm:$0xff]  }
  0x50   : > { %988 = vmatpush3.bf16.msra.mxu1 %v1070_v54  ;;  %v1084_v4 = vld [vmem:[%s1355_s4 + $0x48] sm:$0xff]   ;;  %v492_v7 = vld [vmem:[%s1343_s23] sm:$0xff]  ;;  %v1087_v8 = vld [vmem:[%s1355_s4 + $0x40] sm:$0xff]  }
  0x51   : > { %957 = vmatpush3.bf16.msra.mxu0 %v1071_v55  ;;  %989 = vmatprep.subr.bf16.mxu1 %v1150_v50  ;;  %v1085_v5 = vld [vmem:[%s1355_s4 + $0x88] sm:$0xff]   ;;  %v923_v9 = vcombine.high %v492_v7, %v492_v7  ;;  %v1088_v10 = vld [vmem:[%s1355_s4 + $0x80] sm:$0xff]   ;;  %v922_v13 = vcombine.low %v492_v7, %v492_v7  ;;  %v491_v20 = vld [vmem:[#allocation2] sm:$0xff] }
  0x52   : > { %958 = vmatprep.subr.bf16.mxu0 %v1072_v56  ;;  %v1086_v6 = vld [vmem:[%s1355_s4 + $0x8] sm:$0xff]   ;;  %v1089_v11 = vld [vmem:[%s1355_s4] sm:$0xff]  }
  0x53   : > { %729 = vmatprep.mubr.bf16.mxu0 %v923_v9  ;;  %v1092_v12 = vld [vmem:[%s1343_s23 + $0x8] ss:$0 sps:$4 sm:$0xff]  }
  0x54   : > { %990 = vmatpush3.bf16.msra.mxu1 %v1073_v57 }
  0x55   : > { %959 = vmatpush3.bf16.msra.mxu0 %v1074_v58  ;;  %991 = vmatprep.subr.bf16.mxu1 %v1150_v50 }
  0x56   : > { %960 = vmatprep.subr.bf16.mxu0 %v1075_v59 }
  0x58   : > { %992 = vmatpush3.bf16.msra.mxu1 %v1076_v60 }
  0x59   : > { %961 = vmatpush3.bf16.msra.mxu0 %v1077_v61  ;;  %993 = vmatprep.subr.bf16.mxu1 %v1150_v50 }
  0x5a   : > { %962 = vmatprep.subr.bf16.mxu0 %v1078_v62 }
  0x5c   : > { %994 = vmatpush3.bf16.msra.mxu1 %v1079_v63 }
  0x5d   : > { %963 = vmatpush3.bf16.msra.mxu0 %v1080_v0  ;;  %995 = vmatprep.subr.bf16.mxu1 %v1150_v50 }
  0x5e   : > { %964 = vmatprep.subr.bf16.mxu0 %v1081_v1 }
  0x60   : > { %996 = vmatpush3.bf16.msra.mxu1 %v1082_v2 }
  0x61   : > { %965 = vmatpush3.bf16.msra.mxu0 %v1083_v3  ;;  %997 = vmatprep.subr.bf16.mxu1 %v1150_v50 }
  0x62   : > { %966 = vmatprep.subr.bf16.mxu0 %v1084_v4 }
  0x64   : > { %998 = vmatpush3.bf16.msra.mxu1 %v1085_v5 }
  0x65   : > { %967 = vmatpush3.bf16.msra.mxu0 %v1086_v6  ;;  %999 = vmatprep.subr.bf16.mxu1 %v1150_v50 }
  0x66   : > { %968 = vmatprep.subr.bf16.mxu0 %v1087_v8 }
  0x68   : > { %1000 = vmatpush3.bf16.msra.mxu1 %v1088_v10 }
  0x69   : > { %969 = vmatpush3.bf16.msra.mxu0 %v1089_v11 }
  0x6b   : > { %1002 = vmatmul.mubr.bf16.vlgmr.msra.gmra.mxu1 %v1092_v12 }
  0x6c   : > { %730 = vmatmul.mubr.bf16.vlgmr.msra.gmra.mxu0 %v922_v13 }
 0x12b   : > { %v771_v14 = vpop.f32.mrf.mxu1 }
 0x12c   : > { %v970_v15 = vpop.f32.mrf.mxu0 }
 0x12d   : > { %v1003_v16 = vpop.f32.mrf.mxu1 }
 0x12e   : > { %v971_v17 = vpop.f32.mrf.mxu0 }
 0x12f   : > { %v972_v18 = vadd.f32 %v971_v17, %v970_v15  ;;  %v774_v19 = vpop.f32.mrf.mxu1 }
 0x130   : > { %v973_v21 = vpop.f32.mrf.mxu0 }
 0x131   : > { %v772_v22 = vadd.f32 %v972_v18, %v771_v14  ;;  %v1004_v23 = vpop.f32.mrf.mxu1  ;;  %782 = sbr.rel (%p949_p13) target bundleno = 322 (0x142), region = 81 }
 0x132   : > { %v974_v24 = vpop.f32.mrf.mxu0 }
 0x133   : > { %v777_v25 = vadd.f32 %v772_v22, %v491_v20 }
 0x135   : > { %778 = vst [vmem:[#allocation2] sm:$0xff] %v777_v25 }
 0x136   : > { %v950_v27 = vld [vmem:[%s476_s27] ss:$0 sm:$0xff] }
 0x13c   : > { %v783_v26 = vld [vmem:[#allocation2] sm:$0xff] }
 0x13d   : > { %v791_v28 = vadd.f32 %v950_v27, %v783_v26 }
 0x13f   : > { %v792_v29 = vmax.f32 %v791_v28, 0.0 }
 0x141   : > { %793 = vst [vmem:[%s1353_s30] sm:$0xff] %v792_v29 }
 0x142 PF: > { %s13_s18 = sadd.s32 1, %s1147_s18   ;;  %s1416_s12 = smov %s1127_s13 }
 0x143   : > { %p10_p0 = scmp.ge.s32.totalorder %s13_s18, 8   ;;  %s1417_s13 = smov %s1223_s25 }
 0x144   : > { %s1418_s14 = smov %s1139_s16  ;;  %s1419_s15 = smov %s1143_s17 }
 0x145   : > { %s1420_s16 = smov %s1423_s19  ;;  %s1421_s17 = smov %s1427_s20 }
 0x146   :  { %12 = sbr.rel (!%p10_p0) target bundleno = 4 (0x4), region = 122 }

// kernel: wrap_resnet_forward.33
= control target key start
LH: loop header
LB: loop body
LE: loop exit
PB: predicated region body
PF: predicated region fallthrough
CT: control target
= control target key end

     0   :  { %s1756_s15 = smov 0   ;;  %s1758_s16 = smov 0   ;;  %s2123_s0 = inlined_call_operand.vmem [shape: bf16[8,2304], index: 0, kind: input, shape index: {}]   ;;  %s2124_s1 = inlined_call_operand.vmem [shape: bf16[2304,256], index: 1, kind: input, shape index: {}]   ;;  %s2125_s2 = inlined_call_operand.vmem [shape: f32[1,256], index: 2, kind: input, shape index: {}]   ;;  %s2126_s3 = inlined_call_operand.vmem [shape: f32[8,256], index: 3, kind: input, shape index: {}]   ;;  %s2127_s4 = inlined_call_operand.vmem [shape: f32[8,256], index: 4, kind: output, shape index: {}]  }
   0x1   :  { %s1760_s17 = smov 0   ;;  %s1762_s18 = smov 0  }
   0x2   :  { %s1764_s19 = smov 0   ;;  %s1766_s20 = smov 0  }
   0x3   :  { %s1768_s21 = smov 0  }
   0x4 LB: > { %s26_s22 = sadd.s32 1, %s1720_s19  ;;  %s29_s23 = sadd.s32 1, %s1724_s20  ;;  %s1728_s21 = sphi %s1768_s21, %s14_s21   ;;  %s1724_s20 = sphi %s1766_s20, %s2133_s20   ;;  %s1720_s19 = sphi %s1764_s19, %s2132_s19   ;;  %s1716_s18 = sphi %s1762_s18, %s2131_s18   ;;  %s1712_s17 = sphi %s1760_s17, %s2130_s17   ;;  %s1708_s16 = sphi %s1758_s16, %s2129_s16   ;;  %s1704_s15 = sphi %s1756_s15, %s2128_s15  }
   0x5   : > { %p27_p0 = scmp.ge.s32.totalorder %s26_s22, 3  ;;  %p77_p1 = scmp.ne.s32.totalorder %s1708_s16, %s1704_s15 }
   0x6   : > { %p78_p2 = scmp.eq.s32.totalorder %s1728_s21, 0  ;;  %s70_s27 = sadd.s32 1, %s1708_s16 }
   0x7   : > { %s2135_s22 = smov (%p27_p0, %s26_s22), 0  ;;  %s2137_s23 = smov (!%p27_p0, %s29_s23), %s1724_s20 }
   0x8   : > { %p79_p3 = por %p78_p2, %p77_p1  ;;  %p31_p4 = scmp.ge.s32.totalorder %s2137_s23, 2 }
   0x9   : > { %s65_s24 = ssub.s32 %s1720_s19, %s2135_s22  ;;  %p1428_p6 = scmp.ge.s32.totalorder %s1728_s21, 6 }
   0xa   : > { %s2139_s23 = smov (%p31_p4, %s2137_s23), 0 }
   0xb   : > { %s66_s25 = ssub.s32 %s1724_s20, %s2139_s23  ;;  %185 = sbr.rel (%p1428_p6) target bundleno = 87 (0x57), region = 16 }
   0xc   : > { %s67_s26 = sor.u32 %s66_s25, %s65_s24 }
   0xd   : > { %p68_p5 = scmp.eq.s32.totalorder %s67_s26, 0 }
   0xf   : > { %s1807_s28 = scalar_select %p68_p5, %s1708_s16, %s70_s27  }
  0x10   : > { %201 = sbr.rel (!%p79_p3) target bundleno = 87 (0x57), region = 24  ;;  %s203_s29 = sand.u32 (%p79_p3), 1, %s1708_s16  }
  0x11   : > { %s1494_s30 = smul.u32 (%p79_p3), 192, %s1720_s19 }
  0x12   : > { %s1561_s5 = smul.u32 (%p79_p3), 384, %s203_s29 }
  0x13   : > { %s208_s6 = sadd.s32 (%p79_p3), %s1724_s20, %s1494_s30 }
  0x14   : > { %s1430_s7 = sshll.u32 (%p79_p3), %s208_s6, 2  ;;  %s1821_s11 = scalar_lea.vmem (%p79_p3), [#allocation3], %s1561_s5 }
  0x15   : > { %s1816_s10 = scalar_lea.vmem %s2124_s1, %s1430_s7 }
  0x16   : > { %v227_v0 = vld [vmem:[%s1816_s10] sm:$0xf]  ;;  %v229_v1 = vld [vmem:[%s1816_s10 + $0x8] sm:$0xf]  ;;  %v231_v2 = vld [vmem:[%s1816_s10 + $0x10] sm:$0xf] }
  0x17   : > { %228 = vst [vmem:[%s1821_s11] sm:$0xf] %v227_v0  ;;  %230 = vst [vmem:[%s1821_s11 + $0x4] sm:$0xf] %v229_v1  ;;  %v233_v3 = vld [vmem:[%s1816_s10 + $0x18] sm:$0xf] }
  0x18   : > { %232 = vst [vmem:[%s1821_s11 + $0x8] sm:$0xf] %v231_v2  ;;  %v235_v4 = vld [vmem:[%s1816_s10 + $0x20] sm:$0xf]  ;;  %v237_v5 = vld [vmem:[%s1816_s10 + $0x28] sm:$0xf] }
  0x19   : > { %234 = vst [vmem:[%s1821_s11 + $0xc] sm:$0xf] %v233_v3  ;;  %236 = vst [vmem:[%s1821_s11 + $0x10] sm:$0xf] %v235_v4  ;;  %v239_v6 = vld [vmem:[%s1816_s10 + $0x30] sm:$0xf] }
  0x1a   : > { %238 = vst [vmem:[%s1821_s11 + $0x14] sm:$0xf] %v237_v5  ;;  %v241_v7 = vld [vmem:[%s1816_s10 + $0x38] sm:$0xf]  ;;  %v243_v8 = vld [vmem:[%s1816_s10 + $0x40] sm:$0xf] }
  0x1b   : > { %240 = vst [vmem:[%s1821_s11 + $0x18] sm:$0xf] %v239_v6  ;;  %242 = vst [vmem:[%s1821_s11 + $0x1c] sm:$0xf] %v241_v7  ;;  %v245_v9 = vld [vmem:[%s1816_s10 + $0x48] sm:$0xf] }
  0x1c   : > { %244 = vst [vmem:[%s1821_s11 + $0x20] sm:$0xf] %v243_v8  ;;  %v247_v10 = vld [vmem:[%s1816_s10 + $0x50] sm:$0xf]  ;;  %v249_v11 = vld [vmem:[%s1816_s10 + $0x58] sm:$0xf] }
  0x1d   : > { %246 = vst [vmem:[%s1821_s11 + $0x24] sm:$0xf] %v245_v9  ;;  %248 = vst [vmem:[%s1821_s11 + $0x28] sm:$0xf] %v247_v10  ;;  %v251_v12 = vld [vmem:[%s1816_s10 + $0x60] sm:$0xf] }
  0x1e   : > { %250 = vst [vmem:[%s1821_s11 + $0x2c] sm:$0xf] %v249_v11  ;;  %v253_v13 = vld [vmem:[%s1816_s10 + $0x68] sm:$0xf]  ;;  %v255_v14 = vld [vmem:[%s1816_s10 + $0x70] sm:$0xf] }
  0x1f   : > { %252 = vst [vmem:[%s1821_s11 + $0x30] sm:$0xf] %v251_v12  ;;  %254 = vst [vmem:[%s1821_s11 + $0x34] sm:$0xf] %v253_v13  ;;  %v257_v15 = vld [vmem:[%s1816_s10 + $0x78] sm:$0xf] }
  0x20   : > { %256 = vst [vmem:[%s1821_s11 + $0x38] sm:$0xf] %v255_v14  ;;  %v259_v16 = vld [vmem:[%s1816_s10 + $0x80] sm:$0xf]  ;;  %v261_v17 = vld [vmem:[%s1816_s10 + $0x88] sm:$0xf] }
  0x21   : > { %258 = vst [vmem:[%s1821_s11 + $0x3c] sm:$0xf] %v257_v15  ;;  %260 = vst [vmem:[%s1821_s11 + $0x40] sm:$0xf] %v259_v16  ;;  %v263_v18 = vld [vmem:[%s1816_s10 + $0x90] sm:$0xf] }
  0x22   : > { %262 = vst [vmem:[%s1821_s11 + $0x44] sm:$0xf] %v261_v17  ;;  %v265_v19 = vld [vmem:[%s1816_s10 + $0x98] sm:$0xf]  ;;  %v267_v20 = vld [vmem:[%s1816_s10 + $0xa0] sm:$0xf] }
  0x23   : > { %264 = vst [vmem:[%s1821_s11 + $0x48] sm:$0xf] %v263_v18  ;;  %266 = vst [vmem:[%s1821_s11 + $0x4c] sm:$0xf] %v265_v19  ;;  %v269_v21 = vld [vmem:[%s1816_s10 + $0xa8] sm:$0xf] }
  0x24   : > { %268 = vst [vmem:[%s1821_s11 + $0x50] sm:$0xf] %v267_v20  ;;  %v271_v22 = vld [vmem:[%s1816_s10 + $0xb0] sm:$0xf]  ;;  %v273_v23 = vld [vmem:[%s1816_s10 + $0xb8] sm:$0xf] }
  0x25   : > { %270 = vst [vmem:[%s1821_s11 + $0x54] sm:$0xf] %v269_v21  ;;  %272 = vst [vmem:[%s1821_s11 + $0x58] sm:$0xf] %v271_v22  ;;  %v275_v24 = vld [vmem:[%s1816_s10 + $0xc0] sm:$0xf] }
  0x26   : > { %274 = vst [vmem:[%s1821_s11 + $0x5c] sm:$0xf] %v273_v23  ;;  %v277_v25 = vld [vmem:[%s1816_s10 + $0xc8] sm:$0xf]  ;;  %v279_v26 = vld [vmem:[%s1816_s10 + $0xd0] sm:$0xf] }
  0x27   : > { %276 = vst [vmem:[%s1821_s11 + $0x60] sm:$0xf] %v275_v24  ;;  %278 = vst [vmem:[%s1821_s11 + $0x64] sm:$0xf] %v277_v25  ;;  %v281_v27 = vld [vmem:[%s1816_s10 + $0xd8] sm:$0xf] }
  0x28   : > { %280 = vst [vmem:[%s1821_s11 + $0x68] sm:$0xf] %v279_v26  ;;  %v283_v28 = vld [vmem:[%s1816_s10 + $0xe0] sm:$0xf]  ;;  %v285_v29 = vld [vmem:[%s1816_s10 + $0xe8] sm:$0xf] }
  0x29   : > { %282 = vst [vmem:[%s1821_s11 + $0x6c] sm:$0xf] %v281_v27  ;;  %284 = vst [vmem:[%s1821_s11 + $0x70] sm:$0xf] %v283_v28  ;;  %v287_v30 = vld [vmem:[%s1816_s10 + $0xf0] sm:$0xf] }
  0x2a   : > { %286 = vst [vmem:[%s1821_s11 + $0x74] sm:$0xf] %v285_v29  ;;  %v289_v31 = vld [vmem:[%s1816_s10 + $0xf8] sm:$0xf]  ;;  %v291_v32 = vld [vmem:[%s1816_s10 + $0x100] sm:$0xf] }
  0x2b   : > { %288 = vst [vmem:[%s1821_s11 + $0x78] sm:$0xf] %v287_v30  ;;  %290 = vst [vmem:[%s1821_s11 + $0x7c] sm:$0xf] %v289_v31  ;;  %v293_v33 = vld [vmem:[%s1816_s10 + $0x108] sm:$0xf] }
  0x2c   : > { %292 = vst [vmem:[%s1821_s11 + $0x80] sm:$0xf] %v291_v32  ;;  %v295_v34 = vld [vmem:[%s1816_s10 + $0x110] sm:$0xf]  ;;  %v297_v35 = vld [vmem:[%s1816_s10 + $0x118] sm:$0xf] }
  0x2d   : > { %294 = vst [vmem:[%s1821_s11 + $0x84] sm:$0xf] %v293_v33  ;;  %296 = vst [vmem:[%s1821_s11 + $0x88] sm:$0xf] %v295_v34  ;;  %v299_v36 = vld [vmem:[%s1816_s10 + $0x120] sm:$0xf] }
  0x2e   : > { %298 = vst [vmem:[%s1821_s11 + $0x8c] sm:$0xf] %v297_v35  ;;  %v301_v37 = vld [vmem:[%s1816_s10 + $0x128] sm:$0xf]  ;;  %v303_v38 = vld [vmem:[%s1816_s10 + $0x130] sm:$0xf] }
  0x2f   : > { %300 = vst [vmem:[%s1821_s11 + $0x90] sm:$0xf] %v299_v36  ;;  %302 = vst [vmem:[%s1821_s11 + $0x94] sm:$0xf] %v301_v37  ;;  %v305_v39 = vld [vmem:[%s1816_s10 + $0x138] sm:$0xf] }
  0x30   : > { %304 = vst [vmem:[%s1821_s11 + $0x98] sm:$0xf] %v303_v38  ;;  %v307_v40 = vld [vmem:[%s1816_s10 + $0x140] sm:$0xf]  ;;  %v309_v41 = vld [vmem:[%s1816_s10 + $0x148] sm:$0xf] }
  0x31   : > { %306 = vst [vmem:[%s1821_s11 + $0x9c] sm:$0xf] %v305_v39  ;;  %308 = vst [vmem:[%s1821_s11 + $0xa0] sm:$0xf] %v307_v40  ;;  %v311_v42 = vld [vmem:[%s1816_s10 + $0x150] sm:$0xf] }
  0x32   : > { %310 = vst [vmem:[%s1821_s11 + $0xa4] sm:$0xf] %v309_v41  ;;  %v313_v43 = vld [vmem:[%s1816_s10 + $0x158] sm:$0xf]  ;;  %v315_v44 = vld [vmem:[%s1816_s10 + $0x160] sm:$0xf] }
  0x33   : > { %312 = vst [vmem:[%s1821_s11 + $0xa8] sm:$0xf] %v311_v42  ;;  %314 = vst [vmem:[%s1821_s11 + $0xac] sm:$0xf] %v313_v43  ;;  %v317_v45 = vld [vmem:[%s1816_s10 + $0x168] sm:$0xf] }
  0x34   : > { %316 = vst [vmem:[%s1821_s11 + $0xb0] sm:$0xf] %v315_v44  ;;  %v319_v46 = vld [vmem:[%s1816_s10 + $0x170] sm:$0xf]  ;;  %v321_v47 = vld [vmem:[%s1816_s10 + $0x178] sm:$0xf] }
  0x35   : > { %318 = vst [vmem:[%s1821_s11 + $0xb4] sm:$0xf] %v317_v45  ;;  %320 = vst [vmem:[%s1821_s11 + $0xb8] sm:$0xf] %v319_v46  ;;  %v323_v48 = vld [vmem:[%s1816_s10 + $0x180] sm:$0xf] }
  0x36   : > { %322 = vst [vmem:[%s1821_s11 + $0xbc] sm:$0xf] %v321_v47  ;;  %v325_v49 = vld [vmem:[%s1816_s10 + $0x188] sm:$0xf]  ;;  %v327_v50 = vld [vmem:[%s1816_s10 + $0x190] sm:$0xf] }
  0x37   : > { %324 = vst [vmem:[%s1821_s11 + $0xc0] sm:$0xf] %v323_v48  ;;  %326 = vst [vmem:[%s1821_s11 + $0xc4] sm:$0xf] %v325_v49  ;;  %v329_v51 = vld [vmem:[%s1816_s10 + $0x198] sm:$0xf] }
  0x38   : > { %328 = vst [vmem:[%s1821_s11 + $0xc8] sm:$0xf] %v327_v50  ;;  %v331_v52 = vld [vmem:[%s1816_s10 + $0x1a0] sm:$0xf]  ;;  %v333_v53 = vld [vmem:[%s1816_s10 + $0x1a8] sm:$0xf] }
  0x39   : > { %330 = vst [vmem:[%s1821_s11 + $0xcc] sm:$0xf] %v329_v51  ;;  %332 = vst [vmem:[%s1821_s11 + $0xd0] sm:$0xf] %v331_v52  ;;  %v335_v54 = vld [vmem:[%s1816_s10 + $0x1b0] sm:$0xf] }
  0x3a   : > { %334 = vst [vmem:[%s1821_s11 + $0xd4] sm:$0xf] %v333_v53  ;;  %v337_v55 = vld [vmem:[%s1816_s10 + $0x1b8] sm:$0xf]  ;;  %v339_v56 = vld [vmem:[%s1816_s10 + $0x1c0] sm:$0xf] }
  0x3b   : > { %336 = vst [vmem:[%s1821_s11 + $0xd8] sm:$0xf] %v335_v54  ;;  %338 = vst [vmem:[%s1821_s11 + $0xdc] sm:$0xf] %v337_v55  ;;  %v341_v57 = vld [vmem:[%s1816_s10 + $0x1c8] sm:$0xf] }
  0x3c   : > { %340 = vst [vmem:[%s1821_s11 + $0xe0] sm:$0xf] %v339_v56  ;;  %v343_v58 = vld [vmem:[%s1816_s10 + $0x1d0] sm:$0xf]  ;;  %v345_v59 = vld [vmem:[%s1816_s10 + $0x1d8] sm:$0xf] }
  0x3d   : > { %342 = vst [vmem:[%s1821_s11 + $0xe4] sm:$0xf] %v341_v57  ;;  %344 = vst [vmem:[%s1821_s11 + $0xe8] sm:$0xf] %v343_v58  ;;  %v347_v60 = vld [vmem:[%s1816_s10 + $0x1e0] sm:$0xf] }
  0x3e   : > { %346 = vst [vmem:[%s1821_s11 + $0xec] sm:$0xf] %v345_v59  ;;  %v349_v61 = vld [vmem:[%s1816_s10 + $0x1e8] sm:$0xf]  ;;  %v351_v62 = vld [vmem:[%s1816_s10 + $0x1f0] sm:$0xf] }
  0x3f   : > { %348 = vst [vmem:[%s1821_s11 + $0xf0] sm:$0xf] %v347_v60  ;;  %350 = vst [vmem:[%s1821_s11 + $0xf4] sm:$0xf] %v349_v61  ;;  %v353_v63 = vld [vmem:[%s1816_s10 + $0x1f8] sm:$0xf] }
  0x40   : > { %352 = vst [vmem:[%s1821_s11 + $0xf8] sm:$0xf] %v351_v62  ;;  %v355_v0 = vld [vmem:[%s1816_s10 + $0x200] sm:$0xf]  ;;  %v357_v1 = vld [vmem:[%s1816_s10 + $0x208] sm:$0xf] }
  0x41   : > { %354 = vst [vmem:[%s1821_s11 + $0xfc] sm:$0xf] %v353_v63  ;;  %356 = vst [vmem:[%s1821_s11 + $0x100] sm:$0xf] %v355_v0  ;;  %v359_v2 = vld [vmem:[%s1816_s10 + $0x210] sm:$0xf] }
  0x42   : > { %358 = vst [vmem:[%s1821_s11 + $0x104] sm:$0xf] %v357_v1  ;;  %v361_v3 = vld [vmem:[%s1816_s10 + $0x218] sm:$0xf]  ;;  %v363_v4 = vld [vmem:[%s1816_s10 + $0x220] sm:$0xf] }
  0x43   : > { %360 = vst [vmem:[%s1821_s11 + $0x108] sm:$0xf] %v359_v2  ;;  %362 = vst [vmem:[%s1821_s11 + $0x10c] sm:$0xf] %v361_v3  ;;  %v365_v5 = vld [vmem:[%s1816_s10 + $0x228] sm:$0xf] }
  0x44   : > { %364 = vst [vmem:[%s1821_s11 + $0x110] sm:$0xf] %v363_v4  ;;  %v367_v6 = vld [vmem:[%s1816_s10 + $0x230] sm:$0xf]  ;;  %v369_v7 = vld [vmem:[%s1816_s10 + $0x238] sm:$0xf] }
  0x45   : > { %366 = vst [vmem:[%s1821_s11 + $0x114] sm:$0xf] %v365_v5  ;;  %368 = vst [vmem:[%s1821_s11 + $0x118] sm:$0xf] %v367_v6  ;;  %v371_v8 = vld [vmem:[%s1816_s10 + $0x240] sm:$0xf] }
  0x46   : > { %370 = vst [vmem:[%s1821_s11 + $0x11c] sm:$0xf] %v369_v7  ;;  %v373_v9 = vld [vmem:[%s1816_s10 + $0x248] sm:$0xf]  ;;  %v375_v10 = vld [vmem:[%s1816_s10 + $0x250] sm:$0xf] }
  0x47   : > { %372 = vst [vmem:[%s1821_s11 + $0x120] sm:$0xf] %v371_v8  ;;  %374 = vst [vmem:[%s1821_s11 + $0x124] sm:$0xf] %v373_v9  ;;  %v377_v11 = vld [vmem:[%s1816_s10 + $0x258] sm:$0xf] }
  0x48   : > { %376 = vst [vmem:[%s1821_s11 + $0x128] sm:$0xf] %v375_v10  ;;  %v379_v12 = vld [vmem:[%s1816_s10 + $0x260] sm:$0xf]  ;;  %v381_v13 = vld [vmem:[%s1816_s10 + $0x268] sm:$0xf] }
  0x49   : > { %378 = vst [vmem:[%s1821_s11 + $0x12c] sm:$0xf] %v377_v11  ;;  %380 = vst [vmem:[%s1821_s11 + $0x130] sm:$0xf] %v379_v12  ;;  %v383_v14 = vld [vmem:[%s1816_s10 + $0x270] sm:$0xf] }
  0x4a   : > { %382 = vst [vmem:[%s1821_s11 + $0x134] sm:$0xf] %v381_v13  ;;  %v385_v15 = vld [vmem:[%s1816_s10 + $0x278] sm:$0xf]  ;;  %v387_v16 = vld [vmem:[%s1816_s10 + $0x280] sm:$0xf] }
  0x4b   : > { %384 = vst [vmem:[%s1821_s11 + $0x138] sm:$0xf] %v383_v14  ;;  %386 = vst [vmem:[%s1821_s11 + $0x13c] sm:$0xf] %v385_v15  ;;  %v389_v17 = vld [vmem:[%s1816_s10 + $0x288] sm:$0xf] }
  0x4c   : > { %388 = vst [vmem:[%s1821_s11 + $0x140] sm:$0xf] %v387_v16  ;;  %v391_v18 = vld [vmem:[%s1816_s10 + $0x290] sm:$0xf]  ;;  %v393_v19 = vld [vmem:[%s1816_s10 + $0x298] sm:$0xf] }
  0x4d   : > { %390 = vst [vmem:[%s1821_s11 + $0x144] sm:$0xf] %v389_v17  ;;  %392 = vst [vmem:[%s1821_s11 + $0x148] sm:$0xf] %v391_v18  ;;  %v395_v20 = vld [vmem:[%s1816_s10 + $0x2a0] sm:$0xf] }
  0x4e   : > { %394 = vst [vmem:[%s1821_s11 + $0x14c] sm:$0xf] %v393_v19  ;;  %v397_v21 = vld [vmem:[%s1816_s10 + $0x2a8] sm:$0xf]  ;;  %v399_v22 = vld [vmem:[%s1816_s10 + $0x2b0] sm:$0xf] }
  0x4f   : > { %396 = vst [vmem:[%s1821_s11 + $0x150] sm:$0xf] %v395_v20  ;;  %398 = vst [vmem:[%s1821_s11 + $0x154] sm:$0xf] %v397_v21  ;;  %v401_v23 = vld [vmem:[%s1816_s10 + $0x2b8] sm:$0xf] }
  0x50   : > { %400 = vst [vmem:[%s1821_s11 + $0x158] sm:$0xf] %v399_v22  ;;  %v403_v24 = vld [vmem:[%s1816_s10 + $0x2c0] sm:$0xf]  ;;  %v405_v25 = vld [vmem:[%s1816_s10 + $0x2c8] sm:$0xf] }
  0x51   : > { %402 = vst [vmem:[%s1821_s11 + $0x15c] sm:$0xf] %v401_v23  ;;  %404 = vst [vmem:[%s1821_s11 + $0x160] sm:$0xf] %v403_v24  ;;  %v407_v26 = vld [vmem:[%s1816_s10 + $0x2d0] sm:$0xf] }
  0x52   : > { %406 = vst [vmem:[%s1821_s11 + $0x164] sm:$0xf] %v405_v25  ;;  %v409_v27 = vld [vmem:[%s1816_s10 + $0x2d8] sm:$0xf]  ;;  %v411_v28 = vld [vmem:[%s1816_s10 + $0x2e0] sm:$0xf] }
  0x53   : > { %408 = vst [vmem:[%s1821_s11 + $0x168] sm:$0xf] %v407_v26  ;;  %410 = vst [vmem:[%s1821_s11 + $0x16c] sm:$0xf] %v409_v27  ;;  %v413_v29 = vld [vmem:[%s1816_s10 + $0x2e8] sm:$0xf] }
  0x54   : > { %412 = vst [vmem:[%s1821_s11 + $0x170] sm:$0xf] %v411_v28  ;;  %v415_v30 = vld [vmem:[%s1816_s10 + $0x2f0] sm:$0xf]  ;;  %v417_v31 = vld [vmem:[%s1816_s10 + $0x2f8] sm:$0xf] }
  0x55   : > { %414 = vst [vmem:[%s1821_s11 + $0x174] sm:$0xf] %v413_v29  ;;  %416 = vst [vmem:[%s1821_s11 + $0x178] sm:$0xf] %v415_v30 }
  0x56   : > { %418 = vst [vmem:[%s1821_s11 + $0x17c] sm:$0xf] %v417_v31 }
  0x57 PF: > { %p1431_p7 = scmp.ge.s32.totalorder %s1728_s21, 1  ;;  %p650_p8 = scmp.lt.s32.totalorder %s1728_s21, 7 }
  0x59   : > { %p651_p9 = pnand %p1431_p7, %p650_p8 }
  0x5a   : > { %s657_s12 = sand.u32 (!%p651_p9), 1, %s1704_s15   ;;  %s705_s13 = smul.u32 (!%p651_p9), 6, %s1712_s17 }
  0x5b   : > { %654 = sbr.rel (%p651_p9) target bundleno = 389 (0x185), region = 73  ;;  %p716_p10 = scmp.lt.s32.totalorder (!%p651_p9), %s1716_s18, 1 }
  0x5c   : > { %s1562_s14 = smul.u32 (!%p651_p9), 384, %s657_s12  ;;  %p708_p11 = scmp.lt.s32.totalorder (!%p651_p9), %s705_s13, 17 }
  0x5d   : > { %p1435_p12 = scmp.ne.s32.totalorder (!%p651_p9), %s1712_s17, 0 }
  0x5e   : > { %s2040_s12 = scalar_lea.vmem (!%p651_p9), [#allocation3], %s1562_s14 }
  0x60   : > { %s2141_s13 = smov (!%p708_p11, %s705_s13), 17  ;;  %s2143_s18 = smov (!%p716_p10, %s1716_s18), 1 }
  0x61   : > { %s1432_s24 = sshll.u32 %s2141_s13, 2  ;;  %s718_s5 = scalar_lea.vmem %s2125_s2, %s2143_s18 }
  0x62   : > { %s2023_s27 = scalar_lea.vmem %s2123_s0, %s1432_s24  ;;  %s1433_s15 = sshll.u32 %s2143_s18, 3 }
  0x63   : > { %s2033_s8 = scalar_lea.vmem %s2126_s3, %s1433_s15  ;;  %s2038_s11 = scalar_lea.vmem %s2127_s4, %s1433_s15 }
  0x64   : > { %739 = sbr.rel (%p1435_p12) target bundleno = 107 (0x6b), region = 81 }
  0x69   : > { %v1730_v32 = vmov 0.0  }
  0x6a   : > { %740 = vst [vmem:[#allocation2] sm:$0xff] %v1730_v32 }
  0x6b PF: > { %v1620_v33 = vld [vmem:[%s2040_s12 + $0x78] sm:$0xff]   ;;  %v1624_v37 = vld [vmem:[%s2040_s12 + $0x70] sm:$0xff]   ;;  %v1628_v41 = vld [vmem:[%s2040_s12 + $0x68] sm:$0xff]   ;;  %p1490_p13 = scmp.ne.s32.totalorder %s1712_s17, 2 }
  0x6c   : > { %v1621_v34 = vld [vmem:[%s2040_s12 + $0xf8] sm:$0xff]   ;;  %1495 = vmatprep.subr.bf16.mxu0 %v1620_v33  ;;  %v1625_v38 = vld [vmem:[%s2040_s12 + $0xf0] sm:$0xff]   ;;  %v1629_v42 = vld [vmem:[%s2040_s12 + $0xe8] sm:$0xff]  }
  0x6d   : > { %v1622_v35 = vld [vmem:[%s2040_s12 + $0x38] sm:$0xff]   ;;  %1517 = vmatprep.subr.bf16.mxu1 %v1621_v34  ;;  %v1626_v39 = vld [vmem:[%s2040_s12 + $0x30] sm:$0xff]   ;;  %v1630_v43 = vld [vmem:[%s2040_s12 + $0x28] sm:$0xff]  }
  0x6e   : > { %v1623_v36 = vld [vmem:[%s2040_s12 + $0xb8] sm:$0xff]   ;;  %1496 = vmatpush3.bf16.msra.mxu0 %v1622_v35  ;;  %v1627_v40 = vld [vmem:[%s2040_s12 + $0xb0] sm:$0xff]   ;;  %v1631_v44 = vld [vmem:[%s2040_s12 + $0xa8] sm:$0xff]  }
  0x6f   : > { %1518 = vmatpush3.bf16.msra.mxu1 %v1623_v36  ;;  %1497 = vmatprep.subr.bf16.mxu0 %v1624_v37  ;;  %v1632_v45 = vld [vmem:[%s2040_s12 + $0x60] sm:$0xff]   ;;  %v1636_v49 = vld [vmem:[%s2040_s12 + $0x58] sm:$0xff]   ;;  %v1640_v53 = vld [vmem:[%s2040_s12 + $0x50] sm:$0xff]  }
  0x70   : > { %1519 = vmatprep.subr.bf16.mxu1 %v1625_v38  ;;  %v1633_v46 = vld [vmem:[%s2040_s12 + $0xe0] sm:$0xff]   ;;  %v1637_v50 = vld [vmem:[%s2040_s12 + $0xd8] sm:$0xff]   ;;  %v1641_v54 = vld [vmem:[%s2040_s12 + $0xd0] sm:$0xff]  }
  0x71   : > { %v1634_v47 = vld [vmem:[%s2040_s12 + $0x20] sm:$0xff]   ;;  %v1638_v51 = vld [vmem:[%s2040_s12 + $0x18] sm:$0xff]   ;;  %v1642_v55 = vld [vmem:[%s2040_s12 + $0x10] sm:$0xff]  }
  0x72   : > { %1498 = vmatpush3.bf16.msra.mxu0 %v1626_v39  ;;  %v1635_v48 = vld [vmem:[%s2040_s12 + $0xa0] sm:$0xff]   ;;  %v1639_v52 = vld [vmem:[%s2040_s12 + $0x98] sm:$0xff]   ;;  %v1643_v56 = vld [vmem:[%s2040_s12 + $0x90] sm:$0xff]  }
  0x73   : > { %1520 = vmatpush3.bf16.msra.mxu1 %v1627_v40  ;;  %1499 = vmatprep.subr.bf16.mxu0 %v1628_v41  ;;  %v1644_v57 = vld [vmem:[%s2040_s12 + $0x48] sm:$0xff]   ;;  %v1648_v61 = vld [vmem:[%s2040_s12 + $0x40] sm:$0xff]   ;;  %v742_v1 = vld [vmem:[%s2023_s27] sm:$0xff] }
  0x74   : > { %1521 = vmatprep.subr.bf16.mxu1 %v1629_v42  ;;  %v1645_v58 = vld [vmem:[%s2040_s12 + $0xc8] sm:$0xff]   ;;  %v1649_v62 = vld [vmem:[%s2040_s12 + $0xc0] sm:$0xff]   ;;  %v1436_v3 = vcombine.low %v742_v1, %v742_v1  ;;  %v1437_v4 = vcombine.high %v742_v1, %v742_v1  ;;  %v1656_v7 = vld [vmem:[%s2040_s12 + $0x178] sm:$0xff]  }
  0x75   : > { %v1646_v59 = vld [vmem:[%s2040_s12 + $0x8] sm:$0xff]   ;;  %v1650_v63 = vld [vmem:[%s2040_s12] sm:$0xff]   ;;  %v1657_v8 = vld [vmem:[%s2040_s12 + $0x138] sm:$0xff]  }
  0x76   : > { %1500 = vmatpush3.bf16.msra.mxu0 %v1630_v43  ;;  %v1647_v60 = vld [vmem:[%s2040_s12 + $0x88] sm:$0xff]   ;;  %v1651_v0 = vld [vmem:[%s2040_s12 + $0x80] sm:$0xff]   ;;  %1182 = vmatprep.mubr.bf16.mxu0 %v1437_v4  ;;  %v1658_v9 = vld [vmem:[%s2040_s12 + $0x170] sm:$0xff]  }
  0x77   : > { %1522 = vmatpush3.bf16.msra.mxu1 %v1631_v44  ;;  %1501 = vmatprep.subr.bf16.mxu0 %v1632_v45  ;;  %v743_v2 = vld [vmem:[%s2023_s27 + $0x8] sm:$0xff]  ;;  %v1659_v10 = vld [vmem:[%s2040_s12 + $0x130] sm:$0xff]   ;;  %v1660_v11 = vld [vmem:[%s2040_s12 + $0x168] sm:$0xff]  }
  0x78   : > { %1523 = vmatprep.subr.bf16.mxu1 %v1633_v46  ;;  %v1438_v5 = vcombine.low %v743_v2, %v743_v2  ;;  %v1439_v6 = vcombine.high %v743_v2, %v743_v2  ;;  %v1661_v12 = vld [vmem:[%s2040_s12 + $0x128] sm:$0xff]   ;;  %v1662_v13 = vld [vmem:[%s2040_s12 + $0x160] sm:$0xff]   ;;  %v1664_v15 = vld [vmem:[%s2040_s12 + $0x158] sm:$0xff]  }
  0x79   : > { %v1663_v14 = vld [vmem:[%s2040_s12 + $0x120] sm:$0xff]   ;;  %v744_v16 = vld [vmem:[%s2023_s27 + $0x10] sm:$0xff]  ;;  %v1665_v18 = vld [vmem:[%s2040_s12 + $0x118] sm:$0xff]  }
  0x7a   : > { %1502 = vmatpush3.bf16.msra.mxu0 %v1634_v47  ;;  %1222 = vmatprep.mubr.bf16.mxu1 %v1439_v6  ;;  %v1441_v17 = vcombine.high %v744_v16, %v744_v16  ;;  %v1666_v19 = vld [vmem:[%s2040_s12 + $0x150] sm:$0xff]   ;;  %v1668_v21 = vld [vmem:[%s2040_s12 + $0x148] sm:$0xff]   ;;  %v1670_v23 = vld [vmem:[%s2040_s12 + $0x140] sm:$0xff]   ;;  %v1440_v25 = vcombine.low %v744_v16, %v744_v16 }
  0x7b   : > { %1524 = vmatpush3.bf16.msra.mxu1 %v1635_v48  ;;  %1503 = vmatprep.subr.bf16.mxu0 %v1636_v49  ;;  %v1667_v20 = vld [vmem:[%s2040_s12 + $0x110] sm:$0xff]   ;;  %v1669_v22 = vld [vmem:[%s2040_s12 + $0x108] sm:$0xff]   ;;  %v1671_v24 = vld [vmem:[%s2040_s12 + $0x100] sm:$0xff]  }
  0x7c   : > { %1525 = vmatprep.subr.bf16.mxu1 %v1637_v50  ;;  %v741_v40 = vld [vmem:[#allocation2] sm:$0xff] }
  0x7e   : > { %1504 = vmatpush3.bf16.msra.mxu0 %v1638_v51 }
  0x7f   : > { %1526 = vmatpush3.bf16.msra.mxu1 %v1639_v52  ;;  %1505 = vmatprep.subr.bf16.mxu0 %v1640_v53 }
  0x80   : > { %1527 = vmatprep.subr.bf16.mxu1 %v1641_v54 }
  0x82   : > { %1506 = vmatpush3.bf16.msra.mxu0 %v1642_v55 }
  0x83   : > { %1528 = vmatpush3.bf16.msra.mxu1 %v1643_v56  ;;  %1507 = vmatprep.subr.bf16.mxu0 %v1644_v57 }
  0x84   : > { %1529 = vmatprep.subr.bf16.mxu1 %v1645_v58 }
  0x86   : > { %1508 = vmatpush3.bf16.msra.mxu0 %v1646_v59 }
  0x87   : > { %1530 = vmatpush3.bf16.msra.mxu1 %v1647_v60  ;;  %1509 = vmatprep.subr.bf16.mxu0 %v1648_v61 }
  0x88   : > { %1531 = vmatprep.subr.bf16.mxu1 %v1649_v62 }
  0x8a   : > { %1510 = vmatpush3.bf16.msra.mxu0 %v1650_v63 }
  0x8b   : > { %1532 = vmatpush3.bf16.msra.mxu1 %v1651_v0  ;;  %1539 = vmatprep.subr.bf16.mxu0 %v1656_v7 }
  0x8d   : > { %1183 = vmatmul.mubr.bf16.vlgmr.msra.gmra.mxu0 %v1436_v3 }
  0x8e   : > { %1223 = vmatmul.mubr.bf16.vlgmr.msra.gmra.mxu1 %v1438_v5  ;;  %1540 = vmatpush3.bf16.msra.mxu0 %v1657_v8 }
  0x8f   : > { %1541 = vmatprep.subr.bf16.mxu0 %v1658_v9  ;;  %1262 = vmatprep.mubr.bf16.mxu0 %v1441_v17 }
  0x92   : > { %1542 = vmatpush3.bf16.msra.mxu0 %v1659_v10 }
  0x93   : > { %1543 = vmatprep.subr.bf16.mxu0 %v1660_v11 }
  0x96   : > { %1544 = vmatpush3.bf16.msra.mxu0 %v1661_v12 }
  0x97   : > { %1545 = vmatprep.subr.bf16.mxu0 %v1662_v13 }
  0x9a   : > { %1546 = vmatpush3.bf16.msra.mxu0 %v1663_v14 }
  0x9b   : > { %1547 = vmatprep.subr.bf16.mxu0 %v1664_v15 }
  0x9e   : > { %1548 = vmatpush3.bf16.msra.mxu0 %v1665_v18 }
  0x9f   : > { %1549 = vmatprep.subr.bf16.mxu0 %v1666_v19 }
  0xa2   : > { %1550 = vmatpush3.bf16.msra.mxu0 %v1667_v20 }
  0xa3   : > { %1551 = vmatprep.subr.bf16.mxu0 %v1668_v21 }
  0xa6   : > { %1552 = vmatpush3.bf16.msra.mxu0 %v1669_v22 }
  0xa7   : > { %1553 = vmatprep.subr.bf16.mxu0 %v1670_v23 }
  0xaa   : > { %1554 = vmatpush3.bf16.msra.mxu0 %v1671_v24 }
  0xad   : > { %1263 = vmatmul.mubr.bf16.vlgmr.msra.gmra.mxu0 %v1440_v25 }
 0x14d   : > { %v1511_v26 = vpop.f32.mrf.mxu0 }
 0x14e   : > { %v1533_v27 = vpop.f32.mrf.mxu1 }
 0x14f   : > { %v1512_v28 = vpop.f32.mrf.mxu0 }
 0x150   : > { %v1534_v29 = vpop.f32.mrf.mxu1  ;;  %v1513_v34 = vadd.f32 %v1512_v28, %v1511_v26 }
 0x151   : > { %v1514_v30 = vpop.f32.mrf.mxu0  ;;  %v1535_v35 = vadd.f32 %v1534_v29, %v1533_v27 }
 0x152   : > { %v1536_v31 = vpop.f32.mrf.mxu1 }
 0x153   : > { %v1515_v32 = vpop.f32.mrf.mxu0  ;;  %v1225_v38 = vadd.f32 %v1535_v35, %v1513_v34 }
 0x154   : > { %v1537_v33 = vpop.f32.mrf.mxu1 }
 0x16d   : > { %v1555_v36 = vpop.f32.mrf.mxu0 }
 0x16f   : > { %v1556_v37 = vpop.f32.mrf.mxu0 }
 0x170   : > { %v1557_v39 = vadd.f32 %v1556_v37, %v1555_v36 }
 0x171   : > { %v1558_v41 = vpop.f32.mrf.mxu0 }
 0x172   : > { %v1265_v42 = vadd.f32 %v1557_v39, %v1225_v38  ;;  %1275 = sbr.rel (%p1490_p13) target bundleno = 389 (0x185), region = 85 }
 0x173   : > { %v1559_v43 = vpop.f32.mrf.mxu0 }
 0x174   : > { %v1270_v44 = vadd.f32 %v1265_v42, %v741_v40 }
 0x176   : > { %1271 = vst [vmem:[#allocation2] sm:$0xff] %v1270_v44 }
 0x177   : > { %v1491_v46 = vld [vmem:[%s718_s5] ss:$0 sm:$0xff] }
 0x178   : > { %v1285_v47 = vld [vmem:[%s2033_s8] sm:$0xff] }
 0x17d   : > { %v1276_v45 = vld [vmem:[#allocation2] sm:$0xff] }
 0x17e   : > { %v1284_v48 = vadd.f32 %v1491_v46, %v1276_v45 }
 0x180   : > { %v1286_v49 = vadd.f32 %v1285_v47, %v1284_v48 }
 0x182   : > { %v1287_v50 = vmax.f32 %v1286_v49, 0.0 }
 0x184   : > { %1288 = vst [vmem:[%s2038_s11] sm:$0xff] %v1287_v50 }
 0x185 PF: > { %s14_s21 = sadd.s32 1, %s1728_s21   ;;  %s2128_s15 = smov %s1708_s16 }
 0x186   : > { %p11_p0 = scmp.ge.s32.totalorder %s14_s21, 8   ;;  %s2129_s16 = smov %s1807_s28 }
 0x187   : > { %s2130_s17 = smov %s1720_s19  ;;  %s2131_s18 = smov %s1724_s20 }
 0x188   : > { %s2132_s19 = smov %s2135_s22  ;;  %s2133_s20 = smov %s2139_s23 }
 0x189   :  { %13 = sbr.rel (!%p11_p0) target bundleno = 4 (0x4), region = 129 }

// kernel: wrap_resnet_forward.32
= control target key start
LH: loop header
LB: loop body
LE: loop exit
PB: predicated region body
PF: predicated region fallthrough
CT: control target
= control target key end

     0   :  { %s754_s12 = smov 0   ;;  %s756_s13 = smov 0   ;;  %s844_s0 = inlined_call_operand.vmem [shape: bf16[8,128], index: 0, kind: input, shape index: {}]   ;;  %s845_s1 = inlined_call_operand.vmem [shape: bf16[128,256], index: 1, kind: input, shape index: {}]   ;;  %s846_s2 = inlined_call_operand.vmem [shape: f32[1,256], index: 2, kind: input, shape index: {}]   ;;  %s847_s3 = inlined_call_operand.vmem [shape: f32[8,256], index: 3, kind: output, shape index: {}]  }
   0x1   :  { %s758_s14 = smov 0   ;;  %s760_s15 = smov 0  }
   0x2   :  { %s762_s16 = smov 0  }
   0x3 LB: > { %s28_s17 = sadd.s32 1, %s726_s15  ;;  %p76_p1 = scmp.ne.s32.totalorder %s718_s13, %s714_s12  ;;  %s730_s16 = sphi %s762_s16, %s13_s16   ;;  %s726_s15 = sphi %s760_s15, %s851_s15   ;;  %s722_s14 = sphi %s758_s14, %s850_s14   ;;  %s718_s13 = sphi %s756_s13, %s849_s13   ;;  %s714_s12 = sphi %s754_s12, %s848_s12  }
   0x4   : > { %p30_p0 = scmp.ge.s32.totalorder %s28_s17, 2  ;;  %p77_p2 = scmp.eq.s32.totalorder %s730_s16, 0 }
   0x5   : > { %s69_s19 = sadd.s32 1, %s718_s13  ;;  %p596_p5 = scmp.ge.s32.totalorder %s730_s16, 2 }
   0x6   : > { %s853_s17 = smov (%p30_p0, %s28_s17), 0  ;;  %p78_p3 = por %p77_p2, %p76_p1 }
   0x7   : > { %s65_s18 = ssub.s32 %s726_s15, %s853_s17  ;;  %166 = sbr.rel (%p596_p5) target bundleno = 26 (0x1a), region = 20 }
   0x8   : > { %p67_p4 = scmp.eq.s32.totalorder %s65_s18, 0 }
   0xa   : > { %s789_s20 = scalar_select %p67_p4, %s718_s13, %s69_s19  }
   0xc   : > { %169 = sbr.rel (!%p78_p3) target bundleno = 26 (0x1a), region = 24  ;;  %s171_s21 = sand.u32 (%p78_p3), 1, %s718_s13  }
   0xd   : > { %s598_s22 = sshll.u32 (%p78_p3), %s726_s15, 2  ;;  %s597_s23 = sshll.u32 (%p78_p3), %s171_s21, 6 }
   0xe   : > { %s797_s26 = scalar_lea.vmem (%p78_p3), %s845_s1, %s598_s22  ;;  %s173_s27 = scalar_lea.vmem (%p78_p3), [#allocation3], %s597_s23 }
   0xf   : > { %v195_v0 = vld [vmem:[%s797_s26] sm:$0xf] (%p78_p3)  ;;  %v197_v1 = vld [vmem:[%s797_s26 + $0x8] sm:$0xf] (%p78_p3)  ;;  %v199_v2 = vld [vmem:[%s797_s26 + $0x10] sm:$0xf] (%p78_p3) }
  0x10   : > { %196 = vst [vmem:[%s173_s27] sm:$0xf] (%p78_p3), %v195_v0  ;;  %198 = vst [vmem:[%s173_s27 + $0x4] sm:$0xf] (%p78_p3), %v197_v1  ;;  %v201_v3 = vld [vmem:[%s797_s26 + $0x18] sm:$0xf] (%p78_p3) }
  0x11   : > { %v203_v4 = vld [vmem:[%s797_s26 + $0x20] sm:$0xf]  ;;  %200 = vst [vmem:[%s173_s27 + $0x8] sm:$0xf] %v199_v2  ;;  %202 = vst [vmem:[%s173_s27 + $0xc] sm:$0xf] %v201_v3 }
  0x12   : > { %204 = vst [vmem:[%s173_s27 + $0x10] sm:$0xf] %v203_v4  ;;  %v205_v5 = vld [vmem:[%s797_s26 + $0x28] sm:$0xf]  ;;  %v207_v6 = vld [vmem:[%s797_s26 + $0x30] sm:$0xf] }
  0x13   : > { %v209_v7 = vld [vmem:[%s797_s26 + $0x38] sm:$0xf]  ;;  %206 = vst [vmem:[%s173_s27 + $0x14] sm:$0xf] %v205_v5  ;;  %208 = vst [vmem:[%s173_s27 + $0x18] sm:$0xf] %v207_v6 }
  0x14   : > { %210 = vst [vmem:[%s173_s27 + $0x1c] sm:$0xf] %v209_v7  ;;  %v211_v8 = vld [vmem:[%s797_s26 + $0x40] sm:$0xf]  ;;  %v213_v9 = vld [vmem:[%s797_s26 + $0x48] sm:$0xf] }
  0x15   : > { %v215_v10 = vld [vmem:[%s797_s26 + $0x50] sm:$0xf]  ;;  %212 = vst [vmem:[%s173_s27 + $0x20] sm:$0xf] %v211_v8  ;;  %214 = vst [vmem:[%s173_s27 + $0x24] sm:$0xf] %v213_v9 }
  0x16   : > { %216 = vst [vmem:[%s173_s27 + $0x28] sm:$0xf] %v215_v10  ;;  %v217_v11 = vld [vmem:[%s797_s26 + $0x58] sm:$0xf]  ;;  %v219_v12 = vld [vmem:[%s797_s26 + $0x60] sm:$0xf] }
  0x17   : > { %v221_v13 = vld [vmem:[%s797_s26 + $0x68] sm:$0xf]  ;;  %218 = vst [vmem:[%s173_s27 + $0x2c] sm:$0xf] %v217_v11  ;;  %220 = vst [vmem:[%s173_s27 + $0x30] sm:$0xf] %v219_v12 }
  0x18   : > { %222 = vst [vmem:[%s173_s27 + $0x34] sm:$0xf] %v221_v13  ;;  %v223_v14 = vld [vmem:[%s797_s26 + $0x70] sm:$0xf]  ;;  %v225_v15 = vld [vmem:[%s797_s26 + $0x78] sm:$0xf] }
  0x19   : > { %224 = vst [vmem:[%s173_s27 + $0x38] sm:$0xf] %v223_v14  ;;  %226 = vst [vmem:[%s173_s27 + $0x3c] sm:$0xf] %v225_v15 }
  0x1a PF: > { %p599_p6 = scmp.ge.s32.totalorder %s730_s16, 1  ;;  %p287_p7 = scmp.lt.s32.totalorder %s730_s16, 3 }
  0x1c   : > { %p288_p8 = pnand %p599_p6, %p287_p7 }
  0x1d   : > { %s294_s28 = sand.u32 (!%p288_p8), 1, %s714_s12   ;;  %p338_p9 = scmp.lt.s32.totalorder (!%p288_p8), %s722_s14, 1 }
  0x1e   : > { %291 = sbr.rel (%p288_p8) target bundleno = 267 (0x10b), region = 69  ;;  %s600_s29 = sshll.u32 (!%p288_p8), %s294_s28, 6 }
  0x1f   : > { %s296_s30 = scalar_lea.vmem (!%p288_p8), [#allocation3], %s600_s29 }
  0x23   : > { %v732_v16 = vmov 0.0   ;;  %vm733_vm0 = vmmov 0   ;;  %v684_v17 = vld [vmem:[%s296_s30 + $0x38] sm:$0xff]   ;;  %v685_v18 = vld [vmem:[%s296_s30 + $0x30] sm:$0xff]   ;;  %v686_v19 = vld [vmem:[%s296_s30 + $0x28] sm:$0xff]   ;;  %s855_s14 = smov (!%p338_p9, %s722_s14), 1 }
  0x24   : > { %622 = vmatprep.subr.bf16.mxu0 %v732_v16  ;;  %638 = vmatprep.mubr.msk.bf16.mxu0 %vm733_vm0, %v732_v16  ;;  %v687_v20 = vld [vmem:[%s296_s30 + $0x20] sm:$0xff]   ;;  %v688_v21 = vld [vmem:[%s296_s30 + $0x18] sm:$0xff]   ;;  %v689_v22 = vld [vmem:[%s296_s30 + $0x10] sm:$0xff]   ;;  %s340_s8 = scalar_lea.vmem %s846_s2, %s855_s14  ;;  %s601_s9 = sshll.u32 %s855_s14, 3 }
  0x25   : > { %623 = vmatpush3.bf16.msra.mxu0 %v684_v17  ;;  %v690_v23 = vld [vmem:[%s296_s30 + $0x8] sm:$0xff]   ;;  %v691_v24 = vld [vmem:[%s296_s30] sm:$0xff]   ;;  %s348_s12 = scalar_lea.vmem %s847_s3, %s601_s9 }
  0x26   : > { %624 = vmatprep.subr.bf16.mxu0 %v732_v16  ;;  %v356_v25 = vld [vmem:[%s844_s0] sm:$0xf] }
  0x27   : > { %v610_v26 = vld [vmem:[%s340_s8] ss:$0 sm:$0xff] }
  0x29   : > { %625 = vmatpush3.bf16.msra.mxu0 %v685_v18 }
  0x2a   : > { %626 = vmatprep.subr.bf16.mxu0 %v732_v16 }
  0x2d   : > { %627 = vmatpush3.bf16.msra.mxu0 %v686_v19 }
  0x2e   : > { %628 = vmatprep.subr.bf16.mxu0 %v732_v16 }
  0x31   : > { %629 = vmatpush3.bf16.msra.mxu0 %v687_v20 }
  0x32   : > { %630 = vmatprep.subr.bf16.mxu0 %v732_v16 }
  0x35   : > { %631 = vmatpush3.bf16.msra.mxu0 %v688_v21 }
  0x36   : > { %632 = vmatprep.subr.bf16.mxu0 %v732_v16 }
  0x39   : > { %633 = vmatpush3.bf16.msra.mxu0 %v689_v22 }
  0x3a   : > { %634 = vmatprep.subr.bf16.mxu0 %v732_v16 }
  0x3d   : > { %635 = vmatpush3.bf16.msra.mxu0 %v690_v23 }
  0x3e   : > { %636 = vmatprep.subr.bf16.mxu0 %v732_v16 }
  0x41   : > { %637 = vmatpush3.bf16.msra.mxu0 %v691_v24 }
  0x44   : > { %639 = vmatmul.mubr.bf16.vlgmr.msra.gmra.mxu0 %v356_v25 }
 0x104   : > { %v455_v27 = vpop.f32.mrf.mxu0 }
 0x105   : > { %v474_v28 = vadd.f32 %v610_v26, %v455_v27 }
 0x106   : > { %v640_v29 = vpop.f32.mrf.mxu0 }
 0x107   : > { %475 = vst [vmem:[%s348_s12] sm:$0xff] %v474_v28 }
 0x108   : > { %v458_v30 = vpop.f32.mrf.mxu0 }
 0x10a   : > { %v641_v31 = vpop.f32.mrf.mxu0 }
 0x10b PF: > { %s13_s16 = sadd.s32 1, %s730_s16   ;;  %s848_s12 = smov %s718_s13 }
 0x10c   : > { %p10_p10 = scmp.ge.s32.totalorder %s13_s16, 4   ;;  %s849_s13 = smov %s789_s20 }
 0x10d   : > { %s850_s14 = smov %s726_s15  ;;  %s851_s15 = smov %s853_s17 }
 0x10e   :  { %12 = sbr.rel (!%p10_p10) target bundleno = 3 (0x3), region = 122 }

// kernel: wrap_resnet_forward.34
= control target key start
LH: loop header
LB: loop body
LE: loop exit
PB: predicated region body
PF: predicated region fallthrough
CT: control target
= control target key end

     0   :  { %s1672_s12 = smov 0   ;;  %s1674_s13 = smov 0   ;;  %s2033_s0 = inlined_call_operand.vmem [shape: bf16[8,2304], index: 0, kind: input, shape index: {}]   ;;  %s2034_s1 = inlined_call_operand.vmem [shape: bf16[2304,256], index: 1, kind: input, shape index: {}]   ;;  %s2035_s2 = inlined_call_operand.vmem [shape: f32[1,256], index: 2, kind: input, shape index: {}]   ;;  %s2036_s3 = inlined_call_operand.vmem [shape: f32[8,256], index: 3, kind: output, shape index: {}]  }
   0x1   :  { %s1676_s14 = smov 0   ;;  %s1678_s15 = smov 0  }
   0x2   :  { %s1680_s16 = smov 0   ;;  %s1682_s17 = smov 0  }
   0x3   :  { %s1684_s18 = smov 0  }
   0x4 LB: > { %s25_s19 = sadd.s32 1, %s1641_s16  ;;  %s28_s20 = sadd.s32 1, %s1645_s17  ;;  %s1649_s18 = sphi %s1684_s18, %s13_s18   ;;  %s1645_s17 = sphi %s1682_s17, %s2042_s17   ;;  %s1641_s16 = sphi %s1680_s16, %s2041_s16   ;;  %s1637_s15 = sphi %s1678_s15, %s2040_s15   ;;  %s1633_s14 = sphi %s1676_s14, %s2039_s14   ;;  %s1629_s13 = sphi %s1674_s13, %s2038_s13   ;;  %s1625_s12 = sphi %s1672_s12, %s2037_s12  }
   0x5   : > { %p26_p0 = scmp.ge.s32.totalorder %s25_s19, 3  ;;  %p76_p1 = scmp.ne.s32.totalorder %s1629_s13, %s1625_s12 }
   0x6   : > { %p77_p2 = scmp.eq.s32.totalorder %s1649_s18, 0  ;;  %s69_s24 = sadd.s32 1, %s1629_s13 }
   0x7   : > { %s2044_s19 = smov (%p26_p0, %s25_s19), 0  ;;  %s2046_s20 = smov (!%p26_p0, %s28_s20), %s1645_s17 }
   0x8   : > { %p78_p3 = por %p77_p2, %p76_p1  ;;  %p30_p4 = scmp.ge.s32.totalorder %s2046_s20, 2 }
   0x9   : > { %s64_s21 = ssub.s32 %s1641_s16, %s2044_s19  ;;  %p1350_p6 = scmp.ge.s32.totalorder %s1649_s18, 6 }
   0xa   : > { %s2048_s20 = smov (%p30_p4, %s2046_s20), 0 }
   0xb   : > { %s65_s22 = ssub.s32 %s1645_s17, %s2048_s20  ;;  %156 = sbr.rel (%p1350_p6) target bundleno = 87 (0x57), region = 16 }
   0xc   : > { %s66_s23 = sor.u32 %s65_s22, %s64_s21 }
   0xd   : > { %p67_p5 = scmp.eq.s32.totalorder %s66_s23, 0 }
   0xf   : > { %s1723_s25 = scalar_select %p67_p5, %s1629_s13, %s69_s24  }
  0x10   : > { %172 = sbr.rel (!%p78_p3) target bundleno = 87 (0x57), region = 24  ;;  %s174_s26 = sand.u32 (%p78_p3), 1, %s1629_s13  }
  0x11   : > { %s1415_s27 = smul.u32 (%p78_p3), 192, %s1641_s16 }
  0x12   : > { %s1482_s28 = smul.u32 (%p78_p3), 384, %s174_s26 }
  0x13   : > { %s179_s29 = sadd.s32 (%p78_p3), %s1645_s17, %s1415_s27 }
  0x14   : > { %s1352_s30 = sshll.u32 (%p78_p3), %s179_s29, 2  ;;  %s1737_s7 = scalar_lea.vmem (%p78_p3), [#allocation3], %s1482_s28 }
  0x15   : > { %s1732_s6 = scalar_lea.vmem %s2034_s1, %s1352_s30 }
  0x16   : > { %v198_v0 = vld [vmem:[%s1732_s6] sm:$0xf]  ;;  %v200_v1 = vld [vmem:[%s1732_s6 + $0x8] sm:$0xf]  ;;  %v202_v2 = vld [vmem:[%s1732_s6 + $0x10] sm:$0xf] }
  0x17   : > { %199 = vst [vmem:[%s1737_s7] sm:$0xf] %v198_v0  ;;  %201 = vst [vmem:[%s1737_s7 + $0x4] sm:$0xf] %v200_v1  ;;  %v204_v3 = vld [vmem:[%s1732_s6 + $0x18] sm:$0xf] }
  0x18   : > { %203 = vst [vmem:[%s1737_s7 + $0x8] sm:$0xf] %v202_v2  ;;  %v206_v4 = vld [vmem:[%s1732_s6 + $0x20] sm:$0xf]  ;;  %v208_v5 = vld [vmem:[%s1732_s6 + $0x28] sm:$0xf] }
  0x19   : > { %205 = vst [vmem:[%s1737_s7 + $0xc] sm:$0xf] %v204_v3  ;;  %207 = vst [vmem:[%s1737_s7 + $0x10] sm:$0xf] %v206_v4  ;;  %v210_v6 = vld [vmem:[%s1732_s6 + $0x30] sm:$0xf] }
  0x1a   : > { %209 = vst [vmem:[%s1737_s7 + $0x14] sm:$0xf] %v208_v5  ;;  %v212_v7 = vld [vmem:[%s1732_s6 + $0x38] sm:$0xf]  ;;  %v214_v8 = vld [vmem:[%s1732_s6 + $0x40] sm:$0xf] }
  0x1b   : > { %211 = vst [vmem:[%s1737_s7 + $0x18] sm:$0xf] %v210_v6  ;;  %213 = vst [vmem:[%s1737_s7 + $0x1c] sm:$0xf] %v212_v7  ;;  %v216_v9 = vld [vmem:[%s1732_s6 + $0x48] sm:$0xf] }
  0x1c   : > { %215 = vst [vmem:[%s1737_s7 + $0x20] sm:$0xf] %v214_v8  ;;  %v218_v10 = vld [vmem:[%s1732_s6 + $0x50] sm:$0xf]  ;;  %v220_v11 = vld [vmem:[%s1732_s6 + $0x58] sm:$0xf] }
  0x1d   : > { %217 = vst [vmem:[%s1737_s7 + $0x24] sm:$0xf] %v216_v9  ;;  %219 = vst [vmem:[%s1737_s7 + $0x28] sm:$0xf] %v218_v10  ;;  %v222_v12 = vld [vmem:[%s1732_s6 + $0x60] sm:$0xf] }
  0x1e   : > { %221 = vst [vmem:[%s1737_s7 + $0x2c] sm:$0xf] %v220_v11  ;;  %v224_v13 = vld [vmem:[%s1732_s6 + $0x68] sm:$0xf]  ;;  %v226_v14 = vld [vmem:[%s1732_s6 + $0x70] sm:$0xf] }
  0x1f   : > { %223 = vst [vmem:[%s1737_s7 + $0x30] sm:$0xf] %v222_v12  ;;  %225 = vst [vmem:[%s1737_s7 + $0x34] sm:$0xf] %v224_v13  ;;  %v228_v15 = vld [vmem:[%s1732_s6 + $0x78] sm:$0xf] }
  0x20   : > { %227 = vst [vmem:[%s1737_s7 + $0x38] sm:$0xf] %v226_v14  ;;  %v230_v16 = vld [vmem:[%s1732_s6 + $0x80] sm:$0xf]  ;;  %v232_v17 = vld [vmem:[%s1732_s6 + $0x88] sm:$0xf] }
  0x21   : > { %229 = vst [vmem:[%s1737_s7 + $0x3c] sm:$0xf] %v228_v15  ;;  %231 = vst [vmem:[%s1737_s7 + $0x40] sm:$0xf] %v230_v16  ;;  %v234_v18 = vld [vmem:[%s1732_s6 + $0x90] sm:$0xf] }
  0x22   : > { %233 = vst [vmem:[%s1737_s7 + $0x44] sm:$0xf] %v232_v17  ;;  %v236_v19 = vld [vmem:[%s1732_s6 + $0x98] sm:$0xf]  ;;  %v238_v20 = vld [vmem:[%s1732_s6 + $0xa0] sm:$0xf] }
  0x23   : > { %235 = vst [vmem:[%s1737_s7 + $0x48] sm:$0xf] %v234_v18  ;;  %237 = vst [vmem:[%s1737_s7 + $0x4c] sm:$0xf] %v236_v19  ;;  %v240_v21 = vld [vmem:[%s1732_s6 + $0xa8] sm:$0xf] }
  0x24   : > { %239 = vst [vmem:[%s1737_s7 + $0x50] sm:$0xf] %v238_v20  ;;  %v242_v22 = vld [vmem:[%s1732_s6 + $0xb0] sm:$0xf]  ;;  %v244_v23 = vld [vmem:[%s1732_s6 + $0xb8] sm:$0xf] }
  0x25   : > { %241 = vst [vmem:[%s1737_s7 + $0x54] sm:$0xf] %v240_v21  ;;  %243 = vst [vmem:[%s1737_s7 + $0x58] sm:$0xf] %v242_v22  ;;  %v246_v24 = vld [vmem:[%s1732_s6 + $0xc0] sm:$0xf] }
  0x26   : > { %245 = vst [vmem:[%s1737_s7 + $0x5c] sm:$0xf] %v244_v23  ;;  %v248_v25 = vld [vmem:[%s1732_s6 + $0xc8] sm:$0xf]  ;;  %v250_v26 = vld [vmem:[%s1732_s6 + $0xd0] sm:$0xf] }
  0x27   : > { %247 = vst [vmem:[%s1737_s7 + $0x60] sm:$0xf] %v246_v24  ;;  %249 = vst [vmem:[%s1737_s7 + $0x64] sm:$0xf] %v248_v25  ;;  %v252_v27 = vld [vmem:[%s1732_s6 + $0xd8] sm:$0xf] }
  0x28   : > { %251 = vst [vmem:[%s1737_s7 + $0x68] sm:$0xf] %v250_v26  ;;  %v254_v28 = vld [vmem:[%s1732_s6 + $0xe0] sm:$0xf]  ;;  %v256_v29 = vld [vmem:[%s1732_s6 + $0xe8] sm:$0xf] }
  0x29   : > { %253 = vst [vmem:[%s1737_s7 + $0x6c] sm:$0xf] %v252_v27  ;;  %255 = vst [vmem:[%s1737_s7 + $0x70] sm:$0xf] %v254_v28  ;;  %v258_v30 = vld [vmem:[%s1732_s6 + $0xf0] sm:$0xf] }
  0x2a   : > { %257 = vst [vmem:[%s1737_s7 + $0x74] sm:$0xf] %v256_v29  ;;  %v260_v31 = vld [vmem:[%s1732_s6 + $0xf8] sm:$0xf]  ;;  %v262_v32 = vld [vmem:[%s1732_s6 + $0x100] sm:$0xf] }
  0x2b   : > { %259 = vst [vmem:[%s1737_s7 + $0x78] sm:$0xf] %v258_v30  ;;  %261 = vst [vmem:[%s1737_s7 + $0x7c] sm:$0xf] %v260_v31  ;;  %v264_v33 = vld [vmem:[%s1732_s6 + $0x108] sm:$0xf] }
  0x2c   : > { %263 = vst [vmem:[%s1737_s7 + $0x80] sm:$0xf] %v262_v32  ;;  %v266_v34 = vld [vmem:[%s1732_s6 + $0x110] sm:$0xf]  ;;  %v268_v35 = vld [vmem:[%s1732_s6 + $0x118] sm:$0xf] }
  0x2d   : > { %265 = vst [vmem:[%s1737_s7 + $0x84] sm:$0xf] %v264_v33  ;;  %267 = vst [vmem:[%s1737_s7 + $0x88] sm:$0xf] %v266_v34  ;;  %v270_v36 = vld [vmem:[%s1732_s6 + $0x120] sm:$0xf] }
  0x2e   : > { %269 = vst [vmem:[%s1737_s7 + $0x8c] sm:$0xf] %v268_v35  ;;  %v272_v37 = vld [vmem:[%s1732_s6 + $0x128] sm:$0xf]  ;;  %v274_v38 = vld [vmem:[%s1732_s6 + $0x130] sm:$0xf] }
  0x2f   : > { %271 = vst [vmem:[%s1737_s7 + $0x90] sm:$0xf] %v270_v36  ;;  %273 = vst [vmem:[%s1737_s7 + $0x94] sm:$0xf] %v272_v37  ;;  %v276_v39 = vld [vmem:[%s1732_s6 + $0x138] sm:$0xf] }
  0x30   : > { %275 = vst [vmem:[%s1737_s7 + $0x98] sm:$0xf] %v274_v38  ;;  %v278_v40 = vld [vmem:[%s1732_s6 + $0x140] sm:$0xf]  ;;  %v280_v41 = vld [vmem:[%s1732_s6 + $0x148] sm:$0xf] }
  0x31   : > { %277 = vst [vmem:[%s1737_s7 + $0x9c] sm:$0xf] %v276_v39  ;;  %279 = vst [vmem:[%s1737_s7 + $0xa0] sm:$0xf] %v278_v40  ;;  %v282_v42 = vld [vmem:[%s1732_s6 + $0x150] sm:$0xf] }
  0x32   : > { %281 = vst [vmem:[%s1737_s7 + $0xa4] sm:$0xf] %v280_v41  ;;  %v284_v43 = vld [vmem:[%s1732_s6 + $0x158] sm:$0xf]  ;;  %v286_v44 = vld [vmem:[%s1732_s6 + $0x160] sm:$0xf] }
  0x33   : > { %283 = vst [vmem:[%s1737_s7 + $0xa8] sm:$0xf] %v282_v42  ;;  %285 = vst [vmem:[%s1737_s7 + $0xac] sm:$0xf] %v284_v43  ;;  %v288_v45 = vld [vmem:[%s1732_s6 + $0x168] sm:$0xf] }
  0x34   : > { %287 = vst [vmem:[%s1737_s7 + $0xb0] sm:$0xf] %v286_v44  ;;  %v290_v46 = vld [vmem:[%s1732_s6 + $0x170] sm:$0xf]  ;;  %v292_v47 = vld [vmem:[%s1732_s6 + $0x178] sm:$0xf] }
  0x35   : > { %289 = vst [vmem:[%s1737_s7 + $0xb4] sm:$0xf] %v288_v45  ;;  %291 = vst [vmem:[%s1737_s7 + $0xb8] sm:$0xf] %v290_v46  ;;  %v294_v48 = vld [vmem:[%s1732_s6 + $0x180] sm:$0xf] }
  0x36   : > { %293 = vst [vmem:[%s1737_s7 + $0xbc] sm:$0xf] %v292_v47  ;;  %v296_v49 = vld [vmem:[%s1732_s6 + $0x188] sm:$0xf]  ;;  %v298_v50 = vld [vmem:[%s1732_s6 + $0x190] sm:$0xf] }
  0x37   : > { %295 = vst [vmem:[%s1737_s7 + $0xc0] sm:$0xf] %v294_v48  ;;  %297 = vst [vmem:[%s1737_s7 + $0xc4] sm:$0xf] %v296_v49  ;;  %v300_v51 = vld [vmem:[%s1732_s6 + $0x198] sm:$0xf] }
  0x38   : > { %299 = vst [vmem:[%s1737_s7 + $0xc8] sm:$0xf] %v298_v50  ;;  %v302_v52 = vld [vmem:[%s1732_s6 + $0x1a0] sm:$0xf]  ;;  %v304_v53 = vld [vmem:[%s1732_s6 + $0x1a8] sm:$0xf] }
  0x39   : > { %301 = vst [vmem:[%s1737_s7 + $0xcc] sm:$0xf] %v300_v51  ;;  %303 = vst [vmem:[%s1737_s7 + $0xd0] sm:$0xf] %v302_v52  ;;  %v306_v54 = vld [vmem:[%s1732_s6 + $0x1b0] sm:$0xf] }
  0x3a   : > { %305 = vst [vmem:[%s1737_s7 + $0xd4] sm:$0xf] %v304_v53  ;;  %v308_v55 = vld [vmem:[%s1732_s6 + $0x1b8] sm:$0xf]  ;;  %v310_v56 = vld [vmem:[%s1732_s6 + $0x1c0] sm:$0xf] }
  0x3b   : > { %307 = vst [vmem:[%s1737_s7 + $0xd8] sm:$0xf] %v306_v54  ;;  %309 = vst [vmem:[%s1737_s7 + $0xdc] sm:$0xf] %v308_v55  ;;  %v312_v57 = vld [vmem:[%s1732_s6 + $0x1c8] sm:$0xf] }
  0x3c   : > { %311 = vst [vmem:[%s1737_s7 + $0xe0] sm:$0xf] %v310_v56  ;;  %v314_v58 = vld [vmem:[%s1732_s6 + $0x1d0] sm:$0xf]  ;;  %v316_v59 = vld [vmem:[%s1732_s6 + $0x1d8] sm:$0xf] }
  0x3d   : > { %313 = vst [vmem:[%s1737_s7 + $0xe4] sm:$0xf] %v312_v57  ;;  %315 = vst [vmem:[%s1737_s7 + $0xe8] sm:$0xf] %v314_v58  ;;  %v318_v60 = vld [vmem:[%s1732_s6 + $0x1e0] sm:$0xf] }
  0x3e   : > { %317 = vst [vmem:[%s1737_s7 + $0xec] sm:$0xf] %v316_v59  ;;  %v320_v61 = vld [vmem:[%s1732_s6 + $0x1e8] sm:$0xf]  ;;  %v322_v62 = vld [vmem:[%s1732_s6 + $0x1f0] sm:$0xf] }
  0x3f   : > { %319 = vst [vmem:[%s1737_s7 + $0xf0] sm:$0xf] %v318_v60  ;;  %321 = vst [vmem:[%s1737_s7 + $0xf4] sm:$0xf] %v320_v61  ;;  %v324_v63 = vld [vmem:[%s1732_s6 + $0x1f8] sm:$0xf] }
  0x40   : > { %323 = vst [vmem:[%s1737_s7 + $0xf8] sm:$0xf] %v322_v62  ;;  %v326_v0 = vld [vmem:[%s1732_s6 + $0x200] sm:$0xf]  ;;  %v328_v1 = vld [vmem:[%s1732_s6 + $0x208] sm:$0xf] }
  0x41   : > { %325 = vst [vmem:[%s1737_s7 + $0xfc] sm:$0xf] %v324_v63  ;;  %327 = vst [vmem:[%s1737_s7 + $0x100] sm:$0xf] %v326_v0  ;;  %v330_v2 = vld [vmem:[%s1732_s6 + $0x210] sm:$0xf] }
  0x42   : > { %329 = vst [vmem:[%s1737_s7 + $0x104] sm:$0xf] %v328_v1  ;;  %v332_v3 = vld [vmem:[%s1732_s6 + $0x218] sm:$0xf]  ;;  %v334_v4 = vld [vmem:[%s1732_s6 + $0x220] sm:$0xf] }
  0x43   : > { %331 = vst [vmem:[%s1737_s7 + $0x108] sm:$0xf] %v330_v2  ;;  %333 = vst [vmem:[%s1737_s7 + $0x10c] sm:$0xf] %v332_v3  ;;  %v336_v5 = vld [vmem:[%s1732_s6 + $0x228] sm:$0xf] }
  0x44   : > { %335 = vst [vmem:[%s1737_s7 + $0x110] sm:$0xf] %v334_v4  ;;  %v338_v6 = vld [vmem:[%s1732_s6 + $0x230] sm:$0xf]  ;;  %v340_v7 = vld [vmem:[%s1732_s6 + $0x238] sm:$0xf] }
  0x45   : > { %337 = vst [vmem:[%s1737_s7 + $0x114] sm:$0xf] %v336_v5  ;;  %339 = vst [vmem:[%s1737_s7 + $0x118] sm:$0xf] %v338_v6  ;;  %v342_v8 = vld [vmem:[%s1732_s6 + $0x240] sm:$0xf] }
  0x46   : > { %341 = vst [vmem:[%s1737_s7 + $0x11c] sm:$0xf] %v340_v7  ;;  %v344_v9 = vld [vmem:[%s1732_s6 + $0x248] sm:$0xf]  ;;  %v346_v10 = vld [vmem:[%s1732_s6 + $0x250] sm:$0xf] }
  0x47   : > { %343 = vst [vmem:[%s1737_s7 + $0x120] sm:$0xf] %v342_v8  ;;  %345 = vst [vmem:[%s1737_s7 + $0x124] sm:$0xf] %v344_v9  ;;  %v348_v11 = vld [vmem:[%s1732_s6 + $0x258] sm:$0xf] }
  0x48   : > { %347 = vst [vmem:[%s1737_s7 + $0x128] sm:$0xf] %v346_v10  ;;  %v350_v12 = vld [vmem:[%s1732_s6 + $0x260] sm:$0xf]  ;;  %v352_v13 = vld [vmem:[%s1732_s6 + $0x268] sm:$0xf] }
  0x49   : > { %349 = vst [vmem:[%s1737_s7 + $0x12c] sm:$0xf] %v348_v11  ;;  %351 = vst [vmem:[%s1737_s7 + $0x130] sm:$0xf] %v350_v12  ;;  %v354_v14 = vld [vmem:[%s1732_s6 + $0x270] sm:$0xf] }
  0x4a   : > { %353 = vst [vmem:[%s1737_s7 + $0x134] sm:$0xf] %v352_v13  ;;  %v356_v15 = vld [vmem:[%s1732_s6 + $0x278] sm:$0xf]  ;;  %v358_v16 = vld [vmem:[%s1732_s6 + $0x280] sm:$0xf] }
  0x4b   : > { %355 = vst [vmem:[%s1737_s7 + $0x138] sm:$0xf] %v354_v14  ;;  %357 = vst [vmem:[%s1737_s7 + $0x13c] sm:$0xf] %v356_v15  ;;  %v360_v17 = vld [vmem:[%s1732_s6 + $0x288] sm:$0xf] }
  0x4c   : > { %359 = vst [vmem:[%s1737_s7 + $0x140] sm:$0xf] %v358_v16  ;;  %v362_v18 = vld [vmem:[%s1732_s6 + $0x290] sm:$0xf]  ;;  %v364_v19 = vld [vmem:[%s1732_s6 + $0x298] sm:$0xf] }
  0x4d   : > { %361 = vst [vmem:[%s1737_s7 + $0x144] sm:$0xf] %v360_v17  ;;  %363 = vst [vmem:[%s1737_s7 + $0x148] sm:$0xf] %v362_v18  ;;  %v366_v20 = vld [vmem:[%s1732_s6 + $0x2a0] sm:$0xf] }
  0x4e   : > { %365 = vst [vmem:[%s1737_s7 + $0x14c] sm:$0xf] %v364_v19  ;;  %v368_v21 = vld [vmem:[%s1732_s6 + $0x2a8] sm:$0xf]  ;;  %v370_v22 = vld [vmem:[%s1732_s6 + $0x2b0] sm:$0xf] }
  0x4f   : > { %367 = vst [vmem:[%s1737_s7 + $0x150] sm:$0xf] %v366_v20  ;;  %369 = vst [vmem:[%s1737_s7 + $0x154] sm:$0xf] %v368_v21  ;;  %v372_v23 = vld [vmem:[%s1732_s6 + $0x2b8] sm:$0xf] }
  0x50   : > { %371 = vst [vmem:[%s1737_s7 + $0x158] sm:$0xf] %v370_v22  ;;  %v374_v24 = vld [vmem:[%s1732_s6 + $0x2c0] sm:$0xf]  ;;  %v376_v25 = vld [vmem:[%s1732_s6 + $0x2c8] sm:$0xf] }
  0x51   : > { %373 = vst [vmem:[%s1737_s7 + $0x15c] sm:$0xf] %v372_v23  ;;  %375 = vst [vmem:[%s1737_s7 + $0x160] sm:$0xf] %v374_v24  ;;  %v378_v26 = vld [vmem:[%s1732_s6 + $0x2d0] sm:$0xf] }
  0x52   : > { %377 = vst [vmem:[%s1737_s7 + $0x164] sm:$0xf] %v376_v25  ;;  %v380_v27 = vld [vmem:[%s1732_s6 + $0x2d8] sm:$0xf]  ;;  %v382_v28 = vld [vmem:[%s1732_s6 + $0x2e0] sm:$0xf] }
  0x53   : > { %379 = vst [vmem:[%s1737_s7 + $0x168] sm:$0xf] %v378_v26  ;;  %381 = vst [vmem:[%s1737_s7 + $0x16c] sm:$0xf] %v380_v27  ;;  %v384_v29 = vld [vmem:[%s1732_s6 + $0x2e8] sm:$0xf] }
  0x54   : > { %383 = vst [vmem:[%s1737_s7 + $0x170] sm:$0xf] %v382_v28  ;;  %v386_v30 = vld [vmem:[%s1732_s6 + $0x2f0] sm:$0xf]  ;;  %v388_v31 = vld [vmem:[%s1732_s6 + $0x2f8] sm:$0xf] }
  0x55   : > { %385 = vst [vmem:[%s1737_s7 + $0x174] sm:$0xf] %v384_v29  ;;  %387 = vst [vmem:[%s1737_s7 + $0x178] sm:$0xf] %v386_v30 }
  0x56   : > { %389 = vst [vmem:[%s1737_s7 + $0x17c] sm:$0xf] %v388_v31 }
  0x57 PF: > { %p1353_p7 = scmp.ge.s32.totalorder %s1649_s18, 1  ;;  %p610_p8 = scmp.lt.s32.totalorder %s1649_s18, 7 }
  0x59   : > { %p611_p9 = pnand %p1353_p7, %p610_p8 }
  0x5a   : > { %s617_s8 = sand.u32 (!%p611_p9), 1, %s1625_s12   ;;  %s655_s9 = smul.u32 (!%p611_p9), 6, %s1633_s14 }
  0x5b   : > { %614 = sbr.rel (%p611_p9) target bundleno = 386 (0x182), region = 69  ;;  %p666_p10 = scmp.lt.s32.totalorder (!%p611_p9), %s1637_s15, 1 }
  0x5c   : > { %s1483_s10 = smul.u32 (!%p611_p9), 384, %s617_s8  ;;  %p658_p11 = scmp.lt.s32.totalorder (!%p611_p9), %s655_s9, 17 }
  0x5d   : > { %p1356_p12 = scmp.ne.s32.totalorder (!%p611_p9), %s1633_s14, 0 }
  0x5e   : > { %s1951_s4 = scalar_lea.vmem (!%p611_p9), [#allocation3], %s1483_s10 }
  0x60   : > { %s2050_s9 = smov (!%p658_p11, %s655_s9), 17  ;;  %s2052_s15 = smov (!%p666_p10, %s1637_s15), 1 }
  0x61   : > { %s1354_s11 = sshll.u32 %s2050_s9, 2  ;;  %s668_s27 = scalar_lea.vmem %s2035_s2, %s2052_s15 }
  0x62   : > { %s1939_s23 = scalar_lea.vmem %s2033_s0, %s1354_s11  ;;  %s1355_s12 = sshll.u32 %s2052_s15, 3 }
  0x63   : > { %s1949_s30 = scalar_lea.vmem %s2036_s3, %s1355_s12  ;;  %681 = sbr.rel (%p1356_p12) target bundleno = 106 (0x6a), region = 77 }
  0x68   : > { %v1651_v32 = vmov 0.0  }
  0x69   : > { %682 = vst [vmem:[#allocation2] sm:$0xff] %v1651_v32 }
  0x6a PF: > { %v1541_v33 = vld [vmem:[%s1951_s4 + $0x78] sm:$0xff]   ;;  %v1545_v37 = vld [vmem:[%s1951_s4 + $0x70] sm:$0xff]   ;;  %v1549_v41 = vld [vmem:[%s1951_s4 + $0x68] sm:$0xff]   ;;  %p1411_p13 = scmp.ne.s32.totalorder %s1633_s14, 2 }
  0x6b   : > { %v1542_v34 = vld [vmem:[%s1951_s4 + $0xf8] sm:$0xff]   ;;  %1416 = vmatprep.subr.bf16.mxu0 %v1541_v33  ;;  %v1546_v38 = vld [vmem:[%s1951_s4 + $0xf0] sm:$0xff]   ;;  %v1550_v42 = vld [vmem:[%s1951_s4 + $0xe8] sm:$0xff]  }
  0x6c   : > { %v1543_v35 = vld [vmem:[%s1951_s4 + $0x38] sm:$0xff]   ;;  %1438 = vmatprep.subr.bf16.mxu1 %v1542_v34  ;;  %v1547_v39 = vld [vmem:[%s1951_s4 + $0x30] sm:$0xff]   ;;  %v1551_v43 = vld [vmem:[%s1951_s4 + $0x28] sm:$0xff]  }
  0x6d   : > { %v1544_v36 = vld [vmem:[%s1951_s4 + $0xb8] sm:$0xff]   ;;  %1417 = vmatpush3.bf16.msra.mxu0 %v1543_v35  ;;  %v1548_v40 = vld [vmem:[%s1951_s4 + $0xb0] sm:$0xff]   ;;  %v1552_v44 = vld [vmem:[%s1951_s4 + $0xa8] sm:$0xff]  }
  0x6e   : > { %1439 = vmatpush3.bf16.msra.mxu1 %v1544_v36  ;;  %1418 = vmatprep.subr.bf16.mxu0 %v1545_v37  ;;  %v1553_v45 = vld [vmem:[%s1951_s4 + $0x60] sm:$0xff]   ;;  %v1557_v49 = vld [vmem:[%s1951_s4 + $0x58] sm:$0xff]   ;;  %v1561_v53 = vld [vmem:[%s1951_s4 + $0x50] sm:$0xff]  }
  0x6f   : > { %1440 = vmatprep.subr.bf16.mxu1 %v1546_v38  ;;  %v1554_v46 = vld [vmem:[%s1951_s4 + $0xe0] sm:$0xff]   ;;  %v1558_v50 = vld [vmem:[%s1951_s4 + $0xd8] sm:$0xff]   ;;  %v1562_v54 = vld [vmem:[%s1951_s4 + $0xd0] sm:$0xff]  }
  0x70   : > { %v1555_v47 = vld [vmem:[%s1951_s4 + $0x20] sm:$0xff]   ;;  %v1559_v51 = vld [vmem:[%s1951_s4 + $0x18] sm:$0xff]   ;;  %v1563_v55 = vld [vmem:[%s1951_s4 + $0x10] sm:$0xff]  }
  0x71   : > { %1419 = vmatpush3.bf16.msra.mxu0 %v1547_v39  ;;  %v1556_v48 = vld [vmem:[%s1951_s4 + $0xa0] sm:$0xff]   ;;  %v1560_v52 = vld [vmem:[%s1951_s4 + $0x98] sm:$0xff]   ;;  %v1564_v56 = vld [vmem:[%s1951_s4 + $0x90] sm:$0xff]  }
  0x72   : > { %1441 = vmatpush3.bf16.msra.mxu1 %v1548_v40  ;;  %1420 = vmatprep.subr.bf16.mxu0 %v1549_v41  ;;  %v1565_v57 = vld [vmem:[%s1951_s4 + $0x48] sm:$0xff]   ;;  %v1569_v61 = vld [vmem:[%s1951_s4 + $0x40] sm:$0xff]   ;;  %v684_v1 = vld [vmem:[%s1939_s23] sm:$0xff] }
  0x73   : > { %1442 = vmatprep.subr.bf16.mxu1 %v1550_v42  ;;  %v1566_v58 = vld [vmem:[%s1951_s4 + $0xc8] sm:$0xff]   ;;  %v1570_v62 = vld [vmem:[%s1951_s4 + $0xc0] sm:$0xff]   ;;  %v1357_v3 = vcombine.low %v684_v1, %v684_v1  ;;  %v1358_v4 = vcombine.high %v684_v1, %v684_v1  ;;  %v1577_v7 = vld [vmem:[%s1951_s4 + $0x178] sm:$0xff]  }
  0x74   : > { %v1567_v59 = vld [vmem:[%s1951_s4 + $0x8] sm:$0xff]   ;;  %v1571_v63 = vld [vmem:[%s1951_s4] sm:$0xff]   ;;  %v1578_v8 = vld [vmem:[%s1951_s4 + $0x138] sm:$0xff]  }
  0x75   : > { %1421 = vmatpush3.bf16.msra.mxu0 %v1551_v43  ;;  %v1568_v60 = vld [vmem:[%s1951_s4 + $0x88] sm:$0xff]   ;;  %v1572_v0 = vld [vmem:[%s1951_s4 + $0x80] sm:$0xff]   ;;  %1124 = vmatprep.mubr.bf16.mxu0 %v1358_v4  ;;  %v1579_v9 = vld [vmem:[%s1951_s4 + $0x170] sm:$0xff]  }
  0x76   : > { %1443 = vmatpush3.bf16.msra.mxu1 %v1552_v44  ;;  %1422 = vmatprep.subr.bf16.mxu0 %v1553_v45  ;;  %v685_v2 = vld [vmem:[%s1939_s23 + $0x8] sm:$0xff]  ;;  %v1580_v10 = vld [vmem:[%s1951_s4 + $0x130] sm:$0xff]   ;;  %v1581_v11 = vld [vmem:[%s1951_s4 + $0x168] sm:$0xff]  }
  0x77   : > { %1444 = vmatprep.subr.bf16.mxu1 %v1554_v46  ;;  %v1359_v5 = vcombine.low %v685_v2, %v685_v2  ;;  %v1360_v6 = vcombine.high %v685_v2, %v685_v2  ;;  %v1582_v12 = vld [vmem:[%s1951_s4 + $0x128] sm:$0xff]   ;;  %v1583_v13 = vld [vmem:[%s1951_s4 + $0x160] sm:$0xff]   ;;  %v1585_v15 = vld [vmem:[%s1951_s4 + $0x158] sm:$0xff]  }
  0x78   : > { %v1584_v14 = vld [vmem:[%s1951_s4 + $0x120] sm:$0xff]   ;;  %v686_v16 = vld [vmem:[%s1939_s23 + $0x10] sm:$0xff]  ;;  %v1586_v18 = vld [vmem:[%s1951_s4 + $0x118] sm:$0xff]  }
  0x79   : > { %1423 = vmatpush3.bf16.msra.mxu0 %v1555_v47  ;;  %1164 = vmatprep.mubr.bf16.mxu1 %v1360_v6  ;;  %v1362_v17 = vcombine.high %v686_v16, %v686_v16  ;;  %v1587_v19 = vld [vmem:[%s1951_s4 + $0x150] sm:$0xff]   ;;  %v1589_v21 = vld [vmem:[%s1951_s4 + $0x148] sm:$0xff]   ;;  %v1591_v23 = vld [vmem:[%s1951_s4 + $0x140] sm:$0xff]   ;;  %v1361_v25 = vcombine.low %v686_v16, %v686_v16 }
  0x7a   : > { %1445 = vmatpush3.bf16.msra.mxu1 %v1556_v48  ;;  %1424 = vmatprep.subr.bf16.mxu0 %v1557_v49  ;;  %v1588_v20 = vld [vmem:[%s1951_s4 + $0x110] sm:$0xff]   ;;  %v1590_v22 = vld [vmem:[%s1951_s4 + $0x108] sm:$0xff]   ;;  %v1592_v24 = vld [vmem:[%s1951_s4 + $0x100] sm:$0xff]  }
  0x7b   : > { %1446 = vmatprep.subr.bf16.mxu1 %v1558_v50  ;;  %v683_v40 = vld [vmem:[#allocation2] sm:$0xff] }
  0x7d   : > { %1425 = vmatpush3.bf16.msra.mxu0 %v1559_v51 }
  0x7e   : > { %1447 = vmatpush3.bf16.msra.mxu1 %v1560_v52  ;;  %1426 = vmatprep.subr.bf16.mxu0 %v1561_v53 }
  0x7f   : > { %1448 = vmatprep.subr.bf16.mxu1 %v1562_v54 }
  0x81   : > { %1427 = vmatpush3.bf16.msra.mxu0 %v1563_v55 }
  0x82   : > { %1449 = vmatpush3.bf16.msra.mxu1 %v1564_v56  ;;  %1428 = vmatprep.subr.bf16.mxu0 %v1565_v57 }
  0x83   : > { %1450 = vmatprep.subr.bf16.mxu1 %v1566_v58 }
  0x85   : > { %1429 = vmatpush3.bf16.msra.mxu0 %v1567_v59 }
  0x86   : > { %1451 = vmatpush3.bf16.msra.mxu1 %v1568_v60  ;;  %1430 = vmatprep.subr.bf16.mxu0 %v1569_v61 }
  0x87   : > { %1452 = vmatprep.subr.bf16.mxu1 %v1570_v62 }
  0x89   : > { %1431 = vmatpush3.bf16.msra.mxu0 %v1571_v63 }
  0x8a   : > { %1453 = vmatpush3.bf16.msra.mxu1 %v1572_v0  ;;  %1460 = vmatprep.subr.bf16.mxu0 %v1577_v7 }
  0x8c   : > { %1125 = vmatmul.mubr.bf16.vlgmr.msra.gmra.mxu0 %v1357_v3 }
  0x8d   : > { %1165 = vmatmul.mubr.bf16.vlgmr.msra.gmra.mxu1 %v1359_v5  ;;  %1461 = vmatpush3.bf16.msra.mxu0 %v1578_v8 }
  0x8e   : > { %1462 = vmatprep.subr.bf16.mxu0 %v1579_v9  ;;  %1204 = vmatprep.mubr.bf16.mxu0 %v1362_v17 }
  0x91   : > { %1463 = vmatpush3.bf16.msra.mxu0 %v1580_v10 }
  0x92   : > { %1464 = vmatprep.subr.bf16.mxu0 %v1581_v11 }
  0x95   : > { %1465 = vmatpush3.bf16.msra.mxu0 %v1582_v12 }
  0x96   : > { %1466 = vmatprep.subr.bf16.mxu0 %v1583_v13 }
  0x99   : > { %1467 = vmatpush3.bf16.msra.mxu0 %v1584_v14 }
  0x9a   : > { %1468 = vmatprep.subr.bf16.mxu0 %v1585_v15 }
  0x9d   : > { %1469 = vmatpush3.bf16.msra.mxu0 %v1586_v18 }
  0x9e   : > { %1470 = vmatprep.subr.bf16.mxu0 %v1587_v19 }
  0xa1   : > { %1471 = vmatpush3.bf16.msra.mxu0 %v1588_v20 }
  0xa2   : > { %1472 = vmatprep.subr.bf16.mxu0 %v1589_v21 }
  0xa5   : > { %1473 = vmatpush3.bf16.msra.mxu0 %v1590_v22 }
  0xa6   : > { %1474 = vmatprep.subr.bf16.mxu0 %v1591_v23 }
  0xa9   : > { %1475 = vmatpush3.bf16.msra.mxu0 %v1592_v24 }
  0xac   : > { %1205 = vmatmul.mubr.bf16.vlgmr.msra.gmra.mxu0 %v1361_v25 }
 0x14c   : > { %v1432_v26 = vpop.f32.mrf.mxu0 }
 0x14d   : > { %v1454_v27 = vpop.f32.mrf.mxu1 }
 0x14e   : > { %v1433_v28 = vpop.f32.mrf.mxu0 }
 0x14f   : > { %v1455_v29 = vpop.f32.mrf.mxu1  ;;  %v1434_v34 = vadd.f32 %v1433_v28, %v1432_v26 }
 0x150   : > { %v1435_v30 = vpop.f32.mrf.mxu0  ;;  %v1456_v35 = vadd.f32 %v1455_v29, %v1454_v27 }
 0x151   : > { %v1457_v31 = vpop.f32.mrf.mxu1 }
 0x152   : > { %v1436_v32 = vpop.f32.mrf.mxu0  ;;  %v1167_v38 = vadd.f32 %v1456_v35, %v1434_v34 }
 0x153   : > { %v1458_v33 = vpop.f32.mrf.mxu1 }
 0x16c   : > { %v1476_v36 = vpop.f32.mrf.mxu0 }
 0x16e   : > { %v1477_v37 = vpop.f32.mrf.mxu0 }
 0x16f   : > { %v1478_v39 = vadd.f32 %v1477_v37, %v1476_v36 }
 0x170   : > { %v1479_v41 = vpop.f32.mrf.mxu0 }
 0x171   : > { %v1207_v42 = vadd.f32 %v1478_v39, %v1167_v38  ;;  %1217 = sbr.rel (%p1411_p13) target bundleno = 386 (0x182), region = 81 }
 0x172   : > { %v1480_v43 = vpop.f32.mrf.mxu0 }
 0x173   : > { %v1212_v44 = vadd.f32 %v1207_v42, %v683_v40 }
 0x175   : > { %1213 = vst [vmem:[#allocation2] sm:$0xff] %v1212_v44 }
 0x176   : > { %v1412_v46 = vld [vmem:[%s668_s27] ss:$0 sm:$0xff] }
 0x17c   : > { %v1218_v45 = vld [vmem:[#allocation2] sm:$0xff] }
 0x17d   : > { %v1226_v47 = vadd.f32 %v1412_v46, %v1218_v45 }
 0x17f   : > { %v1227_v48 = vmax.f32 %v1226_v47, 0.0 }
 0x181   : > { %1228 = vst [vmem:[%s1949_s30] sm:$0xff] %v1227_v48 }
 0x182 PF: > { %s13_s18 = sadd.s32 1, %s1649_s18   ;;  %s2037_s12 = smov %s1629_s13 }
 0x183   : > { %p10_p0 = scmp.ge.s32.totalorder %s13_s18, 8   ;;  %s2038_s13 = smov %s1723_s25 }
 0x184   : > { %s2039_s14 = smov %s1641_s16  ;;  %s2040_s15 = smov %s1645_s17 }
 0x185   : > { %s2041_s16 = smov %s2044_s19  ;;  %s2042_s17 = smov %s2048_s20 }
 0x186   :  { %12 = sbr.rel (!%p10_p0) target bundleno = 4 (0x4), region = 122 }

// kernel: wrap_resnet_forward.37
= control target key start
LH: loop header
LB: loop body
LE: loop exit
PB: predicated region body
PF: predicated region fallthrough
CT: control target
= control target key end

     0   :  { %s1046_s12 = smov 0   ;;  %s1048_s13 = smov 0   ;;  %s1230_s0 = inlined_call_operand.vmem [shape: bf16[2,256], index: 0, kind: input, shape index: {}]   ;;  %s1231_s1 = inlined_call_operand.vmem [shape: bf16[256,512], index: 1, kind: input, shape index: {}]   ;;  %s1232_s2 = inlined_call_operand.vmem [shape: f32[1,512], index: 2, kind: input, shape index: {}]   ;;  %s1233_s3 = inlined_call_operand.vmem [shape: f32[2,512], index: 3, kind: output, shape index: {}]  }
   0x1   :  { %s1050_s14 = smov 0   ;;  %s1052_s15 = smov 0  }
   0x2   :  { %s1054_s16 = smov 0  }
   0x3 LB: > { %s28_s17 = sadd.s32 1, %s1017_s15  ;;  %p76_p1 = scmp.ne.s32.totalorder %s1009_s13, %s1005_s12  ;;  %s1021_s16 = sphi %s1054_s16, %s13_s16   ;;  %s1017_s15 = sphi %s1052_s15, %s1237_s15   ;;  %s1013_s14 = sphi %s1050_s14, %s1236_s14   ;;  %s1009_s13 = sphi %s1048_s13, %s1235_s13   ;;  %s1005_s12 = sphi %s1046_s12, %s1234_s12  }
   0x4   : > { %p30_p0 = scmp.ge.s32.totalorder %s28_s17, 2  ;;  %p77_p2 = scmp.eq.s32.totalorder %s1021_s16, 0 }
   0x5   : > { %s69_s19 = sadd.s32 1, %s1009_s13  ;;  %p847_p5 = scmp.ge.s32.totalorder %s1021_s16, 2 }
   0x6   : > { %s1239_s17 = smov (%p30_p0, %s28_s17), 0  ;;  %p78_p3 = por %p77_p2, %p76_p1 }
   0x7   : > { %s65_s18 = ssub.s32 %s1017_s15, %s1239_s17  ;;  %168 = sbr.rel (%p847_p5) target bundleno = 32 (0x20), region = 20 }
   0x8   : > { %p67_p4 = scmp.eq.s32.totalorder %s65_s18, 0 }
   0xa   : > { %s1081_s20 = scalar_select %p67_p4, %s1009_s13, %s69_s19  }
   0xc   : > { %171 = sbr.rel (!%p78_p3) target bundleno = 32 (0x20), region = 24  ;;  %s173_s21 = sand.u32 (%p78_p3), 1, %s1009_s13  }
   0xd   : > { %s891_s22 = sshll.u32 (%p78_p3), %s1017_s15, 3  ;;  %s848_s23 = sshll.u32 (%p78_p3), %s173_s21, 8 }
   0xe   : > { %s1089_s26 = scalar_lea.vmem (%p78_p3), %s1231_s1, %s891_s22  ;;  %s1094_s27 = scalar_lea.vmem (%p78_p3), [#allocation3], %s848_s23 }
   0xf   : > { %v272_v0 = vld [vmem:[%s1089_s26] sm:$0xff] (%p78_p3)  ;;  %v274_v1 = vld [vmem:[%s1089_s26 + $0x10] sm:$0xff] (%p78_p3) }
  0x10   : > { %v276_v2 = vld [vmem:[%s1089_s26 + $0x20] sm:$0xff] (%p78_p3)  ;;  %273 = vst [vmem:[%s1094_s27] sm:$0xff] (%p78_p3), %v272_v0  ;;  %275 = vst [vmem:[%s1094_s27 + $0x8] sm:$0xff] (%p78_p3), %v274_v1  ;;  %v278_v3 = vld [vmem:[%s1089_s26 + $0x30] sm:$0xff] (%p78_p3) }
  0x11   : > { %277 = vst [vmem:[%s1094_s27 + $0x10] sm:$0xff] %v276_v2  ;;  %v280_v4 = vld [vmem:[%s1089_s26 + $0x40] sm:$0xff]  ;;  %v282_v5 = vld [vmem:[%s1089_s26 + $0x50] sm:$0xff]  ;;  %279 = vst [vmem:[%s1094_s27 + $0x18] sm:$0xff] %v278_v3 }
  0x12   : > { %281 = vst [vmem:[%s1094_s27 + $0x20] sm:$0xff] %v280_v4  ;;  %283 = vst [vmem:[%s1094_s27 + $0x28] sm:$0xff] %v282_v5  ;;  %v284_v6 = vld [vmem:[%s1089_s26 + $0x60] sm:$0xff]  ;;  %v286_v7 = vld [vmem:[%s1089_s26 + $0x70] sm:$0xff] }
  0x13   : > { %v288_v8 = vld [vmem:[%s1089_s26 + $0x80] sm:$0xff]  ;;  %285 = vst [vmem:[%s1094_s27 + $0x30] sm:$0xff] %v284_v6  ;;  %287 = vst [vmem:[%s1094_s27 + $0x38] sm:$0xff] %v286_v7  ;;  %v290_v9 = vld [vmem:[%s1089_s26 + $0x90] sm:$0xff] }
  0x14   : > { %289 = vst [vmem:[%s1094_s27 + $0x40] sm:$0xff] %v288_v8  ;;  %v292_v10 = vld [vmem:[%s1089_s26 + $0xa0] sm:$0xff]  ;;  %v294_v11 = vld [vmem:[%s1089_s26 + $0xb0] sm:$0xff]  ;;  %291 = vst [vmem:[%s1094_s27 + $0x48] sm:$0xff] %v290_v9 }
  0x15   : > { %293 = vst [vmem:[%s1094_s27 + $0x50] sm:$0xff] %v292_v10  ;;  %295 = vst [vmem:[%s1094_s27 + $0x58] sm:$0xff] %v294_v11  ;;  %v296_v12 = vld [vmem:[%s1089_s26 + $0xc0] sm:$0xff]  ;;  %v298_v13 = vld [vmem:[%s1089_s26 + $0xd0] sm:$0xff] }
  0x16   : > { %v300_v14 = vld [vmem:[%s1089_s26 + $0xe0] sm:$0xff]  ;;  %297 = vst [vmem:[%s1094_s27 + $0x60] sm:$0xff] %v296_v12  ;;  %299 = vst [vmem:[%s1094_s27 + $0x68] sm:$0xff] %v298_v13  ;;  %v302_v15 = vld [vmem:[%s1089_s26 + $0xf0] sm:$0xff] }
  0x17   : > { %301 = vst [vmem:[%s1094_s27 + $0x70] sm:$0xff] %v300_v14  ;;  %v304_v16 = vld [vmem:[%s1089_s26 + $0x100] sm:$0xff]  ;;  %v306_v17 = vld [vmem:[%s1089_s26 + $0x110] sm:$0xff]  ;;  %303 = vst [vmem:[%s1094_s27 + $0x78] sm:$0xff] %v302_v15 }
  0x18   : > { %305 = vst [vmem:[%s1094_s27 + $0x80] sm:$0xff] %v304_v16  ;;  %307 = vst [vmem:[%s1094_s27 + $0x88] sm:$0xff] %v306_v17  ;;  %v308_v18 = vld [vmem:[%s1089_s26 + $0x120] sm:$0xff]  ;;  %v310_v19 = vld [vmem:[%s1089_s26 + $0x130] sm:$0xff] }
  0x19   : > { %v312_v20 = vld [vmem:[%s1089_s26 + $0x140] sm:$0xff]  ;;  %309 = vst [vmem:[%s1094_s27 + $0x90] sm:$0xff] %v308_v18  ;;  %311 = vst [vmem:[%s1094_s27 + $0x98] sm:$0xff] %v310_v19  ;;  %v314_v21 = vld [vmem:[%s1089_s26 + $0x150] sm:$0xff] }
  0x1a   : > { %313 = vst [vmem:[%s1094_s27 + $0xa0] sm:$0xff] %v312_v20  ;;  %v316_v22 = vld [vmem:[%s1089_s26 + $0x160] sm:$0xff]  ;;  %v318_v23 = vld [vmem:[%s1089_s26 + $0x170] sm:$0xff]  ;;  %315 = vst [vmem:[%s1094_s27 + $0xa8] sm:$0xff] %v314_v21 }
  0x1b   : > { %317 = vst [vmem:[%s1094_s27 + $0xb0] sm:$0xff] %v316_v22  ;;  %319 = vst [vmem:[%s1094_s27 + $0xb8] sm:$0xff] %v318_v23  ;;  %v320_v24 = vld [vmem:[%s1089_s26 + $0x180] sm:$0xff]  ;;  %v322_v25 = vld [vmem:[%s1089_s26 + $0x190] sm:$0xff] }
  0x1c   : > { %v324_v26 = vld [vmem:[%s1089_s26 + $0x1a0] sm:$0xff]  ;;  %321 = vst [vmem:[%s1094_s27 + $0xc0] sm:$0xff] %v320_v24  ;;  %323 = vst [vmem:[%s1094_s27 + $0xc8] sm:$0xff] %v322_v25  ;;  %v326_v27 = vld [vmem:[%s1089_s26 + $0x1b0] sm:$0xff] }
  0x1d   : > { %325 = vst [vmem:[%s1094_s27 + $0xd0] sm:$0xff] %v324_v26  ;;  %v328_v28 = vld [vmem:[%s1089_s26 + $0x1c0] sm:$0xff]  ;;  %v330_v29 = vld [vmem:[%s1089_s26 + $0x1d0] sm:$0xff]  ;;  %327 = vst [vmem:[%s1094_s27 + $0xd8] sm:$0xff] %v326_v27 }
  0x1e   : > { %329 = vst [vmem:[%s1094_s27 + $0xe0] sm:$0xff] %v328_v28  ;;  %331 = vst [vmem:[%s1094_s27 + $0xe8] sm:$0xff] %v330_v29  ;;  %v332_v30 = vld [vmem:[%s1089_s26 + $0x1e0] sm:$0xff]  ;;  %v334_v31 = vld [vmem:[%s1089_s26 + $0x1f0] sm:$0xff] }
  0x1f   : > { %333 = vst [vmem:[%s1094_s27 + $0xf0] sm:$0xff] %v332_v30  ;;  %335 = vst [vmem:[%s1094_s27 + $0xf8] sm:$0xff] %v334_v31 }
  0x20 PF: > { %p851_p6 = scmp.ge.s32.totalorder %s1021_s16, 1  ;;  %p348_p7 = scmp.lt.s32.totalorder %s1021_s16, 3 }
  0x22   : > { %p349_p8 = pnand %p851_p6, %p348_p7 }
  0x23   : > { %s355_s28 = sand.u32 (!%p349_p8), 1, %s1005_s12   ;;  %s853_s6 = sshll.u32 (!%p349_p8), %s1013_s14, 1 }
  0x24   : > { %352 = sbr.rel (%p349_p8) target bundleno = 319 (0x13f), region = 66  ;;  %s852_s4 = sshll.u32 (!%p349_p8), %s355_s28, 8 }
  0x25   : > { %s1167_s5 = scalar_lea.vmem (!%p349_p8), [#allocation3], %s852_s4  ;;  %p406_p9 = scmp.lt.s32.totalorder (!%p349_p8), %s853_s6, 3 }
  0x29   : > { %v1163_v32 = vld.sshfl [vmem:[%s1230_s0] sm:$0x11 pattern:$0x75316420]  ;;  %v471_v33 = vlaneseq  ;;  %v1023_v34 = vmov 1966171168  }
  0x2a   : > { %v469_v35 = vunpack.c.l.s4 %v1023_v34  ;;  %v935_v37 = vld [vmem:[%s1167_s5 + $0x74] ss:$8 sps:$4 sm:$0xff]   ;;  %v937_v38 = vld [vmem:[%s1167_s5 + $0x70] ss:$8 sps:$4 sm:$0xff]   ;;  %v467_v39 = vcombine.high %v1163_v32, %v1163_v32  ;;  %v938_v41 = vld [vmem:[%s1167_s5 + $0x64] ss:$8 sps:$4 sm:$0xff]  }
  0x2b   : > { %v1165_v36 = vshrl.u32 %v471_v33, 7  ;;  %644 = vmatprep.subr.bf16.mxu0 %v935_v37  ;;  %v940_v42 = vld [vmem:[%s1167_s5 + $0x60] ss:$8 sps:$4 sm:$0xff]   ;;  %v941_v44 = vld [vmem:[%s1167_s5 + $0x54] ss:$8 sps:$4 sm:$0xff]   ;;  %v1024_v10 = vmov 0.0  }
  0x2c   : > { %v470_v40 = vunpack.c.0.s8 %v469_v35  ;;  %645 = vmatpush1.bf16.msra.mxu0 %v937_v38  ;;  %v943_v46 = vld [vmem:[%s1167_s5 + $0x50] ss:$8 sps:$4 sm:$0xff]   ;;  %v944_v47 = vld [vmem:[%s1167_s5 + $0x44] ss:$8 sps:$4 sm:$0xff]   ;;  %v946_v48 = vld [vmem:[%s1167_s5 + $0x40] ss:$8 sps:$4 sm:$0xff]  }
  0x2d   : > { %646 = vmatprep.subr.bf16.mxu0 %v938_v41  ;;  %v947_v49 = vld [vmem:[%s1167_s5 + $0x34] ss:$8 sps:$4 sm:$0xff]   ;;  %v949_v50 = vld [vmem:[%s1167_s5 + $0x30] ss:$8 sps:$4 sm:$0xff]   ;;  %v950_v51 = vld [vmem:[%s1167_s5 + $0x24] ss:$8 sps:$4 sm:$0xff]  }
  0x2e   : > { %v473_v43 = vsub.s32 %v470_v40, %v1165_v36  ;;  %v952_v52 = vld [vmem:[%s1167_s5 + $0x20] ss:$8 sps:$4 sm:$0xff]   ;;  %v953_v53 = vld [vmem:[%s1167_s5 + $0x14] ss:$8 sps:$4 sm:$0xff]   ;;  %v955_v54 = vld [vmem:[%s1167_s5 + $0x10] ss:$8 sps:$4 sm:$0xff]  }
  0x2f   : > { %v956_v55 = vld [vmem:[%s1167_s5 + $0x4] ss:$8 sps:$4 sm:$0xff]   ;;  %v958_v56 = vld [vmem:[%s1167_s5] ss:$8 sps:$4 sm:$0xff]   ;;  %v959_v57 = vld [vmem:[%s1167_s5 + $0xf4] ss:$8 sps:$4 sm:$0xff]  }
  0x30   : > { %v481_v45 = vrot.slane %v467_v39, %v473_v43  ;;  %647 = vmatpush1.bf16.msra.mxu0 %v940_v42  ;;  %v961_v58 = vld [vmem:[%s1167_s5 + $0xf0] ss:$8 sps:$4 sm:$0xff]   ;;  %v962_v59 = vld [vmem:[%s1167_s5 + $0xe4] ss:$8 sps:$4 sm:$0xff]   ;;  %v964_v60 = vld [vmem:[%s1167_s5 + $0xe0] ss:$8 sps:$4 sm:$0xff]   ;;  %v474_v9 = vrot.slane %v1163_v32, %v473_v43 }
  0x31   : > { %648 = vmatprep.subr.bf16.mxu0 %v941_v44  ;;  %v965_v61 = vld [vmem:[%s1167_s5 + $0xd4] ss:$8 sps:$4 sm:$0xff]   ;;  %v967_v62 = vld [vmem:[%s1167_s5 + $0xd0] ss:$8 sps:$4 sm:$0xff]   ;;  %v968_v63 = vld [vmem:[%s1167_s5 + $0xc4] ss:$8 sps:$4 sm:$0xff]  }
  0x32   : > { %676 = vmatprep.mubr.bf16.mxu0 %v481_v45  ;;  %v970_v0 = vld [vmem:[%s1167_s5 + $0xc0] ss:$8 sps:$4 sm:$0xff]   ;;  %v971_v1 = vld [vmem:[%s1167_s5 + $0xb4] ss:$8 sps:$4 sm:$0xff]   ;;  %v973_v2 = vld [vmem:[%s1167_s5 + $0xb0] ss:$8 sps:$4 sm:$0xff]  }
  0x33   : > { %v974_v3 = vld [vmem:[%s1167_s5 + $0xa4] ss:$8 sps:$4 sm:$0xff]   ;;  %v976_v4 = vld [vmem:[%s1167_s5 + $0xa0] ss:$8 sps:$4 sm:$0xff]   ;;  %v977_v5 = vld [vmem:[%s1167_s5 + $0x94] ss:$8 sps:$4 sm:$0xff]  }
  0x34   : > { %649 = vmatpush1.bf16.msra.mxu0 %v943_v46  ;;  %v979_v6 = vld [vmem:[%s1167_s5 + $0x90] ss:$8 sps:$4 sm:$0xff]   ;;  %v980_v7 = vld [vmem:[%s1167_s5 + $0x84] ss:$8 sps:$4 sm:$0xff]   ;;  %v982_v8 = vld [vmem:[%s1167_s5 + $0x80] ss:$8 sps:$4 sm:$0xff]  }
  0x35   : > { %650 = vmatprep.subr.bf16.mxu0 %v944_v47  ;;  %424 = vst [vmem:[#allocation2] sm:$0xf] %v1024_v10  ;;  %v1025_v11 = vmov 1983009808   ;;  %s1241_s6 = smov (!%p406_p9, %s853_s6), 3  ;;  %v706_v16 = vsub.s32 0, %v1165_v36 }
  0x36   : > { %v689_v12 = vunpack.c.l.s4 %v1025_v11  ;;  %s408_s9 = scalar_lea.vmem %s1232_s2, %s1241_s6  ;;  %v710_v17 = vsub.s32 1, %v1165_v36  ;;  %s855_s10 = sshll.u32 %s1241_s6, 1 }
  0x37   : > { %v702_v19 = vld [vmem:[%s408_s9] sm:$0x3]  ;;  %s418_s14 = scalar_lea.vmem %s1233_s3, %s855_s10 }
  0x38   : > { %651 = vmatpush1.bf16.msra.mxu0 %v946_v48  ;;  %v690_v13 = vunpack.c.0.s8 %v689_v12  ;;  %v707_v24 = vrot.slane %v702_v19, %v706_v16  ;;  %v711_v25 = vrot.slane %v702_v19, %v710_v17 }
  0x39   : > { %652 = vmatprep.subr.bf16.mxu0 %v947_v49 }
  0x3a   : > { %v693_v15 = vsub.s32 %v690_v13, %v1165_v36  ;;  %v712_v28 = vcombine.low %v707_v24, %v711_v25 }
  0x3c   : > { %653 = vmatpush1.bf16.msra.mxu0 %v949_v50  ;;  %v425_v21 = vld [vmem:[#allocation2] sm:$0xf]  ;;  %v719_v29 = vrot.slane %v712_v28, %v693_v15 }
  0x3d   : > { %654 = vmatprep.subr.bf16.mxu0 %v950_v51 }
  0x40   : > { %655 = vmatpush1.bf16.msra.mxu0 %v952_v52 }
  0x41   : > { %656 = vmatprep.subr.bf16.mxu0 %v953_v53 }
  0x44   : > { %657 = vmatpush1.bf16.msra.mxu0 %v955_v54 }
  0x45   : > { %658 = vmatprep.subr.bf16.mxu0 %v956_v55 }
  0x48   : > { %659 = vmatpush1.bf16.msra.mxu0 %v958_v56 }
  0x49   : > { %660 = vmatprep.subr.bf16.mxu0 %v959_v57 }
  0x4c   : > { %661 = vmatpush2.bf16.msra.mxu0 %v961_v58 }
  0x4d   : > { %662 = vmatprep.subr.bf16.mxu0 %v962_v59 }
  0x50   : > { %663 = vmatpush2.bf16.msra.mxu0 %v964_v60 }
  0x51   : > { %664 = vmatprep.subr.bf16.mxu0 %v965_v61 }
  0x54   : > { %665 = vmatpush2.bf16.msra.mxu0 %v967_v62 }
  0x55   : > { %666 = vmatprep.subr.bf16.mxu0 %v968_v63 }
  0x58   : > { %667 = vmatpush2.bf16.msra.mxu0 %v970_v0 }
  0x59   : > { %668 = vmatprep.subr.bf16.mxu0 %v971_v1 }
  0x5c   : > { %669 = vmatpush2.bf16.msra.mxu0 %v973_v2 }
  0x5d   : > { %670 = vmatprep.subr.bf16.mxu0 %v974_v3 }
  0x60   : > { %671 = vmatpush2.bf16.msra.mxu0 %v976_v4 }
  0x61   : > { %672 = vmatprep.subr.bf16.mxu0 %v977_v5 }
  0x64   : > { %673 = vmatpush2.bf16.msra.mxu0 %v979_v6 }
  0x65   : > { %674 = vmatprep.subr.bf16.mxu0 %v980_v7 }
  0x68   : > { %675 = vmatpush2.bf16.msra.mxu0 %v982_v8 }
  0x6b   : > { %677 = vmatmul.mubr.bf16.vlgmr.msra.gmra.mxu0 %v474_v9 }
 0x12b   : > { %v678_v14 = vpop.f32.mrf.mxu0 }
 0x12d   : > { %v680_v18 = vpop.f32.mrf.mxu0 }
 0x12e   : > { %v687_v20 = vcombine.low %v678_v14, %v680_v18 }
 0x12f   : > { %v682_v22 = vpop.f32.mrf.mxu0 }
 0x130   : > { %v694_v23 = vrot.slane %v687_v20, %v693_v15 }
 0x131   : > { %v683_v26 = vpop.f32.mrf.mxu0 }
 0x132   : > { %v696_v27 = vadd.f32 %v694_v23, %v425_v21 }
 0x134   : > { %697 = vst [vmem:[#allocation2] sm:$0xf] %v696_v27 }
 0x13b   : > { %v701_v30 = vld [vmem:[#allocation2] sm:$0xf] }
 0x13c   : > { %v721_v31 = vadd.f32 %v719_v29, %v701_v30 }
 0x13e   : > { %722 = vst [vmem:[%s418_s14] sm:$0xf] %v721_v31 }
 0x13f PF: > { %s13_s16 = sadd.s32 1, %s1021_s16   ;;  %s1234_s12 = smov %s1009_s13 }
 0x140   : > { %p10_p10 = scmp.ge.s32.totalorder %s13_s16, 4   ;;  %s1235_s13 = smov %s1081_s20 }
 0x141   : > { %s1236_s14 = smov %s1017_s15  ;;  %s1237_s15 = smov %s1239_s17 }
 0x142   :  { %12 = sbr.rel (!%p10_p10) target bundleno = 3 (0x3), region = 119 }

// kernel: wrap_resnet_forward.36
= control target key start
LH: loop header
LB: loop body
LE: loop exit
PB: predicated region body
PF: predicated region fallthrough
CT: control target
= control target key end

     0   :  { %s1993_s12 = smov 0   ;;  %s1995_s13 = smov 0   ;;  %s2426_s0 = inlined_call_operand.vmem [shape: bf16[2,2304], index: 0, kind: input, shape index: {}]   ;;  %s2427_s1 = inlined_call_operand.vmem [shape: bf16[2304,512], index: 1, kind: input, shape index: {}]   ;;  %s2428_s2 = inlined_call_operand.vmem [shape: f32[1,512], index: 2, kind: input, shape index: {}]   ;;  %s2429_s3 = inlined_call_operand.vmem [shape: f32[2,512], index: 3, kind: output, shape index: {}]  }
   0x1   :  { %s1997_s14 = smov 0   ;;  %s1999_s15 = smov 0  }
   0x2   :  { %s2001_s16 = smov 0   ;;  %s2003_s17 = smov 0  }
   0x3   :  { %s2005_s18 = smov 0  }
   0x4 LB: > { %s25_s19 = sadd.s32 1, %s1960_s16  ;;  %s28_s20 = sadd.s32 1, %s1964_s17  ;;  %s1968_s18 = sphi %s2005_s18, %s13_s18   ;;  %s1964_s17 = sphi %s2003_s17, %s2435_s17   ;;  %s1960_s16 = sphi %s2001_s16, %s2434_s16   ;;  %s1956_s15 = sphi %s1999_s15, %s2433_s15   ;;  %s1952_s14 = sphi %s1997_s14, %s2432_s14   ;;  %s1948_s13 = sphi %s1995_s13, %s2431_s13   ;;  %s1944_s12 = sphi %s1993_s12, %s2430_s12  }
   0x5   : > { %p26_p0 = scmp.ge.s32.totalorder %s25_s19, 3  ;;  %p76_p1 = scmp.ne.s32.totalorder %s1948_s13, %s1944_s12 }
   0x6   : > { %p77_p2 = scmp.eq.s32.totalorder %s1968_s18, 0  ;;  %s69_s24 = sadd.s32 1, %s1948_s13 }
   0x7   : > { %s2437_s19 = smov (%p26_p0, %s25_s19), 0  ;;  %s2439_s20 = smov (!%p26_p0, %s28_s20), %s1964_s17 }
   0x8   : > { %p78_p3 = por %p77_p2, %p76_p1  ;;  %p30_p4 = scmp.ge.s32.totalorder %s2439_s20, 2 }
   0x9   : > { %s64_s21 = ssub.s32 %s1960_s16, %s2437_s19  ;;  %p1599_p6 = scmp.ge.s32.totalorder %s1968_s18, 6 }
   0xa   : > { %s2441_s20 = smov (%p30_p4, %s2439_s20), 0 }
   0xb   : > { %s65_s22 = ssub.s32 %s1964_s17, %s2441_s20  ;;  %156 = sbr.rel (%p1599_p6) target bundleno = 72 (0x48), region = 16 }
   0xc   : > { %s66_s23 = sor.u32 %s65_s22, %s64_s21 }
   0xd   : > { %p67_p5 = scmp.eq.s32.totalorder %s66_s23, 0 }
   0xf   : > { %s2044_s25 = scalar_select %p67_p5, %s1948_s13, %s69_s24  }
  0x10   : > { %171 = sbr.rel (!%p78_p3) target bundleno = 72 (0x48), region = 24  ;;  %s173_s26 = sand.u32 (%p78_p3), 1, %s1948_s13  }
  0x11   : > { %s1708_s27 = smul.u32 (%p78_p3), 768, %s173_s26  ;;  %s1600_s28 = sshll.u32 (%p78_p3), %s1964_s17, 1 }
  0x12   : > { %s1707_s29 = smul.u32 (%p78_p3), 384, %s1960_s16 }
  0x13   : > { %s2058_s8 = scalar_lea.vmem (%p78_p3), [#allocation3], %s1708_s27 }
  0x14   : > { %s179_s30 = sadd.s32 (%p78_p3), %s1707_s29, %s1600_s28 }
  0x15   : > { %s1602_s4 = sshll.u32 %s179_s30, 2 }
  0x16   : > { %s2053_s7 = scalar_lea.vmem %s2427_s1, %s1602_s4 }
  0x17   : > { %v400_v0 = vld [vmem:[%s2053_s7] sm:$0xff]  ;;  %v402_v1 = vld [vmem:[%s2053_s7 + $0x10] sm:$0xff] }
  0x18   : > { %v404_v2 = vld [vmem:[%s2053_s7 + $0x20] sm:$0xff]  ;;  %401 = vst [vmem:[%s2058_s8] sm:$0xff] %v400_v0  ;;  %403 = vst [vmem:[%s2058_s8 + $0x8] sm:$0xff] %v402_v1  ;;  %v406_v3 = vld [vmem:[%s2053_s7 + $0x30] sm:$0xff] }
  0x19   : > { %405 = vst [vmem:[%s2058_s8 + $0x10] sm:$0xff] %v404_v2  ;;  %v408_v4 = vld [vmem:[%s2053_s7 + $0x40] sm:$0xff]  ;;  %v410_v5 = vld [vmem:[%s2053_s7 + $0x50] sm:$0xff]  ;;  %407 = vst [vmem:[%s2058_s8 + $0x18] sm:$0xff] %v406_v3 }
  0x1a   : > { %409 = vst [vmem:[%s2058_s8 + $0x20] sm:$0xff] %v408_v4  ;;  %411 = vst [vmem:[%s2058_s8 + $0x28] sm:$0xff] %v410_v5  ;;  %v412_v6 = vld [vmem:[%s2053_s7 + $0x60] sm:$0xff]  ;;  %v414_v7 = vld [vmem:[%s2053_s7 + $0x70] sm:$0xff] }
  0x1b   : > { %v416_v8 = vld [vmem:[%s2053_s7 + $0x80] sm:$0xff]  ;;  %413 = vst [vmem:[%s2058_s8 + $0x30] sm:$0xff] %v412_v6  ;;  %415 = vst [vmem:[%s2058_s8 + $0x38] sm:$0xff] %v414_v7  ;;  %v418_v9 = vld [vmem:[%s2053_s7 + $0x90] sm:$0xff] }
  0x1c   : > { %417 = vst [vmem:[%s2058_s8 + $0x40] sm:$0xff] %v416_v8  ;;  %v420_v10 = vld [vmem:[%s2053_s7 + $0xa0] sm:$0xff]  ;;  %v422_v11 = vld [vmem:[%s2053_s7 + $0xb0] sm:$0xff]  ;;  %419 = vst [vmem:[%s2058_s8 + $0x48] sm:$0xff] %v418_v9 }
  0x1d   : > { %421 = vst [vmem:[%s2058_s8 + $0x50] sm:$0xff] %v420_v10  ;;  %423 = vst [vmem:[%s2058_s8 + $0x58] sm:$0xff] %v422_v11  ;;  %v424_v12 = vld [vmem:[%s2053_s7 + $0xc0] sm:$0xff]  ;;  %v426_v13 = vld [vmem:[%s2053_s7 + $0xd0] sm:$0xff] }
  0x1e   : > { %v428_v14 = vld [vmem:[%s2053_s7 + $0xe0] sm:$0xff]  ;;  %425 = vst [vmem:[%s2058_s8 + $0x60] sm:$0xff] %v424_v12  ;;  %427 = vst [vmem:[%s2058_s8 + $0x68] sm:$0xff] %v426_v13  ;;  %v430_v15 = vld [vmem:[%s2053_s7 + $0xf0] sm:$0xff] }
  0x1f   : > { %429 = vst [vmem:[%s2058_s8 + $0x70] sm:$0xff] %v428_v14  ;;  %v432_v16 = vld [vmem:[%s2053_s7 + $0x100] sm:$0xff]  ;;  %v434_v17 = vld [vmem:[%s2053_s7 + $0x110] sm:$0xff]  ;;  %431 = vst [vmem:[%s2058_s8 + $0x78] sm:$0xff] %v430_v15 }
  0x20   : > { %433 = vst [vmem:[%s2058_s8 + $0x80] sm:$0xff] %v432_v16  ;;  %435 = vst [vmem:[%s2058_s8 + $0x88] sm:$0xff] %v434_v17  ;;  %v436_v18 = vld [vmem:[%s2053_s7 + $0x120] sm:$0xff]  ;;  %v438_v19 = vld [vmem:[%s2053_s7 + $0x130] sm:$0xff] }
  0x21   : > { %v440_v20 = vld [vmem:[%s2053_s7 + $0x140] sm:$0xff]  ;;  %437 = vst [vmem:[%s2058_s8 + $0x90] sm:$0xff] %v436_v18  ;;  %439 = vst [vmem:[%s2058_s8 + $0x98] sm:$0xff] %v438_v19  ;;  %v442_v21 = vld [vmem:[%s2053_s7 + $0x150] sm:$0xff] }
  0x22   : > { %441 = vst [vmem:[%s2058_s8 + $0xa0] sm:$0xff] %v440_v20  ;;  %v444_v22 = vld [vmem:[%s2053_s7 + $0x160] sm:$0xff]  ;;  %v446_v23 = vld [vmem:[%s2053_s7 + $0x170] sm:$0xff]  ;;  %443 = vst [vmem:[%s2058_s8 + $0xa8] sm:$0xff] %v442_v21 }
  0x23   : > { %445 = vst [vmem:[%s2058_s8 + $0xb0] sm:$0xff] %v444_v22  ;;  %447 = vst [vmem:[%s2058_s8 + $0xb8] sm:$0xff] %v446_v23  ;;  %v448_v24 = vld [vmem:[%s2053_s7 + $0x180] sm:$0xff]  ;;  %v450_v25 = vld [vmem:[%s2053_s7 + $0x190] sm:$0xff] }
  0x24   : > { %v452_v26 = vld [vmem:[%s2053_s7 + $0x1a0] sm:$0xff]  ;;  %449 = vst [vmem:[%s2058_s8 + $0xc0] sm:$0xff] %v448_v24  ;;  %451 = vst [vmem:[%s2058_s8 + $0xc8] sm:$0xff] %v450_v25  ;;  %v454_v27 = vld [vmem:[%s2053_s7 + $0x1b0] sm:$0xff] }
  0x25   : > { %453 = vst [vmem:[%s2058_s8 + $0xd0] sm:$0xff] %v452_v26  ;;  %v456_v28 = vld [vmem:[%s2053_s7 + $0x1c0] sm:$0xff]  ;;  %v458_v29 = vld [vmem:[%s2053_s7 + $0x1d0] sm:$0xff]  ;;  %455 = vst [vmem:[%s2058_s8 + $0xd8] sm:$0xff] %v454_v27 }
  0x26   : > { %457 = vst [vmem:[%s2058_s8 + $0xe0] sm:$0xff] %v456_v28  ;;  %459 = vst [vmem:[%s2058_s8 + $0xe8] sm:$0xff] %v458_v29  ;;  %v460_v30 = vld [vmem:[%s2053_s7 + $0x1e0] sm:$0xff]  ;;  %v462_v31 = vld [vmem:[%s2053_s7 + $0x1f0] sm:$0xff] }
  0x27   : > { %v464_v32 = vld [vmem:[%s2053_s7 + $0x200] sm:$0xff]  ;;  %461 = vst [vmem:[%s2058_s8 + $0xf0] sm:$0xff] %v460_v30  ;;  %463 = vst [vmem:[%s2058_s8 + $0xf8] sm:$0xff] %v462_v31  ;;  %v466_v33 = vld [vmem:[%s2053_s7 + $0x210] sm:$0xff] }
  0x28   : > { %465 = vst [vmem:[%s2058_s8 + $0x100] sm:$0xff] %v464_v32  ;;  %v468_v34 = vld [vmem:[%s2053_s7 + $0x220] sm:$0xff]  ;;  %v470_v35 = vld [vmem:[%s2053_s7 + $0x230] sm:$0xff]  ;;  %467 = vst [vmem:[%s2058_s8 + $0x108] sm:$0xff] %v466_v33 }
  0x29   : > { %469 = vst [vmem:[%s2058_s8 + $0x110] sm:$0xff] %v468_v34  ;;  %471 = vst [vmem:[%s2058_s8 + $0x118] sm:$0xff] %v470_v35  ;;  %v472_v36 = vld [vmem:[%s2053_s7 + $0x240] sm:$0xff]  ;;  %v474_v37 = vld [vmem:[%s2053_s7 + $0x250] sm:$0xff] }
  0x2a   : > { %v476_v38 = vld [vmem:[%s2053_s7 + $0x260] sm:$0xff]  ;;  %473 = vst [vmem:[%s2058_s8 + $0x120] sm:$0xff] %v472_v36  ;;  %475 = vst [vmem:[%s2058_s8 + $0x128] sm:$0xff] %v474_v37  ;;  %v478_v39 = vld [vmem:[%s2053_s7 + $0x270] sm:$0xff] }
  0x2b   : > { %477 = vst [vmem:[%s2058_s8 + $0x130] sm:$0xff] %v476_v38  ;;  %v480_v40 = vld [vmem:[%s2053_s7 + $0x280] sm:$0xff]  ;;  %v482_v41 = vld [vmem:[%s2053_s7 + $0x290] sm:$0xff]  ;;  %479 = vst [vmem:[%s2058_s8 + $0x138] sm:$0xff] %v478_v39 }
  0x2c   : > { %481 = vst [vmem:[%s2058_s8 + $0x140] sm:$0xff] %v480_v40  ;;  %483 = vst [vmem:[%s2058_s8 + $0x148] sm:$0xff] %v482_v41  ;;  %v484_v42 = vld [vmem:[%s2053_s7 + $0x2a0] sm:$0xff]  ;;  %v486_v43 = vld [vmem:[%s2053_s7 + $0x2b0] sm:$0xff] }
  0x2d   : > { %v488_v44 = vld [vmem:[%s2053_s7 + $0x2c0] sm:$0xff]  ;;  %485 = vst [vmem:[%s2058_s8 + $0x150] sm:$0xff] %v484_v42  ;;  %487 = vst [vmem:[%s2058_s8 + $0x158] sm:$0xff] %v486_v43  ;;  %v490_v45 = vld [vmem:[%s2053_s7 + $0x2d0] sm:$0xff] }
  0x2e   : > { %489 = vst [vmem:[%s2058_s8 + $0x160] sm:$0xff] %v488_v44  ;;  %v492_v46 = vld [vmem:[%s2053_s7 + $0x2e0] sm:$0xff]  ;;  %v494_v47 = vld [vmem:[%s2053_s7 + $0x2f0] sm:$0xff]  ;;  %491 = vst [vmem:[%s2058_s8 + $0x168] sm:$0xff] %v490_v45 }
  0x2f   : > { %493 = vst [vmem:[%s2058_s8 + $0x170] sm:$0xff] %v492_v46  ;;  %495 = vst [vmem:[%s2058_s8 + $0x178] sm:$0xff] %v494_v47  ;;  %v496_v48 = vld [vmem:[%s2053_s7 + $0x300] sm:$0xff]  ;;  %v498_v49 = vld [vmem:[%s2053_s7 + $0x310] sm:$0xff] }
  0x30   : > { %v500_v50 = vld [vmem:[%s2053_s7 + $0x320] sm:$0xff]  ;;  %497 = vst [vmem:[%s2058_s8 + $0x180] sm:$0xff] %v496_v48  ;;  %499 = vst [vmem:[%s2058_s8 + $0x188] sm:$0xff] %v498_v49  ;;  %v502_v51 = vld [vmem:[%s2053_s7 + $0x330] sm:$0xff] }
  0x31   : > { %501 = vst [vmem:[%s2058_s8 + $0x190] sm:$0xff] %v500_v50  ;;  %v504_v52 = vld [vmem:[%s2053_s7 + $0x340] sm:$0xff]  ;;  %v506_v53 = vld [vmem:[%s2053_s7 + $0x350] sm:$0xff]  ;;  %503 = vst [vmem:[%s2058_s8 + $0x198] sm:$0xff] %v502_v51 }
  0x32   : > { %505 = vst [vmem:[%s2058_s8 + $0x1a0] sm:$0xff] %v504_v52  ;;  %507 = vst [vmem:[%s2058_s8 + $0x1a8] sm:$0xff] %v506_v53  ;;  %v508_v54 = vld [vmem:[%s2053_s7 + $0x360] sm:$0xff]  ;;  %v510_v55 = vld [vmem:[%s2053_s7 + $0x370] sm:$0xff] }
  0x33   : > { %v512_v56 = vld [vmem:[%s2053_s7 + $0x380] sm:$0xff]  ;;  %509 = vst [vmem:[%s2058_s8 + $0x1b0] sm:$0xff] %v508_v54  ;;  %511 = vst [vmem:[%s2058_s8 + $0x1b8] sm:$0xff] %v510_v55  ;;  %v514_v57 = vld [vmem:[%s2053_s7 + $0x390] sm:$0xff] }
  0x34   : > { %513 = vst [vmem:[%s2058_s8 + $0x1c0] sm:$0xff] %v512_v56  ;;  %v516_v58 = vld [vmem:[%s2053_s7 + $0x3a0] sm:$0xff]  ;;  %v518_v59 = vld [vmem:[%s2053_s7 + $0x3b0] sm:$0xff]  ;;  %515 = vst [vmem:[%s2058_s8 + $0x1c8] sm:$0xff] %v514_v57 }
  0x35   : > { %517 = vst [vmem:[%s2058_s8 + $0x1d0] sm:$0xff] %v516_v58  ;;  %519 = vst [vmem:[%s2058_s8 + $0x1d8] sm:$0xff] %v518_v59  ;;  %v520_v60 = vld [vmem:[%s2053_s7 + $0x3c0] sm:$0xff]  ;;  %v522_v61 = vld [vmem:[%s2053_s7 + $0x3d0] sm:$0xff] }
  0x36   : > { %v524_v62 = vld [vmem:[%s2053_s7 + $0x3e0] sm:$0xff]  ;;  %521 = vst [vmem:[%s2058_s8 + $0x1e0] sm:$0xff] %v520_v60  ;;  %523 = vst [vmem:[%s2058_s8 + $0x1e8] sm:$0xff] %v522_v61  ;;  %v526_v63 = vld [vmem:[%s2053_s7 + $0x3f0] sm:$0xff] }
  0x37   : > { %525 = vst [vmem:[%s2058_s8 + $0x1f0] sm:$0xff] %v524_v62  ;;  %v528_v0 = vld [vmem:[%s2053_s7 + $0x400] sm:$0xff]  ;;  %v530_v1 = vld [vmem:[%s2053_s7 + $0x410] sm:$0xff]  ;;  %527 = vst [vmem:[%s2058_s8 + $0x1f8] sm:$0xff] %v526_v63 }
  0x38   : > { %529 = vst [vmem:[%s2058_s8 + $0x200] sm:$0xff] %v528_v0  ;;  %531 = vst [vmem:[%s2058_s8 + $0x208] sm:$0xff] %v530_v1  ;;  %v532_v2 = vld [vmem:[%s2053_s7 + $0x420] sm:$0xff]  ;;  %v534_v3 = vld [vmem:[%s2053_s7 + $0x430] sm:$0xff] }
  0x39   : > { %v536_v4 = vld [vmem:[%s2053_s7 + $0x440] sm:$0xff]  ;;  %533 = vst [vmem:[%s2058_s8 + $0x210] sm:$0xff] %v532_v2  ;;  %535 = vst [vmem:[%s2058_s8 + $0x218] sm:$0xff] %v534_v3  ;;  %v538_v5 = vld [vmem:[%s2053_s7 + $0x450] sm:$0xff] }
  0x3a   : > { %537 = vst [vmem:[%s2058_s8 + $0x220] sm:$0xff] %v536_v4  ;;  %v540_v6 = vld [vmem:[%s2053_s7 + $0x460] sm:$0xff]  ;;  %v542_v7 = vld [vmem:[%s2053_s7 + $0x470] sm:$0xff]  ;;  %539 = vst [vmem:[%s2058_s8 + $0x228] sm:$0xff] %v538_v5 }
  0x3b   : > { %541 = vst [vmem:[%s2058_s8 + $0x230] sm:$0xff] %v540_v6  ;;  %543 = vst [vmem:[%s2058_s8 + $0x238] sm:$0xff] %v542_v7  ;;  %v544_v8 = vld [vmem:[%s2053_s7 + $0x480] sm:$0xff]  ;;  %v546_v9 = vld [vmem:[%s2053_s7 + $0x490] sm:$0xff] }
  0x3c   : > { %v548_v10 = vld [vmem:[%s2053_s7 + $0x4a0] sm:$0xff]  ;;  %545 = vst [vmem:[%s2058_s8 + $0x240] sm:$0xff] %v544_v8  ;;  %547 = vst [vmem:[%s2058_s8 + $0x248] sm:$0xff] %v546_v9  ;;  %v550_v11 = vld [vmem:[%s2053_s7 + $0x4b0] sm:$0xff] }
  0x3d   : > { %549 = vst [vmem:[%s2058_s8 + $0x250] sm:$0xff] %v548_v10  ;;  %v552_v12 = vld [vmem:[%s2053_s7 + $0x4c0] sm:$0xff]  ;;  %v554_v13 = vld [vmem:[%s2053_s7 + $0x4d0] sm:$0xff]  ;;  %551 = vst [vmem:[%s2058_s8 + $0x258] sm:$0xff] %v550_v11 }
  0x3e   : > { %553 = vst [vmem:[%s2058_s8 + $0x260] sm:$0xff] %v552_v12  ;;  %555 = vst [vmem:[%s2058_s8 + $0x268] sm:$0xff] %v554_v13  ;;  %v556_v14 = vld [vmem:[%s2053_s7 + $0x4e0] sm:$0xff]  ;;  %v558_v15 = vld [vmem:[%s2053_s7 + $0x4f0] sm:$0xff] }
  0x3f   : > { %v560_v16 = vld [vmem:[%s2053_s7 + $0x500] sm:$0xff]  ;;  %557 = vst [vmem:[%s2058_s8 + $0x270] sm:$0xff] %v556_v14  ;;  %559 = vst [vmem:[%s2058_s8 + $0x278] sm:$0xff] %v558_v15  ;;  %v562_v17 = vld [vmem:[%s2053_s7 + $0x510] sm:$0xff] }
  0x40   : > { %561 = vst [vmem:[%s2058_s8 + $0x280] sm:$0xff] %v560_v16  ;;  %v564_v18 = vld [vmem:[%s2053_s7 + $0x520] sm:$0xff]  ;;  %v566_v19 = vld [vmem:[%s2053_s7 + $0x530] sm:$0xff]  ;;  %563 = vst [vmem:[%s2058_s8 + $0x288] sm:$0xff] %v562_v17 }
  0x41   : > { %565 = vst [vmem:[%s2058_s8 + $0x290] sm:$0xff] %v564_v18  ;;  %567 = vst [vmem:[%s2058_s8 + $0x298] sm:$0xff] %v566_v19  ;;  %v568_v20 = vld [vmem:[%s2053_s7 + $0x540] sm:$0xff]  ;;  %v570_v21 = vld [vmem:[%s2053_s7 + $0x550] sm:$0xff] }
  0x42   : > { %v572_v22 = vld [vmem:[%s2053_s7 + $0x560] sm:$0xff]  ;;  %569 = vst [vmem:[%s2058_s8 + $0x2a0] sm:$0xff] %v568_v20  ;;  %571 = vst [vmem:[%s2058_s8 + $0x2a8] sm:$0xff] %v570_v21  ;;  %v574_v23 = vld [vmem:[%s2053_s7 + $0x570] sm:$0xff] }
  0x43   : > { %573 = vst [vmem:[%s2058_s8 + $0x2b0] sm:$0xff] %v572_v22  ;;  %v576_v24 = vld [vmem:[%s2053_s7 + $0x580] sm:$0xff]  ;;  %v578_v25 = vld [vmem:[%s2053_s7 + $0x590] sm:$0xff]  ;;  %575 = vst [vmem:[%s2058_s8 + $0x2b8] sm:$0xff] %v574_v23 }
  0x44   : > { %577 = vst [vmem:[%s2058_s8 + $0x2c0] sm:$0xff] %v576_v24  ;;  %579 = vst [vmem:[%s2058_s8 + $0x2c8] sm:$0xff] %v578_v25  ;;  %v580_v26 = vld [vmem:[%s2053_s7 + $0x5a0] sm:$0xff]  ;;  %v582_v27 = vld [vmem:[%s2053_s7 + $0x5b0] sm:$0xff] }
  0x45   : > { %v584_v28 = vld [vmem:[%s2053_s7 + $0x5c0] sm:$0xff]  ;;  %581 = vst [vmem:[%s2058_s8 + $0x2d0] sm:$0xff] %v580_v26  ;;  %583 = vst [vmem:[%s2058_s8 + $0x2d8] sm:$0xff] %v582_v27  ;;  %v586_v29 = vld [vmem:[%s2053_s7 + $0x5d0] sm:$0xff] }
  0x46   : > { %585 = vst [vmem:[%s2058_s8 + $0x2e0] sm:$0xff] %v584_v28  ;;  %v588_v30 = vld [vmem:[%s2053_s7 + $0x5e0] sm:$0xff]  ;;  %v590_v31 = vld [vmem:[%s2053_s7 + $0x5f0] sm:$0xff]  ;;  %587 = vst [vmem:[%s2058_s8 + $0x2e8] sm:$0xff] %v586_v29 }
  0x47   : > { %589 = vst [vmem:[%s2058_s8 + $0x2f0] sm:$0xff] %v588_v30  ;;  %591 = vst [vmem:[%s2058_s8 + $0x2f8] sm:$0xff] %v590_v31 }
  0x48 PF: > { %p1603_p7 = scmp.ge.s32.totalorder %s1968_s18, 1  ;;  %p604_p8 = scmp.lt.s32.totalorder %s1968_s18, 7 }
  0x4a   : > { %p605_p9 = pnand %p1603_p7, %p604_p8 }
  0x4b   : > { %s611_s9 = sand.u32 (!%p605_p9), 1, %s1944_s12   ;;  %s650_s10 = smul.u32 (!%p605_p9), 6, %s1952_s14 }
  0x4c   : > { %608 = sbr.rel (%p605_p9) target bundleno = 436 (0x1b4), region = 66  ;;  %s1604_s21 = sshll.u32 (!%p605_p9), %s1956_s15, 1 }
  0x4d   : > { %s1709_s11 = smul.u32 (!%p605_p9), 768, %s611_s9  ;;  %p653_p10 = scmp.lt.s32.totalorder (!%p605_p9), %s650_s10, 17 }
  0x4e   : > { %p662_p11 = scmp.lt.s32.totalorder (!%p605_p9), %s1604_s21, 3  ;;  %p1607_p12 = scmp.ne.s32.totalorder (!%p605_p9), %s1952_s14, 0 }
  0x4f   : > { %s2272_s4 = scalar_lea.vmem (!%p605_p9), [#allocation3], %s1709_s11 }
  0x51   : > { %s2443_s10 = smov (!%p653_p10, %s650_s10), 17  ;;  %s2445_s21 = smov (!%p662_p11, %s1604_s21), 3 }
  0x52   : > { %s657_s24 = scalar_lea.vmem %s2426_s0, %s2443_s10  ;;  %s664_s12 = scalar_lea.vmem %s2428_s2, %s2445_s21 }
  0x53   : > { %s1606_s28 = sshll.u32 %s2445_s21, 1  ;;  %679 = sbr.rel (%p1607_p12) target bundleno = 90 (0x5a), region = 74 }
  0x54   : > { %s2270_s30 = scalar_lea.vmem %s2429_s3, %s1606_s28 }
  0x58   : > { %v1970_v32 = vmov 0.0  }
  0x59   : > { %680 = vst [vmem:[#allocation2] sm:$0xf] %v1970_v32 }
  0x5a PF: > { %v1769_v33 = vld [vmem:[%s2272_s4 + $0x74] ss:$8 sps:$4 sm:$0xff]   ;;  %v1773_v35 = vld [vmem:[%s2272_s4 + $0x70] ss:$8 sps:$4 sm:$0xff]   ;;  %v1775_v37 = vld [vmem:[%s2272_s4 + $0x64] ss:$8 sps:$4 sm:$0xff]   ;;  %v784_v7 = vlaneseq }
  0x5b   : > { %v1771_v34 = vld [vmem:[%s2272_s4 + $0x174] ss:$8 sps:$4 sm:$0xff]   ;;  %1313 = vmatprep.subr.bf16.mxu0 %v1769_v33  ;;  %v1774_v36 = vld [vmem:[%s2272_s4 + $0x170] ss:$8 sps:$4 sm:$0xff]   ;;  %v1777_v38 = vld [vmem:[%s2272_s4 + $0x164] ss:$8 sps:$4 sm:$0xff]  }
  0x5c   : > { %1354 = vmatprep.subr.bf16.mxu1 %v1771_v34  ;;  %1314 = vmatpush1.bf16.msra.mxu0 %v1773_v35  ;;  %v1779_v39 = vld [vmem:[%s2272_s4 + $0x60] ss:$8 sps:$4 sm:$0xff]   ;;  %v1781_v41 = vld [vmem:[%s2272_s4 + $0x54] ss:$8 sps:$4 sm:$0xff]   ;;  %v1785_v43 = vld [vmem:[%s2272_s4 + $0x50] ss:$8 sps:$4 sm:$0xff]  }
  0x5d   : > { %1355 = vmatpush1.bf16.msra.mxu1 %v1774_v36  ;;  %1315 = vmatprep.subr.bf16.mxu0 %v1775_v37  ;;  %v1780_v40 = vld [vmem:[%s2272_s4 + $0x160] ss:$8 sps:$4 sm:$0xff]   ;;  %v1783_v42 = vld [vmem:[%s2272_s4 + $0x154] ss:$8 sps:$4 sm:$0xff]   ;;  %v1786_v44 = vld [vmem:[%s2272_s4 + $0x150] ss:$8 sps:$4 sm:$0xff]  }
  0x5e   : > { %1356 = vmatprep.subr.bf16.mxu1 %v1777_v38  ;;  %v1787_v45 = vld [vmem:[%s2272_s4 + $0x44] ss:$8 sps:$4 sm:$0xff]   ;;  %v1791_v47 = vld [vmem:[%s2272_s4 + $0x40] ss:$8 sps:$4 sm:$0xff]   ;;  %v1793_v49 = vld [vmem:[%s2272_s4 + $0x34] ss:$8 sps:$4 sm:$0xff]  }
  0x5f   : > { %v1789_v46 = vld [vmem:[%s2272_s4 + $0x144] ss:$8 sps:$4 sm:$0xff]   ;;  %v1792_v48 = vld [vmem:[%s2272_s4 + $0x140] ss:$8 sps:$4 sm:$0xff]   ;;  %v1795_v50 = vld [vmem:[%s2272_s4 + $0x134] ss:$8 sps:$4 sm:$0xff]  }
  0x60   : > { %1316 = vmatpush1.bf16.msra.mxu0 %v1779_v39  ;;  %v1797_v51 = vld [vmem:[%s2272_s4 + $0x30] ss:$8 sps:$4 sm:$0xff]   ;;  %v1799_v53 = vld [vmem:[%s2272_s4 + $0x24] ss:$8 sps:$4 sm:$0xff]   ;;  %v1803_v55 = vld [vmem:[%s2272_s4 + $0x20] ss:$8 sps:$4 sm:$0xff]  }
  0x61   : > { %1357 = vmatpush1.bf16.msra.mxu1 %v1780_v40  ;;  %1317 = vmatprep.subr.bf16.mxu0 %v1781_v41  ;;  %v1798_v52 = vld [vmem:[%s2272_s4 + $0x130] ss:$8 sps:$4 sm:$0xff]   ;;  %v1801_v54 = vld [vmem:[%s2272_s4 + $0x124] ss:$8 sps:$4 sm:$0xff]   ;;  %v1804_v56 = vld [vmem:[%s2272_s4 + $0x120] ss:$8 sps:$4 sm:$0xff]  }
  0x62   : > { %1358 = vmatprep.subr.bf16.mxu1 %v1783_v42  ;;  %v1805_v57 = vld [vmem:[%s2272_s4 + $0x14] ss:$8 sps:$4 sm:$0xff]   ;;  %v1809_v59 = vld [vmem:[%s2272_s4 + $0x10] ss:$8 sps:$4 sm:$0xff]   ;;  %v1811_v61 = vld [vmem:[%s2272_s4 + $0x4] ss:$8 sps:$4 sm:$0xff]  }
  0x63   : > { %v1807_v58 = vld [vmem:[%s2272_s4 + $0x114] ss:$8 sps:$4 sm:$0xff]   ;;  %v1810_v60 = vld [vmem:[%s2272_s4 + $0x110] ss:$8 sps:$4 sm:$0xff]   ;;  %v1813_v62 = vld [vmem:[%s2272_s4 + $0x104] ss:$8 sps:$4 sm:$0xff]  }
  0x64   : > { %1318 = vmatpush1.bf16.msra.mxu0 %v1785_v43  ;;  %v1815_v63 = vld [vmem:[%s2272_s4] ss:$8 sps:$4 sm:$0xff]   ;;  %v1817_v1 = vld [vmem:[%s2272_s4 + $0xf4] ss:$8 sps:$4 sm:$0xff]   ;;  %v1821_v3 = vld [vmem:[%s2272_s4 + $0xf0] ss:$8 sps:$4 sm:$0xff]  }
  0x65   : > { %1359 = vmatpush1.bf16.msra.mxu1 %v1786_v44  ;;  %1319 = vmatprep.subr.bf16.mxu0 %v1787_v45  ;;  %v1816_v0 = vld [vmem:[%s2272_s4 + $0x100] ss:$8 sps:$4 sm:$0xff]   ;;  %v1819_v2 = vld [vmem:[%s2272_s4 + $0x1f4] ss:$8 sps:$4 sm:$0xff]   ;;  %v1822_v4 = vld [vmem:[%s2272_s4 + $0x1f0] ss:$8 sps:$4 sm:$0xff]  }
  0x66   : > { %1360 = vmatprep.subr.bf16.mxu1 %v1789_v46  ;;  %v1971_v5 = vmov 1966171168   ;;  %v1823_v8 = vld [vmem:[%s2272_s4 + $0xe4] ss:$8 sps:$4 sm:$0xff]   ;;  %v1827_v10 = vld [vmem:[%s2272_s4 + $0xe0] ss:$8 sps:$4 sm:$0xff]  }
  0x67   : > { %v782_v6 = vunpack.c.l.s4 %v1971_v5  ;;  %v1825_v9 = vld [vmem:[%s2272_s4 + $0x1e4] ss:$8 sps:$4 sm:$0xff]   ;;  %v2314_v12 = vshrl.u32 %v784_v7, 7  ;;  %v1828_v13 = vld [vmem:[%s2272_s4 + $0x1e0] ss:$8 sps:$4 sm:$0xff]   ;;  %p1704_p13 = scmp.ne.s32.totalorder %s1952_s14, 2 }
  0x68   : > { %1320 = vmatpush1.bf16.msra.mxu0 %v1791_v47  ;;  %v1829_v14 = vld [vmem:[%s2272_s4 + $0xd4] ss:$8 sps:$4 sm:$0xff]   ;;  %v1833_v16 = vld [vmem:[%s2272_s4 + $0xd0] ss:$8 sps:$4 sm:$0xff]   ;;  %v1835_v19 = vld [vmem:[%s2272_s4 + $0xc4] ss:$8 sps:$4 sm:$0xff]  }
  0x69   : > { %1361 = vmatpush1.bf16.msra.mxu1 %v1792_v48  ;;  %1321 = vmatprep.subr.bf16.mxu0 %v1793_v49  ;;  %v783_v11 = vunpack.c.0.s8 %v782_v6  ;;  %v1831_v15 = vld [vmem:[%s2272_s4 + $0x1d4] ss:$8 sps:$4 sm:$0xff]   ;;  %v1834_v17 = vld [vmem:[%s2272_s4 + $0x1d0] ss:$8 sps:$4 sm:$0xff]   ;;  %v1837_v20 = vld [vmem:[%s2272_s4 + $0x1c4] ss:$8 sps:$4 sm:$0xff]  }
  0x6a   : > { %1362 = vmatprep.subr.bf16.mxu1 %v1795_v50  ;;  %v682_v21 = vld [vmem:[%s657_s24] sm:$0x3f]  ;;  %v1845_v30 = vld [vmem:[%s2272_s4 + $0xb0] ss:$8 sps:$4 sm:$0xff]   ;;  %v1847_v34 = vld [vmem:[%s2272_s4 + $0xa4] ss:$8 sps:$4 sm:$0xff]  }
  0x6b   : > { %v2322_v18 = vsub.s32 %v783_v11, %v2314_v12  ;;  %v1839_v22 = vld [vmem:[%s2272_s4 + $0xc0] ss:$8 sps:$4 sm:$0xff]   ;;  %v780_v23 = vcombine.high %v682_v21, %v682_v21  ;;  %v1841_v26 = vld [vmem:[%s2272_s4 + $0xb4] ss:$8 sps:$4 sm:$0xff]   ;;  %v1846_v33 = vld [vmem:[%s2272_s4 + $0x1b0] ss:$8 sps:$4 sm:$0xff]  }
  0x6c   : > { %1322 = vmatpush1.bf16.msra.mxu0 %v1797_v51  ;;  %v1840_v25 = vld [vmem:[%s2272_s4 + $0x1c0] ss:$8 sps:$4 sm:$0xff]   ;;  %v1843_v27 = vld [vmem:[%s2272_s4 + $0x1b4] ss:$8 sps:$4 sm:$0xff]   ;;  %v1849_v35 = vld [vmem:[%s2272_s4 + $0x1a4] ss:$8 sps:$4 sm:$0xff]  }
  0x6d   : > { %1363 = vmatpush1.bf16.msra.mxu1 %v1798_v52  ;;  %1323 = vmatprep.subr.bf16.mxu0 %v1799_v53  ;;  %v787_v24 = vrot.slane %v682_v21, %v2322_v18  ;;  %v2337_v29 = vrot.slane %v780_v23, %v2322_v18  ;;  %v1851_v37 = vld [vmem:[%s2272_s4 + $0xa0] ss:$8 sps:$4 sm:$0xff]   ;;  %v1853_v39 = vld [vmem:[%s2272_s4 + $0x94] ss:$8 sps:$4 sm:$0xff]   ;;  %v1857_v41 = vld [vmem:[%s2272_s4 + $0x90] ss:$8 sps:$4 sm:$0xff]  }
  0x6e   : > { %1364 = vmatprep.subr.bf16.mxu1 %v1801_v54  ;;  %v1852_v38 = vld [vmem:[%s2272_s4 + $0x1a0] ss:$8 sps:$4 sm:$0xff]   ;;  %v1855_v40 = vld [vmem:[%s2272_s4 + $0x194] ss:$8 sps:$4 sm:$0xff]   ;;  %v1858_v42 = vld [vmem:[%s2272_s4 + $0x190] ss:$8 sps:$4 sm:$0xff]  }
  0x6f   : > { %v795_v28 = vcombine.high %v787_v24, %v787_v24  ;;  %v810_v32 = vrot.slane %v2337_v29, %v2322_v18  ;;  %v1859_v43 = vld [vmem:[%s2272_s4 + $0x84] ss:$8 sps:$4 sm:$0xff]   ;;  %v1863_v45 = vld [vmem:[%s2272_s4 + $0x80] ss:$8 sps:$4 sm:$0xff]   ;;  %v803_v46 = vrot.slane %v787_v24, %v2322_v18  ;;  %v796_v48 = vcombine.high %v2337_v29, %v2337_v29  ;;  %v1868_v49 = vld [vmem:[%s2272_s4 + $0x274] ss:$8 sps:$4 sm:$0xff]  }
  0x70   : > { %1324 = vmatpush1.bf16.msra.mxu0 %v1803_v55  ;;  %v1861_v44 = vld [vmem:[%s2272_s4 + $0x184] ss:$8 sps:$4 sm:$0xff]   ;;  %v1864_v47 = vld [vmem:[%s2272_s4 + $0x180] ss:$8 sps:$4 sm:$0xff]   ;;  %v1866_v51 = vld [vmem:[%s2272_s4 + $0x270] ss:$8 sps:$4 sm:$0xff]  }
  0x71   : > { %1365 = vmatpush1.bf16.msra.mxu1 %v1804_v56  ;;  %1325 = vmatprep.subr.bf16.mxu0 %v1805_v57  ;;  %v817_v31 = vrot.slane %v795_v28, %v2322_v18  ;;  %v825_v50 = vcombine.high %v803_v46, %v803_v46  ;;  %v824_v52 = vrot.slane %v796_v48, %v2322_v18  ;;  %v1871_v53 = vld [vmem:[%s2272_s4 + $0x264] ss:$8 sps:$4 sm:$0xff]   ;;  %v1869_v54 = vld [vmem:[%s2272_s4 + $0x260] ss:$8 sps:$4 sm:$0xff]   ;;  %v1874_v55 = vld [vmem:[%s2272_s4 + $0x254] ss:$8 sps:$4 sm:$0xff]  }
  0x72   : > { %1366 = vmatprep.subr.bf16.mxu1 %v1807_v58  ;;  %v1872_v56 = vld [vmem:[%s2272_s4 + $0x250] ss:$8 sps:$4 sm:$0xff]   ;;  %v1877_v57 = vld [vmem:[%s2272_s4 + $0x244] ss:$8 sps:$4 sm:$0xff]   ;;  %v1875_v58 = vld [vmem:[%s2272_s4 + $0x240] ss:$8 sps:$4 sm:$0xff]  }
  0x73   : > { %v826_v36 = vcombine.high %v817_v31, %v817_v31  ;;  %1345 = vmatprep.mubr.bf16.mxu0 %v817_v31  ;;  %v1895_v5 = vld [vmem:[%s2272_s4 + $0x2e4] ss:$8 sps:$4 sm:$0xff]   ;;  %v1893_v6 = vld [vmem:[%s2272_s4 + $0x2e0] ss:$8 sps:$4 sm:$0xff]   ;;  %v1898_v7 = vld [vmem:[%s2272_s4 + $0x2d4] ss:$8 sps:$4 sm:$0xff]  }
  0x74   : > { %1326 = vmatpush1.bf16.msra.mxu0 %v1809_v59  ;;  %v1880_v59 = vld [vmem:[%s2272_s4 + $0x234] ss:$8 sps:$4 sm:$0xff]   ;;  %v1972_v31 = vmov 1983009808  }
  0x75   : > { %1367 = vmatpush1.bf16.msra.mxu1 %v1810_v60  ;;  %1327 = vmatprep.subr.bf16.mxu0 %v1811_v61  ;;  %v1878_v60 = vld [vmem:[%s2272_s4 + $0x230] ss:$8 sps:$4 sm:$0xff]   ;;  %v1883_v61 = vld [vmem:[%s2272_s4 + $0x224] ss:$8 sps:$4 sm:$0xff]   ;;  %v1904_v11 = vld [vmem:[%s2272_s4 + $0x2b4] ss:$8 sps:$4 sm:$0xff]  }
  0x76   : > { %1368 = vmatprep.subr.bf16.mxu1 %v1813_v62  ;;  %1386 = vmatprep.mubr.bf16.mxu1 %v826_v36  ;;  %v1881_v62 = vld [vmem:[%s2272_s4 + $0x220] ss:$8 sps:$4 sm:$0xff]  }
  0x78   : > { %1328 = vmatpush1.bf16.msra.mxu0 %v1815_v63  ;;  %v1886_v63 = vld [vmem:[%s2272_s4 + $0x214] ss:$8 sps:$4 sm:$0xff]  }
  0x79   : > { %1369 = vmatpush1.bf16.msra.mxu1 %v1816_v0  ;;  %1329 = vmatprep.subr.bf16.mxu0 %v1817_v1  ;;  %v1884_v0 = vld [vmem:[%s2272_s4 + $0x210] ss:$8 sps:$4 sm:$0xff]   ;;  %v1889_v1 = vld [vmem:[%s2272_s4 + $0x204] ss:$8 sps:$4 sm:$0xff]  }
  0x7a   : > { %1370 = vmatprep.subr.bf16.mxu1 %v1819_v2  ;;  %v1887_v2 = vld [vmem:[%s2272_s4 + $0x200] ss:$8 sps:$4 sm:$0xff]  }
  0x7c   : > { %1330 = vmatpush2.bf16.msra.mxu0 %v1821_v3  ;;  %v1892_v3 = vld [vmem:[%s2272_s4 + $0x2f4] ss:$8 sps:$4 sm:$0xff]  }
  0x7d   : > { %1371 = vmatpush2.bf16.msra.mxu1 %v1822_v4  ;;  %1331 = vmatprep.subr.bf16.mxu0 %v1823_v8  ;;  %v1890_v4 = vld [vmem:[%s2272_s4 + $0x2f0] ss:$8 sps:$4 sm:$0xff]  }
  0x7e   : > { %1372 = vmatprep.subr.bf16.mxu1 %v1825_v9  ;;  %v1896_v8 = vld [vmem:[%s2272_s4 + $0x2d0] ss:$8 sps:$4 sm:$0xff]   ;;  %v1901_v9 = vld [vmem:[%s2272_s4 + $0x2c4] ss:$8 sps:$4 sm:$0xff]  }
  0x80   : > { %1332 = vmatpush2.bf16.msra.mxu0 %v1827_v10  ;;  %v1899_v10 = vld [vmem:[%s2272_s4 + $0x2c0] ss:$8 sps:$4 sm:$0xff]  }
  0x81   : > { %1373 = vmatpush2.bf16.msra.mxu1 %v1828_v13  ;;  %1333 = vmatprep.subr.bf16.mxu0 %v1829_v14  ;;  %v1902_v13 = vld [vmem:[%s2272_s4 + $0x2b0] ss:$8 sps:$4 sm:$0xff]   ;;  %v1907_v14 = vld [vmem:[%s2272_s4 + $0x2a4] ss:$8 sps:$4 sm:$0xff]  }
  0x82   : > { %1374 = vmatprep.subr.bf16.mxu1 %v1831_v15  ;;  %v1905_v15 = vld [vmem:[%s2272_s4 + $0x2a0] ss:$8 sps:$4 sm:$0xff]  }
  0x84   : > { %1334 = vmatpush2.bf16.msra.mxu0 %v1833_v16  ;;  %v1910_v16 = vld [vmem:[%s2272_s4 + $0x294] ss:$8 sps:$4 sm:$0xff]  }
  0x85   : > { %1375 = vmatpush2.bf16.msra.mxu1 %v1834_v17  ;;  %1335 = vmatprep.subr.bf16.mxu0 %v1835_v19  ;;  %v1908_v17 = vld [vmem:[%s2272_s4 + $0x290] ss:$8 sps:$4 sm:$0xff]   ;;  %v1913_v19 = vld [vmem:[%s2272_s4 + $0x284] ss:$8 sps:$4 sm:$0xff]  }
  0x86   : > { %1376 = vmatprep.subr.bf16.mxu1 %v1837_v20  ;;  %v1911_v20 = vld [vmem:[%s2272_s4 + $0x280] ss:$8 sps:$4 sm:$0xff]  }
  0x88   : > { %1336 = vmatpush2.bf16.msra.mxu0 %v1839_v22 }
  0x89   : > { %1377 = vmatpush2.bf16.msra.mxu1 %v1840_v25  ;;  %1337 = vmatprep.subr.bf16.mxu0 %v1841_v26 }
  0x8a   : > { %1378 = vmatprep.subr.bf16.mxu1 %v1843_v27 }
  0x8c   : > { %1338 = vmatpush2.bf16.msra.mxu0 %v1845_v30 }
  0x8d   : > { %1379 = vmatpush2.bf16.msra.mxu1 %v1846_v33  ;;  %1339 = vmatprep.subr.bf16.mxu0 %v1847_v34  ;;  %v1440_v33 = vunpack.c.l.s4 %v1972_v31 }
  0x8e   : > { %1380 = vmatprep.subr.bf16.mxu1 %v1849_v35 }
  0x8f   : > { %v1441_v34 = vunpack.c.0.s8 %v1440_v33 }
  0x90   : > { %1340 = vmatpush2.bf16.msra.mxu0 %v1851_v37 }
  0x91   : > { %1381 = vmatpush2.bf16.msra.mxu1 %v1852_v38  ;;  %1341 = vmatprep.subr.bf16.mxu0 %v1853_v39  ;;  %v1444_v18 = vsub.s32 %v1441_v34, %v2314_v12 }
  0x92   : > { %1382 = vmatprep.subr.bf16.mxu1 %v1855_v40  ;;  %v681_v40 = vld [vmem:[#allocation2] sm:$0xf] }
  0x94   : > { %1342 = vmatpush2.bf16.msra.mxu0 %v1857_v41 }
  0x95   : > { %1383 = vmatpush2.bf16.msra.mxu1 %v1858_v42  ;;  %1343 = vmatprep.subr.bf16.mxu0 %v1859_v43 }
  0x96   : > { %1384 = vmatprep.subr.bf16.mxu1 %v1861_v44 }
  0x98   : > { %1344 = vmatpush2.bf16.msra.mxu0 %v1863_v45 }
  0x99   : > { %1385 = vmatpush2.bf16.msra.mxu1 %v1864_v47  ;;  %1395 = vmatprep.subr.bf16.mxu0 %v1868_v49 }
  0x9b   : > { %1346 = vmatmul.mubr.bf16.vlgmr.msra.gmra.mxu0 %v803_v46 }
  0x9c   : > { %1387 = vmatmul.mubr.bf16.vlgmr.msra.gmra.mxu1 %v825_v50  ;;  %1396 = vmatpush1.bf16.msra.mxu0 %v1866_v51 }
  0x9d   : > { %1427 = vmatprep.mubr.bf16.mxu0 %v824_v52  ;;  %1397 = vmatprep.subr.bf16.mxu0 %v1871_v53 }
  0xa0   : > { %1398 = vmatpush1.bf16.msra.mxu0 %v1869_v54 }
  0xa1   : > { %1399 = vmatprep.subr.bf16.mxu0 %v1874_v55 }
  0xa4   : > { %1400 = vmatpush1.bf16.msra.mxu0 %v1872_v56 }
  0xa5   : > { %1401 = vmatprep.subr.bf16.mxu0 %v1877_v57 }
  0xa8   : > { %1402 = vmatpush1.bf16.msra.mxu0 %v1875_v58 }
  0xa9   : > { %1403 = vmatprep.subr.bf16.mxu0 %v1880_v59 }
  0xac   : > { %1404 = vmatpush1.bf16.msra.mxu0 %v1878_v60 }
  0xad   : > { %1405 = vmatprep.subr.bf16.mxu0 %v1883_v61 }
  0xb0   : > { %1406 = vmatpush1.bf16.msra.mxu0 %v1881_v62 }
  0xb1   : > { %1407 = vmatprep.subr.bf16.mxu0 %v1886_v63 }
  0xb4   : > { %1408 = vmatpush1.bf16.msra.mxu0 %v1884_v0 }
  0xb5   : > { %1409 = vmatprep.subr.bf16.mxu0 %v1889_v1 }
  0xb8   : > { %1410 = vmatpush1.bf16.msra.mxu0 %v1887_v2 }
  0xb9   : > { %1411 = vmatprep.subr.bf16.mxu0 %v1892_v3 }
  0xbc   : > { %1412 = vmatpush2.bf16.msra.mxu0 %v1890_v4 }
  0xbd   : > { %1413 = vmatprep.subr.bf16.mxu0 %v1895_v5 }
  0xc0   : > { %1414 = vmatpush2.bf16.msra.mxu0 %v1893_v6 }
  0xc1   : > { %1415 = vmatprep.subr.bf16.mxu0 %v1898_v7 }
  0xc4   : > { %1416 = vmatpush2.bf16.msra.mxu0 %v1896_v8 }
  0xc5   : > { %1417 = vmatprep.subr.bf16.mxu0 %v1901_v9 }
  0xc8   : > { %1418 = vmatpush2.bf16.msra.mxu0 %v1899_v10 }
  0xc9   : > { %1419 = vmatprep.subr.bf16.mxu0 %v1904_v11 }
  0xcc   : > { %1420 = vmatpush2.bf16.msra.mxu0 %v1902_v13 }
  0xcd   : > { %1421 = vmatprep.subr.bf16.mxu0 %v1907_v14 }
  0xd0   : > { %1422 = vmatpush2.bf16.msra.mxu0 %v1905_v15 }
  0xd1   : > { %1423 = vmatprep.subr.bf16.mxu0 %v1910_v16 }
  0xd4   : > { %1424 = vmatpush2.bf16.msra.mxu0 %v1908_v17 }
  0xd5   : > { %1425 = vmatprep.subr.bf16.mxu0 %v1913_v19 }
  0xd8   : > { %1426 = vmatpush2.bf16.msra.mxu0 %v1911_v20 }
  0xdb   : > { %1428 = vmatmul.mubr.bf16.vlgmr.msra.gmra.mxu0 %v810_v32 }
 0x15b   : > { %v1347_v21 = vpop.f32.mrf.mxu0 }
 0x15c   : > { %v1388_v22 = vpop.f32.mrf.mxu1 }
 0x15d   : > { %v1389_v23 = vadd.f32 %v1388_v22, %v1347_v21  ;;  %v1349_v24 = vpop.f32.mrf.mxu0 }
 0x15e   : > { %v1390_v25 = vpop.f32.mrf.mxu1 }
 0x15f   : > { %v1351_v26 = vpop.f32.mrf.mxu0  ;;  %v1391_v36 = vadd.f32 %v1390_v25, %v1349_v24 }
 0x160   : > { %v1392_v27 = vpop.f32.mrf.mxu1 }
 0x161   : > { %v1352_v28 = vpop.f32.mrf.mxu0 }
 0x162   : > { %v1393_v30 = vpop.f32.mrf.mxu1 }
 0x19b   : > { %v1429_v35 = vpop.f32.mrf.mxu0 }
 0x19c   : > { %v1430_v38 = vadd.f32 %v1429_v35, %v1389_v23 }
 0x19d   : > { %v1431_v37 = vpop.f32.mrf.mxu0 }
 0x19e   : > { %v1432_v39 = vadd.f32 %v1431_v37, %v1391_v36 }
 0x19f   : > { %v1433_v29 = vpop.f32.mrf.mxu0 }
 0x1a0   : > { %v1438_v32 = vcombine.low %v1430_v38, %v1432_v39 }
 0x1a1   : > { %v1434_v41 = vpop.f32.mrf.mxu0 }
 0x1a2   : > { %v1445_v42 = vrot.slane %v1438_v32, %v1444_v18  ;;  %1452 = sbr.rel (%p1704_p13) target bundleno = 436 (0x1b4), region = 78 }
 0x1a4   : > { %v1447_v43 = vadd.f32 %v1445_v42, %v681_v40 }
 0x1a6   : > { %1448 = vst [vmem:[#allocation2] sm:$0xf] %v1447_v43 }
 0x1a7   : > { %v1454_v44 = vld [vmem:[%s664_s12] sm:$0x3]  ;;  %v1458_v45 = vsub.s32 0, %v2314_v12  ;;  %v1462_v46 = vsub.s32 1, %v2314_v12 }
 0x1a9   : > { %v1459_v47 = vrot.slane %v1454_v44, %v1458_v45  ;;  %v1463_v48 = vrot.slane %v1454_v44, %v1462_v46 }
 0x1ab   : > { %v1464_v49 = vcombine.low %v1459_v47, %v1463_v48 }
 0x1ad   : > { %v1453_v50 = vld [vmem:[#allocation2] sm:$0xf]  ;;  %v1471_v51 = vrot.slane %v1464_v49, %v1444_v18 }
 0x1af   : > { %v1473_v52 = vadd.f32 %v1471_v51, %v1453_v50 }
 0x1b1   : > { %v1474_v53 = vmax.f32 %v1473_v52, 0.0 }
 0x1b3   : > { %1475 = vst [vmem:[%s2270_s30] sm:$0xf] %v1474_v53 }
 0x1b4 PF: > { %s13_s18 = sadd.s32 1, %s1968_s18   ;;  %s2430_s12 = smov %s1948_s13 }
 0x1b5   : > { %p10_p0 = scmp.ge.s32.totalorder %s13_s18, 8   ;;  %s2431_s13 = smov %s2044_s25 }
 0x1b6   : > { %s2432_s14 = smov %s1960_s16  ;;  %s2433_s15 = smov %s1964_s17 }
 0x1b7   : > { %s2434_s16 = smov %s2437_s19  ;;  %s2435_s17 = smov %s2441_s20 }
 0x1b8   :  { %12 = sbr.rel (!%p10_p0) target bundleno = 4 (0x4), region = 119 }

// kernel: wrap_resnet_forward.41
= control target key start
LH: loop header
LB: loop body
LE: loop exit
PB: predicated region body
PF: predicated region fallthrough
CT: control target
= control target key end

     0   :  { %v99_v30 = vlaneseq  ;;  %v552_v34 = vmov 1966171168   ;;  %s680_s0 = inlined_call_operand.vmem [shape: bf16[2,512], index: 0, kind: input, shape index: {}]   ;;  %s681_s1 = inlined_call_operand.vmem [shape: bf16[512,128], index: 1, kind: input, shape index: {}]   ;;  %s682_s2 = inlined_call_operand.vmem [shape: f32[1,128], index: 2, kind: input, shape index: {}]   ;;  %s683_s3 = inlined_call_operand.hbm [shape: f32[2,128], index: 3, kind: output, shape index: {}]  }
   0x1   :  { %v498_v0 = vld [vmem:[%s681_s1 + $0x78] sm:$0xff]   ;;  %v502_v4 = vld [vmem:[%s681_s1 + $0x70] sm:$0xff]   ;;  %v506_v8 = vld [vmem:[%s681_s1 + $0x68] sm:$0xff]   ;;  %v97_v35 = vunpack.c.l.s4 %v552_v34 }
   0x2   :  { %v499_v1 = vld [vmem:[%s681_s1 + $0xf8] sm:$0xff]   ;;  %451 = vmatprep.subr.bf16.mxu0 %v498_v0  ;;  %v503_v5 = vld [vmem:[%s681_s1 + $0xf0] sm:$0xff]   ;;  %v507_v9 = vld [vmem:[%s681_s1 + $0xe8] sm:$0xff]   ;;  %v100_v36 = vshrl.u32 %v99_v30, 7 }
   0x3   :  { %v500_v2 = vld [vmem:[%s681_s1 + $0x38] sm:$0xff]   ;;  %473 = vmatprep.subr.bf16.mxu1 %v499_v1  ;;  %v504_v6 = vld [vmem:[%s681_s1 + $0x30] sm:$0xff]   ;;  %v508_v10 = vld [vmem:[%s681_s1 + $0x28] sm:$0xff]  }
   0x4   :  { %v501_v3 = vld [vmem:[%s681_s1 + $0xb8] sm:$0xff]   ;;  %452 = vmatpush3.bf16.msra.mxu0 %v500_v2  ;;  %v505_v7 = vld [vmem:[%s681_s1 + $0xb0] sm:$0xff]   ;;  %v509_v11 = vld [vmem:[%s681_s1 + $0xa8] sm:$0xff]  }
   0x5   :  { %474 = vmatpush3.bf16.msra.mxu1 %v501_v3  ;;  %453 = vmatprep.subr.bf16.mxu0 %v502_v4  ;;  %v510_v12 = vld [vmem:[%s681_s1 + $0x60] sm:$0xff]   ;;  %v514_v16 = vld [vmem:[%s681_s1 + $0x58] sm:$0xff]   ;;  %v518_v20 = vld [vmem:[%s681_s1 + $0x50] sm:$0xff]  }
   0x6   :  { %475 = vmatprep.subr.bf16.mxu1 %v503_v5  ;;  %v511_v13 = vld [vmem:[%s681_s1 + $0xe0] sm:$0xff]   ;;  %v515_v17 = vld [vmem:[%s681_s1 + $0xd8] sm:$0xff]   ;;  %v519_v21 = vld [vmem:[%s681_s1 + $0xd0] sm:$0xff]  }
   0x7   :  { %v512_v14 = vld [vmem:[%s681_s1 + $0x20] sm:$0xff]   ;;  %v516_v18 = vld [vmem:[%s681_s1 + $0x18] sm:$0xff]   ;;  %v520_v22 = vld [vmem:[%s681_s1 + $0x10] sm:$0xff]  }
   0x8   :  { %454 = vmatpush3.bf16.msra.mxu0 %v504_v6  ;;  %v513_v15 = vld [vmem:[%s681_s1 + $0xa0] sm:$0xff]   ;;  %v517_v19 = vld [vmem:[%s681_s1 + $0x98] sm:$0xff]   ;;  %v521_v23 = vld [vmem:[%s681_s1 + $0x90] sm:$0xff]  }
   0x9   :  { %476 = vmatpush3.bf16.msra.mxu1 %v505_v7  ;;  %455 = vmatprep.subr.bf16.mxu0 %v506_v8  ;;  %v522_v24 = vld [vmem:[%s681_s1 + $0x48] sm:$0xff]   ;;  %v526_v28 = vld [vmem:[%s681_s1 + $0x40] sm:$0xff]  }
   0xa   :  { %477 = vmatprep.subr.bf16.mxu1 %v507_v9  ;;  %v523_v25 = vld [vmem:[%s681_s1 + $0xc8] sm:$0xff]   ;;  %v527_v29 = vld [vmem:[%s681_s1 + $0xc0] sm:$0xff]  }
   0xb   :  { %v524_v26 = vld [vmem:[%s681_s1 + $0x8] sm:$0xff]   ;;  %v528_v31 = vld [vmem:[%s681_s1] sm:$0xff]  }
   0xc   :  { %456 = vmatpush3.bf16.msra.mxu0 %v508_v10  ;;  %v525_v27 = vld [vmem:[%s681_s1 + $0x88] sm:$0xff]   ;;  %v529_v32 = vld [vmem:[%s681_s1 + $0x80] sm:$0xff]  }
   0xd   :  { %478 = vmatpush3.bf16.msra.mxu1 %v509_v11  ;;  %457 = vmatprep.subr.bf16.mxu0 %v510_v12  ;;  %v417_v33 = vld.sshfl [vmem:[%s680_s0] sm:$0x33 pattern:$0x75316420] }
   0xe   :  { %479 = vmatprep.subr.bf16.mxu1 %v511_v13 }
  0x10   :  { %458 = vmatpush3.bf16.msra.mxu0 %v512_v14 }
  0x11   :  { %480 = vmatpush3.bf16.msra.mxu1 %v513_v15  ;;  %459 = vmatprep.subr.bf16.mxu0 %v514_v16 }
  0x12   :  { %481 = vmatprep.subr.bf16.mxu1 %v515_v17 }
  0x14   :  { %460 = vmatpush3.bf16.msra.mxu0 %v516_v18 }
  0x15   :  { %482 = vmatpush3.bf16.msra.mxu1 %v517_v19  ;;  %461 = vmatprep.subr.bf16.mxu0 %v518_v20 }
  0x16   :  { %483 = vmatprep.subr.bf16.mxu1 %v519_v21 }
  0x18   :  { %462 = vmatpush3.bf16.msra.mxu0 %v520_v22 }
  0x19   :  { %484 = vmatpush3.bf16.msra.mxu1 %v521_v23  ;;  %463 = vmatprep.subr.bf16.mxu0 %v522_v24 }
  0x1a   :  { %485 = vmatprep.subr.bf16.mxu1 %v523_v25 }
  0x1c   :  { %464 = vmatpush3.bf16.msra.mxu0 %v524_v26 }
  0x1d   :  { %486 = vmatpush3.bf16.msra.mxu1 %v525_v27  ;;  %465 = vmatprep.subr.bf16.mxu0 %v526_v28 }
  0x1e   :  { %487 = vmatprep.subr.bf16.mxu1 %v527_v29 }
  0x20   :  { %466 = vmatpush3.bf16.msra.mxu0 %v528_v31 }
  0x21   :  { %488 = vmatpush3.bf16.msra.mxu1 %v529_v32 }
  0x22   :  { %8 = vsyncpa [#allocation4], 0  ;;  %v95_v37 = vcombine.high %v417_v33, %v417_v33  ;;  %v98_v38 = vunpack.c.0.s8 %v97_v35  ;;  %v553_v44 = vmov 0.0   ;;  %v450_v58 = vld [vmem:[%s682_s2] ss:$0 sm:$0xff]  ;;  %s554_s24 = smov [#allocation3]  }
  0x23   :  { %20 = vst [vmem:[#allocation2] sm:$0x3] %v553_v44  ;;  %s409_s25 = sshll.u32 %s554_s24, 4  ;;  %s410_s25 = int_to_ptr.vmem [resolvable:$true] %s409_s25 }
  0x24   :  { %v101_v39 = vsub.s32 %v98_v38, %v100_v36  ;;  %s530_s26 = scalar_lea.vmem %s410_s25, 32  ;;  %p535_p1 = scmp.lt.s32.totalorder %s410_s25, %s410_s25 }
  0x25   :  { %p531_p0 = scmp.ne.s32.totalorder %s410_s25, %s530_s26  ;;  %p536_p2 = scmp.lt.s32.totalorder %s530_s26, %s530_s26 }
  0x26   :  { %v109_v40 = vrot.slane %v95_v37, %v101_v39  ;;  %v102_v41 = vrot.slane %v417_v33, %v101_v39 }
  0x27   :  { %p537_p3 = por %p536_p2, %p535_p1 }
  0x28   :  { %340 = vmatprep.mubr.bf16.mxu0 %v109_v40  ;;  %v111_v42 = vcombine.high %v109_v40, %v109_v40  ;;  %v110_v43 = vcombine.high %v102_v41, %v102_v41 }
  0x29   :  { %341 = vmatmul.mubr.bf16.vlgmr.msra.gmra.mxu0 %v102_v41  ;;  %p538_p4 = pnand %p537_p3, %p531_p0 }
  0x2a   :  { %380 = vmatprep.mubr.bf16.mxu1 %v111_v42  ;;  %v21_v52 = vld [vmem:[#allocation2] sm:$0x3] }
  0x2b   :  { %381 = vmatmul.mubr.bf16.vlgmr.msra.gmra.mxu1 %v110_v43 }
  0xe9   :  { %v467_v45 = vpop.f32.mrf.mxu0 }
  0xeb   :  { %v489_v46 = vpop.f32.mrf.mxu1  ;;  %v468_v47 = vpop.f32.mrf.mxu0 }
  0xec   :  { %v469_v48 = vadd.f32 %v468_v47, %v467_v45 }
  0xed   :  { %v490_v49 = vpop.f32.mrf.mxu1  ;;  %v470_v50 = vpop.f32.mrf.mxu0 }
  0xee   :  { %v491_v51 = vadd.f32 %v490_v49, %v489_v46 }
  0xef   :  { %v492_v53 = vpop.f32.mrf.mxu1  ;;  %v471_v54 = vpop.f32.mrf.mxu0 }
  0xf0   :  { %v383_v55 = vadd.f32 %v491_v51, %v469_v48 }
  0xf1   :  { %v493_v56 = vpop.f32.mrf.mxu1 }
  0xf2   :  { %v388_v57 = vadd.f32 %v383_v55, %v21_v52 }
  0xf4   :  { %389 = vst [vmem:[#allocation2] sm:$0x3] %v388_v57 }
  0xfb   :  { %v393_v59 = vld [vmem:[#allocation2] sm:$0x3] }
  0xfc   :  { %v401_v60 = vadd.f32 %v450_v58, %v393_v59 }
  0xfe   :  { %402 = vst [vmem:[#allocation3] sm:$0x3] %v401_v60 }
  0xff   :  { %541 = shalt.err (!%p538_p4)
}
 0x100   :  { %412 = dma.vmem_to_hbm [thread:$0]  %s410_s25, 32, %s683_s3, [#allocation4]  }
 0x101   :  { %550 = dma.done.wait [#allocation4], 32  }
 0x102   :  { %551 = vsyncadd [#allocation4], 4294967264 }
 0x103   :  { %416 = vsyncpa [#allocation4], 1 }

// kernel: wrap_resnet_forward.38
= control target key start
LH: loop header
LB: loop body
LE: loop exit
PB: predicated region body
PF: predicated region fallthrough
CT: control target
= control target key end

     0   :  { %s2083_s15 = smov 0   ;;  %s2085_s16 = smov 0   ;;  %s2522_s0 = inlined_call_operand.vmem [shape: bf16[2,4608], index: 0, kind: input, shape index: {}]   ;;  %s2523_s1 = inlined_call_operand.vmem [shape: bf16[4608,512], index: 1, kind: input, shape index: {}]   ;;  %s2524_s2 = inlined_call_operand.vmem [shape: f32[1,512], index: 2, kind: input, shape index: {}]   ;;  %s2525_s3 = inlined_call_operand.vmem [shape: f32[2,512], index: 3, kind: input, shape index: {}]   ;;  %s2526_s4 = inlined_call_operand.vmem [shape: f32[2,512], index: 4, kind: output, shape index: {}]  }
   0x1   :  { %s2087_s17 = smov 0   ;;  %s2089_s18 = smov 0  }
   0x2   :  { %s2091_s19 = smov 0   ;;  %s2093_s20 = smov 0  }
   0x3   :  { %s2095_s21 = smov 0  }
   0x4 LB: > { %s26_s22 = sadd.s32 1, %s2045_s19  ;;  %s29_s23 = sadd.s32 1, %s2049_s20  ;;  %s2053_s21 = sphi %s2095_s21, %s14_s21   ;;  %s2049_s20 = sphi %s2093_s20, %s2532_s20   ;;  %s2045_s19 = sphi %s2091_s19, %s2531_s19   ;;  %s2041_s18 = sphi %s2089_s18, %s2530_s18   ;;  %s2037_s17 = sphi %s2087_s17, %s2529_s17   ;;  %s2033_s16 = sphi %s2085_s16, %s2528_s16   ;;  %s2029_s15 = sphi %s2083_s15, %s2527_s15  }
   0x5   : > { %p27_p0 = scmp.ge.s32.totalorder %s26_s22, 6  ;;  %p77_p1 = scmp.ne.s32.totalorder %s2033_s16, %s2029_s15 }
   0x6   : > { %p78_p2 = scmp.eq.s32.totalorder %s2053_s21, 0  ;;  %s70_s27 = sadd.s32 1, %s2033_s16 }
   0x7   : > { %s2534_s22 = smov (%p27_p0, %s26_s22), 0  ;;  %s2536_s23 = smov (!%p27_p0, %s29_s23), %s2049_s20 }
   0x8   : > { %p79_p3 = por %p78_p2, %p77_p1  ;;  %p31_p4 = scmp.ge.s32.totalorder %s2536_s23, 2 }
   0x9   : > { %s65_s24 = ssub.s32 %s2045_s19, %s2534_s22  ;;  %p1682_p6 = scmp.ge.s32.totalorder %s2053_s21, 12 }
   0xa   : > { %s2538_s23 = smov (%p31_p4, %s2536_s23), 0 }
   0xb   : > { %s66_s25 = ssub.s32 %s2049_s20, %s2538_s23  ;;  %185 = sbr.rel (%p1682_p6) target bundleno = 72 (0x48), region = 16 }
   0xc   : > { %s67_s26 = sor.u32 %s66_s25, %s65_s24 }
   0xd   : > { %p68_p5 = scmp.eq.s32.totalorder %s67_s26, 0 }
   0xf   : > { %s2134_s28 = scalar_select %p68_p5, %s2033_s16, %s70_s27  }
  0x10   : > { %200 = sbr.rel (!%p79_p3) target bundleno = 72 (0x48), region = 24  ;;  %s202_s29 = sand.u32 (%p79_p3), 1, %s2033_s16  }
  0x11   : > { %s1793_s30 = smul.u32 (%p79_p3), 768, %s202_s29  ;;  %s1683_s5 = sshll.u32 (%p79_p3), %s2049_s20, 1 }
  0x12   : > { %s1792_s6 = smul.u32 (%p79_p3), 384, %s2045_s19 }
  0x13   : > { %s2148_s12 = scalar_lea.vmem (%p79_p3), [#allocation3], %s1793_s30 }
  0x14   : > { %s208_s7 = sadd.s32 (%p79_p3), %s1792_s6, %s1683_s5 }
  0x15   : > { %s1685_s8 = sshll.u32 %s208_s7, 2 }
  0x16   : > { %s2143_s11 = scalar_lea.vmem %s2523_s1, %s1685_s8 }
  0x17   : > { %v429_v0 = vld [vmem:[%s2143_s11] sm:$0xff]  ;;  %v431_v1 = vld [vmem:[%s2143_s11 + $0x10] sm:$0xff] }
  0x18   : > { %v433_v2 = vld [vmem:[%s2143_s11 + $0x20] sm:$0xff]  ;;  %430 = vst [vmem:[%s2148_s12] sm:$0xff] %v429_v0  ;;  %432 = vst [vmem:[%s2148_s12 + $0x8] sm:$0xff] %v431_v1  ;;  %v435_v3 = vld [vmem:[%s2143_s11 + $0x30] sm:$0xff] }
  0x19   : > { %434 = vst [vmem:[%s2148_s12 + $0x10] sm:$0xff] %v433_v2  ;;  %v437_v4 = vld [vmem:[%s2143_s11 + $0x40] sm:$0xff]  ;;  %v439_v5 = vld [vmem:[%s2143_s11 + $0x50] sm:$0xff]  ;;  %436 = vst [vmem:[%s2148_s12 + $0x18] sm:$0xff] %v435_v3 }
  0x1a   : > { %438 = vst [vmem:[%s2148_s12 + $0x20] sm:$0xff] %v437_v4  ;;  %440 = vst [vmem:[%s2148_s12 + $0x28] sm:$0xff] %v439_v5  ;;  %v441_v6 = vld [vmem:[%s2143_s11 + $0x60] sm:$0xff]  ;;  %v443_v7 = vld [vmem:[%s2143_s11 + $0x70] sm:$0xff] }
  0x1b   : > { %v445_v8 = vld [vmem:[%s2143_s11 + $0x80] sm:$0xff]  ;;  %442 = vst [vmem:[%s2148_s12 + $0x30] sm:$0xff] %v441_v6  ;;  %444 = vst [vmem:[%s2148_s12 + $0x38] sm:$0xff] %v443_v7  ;;  %v447_v9 = vld [vmem:[%s2143_s11 + $0x90] sm:$0xff] }
  0x1c   : > { %446 = vst [vmem:[%s2148_s12 + $0x40] sm:$0xff] %v445_v8  ;;  %v449_v10 = vld [vmem:[%s2143_s11 + $0xa0] sm:$0xff]  ;;  %v451_v11 = vld [vmem:[%s2143_s11 + $0xb0] sm:$0xff]  ;;  %448 = vst [vmem:[%s2148_s12 + $0x48] sm:$0xff] %v447_v9 }
  0x1d   : > { %450 = vst [vmem:[%s2148_s12 + $0x50] sm:$0xff] %v449_v10  ;;  %452 = vst [vmem:[%s2148_s12 + $0x58] sm:$0xff] %v451_v11  ;;  %v453_v12 = vld [vmem:[%s2143_s11 + $0xc0] sm:$0xff]  ;;  %v455_v13 = vld [vmem:[%s2143_s11 + $0xd0] sm:$0xff] }
  0x1e   : > { %v457_v14 = vld [vmem:[%s2143_s11 + $0xe0] sm:$0xff]  ;;  %454 = vst [vmem:[%s2148_s12 + $0x60] sm:$0xff] %v453_v12  ;;  %456 = vst [vmem:[%s2148_s12 + $0x68] sm:$0xff] %v455_v13  ;;  %v459_v15 = vld [vmem:[%s2143_s11 + $0xf0] sm:$0xff] }
  0x1f   : > { %458 = vst [vmem:[%s2148_s12 + $0x70] sm:$0xff] %v457_v14  ;;  %v461_v16 = vld [vmem:[%s2143_s11 + $0x100] sm:$0xff]  ;;  %v463_v17 = vld [vmem:[%s2143_s11 + $0x110] sm:$0xff]  ;;  %460 = vst [vmem:[%s2148_s12 + $0x78] sm:$0xff] %v459_v15 }
  0x20   : > { %462 = vst [vmem:[%s2148_s12 + $0x80] sm:$0xff] %v461_v16  ;;  %464 = vst [vmem:[%s2148_s12 + $0x88] sm:$0xff] %v463_v17  ;;  %v465_v18 = vld [vmem:[%s2143_s11 + $0x120] sm:$0xff]  ;;  %v467_v19 = vld [vmem:[%s2143_s11 + $0x130] sm:$0xff] }
  0x21   : > { %v469_v20 = vld [vmem:[%s2143_s11 + $0x140] sm:$0xff]  ;;  %466 = vst [vmem:[%s2148_s12 + $0x90] sm:$0xff] %v465_v18  ;;  %468 = vst [vmem:[%s2148_s12 + $0x98] sm:$0xff] %v467_v19  ;;  %v471_v21 = vld [vmem:[%s2143_s11 + $0x150] sm:$0xff] }
  0x22   : > { %470 = vst [vmem:[%s2148_s12 + $0xa0] sm:$0xff] %v469_v20  ;;  %v473_v22 = vld [vmem:[%s2143_s11 + $0x160] sm:$0xff]  ;;  %v475_v23 = vld [vmem:[%s2143_s11 + $0x170] sm:$0xff]  ;;  %472 = vst [vmem:[%s2148_s12 + $0xa8] sm:$0xff] %v471_v21 }
  0x23   : > { %474 = vst [vmem:[%s2148_s12 + $0xb0] sm:$0xff] %v473_v22  ;;  %476 = vst [vmem:[%s2148_s12 + $0xb8] sm:$0xff] %v475_v23  ;;  %v477_v24 = vld [vmem:[%s2143_s11 + $0x180] sm:$0xff]  ;;  %v479_v25 = vld [vmem:[%s2143_s11 + $0x190] sm:$0xff] }
  0x24   : > { %v481_v26 = vld [vmem:[%s2143_s11 + $0x1a0] sm:$0xff]  ;;  %478 = vst [vmem:[%s2148_s12 + $0xc0] sm:$0xff] %v477_v24  ;;  %480 = vst [vmem:[%s2148_s12 + $0xc8] sm:$0xff] %v479_v25  ;;  %v483_v27 = vld [vmem:[%s2143_s11 + $0x1b0] sm:$0xff] }
  0x25   : > { %482 = vst [vmem:[%s2148_s12 + $0xd0] sm:$0xff] %v481_v26  ;;  %v485_v28 = vld [vmem:[%s2143_s11 + $0x1c0] sm:$0xff]  ;;  %v487_v29 = vld [vmem:[%s2143_s11 + $0x1d0] sm:$0xff]  ;;  %484 = vst [vmem:[%s2148_s12 + $0xd8] sm:$0xff] %v483_v27 }
  0x26   : > { %486 = vst [vmem:[%s2148_s12 + $0xe0] sm:$0xff] %v485_v28  ;;  %488 = vst [vmem:[%s2148_s12 + $0xe8] sm:$0xff] %v487_v29  ;;  %v489_v30 = vld [vmem:[%s2143_s11 + $0x1e0] sm:$0xff]  ;;  %v491_v31 = vld [vmem:[%s2143_s11 + $0x1f0] sm:$0xff] }
  0x27   : > { %v493_v32 = vld [vmem:[%s2143_s11 + $0x200] sm:$0xff]  ;;  %490 = vst [vmem:[%s2148_s12 + $0xf0] sm:$0xff] %v489_v30  ;;  %492 = vst [vmem:[%s2148_s12 + $0xf8] sm:$0xff] %v491_v31  ;;  %v495_v33 = vld [vmem:[%s2143_s11 + $0x210] sm:$0xff] }
  0x28   : > { %494 = vst [vmem:[%s2148_s12 + $0x100] sm:$0xff] %v493_v32  ;;  %v497_v34 = vld [vmem:[%s2143_s11 + $0x220] sm:$0xff]  ;;  %v499_v35 = vld [vmem:[%s2143_s11 + $0x230] sm:$0xff]  ;;  %496 = vst [vmem:[%s2148_s12 + $0x108] sm:$0xff] %v495_v33 }
  0x29   : > { %498 = vst [vmem:[%s2148_s12 + $0x110] sm:$0xff] %v497_v34  ;;  %500 = vst [vmem:[%s2148_s12 + $0x118] sm:$0xff] %v499_v35  ;;  %v501_v36 = vld [vmem:[%s2143_s11 + $0x240] sm:$0xff]  ;;  %v503_v37 = vld [vmem:[%s2143_s11 + $0x250] sm:$0xff] }
  0x2a   : > { %v505_v38 = vld [vmem:[%s2143_s11 + $0x260] sm:$0xff]  ;;  %502 = vst [vmem:[%s2148_s12 + $0x120] sm:$0xff] %v501_v36  ;;  %504 = vst [vmem:[%s2148_s12 + $0x128] sm:$0xff] %v503_v37  ;;  %v507_v39 = vld [vmem:[%s2143_s11 + $0x270] sm:$0xff] }
  0x2b   : > { %506 = vst [vmem:[%s2148_s12 + $0x130] sm:$0xff] %v505_v38  ;;  %v509_v40 = vld [vmem:[%s2143_s11 + $0x280] sm:$0xff]  ;;  %v511_v41 = vld [vmem:[%s2143_s11 + $0x290] sm:$0xff]  ;;  %508 = vst [vmem:[%s2148_s12 + $0x138] sm:$0xff] %v507_v39 }
  0x2c   : > { %510 = vst [vmem:[%s2148_s12 + $0x140] sm:$0xff] %v509_v40  ;;  %512 = vst [vmem:[%s2148_s12 + $0x148] sm:$0xff] %v511_v41  ;;  %v513_v42 = vld [vmem:[%s2143_s11 + $0x2a0] sm:$0xff]  ;;  %v515_v43 = vld [vmem:[%s2143_s11 + $0x2b0] sm:$0xff] }
  0x2d   : > { %v517_v44 = vld [vmem:[%s2143_s11 + $0x2c0] sm:$0xff]  ;;  %514 = vst [vmem:[%s2148_s12 + $0x150] sm:$0xff] %v513_v42  ;;  %516 = vst [vmem:[%s2148_s12 + $0x158] sm:$0xff] %v515_v43  ;;  %v519_v45 = vld [vmem:[%s2143_s11 + $0x2d0] sm:$0xff] }
  0x2e   : > { %518 = vst [vmem:[%s2148_s12 + $0x160] sm:$0xff] %v517_v44  ;;  %v521_v46 = vld [vmem:[%s2143_s11 + $0x2e0] sm:$0xff]  ;;  %v523_v47 = vld [vmem:[%s2143_s11 + $0x2f0] sm:$0xff]  ;;  %520 = vst [vmem:[%s2148_s12 + $0x168] sm:$0xff] %v519_v45 }
  0x2f   : > { %522 = vst [vmem:[%s2148_s12 + $0x170] sm:$0xff] %v521_v46  ;;  %524 = vst [vmem:[%s2148_s12 + $0x178] sm:$0xff] %v523_v47  ;;  %v525_v48 = vld [vmem:[%s2143_s11 + $0x300] sm:$0xff]  ;;  %v527_v49 = vld [vmem:[%s2143_s11 + $0x310] sm:$0xff] }
  0x30   : > { %v529_v50 = vld [vmem:[%s2143_s11 + $0x320] sm:$0xff]  ;;  %526 = vst [vmem:[%s2148_s12 + $0x180] sm:$0xff] %v525_v48  ;;  %528 = vst [vmem:[%s2148_s12 + $0x188] sm:$0xff] %v527_v49  ;;  %v531_v51 = vld [vmem:[%s2143_s11 + $0x330] sm:$0xff] }
  0x31   : > { %530 = vst [vmem:[%s2148_s12 + $0x190] sm:$0xff] %v529_v50  ;;  %v533_v52 = vld [vmem:[%s2143_s11 + $0x340] sm:$0xff]  ;;  %v535_v53 = vld [vmem:[%s2143_s11 + $0x350] sm:$0xff]  ;;  %532 = vst [vmem:[%s2148_s12 + $0x198] sm:$0xff] %v531_v51 }
  0x32   : > { %534 = vst [vmem:[%s2148_s12 + $0x1a0] sm:$0xff] %v533_v52  ;;  %536 = vst [vmem:[%s2148_s12 + $0x1a8] sm:$0xff] %v535_v53  ;;  %v537_v54 = vld [vmem:[%s2143_s11 + $0x360] sm:$0xff]  ;;  %v539_v55 = vld [vmem:[%s2143_s11 + $0x370] sm:$0xff] }
  0x33   : > { %v541_v56 = vld [vmem:[%s2143_s11 + $0x380] sm:$0xff]  ;;  %538 = vst [vmem:[%s2148_s12 + $0x1b0] sm:$0xff] %v537_v54  ;;  %540 = vst [vmem:[%s2148_s12 + $0x1b8] sm:$0xff] %v539_v55  ;;  %v543_v57 = vld [vmem:[%s2143_s11 + $0x390] sm:$0xff] }
  0x34   : > { %542 = vst [vmem:[%s2148_s12 + $0x1c0] sm:$0xff] %v541_v56  ;;  %v545_v58 = vld [vmem:[%s2143_s11 + $0x3a0] sm:$0xff]  ;;  %v547_v59 = vld [vmem:[%s2143_s11 + $0x3b0] sm:$0xff]  ;;  %544 = vst [vmem:[%s2148_s12 + $0x1c8] sm:$0xff] %v543_v57 }
  0x35   : > { %546 = vst [vmem:[%s2148_s12 + $0x1d0] sm:$0xff] %v545_v58  ;;  %548 = vst [vmem:[%s2148_s12 + $0x1d8] sm:$0xff] %v547_v59  ;;  %v549_v60 = vld [vmem:[%s2143_s11 + $0x3c0] sm:$0xff]  ;;  %v551_v61 = vld [vmem:[%s2143_s11 + $0x3d0] sm:$0xff] }
  0x36   : > { %v553_v62 = vld [vmem:[%s2143_s11 + $0x3e0] sm:$0xff]  ;;  %550 = vst [vmem:[%s2148_s12 + $0x1e0] sm:$0xff] %v549_v60  ;;  %552 = vst [vmem:[%s2148_s12 + $0x1e8] sm:$0xff] %v551_v61  ;;  %v555_v63 = vld [vmem:[%s2143_s11 + $0x3f0] sm:$0xff] }
  0x37   : > { %554 = vst [vmem:[%s2148_s12 + $0x1f0] sm:$0xff] %v553_v62  ;;  %v557_v0 = vld [vmem:[%s2143_s11 + $0x400] sm:$0xff]  ;;  %v559_v1 = vld [vmem:[%s2143_s11 + $0x410] sm:$0xff]  ;;  %556 = vst [vmem:[%s2148_s12 + $0x1f8] sm:$0xff] %v555_v63 }
  0x38   : > { %558 = vst [vmem:[%s2148_s12 + $0x200] sm:$0xff] %v557_v0  ;;  %560 = vst [vmem:[%s2148_s12 + $0x208] sm:$0xff] %v559_v1  ;;  %v561_v2 = vld [vmem:[%s2143_s11 + $0x420] sm:$0xff]  ;;  %v563_v3 = vld [vmem:[%s2143_s11 + $0x430] sm:$0xff] }
  0x39   : > { %v565_v4 = vld [vmem:[%s2143_s11 + $0x440] sm:$0xff]  ;;  %562 = vst [vmem:[%s2148_s12 + $0x210] sm:$0xff] %v561_v2  ;;  %564 = vst [vmem:[%s2148_s12 + $0x218] sm:$0xff] %v563_v3  ;;  %v567_v5 = vld [vmem:[%s2143_s11 + $0x450] sm:$0xff] }
  0x3a   : > { %566 = vst [vmem:[%s2148_s12 + $0x220] sm:$0xff] %v565_v4  ;;  %v569_v6 = vld [vmem:[%s2143_s11 + $0x460] sm:$0xff]  ;;  %v571_v7 = vld [vmem:[%s2143_s11 + $0x470] sm:$0xff]  ;;  %568 = vst [vmem:[%s2148_s12 + $0x228] sm:$0xff] %v567_v5 }
  0x3b   : > { %570 = vst [vmem:[%s2148_s12 + $0x230] sm:$0xff] %v569_v6  ;;  %572 = vst [vmem:[%s2148_s12 + $0x238] sm:$0xff] %v571_v7  ;;  %v573_v8 = vld [vmem:[%s2143_s11 + $0x480] sm:$0xff]  ;;  %v575_v9 = vld [vmem:[%s2143_s11 + $0x490] sm:$0xff] }
  0x3c   : > { %v577_v10 = vld [vmem:[%s2143_s11 + $0x4a0] sm:$0xff]  ;;  %574 = vst [vmem:[%s2148_s12 + $0x240] sm:$0xff] %v573_v8  ;;  %576 = vst [vmem:[%s2148_s12 + $0x248] sm:$0xff] %v575_v9  ;;  %v579_v11 = vld [vmem:[%s2143_s11 + $0x4b0] sm:$0xff] }
  0x3d   : > { %578 = vst [vmem:[%s2148_s12 + $0x250] sm:$0xff] %v577_v10  ;;  %v581_v12 = vld [vmem:[%s2143_s11 + $0x4c0] sm:$0xff]  ;;  %v583_v13 = vld [vmem:[%s2143_s11 + $0x4d0] sm:$0xff]  ;;  %580 = vst [vmem:[%s2148_s12 + $0x258] sm:$0xff] %v579_v11 }
  0x3e   : > { %582 = vst [vmem:[%s2148_s12 + $0x260] sm:$0xff] %v581_v12  ;;  %584 = vst [vmem:[%s2148_s12 + $0x268] sm:$0xff] %v583_v13  ;;  %v585_v14 = vld [vmem:[%s2143_s11 + $0x4e0] sm:$0xff]  ;;  %v587_v15 = vld [vmem:[%s2143_s11 + $0x4f0] sm:$0xff] }
  0x3f   : > { %v589_v16 = vld [vmem:[%s2143_s11 + $0x500] sm:$0xff]  ;;  %586 = vst [vmem:[%s2148_s12 + $0x270] sm:$0xff] %v585_v14  ;;  %588 = vst [vmem:[%s2148_s12 + $0x278] sm:$0xff] %v587_v15  ;;  %v591_v17 = vld [vmem:[%s2143_s11 + $0x510] sm:$0xff] }
  0x40   : > { %590 = vst [vmem:[%s2148_s12 + $0x280] sm:$0xff] %v589_v16  ;;  %v593_v18 = vld [vmem:[%s2143_s11 + $0x520] sm:$0xff]  ;;  %v595_v19 = vld [vmem:[%s2143_s11 + $0x530] sm:$0xff]  ;;  %592 = vst [vmem:[%s2148_s12 + $0x288] sm:$0xff] %v591_v17 }
  0x41   : > { %594 = vst [vmem:[%s2148_s12 + $0x290] sm:$0xff] %v593_v18  ;;  %596 = vst [vmem:[%s2148_s12 + $0x298] sm:$0xff] %v595_v19  ;;  %v597_v20 = vld [vmem:[%s2143_s11 + $0x540] sm:$0xff]  ;;  %v599_v21 = vld [vmem:[%s2143_s11 + $0x550] sm:$0xff] }
  0x42   : > { %v601_v22 = vld [vmem:[%s2143_s11 + $0x560] sm:$0xff]  ;;  %598 = vst [vmem:[%s2148_s12 + $0x2a0] sm:$0xff] %v597_v20  ;;  %600 = vst [vmem:[%s2148_s12 + $0x2a8] sm:$0xff] %v599_v21  ;;  %v603_v23 = vld [vmem:[%s2143_s11 + $0x570] sm:$0xff] }
  0x43   : > { %602 = vst [vmem:[%s2148_s12 + $0x2b0] sm:$0xff] %v601_v22  ;;  %v605_v24 = vld [vmem:[%s2143_s11 + $0x580] sm:$0xff]  ;;  %v607_v25 = vld [vmem:[%s2143_s11 + $0x590] sm:$0xff]  ;;  %604 = vst [vmem:[%s2148_s12 + $0x2b8] sm:$0xff] %v603_v23 }
  0x44   : > { %606 = vst [vmem:[%s2148_s12 + $0x2c0] sm:$0xff] %v605_v24  ;;  %608 = vst [vmem:[%s2148_s12 + $0x2c8] sm:$0xff] %v607_v25  ;;  %v609_v26 = vld [vmem:[%s2143_s11 + $0x5a0] sm:$0xff]  ;;  %v611_v27 = vld [vmem:[%s2143_s11 + $0x5b0] sm:$0xff] }
  0x45   : > { %v613_v28 = vld [vmem:[%s2143_s11 + $0x5c0] sm:$0xff]  ;;  %610 = vst [vmem:[%s2148_s12 + $0x2d0] sm:$0xff] %v609_v26  ;;  %612 = vst [vmem:[%s2148_s12 + $0x2d8] sm:$0xff] %v611_v27  ;;  %v615_v29 = vld [vmem:[%s2143_s11 + $0x5d0] sm:$0xff] }
  0x46   : > { %614 = vst [vmem:[%s2148_s12 + $0x2e0] sm:$0xff] %v613_v28  ;;  %v617_v30 = vld [vmem:[%s2143_s11 + $0x5e0] sm:$0xff]  ;;  %v619_v31 = vld [vmem:[%s2143_s11 + $0x5f0] sm:$0xff]  ;;  %616 = vst [vmem:[%s2148_s12 + $0x2e8] sm:$0xff] %v615_v29 }
  0x47   : > { %618 = vst [vmem:[%s2148_s12 + $0x2f0] sm:$0xff] %v617_v30  ;;  %620 = vst [vmem:[%s2148_s12 + $0x2f8] sm:$0xff] %v619_v31 }
  0x48 PF: > { %p1686_p7 = scmp.ge.s32.totalorder %s2053_s21, 1  ;;  %p646_p8 = scmp.lt.s32.totalorder %s2053_s21, 13 }
  0x4a   : > { %p647_p9 = pnand %p1686_p7, %p646_p8 }
  0x4b   : > { %s653_s13 = sand.u32 (!%p647_p9), 1, %s2029_s15   ;;  %s703_s14 = smul.u32 (!%p647_p9), 6, %s2037_s17 }
  0x4c   : > { %650 = sbr.rel (%p647_p9) target bundleno = 438 (0x1b6), region = 70  ;;  %s1687_s25 = sshll.u32 (!%p647_p9), %s2041_s18, 1 }
  0x4d   : > { %s1794_s24 = smul.u32 (!%p647_p9), 768, %s653_s13  ;;  %p706_p10 = scmp.lt.s32.totalorder (!%p647_p9), %s703_s14, 35 }
  0x4e   : > { %p715_p11 = scmp.lt.s32.totalorder (!%p647_p9), %s1687_s25, 3  ;;  %p1692_p12 = scmp.ne.s32.totalorder (!%p647_p9), %s2037_s17, 0 }
  0x4f   : > { %s2367_s12 = scalar_lea.vmem (!%p647_p9), [#allocation3], %s1794_s24 }
  0x51   : > { %s2540_s14 = smov (!%p706_p10, %s703_s14), 35  ;;  %s2542_s25 = smov (!%p715_p11, %s1687_s25), 3 }
  0x52   : > { %s710_s29 = scalar_lea.vmem %s2522_s0, %s2540_s14  ;;  %s717_s15 = scalar_lea.vmem %s2524_s2, %s2542_s25 }
  0x53   : > { %s1689_s6 = sshll.u32 %s2542_s25, 1  ;;  %742 = sbr.rel (%p1692_p12) target bundleno = 90 (0x5a), region = 78 }
  0x54   : > { %s2360_s8 = scalar_lea.vmem %s2525_s3, %s1689_s6  ;;  %s2365_s11 = scalar_lea.vmem %s2526_s4, %s1689_s6 }
  0x58   : > { %v2055_v32 = vmov 0.0  }
  0x59   : > { %743 = vst [vmem:[#allocation2] sm:$0xf] %v2055_v32 }
  0x5a PF: > { %v1854_v33 = vld [vmem:[%s2367_s12 + $0x74] ss:$8 sps:$4 sm:$0xff]   ;;  %v1858_v35 = vld [vmem:[%s2367_s12 + $0x70] ss:$8 sps:$4 sm:$0xff]   ;;  %v1860_v37 = vld [vmem:[%s2367_s12 + $0x64] ss:$8 sps:$4 sm:$0xff]   ;;  %v847_v7 = vlaneseq }
  0x5b   : > { %v1856_v34 = vld [vmem:[%s2367_s12 + $0x174] ss:$8 sps:$4 sm:$0xff]   ;;  %1376 = vmatprep.subr.bf16.mxu0 %v1854_v33  ;;  %v1859_v36 = vld [vmem:[%s2367_s12 + $0x170] ss:$8 sps:$4 sm:$0xff]   ;;  %v1862_v38 = vld [vmem:[%s2367_s12 + $0x164] ss:$8 sps:$4 sm:$0xff]  }
  0x5c   : > { %1417 = vmatprep.subr.bf16.mxu1 %v1856_v34  ;;  %1377 = vmatpush1.bf16.msra.mxu0 %v1858_v35  ;;  %v1864_v39 = vld [vmem:[%s2367_s12 + $0x60] ss:$8 sps:$4 sm:$0xff]   ;;  %v1866_v41 = vld [vmem:[%s2367_s12 + $0x54] ss:$8 sps:$4 sm:$0xff]   ;;  %v1870_v43 = vld [vmem:[%s2367_s12 + $0x50] ss:$8 sps:$4 sm:$0xff]  }
  0x5d   : > { %1418 = vmatpush1.bf16.msra.mxu1 %v1859_v36  ;;  %1378 = vmatprep.subr.bf16.mxu0 %v1860_v37  ;;  %v1865_v40 = vld [vmem:[%s2367_s12 + $0x160] ss:$8 sps:$4 sm:$0xff]   ;;  %v1868_v42 = vld [vmem:[%s2367_s12 + $0x154] ss:$8 sps:$4 sm:$0xff]   ;;  %v1871_v44 = vld [vmem:[%s2367_s12 + $0x150] ss:$8 sps:$4 sm:$0xff]  }
  0x5e   : > { %1419 = vmatprep.subr.bf16.mxu1 %v1862_v38  ;;  %v1872_v45 = vld [vmem:[%s2367_s12 + $0x44] ss:$8 sps:$4 sm:$0xff]   ;;  %v1876_v47 = vld [vmem:[%s2367_s12 + $0x40] ss:$8 sps:$4 sm:$0xff]   ;;  %v1878_v49 = vld [vmem:[%s2367_s12 + $0x34] ss:$8 sps:$4 sm:$0xff]  }
  0x5f   : > { %v1874_v46 = vld [vmem:[%s2367_s12 + $0x144] ss:$8 sps:$4 sm:$0xff]   ;;  %v1877_v48 = vld [vmem:[%s2367_s12 + $0x140] ss:$8 sps:$4 sm:$0xff]   ;;  %v1880_v50 = vld [vmem:[%s2367_s12 + $0x134] ss:$8 sps:$4 sm:$0xff]  }
  0x60   : > { %1379 = vmatpush1.bf16.msra.mxu0 %v1864_v39  ;;  %v1882_v51 = vld [vmem:[%s2367_s12 + $0x30] ss:$8 sps:$4 sm:$0xff]   ;;  %v1884_v53 = vld [vmem:[%s2367_s12 + $0x24] ss:$8 sps:$4 sm:$0xff]   ;;  %v1888_v55 = vld [vmem:[%s2367_s12 + $0x20] ss:$8 sps:$4 sm:$0xff]  }
  0x61   : > { %1420 = vmatpush1.bf16.msra.mxu1 %v1865_v40  ;;  %1380 = vmatprep.subr.bf16.mxu0 %v1866_v41  ;;  %v1883_v52 = vld [vmem:[%s2367_s12 + $0x130] ss:$8 sps:$4 sm:$0xff]   ;;  %v1886_v54 = vld [vmem:[%s2367_s12 + $0x124] ss:$8 sps:$4 sm:$0xff]   ;;  %v1889_v56 = vld [vmem:[%s2367_s12 + $0x120] ss:$8 sps:$4 sm:$0xff]  }
  0x62   : > { %1421 = vmatprep.subr.bf16.mxu1 %v1868_v42  ;;  %v1890_v57 = vld [vmem:[%s2367_s12 + $0x14] ss:$8 sps:$4 sm:$0xff]   ;;  %v1894_v59 = vld [vmem:[%s2367_s12 + $0x10] ss:$8 sps:$4 sm:$0xff]   ;;  %v1896_v61 = vld [vmem:[%s2367_s12 + $0x4] ss:$8 sps:$4 sm:$0xff]  }
  0x63   : > { %v1892_v58 = vld [vmem:[%s2367_s12 + $0x114] ss:$8 sps:$4 sm:$0xff]   ;;  %v1895_v60 = vld [vmem:[%s2367_s12 + $0x110] ss:$8 sps:$4 sm:$0xff]   ;;  %v1898_v62 = vld [vmem:[%s2367_s12 + $0x104] ss:$8 sps:$4 sm:$0xff]  }
  0x64   : > { %1381 = vmatpush1.bf16.msra.mxu0 %v1870_v43  ;;  %v1900_v63 = vld [vmem:[%s2367_s12] ss:$8 sps:$4 sm:$0xff]   ;;  %v1902_v1 = vld [vmem:[%s2367_s12 + $0xf4] ss:$8 sps:$4 sm:$0xff]   ;;  %v1906_v3 = vld [vmem:[%s2367_s12 + $0xf0] ss:$8 sps:$4 sm:$0xff]  }
  0x65   : > { %1422 = vmatpush1.bf16.msra.mxu1 %v1871_v44  ;;  %1382 = vmatprep.subr.bf16.mxu0 %v1872_v45  ;;  %v1901_v0 = vld [vmem:[%s2367_s12 + $0x100] ss:$8 sps:$4 sm:$0xff]   ;;  %v1904_v2 = vld [vmem:[%s2367_s12 + $0x1f4] ss:$8 sps:$4 sm:$0xff]   ;;  %v1907_v4 = vld [vmem:[%s2367_s12 + $0x1f0] ss:$8 sps:$4 sm:$0xff]  }
  0x66   : > { %1423 = vmatprep.subr.bf16.mxu1 %v1874_v46  ;;  %v2056_v5 = vmov 1966171168   ;;  %v1908_v8 = vld [vmem:[%s2367_s12 + $0xe4] ss:$8 sps:$4 sm:$0xff]   ;;  %v1912_v10 = vld [vmem:[%s2367_s12 + $0xe0] ss:$8 sps:$4 sm:$0xff]  }
  0x67   : > { %v845_v6 = vunpack.c.l.s4 %v2056_v5  ;;  %v1910_v9 = vld [vmem:[%s2367_s12 + $0x1e4] ss:$8 sps:$4 sm:$0xff]   ;;  %v2409_v12 = vshrl.u32 %v847_v7, 7  ;;  %v1913_v13 = vld [vmem:[%s2367_s12 + $0x1e0] ss:$8 sps:$4 sm:$0xff]   ;;  %p1789_p13 = scmp.ne.s32.totalorder %s2037_s17, 5 }
  0x68   : > { %1383 = vmatpush1.bf16.msra.mxu0 %v1876_v47  ;;  %v1914_v14 = vld [vmem:[%s2367_s12 + $0xd4] ss:$8 sps:$4 sm:$0xff]   ;;  %v1918_v16 = vld [vmem:[%s2367_s12 + $0xd0] ss:$8 sps:$4 sm:$0xff]   ;;  %v1920_v19 = vld [vmem:[%s2367_s12 + $0xc4] ss:$8 sps:$4 sm:$0xff]  }
  0x69   : > { %1424 = vmatpush1.bf16.msra.mxu1 %v1877_v48  ;;  %1384 = vmatprep.subr.bf16.mxu0 %v1878_v49  ;;  %v846_v11 = vunpack.c.0.s8 %v845_v6  ;;  %v1916_v15 = vld [vmem:[%s2367_s12 + $0x1d4] ss:$8 sps:$4 sm:$0xff]   ;;  %v1919_v17 = vld [vmem:[%s2367_s12 + $0x1d0] ss:$8 sps:$4 sm:$0xff]   ;;  %v1922_v20 = vld [vmem:[%s2367_s12 + $0x1c4] ss:$8 sps:$4 sm:$0xff]  }
  0x6a   : > { %1425 = vmatprep.subr.bf16.mxu1 %v1880_v50  ;;  %v745_v21 = vld [vmem:[%s710_s29] sm:$0x3f]  ;;  %v1930_v30 = vld [vmem:[%s2367_s12 + $0xb0] ss:$8 sps:$4 sm:$0xff]   ;;  %v1932_v34 = vld [vmem:[%s2367_s12 + $0xa4] ss:$8 sps:$4 sm:$0xff]  }
  0x6b   : > { %v2417_v18 = vsub.s32 %v846_v11, %v2409_v12  ;;  %v1924_v22 = vld [vmem:[%s2367_s12 + $0xc0] ss:$8 sps:$4 sm:$0xff]   ;;  %v843_v23 = vcombine.high %v745_v21, %v745_v21  ;;  %v1926_v26 = vld [vmem:[%s2367_s12 + $0xb4] ss:$8 sps:$4 sm:$0xff]   ;;  %v1931_v33 = vld [vmem:[%s2367_s12 + $0x1b0] ss:$8 sps:$4 sm:$0xff]  }
  0x6c   : > { %1385 = vmatpush1.bf16.msra.mxu0 %v1882_v51  ;;  %v1925_v25 = vld [vmem:[%s2367_s12 + $0x1c0] ss:$8 sps:$4 sm:$0xff]   ;;  %v1928_v27 = vld [vmem:[%s2367_s12 + $0x1b4] ss:$8 sps:$4 sm:$0xff]   ;;  %v1934_v35 = vld [vmem:[%s2367_s12 + $0x1a4] ss:$8 sps:$4 sm:$0xff]  }
  0x6d   : > { %1426 = vmatpush1.bf16.msra.mxu1 %v1883_v52  ;;  %1386 = vmatprep.subr.bf16.mxu0 %v1884_v53  ;;  %v850_v24 = vrot.slane %v745_v21, %v2417_v18  ;;  %v2432_v29 = vrot.slane %v843_v23, %v2417_v18  ;;  %v1936_v37 = vld [vmem:[%s2367_s12 + $0xa0] ss:$8 sps:$4 sm:$0xff]   ;;  %v1938_v39 = vld [vmem:[%s2367_s12 + $0x94] ss:$8 sps:$4 sm:$0xff]   ;;  %v1942_v41 = vld [vmem:[%s2367_s12 + $0x90] ss:$8 sps:$4 sm:$0xff]  }
  0x6e   : > { %1427 = vmatprep.subr.bf16.mxu1 %v1886_v54  ;;  %v1937_v38 = vld [vmem:[%s2367_s12 + $0x1a0] ss:$8 sps:$4 sm:$0xff]   ;;  %v1940_v40 = vld [vmem:[%s2367_s12 + $0x194] ss:$8 sps:$4 sm:$0xff]   ;;  %v1943_v42 = vld [vmem:[%s2367_s12 + $0x190] ss:$8 sps:$4 sm:$0xff]  }
  0x6f   : > { %v858_v28 = vcombine.high %v850_v24, %v850_v24  ;;  %v873_v32 = vrot.slane %v2432_v29, %v2417_v18  ;;  %v1944_v43 = vld [vmem:[%s2367_s12 + $0x84] ss:$8 sps:$4 sm:$0xff]   ;;  %v1948_v45 = vld [vmem:[%s2367_s12 + $0x80] ss:$8 sps:$4 sm:$0xff]   ;;  %v866_v46 = vrot.slane %v850_v24, %v2417_v18  ;;  %v859_v48 = vcombine.high %v2432_v29, %v2432_v29  ;;  %v1953_v49 = vld [vmem:[%s2367_s12 + $0x274] ss:$8 sps:$4 sm:$0xff]  }
  0x70   : > { %1387 = vmatpush1.bf16.msra.mxu0 %v1888_v55  ;;  %v1946_v44 = vld [vmem:[%s2367_s12 + $0x184] ss:$8 sps:$4 sm:$0xff]   ;;  %v1949_v47 = vld [vmem:[%s2367_s12 + $0x180] ss:$8 sps:$4 sm:$0xff]   ;;  %v1951_v51 = vld [vmem:[%s2367_s12 + $0x270] ss:$8 sps:$4 sm:$0xff]  }
  0x71   : > { %1428 = vmatpush1.bf16.msra.mxu1 %v1889_v56  ;;  %1388 = vmatprep.subr.bf16.mxu0 %v1890_v57  ;;  %v880_v31 = vrot.slane %v858_v28, %v2417_v18  ;;  %v888_v50 = vcombine.high %v866_v46, %v866_v46  ;;  %v887_v52 = vrot.slane %v859_v48, %v2417_v18  ;;  %v1956_v53 = vld [vmem:[%s2367_s12 + $0x264] ss:$8 sps:$4 sm:$0xff]   ;;  %v1954_v54 = vld [vmem:[%s2367_s12 + $0x260] ss:$8 sps:$4 sm:$0xff]   ;;  %v1959_v55 = vld [vmem:[%s2367_s12 + $0x254] ss:$8 sps:$4 sm:$0xff]  }
  0x72   : > { %1429 = vmatprep.subr.bf16.mxu1 %v1892_v58  ;;  %v1957_v56 = vld [vmem:[%s2367_s12 + $0x250] ss:$8 sps:$4 sm:$0xff]   ;;  %v1962_v57 = vld [vmem:[%s2367_s12 + $0x244] ss:$8 sps:$4 sm:$0xff]   ;;  %v1960_v58 = vld [vmem:[%s2367_s12 + $0x240] ss:$8 sps:$4 sm:$0xff]  }
  0x73   : > { %v889_v36 = vcombine.high %v880_v31, %v880_v31  ;;  %1408 = vmatprep.mubr.bf16.mxu0 %v880_v31  ;;  %v1980_v5 = vld [vmem:[%s2367_s12 + $0x2e4] ss:$8 sps:$4 sm:$0xff]   ;;  %v1978_v6 = vld [vmem:[%s2367_s12 + $0x2e0] ss:$8 sps:$4 sm:$0xff]   ;;  %v1983_v7 = vld [vmem:[%s2367_s12 + $0x2d4] ss:$8 sps:$4 sm:$0xff]  }
  0x74   : > { %1389 = vmatpush1.bf16.msra.mxu0 %v1894_v59  ;;  %v1965_v59 = vld [vmem:[%s2367_s12 + $0x234] ss:$8 sps:$4 sm:$0xff]   ;;  %v2057_v31 = vmov 1983009808  }
  0x75   : > { %1430 = vmatpush1.bf16.msra.mxu1 %v1895_v60  ;;  %1390 = vmatprep.subr.bf16.mxu0 %v1896_v61  ;;  %v1963_v60 = vld [vmem:[%s2367_s12 + $0x230] ss:$8 sps:$4 sm:$0xff]   ;;  %v1968_v61 = vld [vmem:[%s2367_s12 + $0x224] ss:$8 sps:$4 sm:$0xff]   ;;  %v1989_v11 = vld [vmem:[%s2367_s12 + $0x2b4] ss:$8 sps:$4 sm:$0xff]  }
  0x76   : > { %1431 = vmatprep.subr.bf16.mxu1 %v1898_v62  ;;  %1449 = vmatprep.mubr.bf16.mxu1 %v889_v36  ;;  %v1966_v62 = vld [vmem:[%s2367_s12 + $0x220] ss:$8 sps:$4 sm:$0xff]  }
  0x78   : > { %1391 = vmatpush1.bf16.msra.mxu0 %v1900_v63  ;;  %v1971_v63 = vld [vmem:[%s2367_s12 + $0x214] ss:$8 sps:$4 sm:$0xff]  }
  0x79   : > { %1432 = vmatpush1.bf16.msra.mxu1 %v1901_v0  ;;  %1392 = vmatprep.subr.bf16.mxu0 %v1902_v1  ;;  %v1969_v0 = vld [vmem:[%s2367_s12 + $0x210] ss:$8 sps:$4 sm:$0xff]   ;;  %v1974_v1 = vld [vmem:[%s2367_s12 + $0x204] ss:$8 sps:$4 sm:$0xff]  }
  0x7a   : > { %1433 = vmatprep.subr.bf16.mxu1 %v1904_v2  ;;  %v1972_v2 = vld [vmem:[%s2367_s12 + $0x200] ss:$8 sps:$4 sm:$0xff]  }
  0x7c   : > { %1393 = vmatpush2.bf16.msra.mxu0 %v1906_v3  ;;  %v1977_v3 = vld [vmem:[%s2367_s12 + $0x2f4] ss:$8 sps:$4 sm:$0xff]  }
  0x7d   : > { %1434 = vmatpush2.bf16.msra.mxu1 %v1907_v4  ;;  %1394 = vmatprep.subr.bf16.mxu0 %v1908_v8  ;;  %v1975_v4 = vld [vmem:[%s2367_s12 + $0x2f0] ss:$8 sps:$4 sm:$0xff]  }
  0x7e   : > { %1435 = vmatprep.subr.bf16.mxu1 %v1910_v9  ;;  %v1981_v8 = vld [vmem:[%s2367_s12 + $0x2d0] ss:$8 sps:$4 sm:$0xff]   ;;  %v1986_v9 = vld [vmem:[%s2367_s12 + $0x2c4] ss:$8 sps:$4 sm:$0xff]  }
  0x80   : > { %1395 = vmatpush2.bf16.msra.mxu0 %v1912_v10  ;;  %v1984_v10 = vld [vmem:[%s2367_s12 + $0x2c0] ss:$8 sps:$4 sm:$0xff]  }
  0x81   : > { %1436 = vmatpush2.bf16.msra.mxu1 %v1913_v13  ;;  %1396 = vmatprep.subr.bf16.mxu0 %v1914_v14  ;;  %v1987_v13 = vld [vmem:[%s2367_s12 + $0x2b0] ss:$8 sps:$4 sm:$0xff]   ;;  %v1992_v14 = vld [vmem:[%s2367_s12 + $0x2a4] ss:$8 sps:$4 sm:$0xff]  }
  0x82   : > { %1437 = vmatprep.subr.bf16.mxu1 %v1916_v15  ;;  %v1990_v15 = vld [vmem:[%s2367_s12 + $0x2a0] ss:$8 sps:$4 sm:$0xff]  }
  0x84   : > { %1397 = vmatpush2.bf16.msra.mxu0 %v1918_v16  ;;  %v1995_v16 = vld [vmem:[%s2367_s12 + $0x294] ss:$8 sps:$4 sm:$0xff]  }
  0x85   : > { %1438 = vmatpush2.bf16.msra.mxu1 %v1919_v17  ;;  %1398 = vmatprep.subr.bf16.mxu0 %v1920_v19  ;;  %v1993_v17 = vld [vmem:[%s2367_s12 + $0x290] ss:$8 sps:$4 sm:$0xff]   ;;  %v1998_v19 = vld [vmem:[%s2367_s12 + $0x284] ss:$8 sps:$4 sm:$0xff]  }
  0x86   : > { %1439 = vmatprep.subr.bf16.mxu1 %v1922_v20  ;;  %v1996_v20 = vld [vmem:[%s2367_s12 + $0x280] ss:$8 sps:$4 sm:$0xff]  }
  0x88   : > { %1399 = vmatpush2.bf16.msra.mxu0 %v1924_v22 }
  0x89   : > { %1440 = vmatpush2.bf16.msra.mxu1 %v1925_v25  ;;  %1400 = vmatprep.subr.bf16.mxu0 %v1926_v26 }
  0x8a   : > { %1441 = vmatprep.subr.bf16.mxu1 %v1928_v27 }
  0x8c   : > { %1401 = vmatpush2.bf16.msra.mxu0 %v1930_v30 }
  0x8d   : > { %1442 = vmatpush2.bf16.msra.mxu1 %v1931_v33  ;;  %1402 = vmatprep.subr.bf16.mxu0 %v1932_v34  ;;  %v1503_v33 = vunpack.c.l.s4 %v2057_v31 }
  0x8e   : > { %1443 = vmatprep.subr.bf16.mxu1 %v1934_v35 }
  0x8f   : > { %v1504_v34 = vunpack.c.0.s8 %v1503_v33 }
  0x90   : > { %1403 = vmatpush2.bf16.msra.mxu0 %v1936_v37 }
  0x91   : > { %1444 = vmatpush2.bf16.msra.mxu1 %v1937_v38  ;;  %1404 = vmatprep.subr.bf16.mxu0 %v1938_v39  ;;  %v1507_v18 = vsub.s32 %v1504_v34, %v2409_v12 }
  0x92   : > { %1445 = vmatprep.subr.bf16.mxu1 %v1940_v40  ;;  %v744_v40 = vld [vmem:[#allocation2] sm:$0xf] }
  0x94   : > { %1405 = vmatpush2.bf16.msra.mxu0 %v1942_v41 }
  0x95   : > { %1446 = vmatpush2.bf16.msra.mxu1 %v1943_v42  ;;  %1406 = vmatprep.subr.bf16.mxu0 %v1944_v43 }
  0x96   : > { %1447 = vmatprep.subr.bf16.mxu1 %v1946_v44 }
  0x98   : > { %1407 = vmatpush2.bf16.msra.mxu0 %v1948_v45 }
  0x99   : > { %1448 = vmatpush2.bf16.msra.mxu1 %v1949_v47  ;;  %1458 = vmatprep.subr.bf16.mxu0 %v1953_v49 }
  0x9b   : > { %1409 = vmatmul.mubr.bf16.vlgmr.msra.gmra.mxu0 %v866_v46 }
  0x9c   : > { %1450 = vmatmul.mubr.bf16.vlgmr.msra.gmra.mxu1 %v888_v50  ;;  %1459 = vmatpush1.bf16.msra.mxu0 %v1951_v51 }
  0x9d   : > { %1490 = vmatprep.mubr.bf16.mxu0 %v887_v52  ;;  %1460 = vmatprep.subr.bf16.mxu0 %v1956_v53 }
  0xa0   : > { %1461 = vmatpush1.bf16.msra.mxu0 %v1954_v54 }
  0xa1   : > { %1462 = vmatprep.subr.bf16.mxu0 %v1959_v55 }
  0xa4   : > { %1463 = vmatpush1.bf16.msra.mxu0 %v1957_v56 }
  0xa5   : > { %1464 = vmatprep.subr.bf16.mxu0 %v1962_v57 }
  0xa8   : > { %1465 = vmatpush1.bf16.msra.mxu0 %v1960_v58 }
  0xa9   : > { %1466 = vmatprep.subr.bf16.mxu0 %v1965_v59 }
  0xac   : > { %1467 = vmatpush1.bf16.msra.mxu0 %v1963_v60 }
  0xad   : > { %1468 = vmatprep.subr.bf16.mxu0 %v1968_v61 }
  0xb0   : > { %1469 = vmatpush1.bf16.msra.mxu0 %v1966_v62 }
  0xb1   : > { %1470 = vmatprep.subr.bf16.mxu0 %v1971_v63 }
  0xb4   : > { %1471 = vmatpush1.bf16.msra.mxu0 %v1969_v0 }
  0xb5   : > { %1472 = vmatprep.subr.bf16.mxu0 %v1974_v1 }
  0xb8   : > { %1473 = vmatpush1.bf16.msra.mxu0 %v1972_v2 }
  0xb9   : > { %1474 = vmatprep.subr.bf16.mxu0 %v1977_v3 }
  0xbc   : > { %1475 = vmatpush2.bf16.msra.mxu0 %v1975_v4 }
  0xbd   : > { %1476 = vmatprep.subr.bf16.mxu0 %v1980_v5 }
  0xc0   : > { %1477 = vmatpush2.bf16.msra.mxu0 %v1978_v6 }
  0xc1   : > { %1478 = vmatprep.subr.bf16.mxu0 %v1983_v7 }
  0xc4   : > { %1479 = vmatpush2.bf16.msra.mxu0 %v1981_v8 }
  0xc5   : > { %1480 = vmatprep.subr.bf16.mxu0 %v1986_v9 }
  0xc8   : > { %1481 = vmatpush2.bf16.msra.mxu0 %v1984_v10 }
  0xc9   : > { %1482 = vmatprep.subr.bf16.mxu0 %v1989_v11 }
  0xcc   : > { %1483 = vmatpush2.bf16.msra.mxu0 %v1987_v13 }
  0xcd   : > { %1484 = vmatprep.subr.bf16.mxu0 %v1992_v14 }
  0xd0   : > { %1485 = vmatpush2.bf16.msra.mxu0 %v1990_v15 }
  0xd1   : > { %1486 = vmatprep.subr.bf16.mxu0 %v1995_v16 }
  0xd4   : > { %1487 = vmatpush2.bf16.msra.mxu0 %v1993_v17 }
  0xd5   : > { %1488 = vmatprep.subr.bf16.mxu0 %v1998_v19 }
  0xd8   : > { %1489 = vmatpush2.bf16.msra.mxu0 %v1996_v20 }
  0xdb   : > { %1491 = vmatmul.mubr.bf16.vlgmr.msra.gmra.mxu0 %v873_v32 }
 0x15b   : > { %v1410_v21 = vpop.f32.mrf.mxu0 }
 0x15c   : > { %v1451_v22 = vpop.f32.mrf.mxu1 }
 0x15d   : > { %v1452_v23 = vadd.f32 %v1451_v22, %v1410_v21  ;;  %v1412_v24 = vpop.f32.mrf.mxu0 }
 0x15e   : > { %v1453_v25 = vpop.f32.mrf.mxu1 }
 0x15f   : > { %v1414_v26 = vpop.f32.mrf.mxu0  ;;  %v1454_v36 = vadd.f32 %v1453_v25, %v1412_v24 }
 0x160   : > { %v1455_v27 = vpop.f32.mrf.mxu1 }
 0x161   : > { %v1415_v28 = vpop.f32.mrf.mxu0 }
 0x162   : > { %v1456_v30 = vpop.f32.mrf.mxu1 }
 0x19b   : > { %v1492_v35 = vpop.f32.mrf.mxu0 }
 0x19c   : > { %v1493_v38 = vadd.f32 %v1492_v35, %v1452_v23 }
 0x19d   : > { %v1494_v37 = vpop.f32.mrf.mxu0 }
 0x19e   : > { %v1495_v39 = vadd.f32 %v1494_v37, %v1454_v36 }
 0x19f   : > { %v1496_v29 = vpop.f32.mrf.mxu0 }
 0x1a0   : > { %v1501_v32 = vcombine.low %v1493_v38, %v1495_v39 }
 0x1a1   : > { %v1497_v41 = vpop.f32.mrf.mxu0 }
 0x1a2   : > { %v1508_v42 = vrot.slane %v1501_v32, %v1507_v18  ;;  %1515 = sbr.rel (%p1789_p13) target bundleno = 438 (0x1b6), region = 82 }
 0x1a4   : > { %v1510_v43 = vadd.f32 %v1508_v42, %v744_v40 }
 0x1a6   : > { %1511 = vst [vmem:[#allocation2] sm:$0xf] %v1510_v43 }
 0x1a7   : > { %v1517_v44 = vld [vmem:[%s717_s15] sm:$0x3]  ;;  %v1521_v45 = vsub.s32 0, %v2409_v12  ;;  %v1525_v46 = vsub.s32 1, %v2409_v12 }
 0x1a8   : > { %v1537_v52 = vld [vmem:[%s2360_s8] sm:$0xf] }
 0x1a9   : > { %v1522_v47 = vrot.slane %v1517_v44, %v1521_v45  ;;  %v1526_v48 = vrot.slane %v1517_v44, %v1525_v46 }
 0x1ab   : > { %v1527_v49 = vcombine.low %v1522_v47, %v1526_v48 }
 0x1ad   : > { %v1516_v50 = vld [vmem:[#allocation2] sm:$0xf]  ;;  %v1534_v51 = vrot.slane %v1527_v49, %v1507_v18 }
 0x1af   : > { %v1536_v53 = vadd.f32 %v1534_v51, %v1516_v50 }
 0x1b1   : > { %v1538_v54 = vadd.f32 %v1537_v52, %v1536_v53 }
 0x1b3   : > { %v1539_v55 = vmax.f32 %v1538_v54, 0.0 }
 0x1b5   : > { %1540 = vst [vmem:[%s2365_s11] sm:$0xf] %v1539_v55 }
 0x1b6 PF: > { %s14_s21 = sadd.s32 1, %s2053_s21   ;;  %s2527_s15 = smov %s2033_s16 }
 0x1b7   : > { %p11_p0 = scmp.ge.s32.totalorder %s14_s21, 14   ;;  %s2528_s16 = smov %s2134_s28 }
 0x1b8   : > { %s2529_s17 = smov %s2045_s19  ;;  %s2530_s18 = smov %s2049_s20 }
 0x1b9   : > { %s2531_s19 = smov %s2534_s22  ;;  %s2532_s20 = smov %s2538_s23 }
 0x1ba   :  { %13 = sbr.rel (!%p11_p0) target bundleno = 4 (0x4), region = 126 }

// kernel: wrap_resnet_forward.39
= control target key start
LH: loop header
LB: loop body
LE: loop exit
PB: predicated region body
PF: predicated region fallthrough
CT: control target
= control target key end

     0   :  { %s1993_s12 = smov 0   ;;  %s1995_s13 = smov 0   ;;  %s2426_s0 = inlined_call_operand.vmem [shape: bf16[2,4608], index: 0, kind: input, shape index: {}]   ;;  %s2427_s1 = inlined_call_operand.vmem [shape: bf16[4608,512], index: 1, kind: input, shape index: {}]   ;;  %s2428_s2 = inlined_call_operand.vmem [shape: f32[1,512], index: 2, kind: input, shape index: {}]   ;;  %s2429_s3 = inlined_call_operand.vmem [shape: f32[2,512], index: 3, kind: output, shape index: {}]  }
   0x1   :  { %s1997_s14 = smov 0   ;;  %s1999_s15 = smov 0  }
   0x2   :  { %s2001_s16 = smov 0   ;;  %s2003_s17 = smov 0  }
   0x3   :  { %s2005_s18 = smov 0  }
   0x4 LB: > { %s25_s19 = sadd.s32 1, %s1960_s16  ;;  %s28_s20 = sadd.s32 1, %s1964_s17  ;;  %s1968_s18 = sphi %s2005_s18, %s13_s18   ;;  %s1964_s17 = sphi %s2003_s17, %s2435_s17   ;;  %s1960_s16 = sphi %s2001_s16, %s2434_s16   ;;  %s1956_s15 = sphi %s1999_s15, %s2433_s15   ;;  %s1952_s14 = sphi %s1997_s14, %s2432_s14   ;;  %s1948_s13 = sphi %s1995_s13, %s2431_s13   ;;  %s1944_s12 = sphi %s1993_s12, %s2430_s12  }
   0x5   : > { %p26_p0 = scmp.ge.s32.totalorder %s25_s19, 6  ;;  %p76_p1 = scmp.ne.s32.totalorder %s1948_s13, %s1944_s12 }
   0x6   : > { %p77_p2 = scmp.eq.s32.totalorder %s1968_s18, 0  ;;  %s69_s24 = sadd.s32 1, %s1948_s13 }
   0x7   : > { %s2437_s19 = smov (%p26_p0, %s25_s19), 0  ;;  %s2439_s20 = smov (!%p26_p0, %s28_s20), %s1964_s17 }
   0x8   : > { %p78_p3 = por %p77_p2, %p76_p1  ;;  %p30_p4 = scmp.ge.s32.totalorder %s2439_s20, 2 }
   0x9   : > { %s64_s21 = ssub.s32 %s1960_s16, %s2437_s19  ;;  %p1599_p6 = scmp.ge.s32.totalorder %s1968_s18, 12 }
   0xa   : > { %s2441_s20 = smov (%p30_p4, %s2439_s20), 0 }
   0xb   : > { %s65_s22 = ssub.s32 %s1964_s17, %s2441_s20  ;;  %156 = sbr.rel (%p1599_p6) target bundleno = 72 (0x48), region = 16 }
   0xc   : > { %s66_s23 = sor.u32 %s65_s22, %s64_s21 }
   0xd   : > { %p67_p5 = scmp.eq.s32.totalorder %s66_s23, 0 }
   0xf   : > { %s2044_s25 = scalar_select %p67_p5, %s1948_s13, %s69_s24  }
  0x10   : > { %171 = sbr.rel (!%p78_p3) target bundleno = 72 (0x48), region = 24  ;;  %s173_s26 = sand.u32 (%p78_p3), 1, %s1948_s13  }
  0x11   : > { %s1708_s27 = smul.u32 (%p78_p3), 768, %s173_s26  ;;  %s1600_s28 = sshll.u32 (%p78_p3), %s1964_s17, 1 }
  0x12   : > { %s1707_s29 = smul.u32 (%p78_p3), 384, %s1960_s16 }
  0x13   : > { %s2058_s8 = scalar_lea.vmem (%p78_p3), [#allocation3], %s1708_s27 }
  0x14   : > { %s179_s30 = sadd.s32 (%p78_p3), %s1707_s29, %s1600_s28 }
  0x15   : > { %s1602_s4 = sshll.u32 %s179_s30, 2 }
  0x16   : > { %s2053_s7 = scalar_lea.vmem %s2427_s1, %s1602_s4 }
  0x17   : > { %v400_v0 = vld [vmem:[%s2053_s7] sm:$0xff]  ;;  %v402_v1 = vld [vmem:[%s2053_s7 + $0x10] sm:$0xff] }
  0x18   : > { %v404_v2 = vld [vmem:[%s2053_s7 + $0x20] sm:$0xff]  ;;  %401 = vst [vmem:[%s2058_s8] sm:$0xff] %v400_v0  ;;  %403 = vst [vmem:[%s2058_s8 + $0x8] sm:$0xff] %v402_v1  ;;  %v406_v3 = vld [vmem:[%s2053_s7 + $0x30] sm:$0xff] }
  0x19   : > { %405 = vst [vmem:[%s2058_s8 + $0x10] sm:$0xff] %v404_v2  ;;  %v408_v4 = vld [vmem:[%s2053_s7 + $0x40] sm:$0xff]  ;;  %v410_v5 = vld [vmem:[%s2053_s7 + $0x50] sm:$0xff]  ;;  %407 = vst [vmem:[%s2058_s8 + $0x18] sm:$0xff] %v406_v3 }
  0x1a   : > { %409 = vst [vmem:[%s2058_s8 + $0x20] sm:$0xff] %v408_v4  ;;  %411 = vst [vmem:[%s2058_s8 + $0x28] sm:$0xff] %v410_v5  ;;  %v412_v6 = vld [vmem:[%s2053_s7 + $0x60] sm:$0xff]  ;;  %v414_v7 = vld [vmem:[%s2053_s7 + $0x70] sm:$0xff] }
  0x1b   : > { %v416_v8 = vld [vmem:[%s2053_s7 + $0x80] sm:$0xff]  ;;  %413 = vst [vmem:[%s2058_s8 + $0x30] sm:$0xff] %v412_v6  ;;  %415 = vst [vmem:[%s2058_s8 + $0x38] sm:$0xff] %v414_v7  ;;  %v418_v9 = vld [vmem:[%s2053_s7 + $0x90] sm:$0xff] }
  0x1c   : > { %417 = vst [vmem:[%s2058_s8 + $0x40] sm:$0xff] %v416_v8  ;;  %v420_v10 = vld [vmem:[%s2053_s7 + $0xa0] sm:$0xff]  ;;  %v422_v11 = vld [vmem:[%s2053_s7 + $0xb0] sm:$0xff]  ;;  %419 = vst [vmem:[%s2058_s8 + $0x48] sm:$0xff] %v418_v9 }
  0x1d   : > { %421 = vst [vmem:[%s2058_s8 + $0x50] sm:$0xff] %v420_v10  ;;  %423 = vst [vmem:[%s2058_s8 + $0x58] sm:$0xff] %v422_v11  ;;  %v424_v12 = vld [vmem:[%s2053_s7 + $0xc0] sm:$0xff]  ;;  %v426_v13 = vld [vmem:[%s2053_s7 + $0xd0] sm:$0xff] }
  0x1e   : > { %v428_v14 = vld [vmem:[%s2053_s7 + $0xe0] sm:$0xff]  ;;  %425 = vst [vmem:[%s2058_s8 + $0x60] sm:$0xff] %v424_v12  ;;  %427 = vst [vmem:[%s2058_s8 + $0x68] sm:$0xff] %v426_v13  ;;  %v430_v15 = vld [vmem:[%s2053_s7 + $0xf0] sm:$0xff] }
  0x1f   : > { %429 = vst [vmem:[%s2058_s8 + $0x70] sm:$0xff] %v428_v14  ;;  %v432_v16 = vld [vmem:[%s2053_s7 + $0x100] sm:$0xff]  ;;  %v434_v17 = vld [vmem:[%s2053_s7 + $0x110] sm:$0xff]  ;;  %431 = vst [vmem:[%s2058_s8 + $0x78] sm:$0xff] %v430_v15 }
  0x20   : > { %433 = vst [vmem:[%s2058_s8 + $0x80] sm:$0xff] %v432_v16  ;;  %435 = vst [vmem:[%s2058_s8 + $0x88] sm:$0xff] %v434_v17  ;;  %v436_v18 = vld [vmem:[%s2053_s7 + $0x120] sm:$0xff]  ;;  %v438_v19 = vld [vmem:[%s2053_s7 + $0x130] sm:$0xff] }
  0x21   : > { %v440_v20 = vld [vmem:[%s2053_s7 + $0x140] sm:$0xff]  ;;  %437 = vst [vmem:[%s2058_s8 + $0x90] sm:$0xff] %v436_v18  ;;  %439 = vst [vmem:[%s2058_s8 + $0x98] sm:$0xff] %v438_v19  ;;  %v442_v21 = vld [vmem:[%s2053_s7 + $0x150] sm:$0xff] }
  0x22   : > { %441 = vst [vmem:[%s2058_s8 + $0xa0] sm:$0xff] %v440_v20  ;;  %v444_v22 = vld [vmem:[%s2053_s7 + $0x160] sm:$0xff]  ;;  %v446_v23 = vld [vmem:[%s2053_s7 + $0x170] sm:$0xff]  ;;  %443 = vst [vmem:[%s2058_s8 + $0xa8] sm:$0xff] %v442_v21 }
  0x23   : > { %445 = vst [vmem:[%s2058_s8 + $0xb0] sm:$0xff] %v444_v22  ;;  %447 = vst [vmem:[%s2058_s8 + $0xb8] sm:$0xff] %v446_v23  ;;  %v448_v24 = vld [vmem:[%s2053_s7 + $0x180] sm:$0xff]  ;;  %v450_v25 = vld [vmem:[%s2053_s7 + $0x190] sm:$0xff] }
  0x24   : > { %v452_v26 = vld [vmem:[%s2053_s7 + $0x1a0] sm:$0xff]  ;;  %449 = vst [vmem:[%s2058_s8 + $0xc0] sm:$0xff] %v448_v24  ;;  %451 = vst [vmem:[%s2058_s8 + $0xc8] sm:$0xff] %v450_v25  ;;  %v454_v27 = vld [vmem:[%s2053_s7 + $0x1b0] sm:$0xff] }
  0x25   : > { %453 = vst [vmem:[%s2058_s8 + $0xd0] sm:$0xff] %v452_v26  ;;  %v456_v28 = vld [vmem:[%s2053_s7 + $0x1c0] sm:$0xff]  ;;  %v458_v29 = vld [vmem:[%s2053_s7 + $0x1d0] sm:$0xff]  ;;  %455 = vst [vmem:[%s2058_s8 + $0xd8] sm:$0xff] %v454_v27 }
  0x26   : > { %457 = vst [vmem:[%s2058_s8 + $0xe0] sm:$0xff] %v456_v28  ;;  %459 = vst [vmem:[%s2058_s8 + $0xe8] sm:$0xff] %v458_v29  ;;  %v460_v30 = vld [vmem:[%s2053_s7 + $0x1e0] sm:$0xff]  ;;  %v462_v31 = vld [vmem:[%s2053_s7 + $0x1f0] sm:$0xff] }
  0x27   : > { %v464_v32 = vld [vmem:[%s2053_s7 + $0x200] sm:$0xff]  ;;  %461 = vst [vmem:[%s2058_s8 + $0xf0] sm:$0xff] %v460_v30  ;;  %463 = vst [vmem:[%s2058_s8 + $0xf8] sm:$0xff] %v462_v31  ;;  %v466_v33 = vld [vmem:[%s2053_s7 + $0x210] sm:$0xff] }
  0x28   : > { %465 = vst [vmem:[%s2058_s8 + $0x100] sm:$0xff] %v464_v32  ;;  %v468_v34 = vld [vmem:[%s2053_s7 + $0x220] sm:$0xff]  ;;  %v470_v35 = vld [vmem:[%s2053_s7 + $0x230] sm:$0xff]  ;;  %467 = vst [vmem:[%s2058_s8 + $0x108] sm:$0xff] %v466_v33 }
  0x29   : > { %469 = vst [vmem:[%s2058_s8 + $0x110] sm:$0xff] %v468_v34  ;;  %471 = vst [vmem:[%s2058_s8 + $0x118] sm:$0xff] %v470_v35  ;;  %v472_v36 = vld [vmem:[%s2053_s7 + $0x240] sm:$0xff]  ;;  %v474_v37 = vld [vmem:[%s2053_s7 + $0x250] sm:$0xff] }
  0x2a   : > { %v476_v38 = vld [vmem:[%s2053_s7 + $0x260] sm:$0xff]  ;;  %473 = vst [vmem:[%s2058_s8 + $0x120] sm:$0xff] %v472_v36  ;;  %475 = vst [vmem:[%s2058_s8 + $0x128] sm:$0xff] %v474_v37  ;;  %v478_v39 = vld [vmem:[%s2053_s7 + $0x270] sm:$0xff] }
  0x2b   : > { %477 = vst [vmem:[%s2058_s8 + $0x130] sm:$0xff] %v476_v38  ;;  %v480_v40 = vld [vmem:[%s2053_s7 + $0x280] sm:$0xff]  ;;  %v482_v41 = vld [vmem:[%s2053_s7 + $0x290] sm:$0xff]  ;;  %479 = vst [vmem:[%s2058_s8 + $0x138] sm:$0xff] %v478_v39 }
  0x2c   : > { %481 = vst [vmem:[%s2058_s8 + $0x140] sm:$0xff] %v480_v40  ;;  %483 = vst [vmem:[%s2058_s8 + $0x148] sm:$0xff] %v482_v41  ;;  %v484_v42 = vld [vmem:[%s2053_s7 + $0x2a0] sm:$0xff]  ;;  %v486_v43 = vld [vmem:[%s2053_s7 + $0x2b0] sm:$0xff] }
  0x2d   : > { %v488_v44 = vld [vmem:[%s2053_s7 + $0x2c0] sm:$0xff]  ;;  %485 = vst [vmem:[%s2058_s8 + $0x150] sm:$0xff] %v484_v42  ;;  %487 = vst [vmem:[%s2058_s8 + $0x158] sm:$0xff] %v486_v43  ;;  %v490_v45 = vld [vmem:[%s2053_s7 + $0x2d0] sm:$0xff] }
  0x2e   : > { %489 = vst [vmem:[%s2058_s8 + $0x160] sm:$0xff] %v488_v44  ;;  %v492_v46 = vld [vmem:[%s2053_s7 + $0x2e0] sm:$0xff]  ;;  %v494_v47 = vld [vmem:[%s2053_s7 + $0x2f0] sm:$0xff]  ;;  %491 = vst [vmem:[%s2058_s8 + $0x168] sm:$0xff] %v490_v45 }
  0x2f   : > { %493 = vst [vmem:[%s2058_s8 + $0x170] sm:$0xff] %v492_v46  ;;  %495 = vst [vmem:[%s2058_s8 + $0x178] sm:$0xff] %v494_v47  ;;  %v496_v48 = vld [vmem:[%s2053_s7 + $0x300] sm:$0xff]  ;;  %v498_v49 = vld [vmem:[%s2053_s7 + $0x310] sm:$0xff] }
  0x30   : > { %v500_v50 = vld [vmem:[%s2053_s7 + $0x320] sm:$0xff]  ;;  %497 = vst [vmem:[%s2058_s8 + $0x180] sm:$0xff] %v496_v48  ;;  %499 = vst [vmem:[%s2058_s8 + $0x188] sm:$0xff] %v498_v49  ;;  %v502_v51 = vld [vmem:[%s2053_s7 + $0x330] sm:$0xff] }
  0x31   : > { %501 = vst [vmem:[%s2058_s8 + $0x190] sm:$0xff] %v500_v50  ;;  %v504_v52 = vld [vmem:[%s2053_s7 + $0x340] sm:$0xff]  ;;  %v506_v53 = vld [vmem:[%s2053_s7 + $0x350] sm:$0xff]  ;;  %503 = vst [vmem:[%s2058_s8 + $0x198] sm:$0xff] %v502_v51 }
  0x32   : > { %505 = vst [vmem:[%s2058_s8 + $0x1a0] sm:$0xff] %v504_v52  ;;  %507 = vst [vmem:[%s2058_s8 + $0x1a8] sm:$0xff] %v506_v53  ;;  %v508_v54 = vld [vmem:[%s2053_s7 + $0x360] sm:$0xff]  ;;  %v510_v55 = vld [vmem:[%s2053_s7 + $0x370] sm:$0xff] }
  0x33   : > { %v512_v56 = vld [vmem:[%s2053_s7 + $0x380] sm:$0xff]  ;;  %509 = vst [vmem:[%s2058_s8 + $0x1b0] sm:$0xff] %v508_v54  ;;  %511 = vst [vmem:[%s2058_s8 + $0x1b8] sm:$0xff] %v510_v55  ;;  %v514_v57 = vld [vmem:[%s2053_s7 + $0x390] sm:$0xff] }
  0x34   : > { %513 = vst [vmem:[%s2058_s8 + $0x1c0] sm:$0xff] %v512_v56  ;;  %v516_v58 = vld [vmem:[%s2053_s7 + $0x3a0] sm:$0xff]  ;;  %v518_v59 = vld [vmem:[%s2053_s7 + $0x3b0] sm:$0xff]  ;;  %515 = vst [vmem:[%s2058_s8 + $0x1c8] sm:$0xff] %v514_v57 }
  0x35   : > { %517 = vst [vmem:[%s2058_s8 + $0x1d0] sm:$0xff] %v516_v58  ;;  %519 = vst [vmem:[%s2058_s8 + $0x1d8] sm:$0xff] %v518_v59  ;;  %v520_v60 = vld [vmem:[%s2053_s7 + $0x3c0] sm:$0xff]  ;;  %v522_v61 = vld [vmem:[%s2053_s7 + $0x3d0] sm:$0xff] }
  0x36   : > { %v524_v62 = vld [vmem:[%s2053_s7 + $0x3e0] sm:$0xff]  ;;  %521 = vst [vmem:[%s2058_s8 + $0x1e0] sm:$0xff] %v520_v60  ;;  %523 = vst [vmem:[%s2058_s8 + $0x1e8] sm:$0xff] %v522_v61  ;;  %v526_v63 = vld [vmem:[%s2053_s7 + $0x3f0] sm:$0xff] }
  0x37   : > { %525 = vst [vmem:[%s2058_s8 + $0x1f0] sm:$0xff] %v524_v62  ;;  %v528_v0 = vld [vmem:[%s2053_s7 + $0x400] sm:$0xff]  ;;  %v530_v1 = vld [vmem:[%s2053_s7 + $0x410] sm:$0xff]  ;;  %527 = vst [vmem:[%s2058_s8 + $0x1f8] sm:$0xff] %v526_v63 }
  0x38   : > { %529 = vst [vmem:[%s2058_s8 + $0x200] sm:$0xff] %v528_v0  ;;  %531 = vst [vmem:[%s2058_s8 + $0x208] sm:$0xff] %v530_v1  ;;  %v532_v2 = vld [vmem:[%s2053_s7 + $0x420] sm:$0xff]  ;;  %v534_v3 = vld [vmem:[%s2053_s7 + $0x430] sm:$0xff] }
  0x39   : > { %v536_v4 = vld [vmem:[%s2053_s7 + $0x440] sm:$0xff]  ;;  %533 = vst [vmem:[%s2058_s8 + $0x210] sm:$0xff] %v532_v2  ;;  %535 = vst [vmem:[%s2058_s8 + $0x218] sm:$0xff] %v534_v3  ;;  %v538_v5 = vld [vmem:[%s2053_s7 + $0x450] sm:$0xff] }
  0x3a   : > { %537 = vst [vmem:[%s2058_s8 + $0x220] sm:$0xff] %v536_v4  ;;  %v540_v6 = vld [vmem:[%s2053_s7 + $0x460] sm:$0xff]  ;;  %v542_v7 = vld [vmem:[%s2053_s7 + $0x470] sm:$0xff]  ;;  %539 = vst [vmem:[%s2058_s8 + $0x228] sm:$0xff] %v538_v5 }
  0x3b   : > { %541 = vst [vmem:[%s2058_s8 + $0x230] sm:$0xff] %v540_v6  ;;  %543 = vst [vmem:[%s2058_s8 + $0x238] sm:$0xff] %v542_v7  ;;  %v544_v8 = vld [vmem:[%s2053_s7 + $0x480] sm:$0xff]  ;;  %v546_v9 = vld [vmem:[%s2053_s7 + $0x490] sm:$0xff] }
  0x3c   : > { %v548_v10 = vld [vmem:[%s2053_s7 + $0x4a0] sm:$0xff]  ;;  %545 = vst [vmem:[%s2058_s8 + $0x240] sm:$0xff] %v544_v8  ;;  %547 = vst [vmem:[%s2058_s8 + $0x248] sm:$0xff] %v546_v9  ;;  %v550_v11 = vld [vmem:[%s2053_s7 + $0x4b0] sm:$0xff] }
  0x3d   : > { %549 = vst [vmem:[%s2058_s8 + $0x250] sm:$0xff] %v548_v10  ;;  %v552_v12 = vld [vmem:[%s2053_s7 + $0x4c0] sm:$0xff]  ;;  %v554_v13 = vld [vmem:[%s2053_s7 + $0x4d0] sm:$0xff]  ;;  %551 = vst [vmem:[%s2058_s8 + $0x258] sm:$0xff] %v550_v11 }
  0x3e   : > { %553 = vst [vmem:[%s2058_s8 + $0x260] sm:$0xff] %v552_v12  ;;  %555 = vst [vmem:[%s2058_s8 + $0x268] sm:$0xff] %v554_v13  ;;  %v556_v14 = vld [vmem:[%s2053_s7 + $0x4e0] sm:$0xff]  ;;  %v558_v15 = vld [vmem:[%s2053_s7 + $0x4f0] sm:$0xff] }
  0x3f   : > { %v560_v16 = vld [vmem:[%s2053_s7 + $0x500] sm:$0xff]  ;;  %557 = vst [vmem:[%s2058_s8 + $0x270] sm:$0xff] %v556_v14  ;;  %559 = vst [vmem:[%s2058_s8 + $0x278] sm:$0xff] %v558_v15  ;;  %v562_v17 = vld [vmem:[%s2053_s7 + $0x510] sm:$0xff] }
  0x40   : > { %561 = vst [vmem:[%s2058_s8 + $0x280] sm:$0xff] %v560_v16  ;;  %v564_v18 = vld [vmem:[%s2053_s7 + $0x520] sm:$0xff]  ;;  %v566_v19 = vld [vmem:[%s2053_s7 + $0x530] sm:$0xff]  ;;  %563 = vst [vmem:[%s2058_s8 + $0x288] sm:$0xff] %v562_v17 }
  0x41   : > { %565 = vst [vmem:[%s2058_s8 + $0x290] sm:$0xff] %v564_v18  ;;  %567 = vst [vmem:[%s2058_s8 + $0x298] sm:$0xff] %v566_v19  ;;  %v568_v20 = vld [vmem:[%s2053_s7 + $0x540] sm:$0xff]  ;;  %v570_v21 = vld [vmem:[%s2053_s7 + $0x550] sm:$0xff] }
  0x42   : > { %v572_v22 = vld [vmem:[%s2053_s7 + $0x560] sm:$0xff]  ;;  %569 = vst [vmem:[%s2058_s8 + $0x2a0] sm:$0xff] %v568_v20  ;;  %571 = vst [vmem:[%s2058_s8 + $0x2a8] sm:$0xff] %v570_v21  ;;  %v574_v23 = vld [vmem:[%s2053_s7 + $0x570] sm:$0xff] }
  0x43   : > { %573 = vst [vmem:[%s2058_s8 + $0x2b0] sm:$0xff] %v572_v22  ;;  %v576_v24 = vld [vmem:[%s2053_s7 + $0x580] sm:$0xff]  ;;  %v578_v25 = vld [vmem:[%s2053_s7 + $0x590] sm:$0xff]  ;;  %575 = vst [vmem:[%s2058_s8 + $0x2b8] sm:$0xff] %v574_v23 }
  0x44   : > { %577 = vst [vmem:[%s2058_s8 + $0x2c0] sm:$0xff] %v576_v24  ;;  %579 = vst [vmem:[%s2058_s8 + $0x2c8] sm:$0xff] %v578_v25  ;;  %v580_v26 = vld [vmem:[%s2053_s7 + $0x5a0] sm:$0xff]  ;;  %v582_v27 = vld [vmem:[%s2053_s7 + $0x5b0] sm:$0xff] }
  0x45   : > { %v584_v28 = vld [vmem:[%s2053_s7 + $0x5c0] sm:$0xff]  ;;  %581 = vst [vmem:[%s2058_s8 + $0x2d0] sm:$0xff] %v580_v26  ;;  %583 = vst [vmem:[%s2058_s8 + $0x2d8] sm:$0xff] %v582_v27  ;;  %v586_v29 = vld [vmem:[%s2053_s7 + $0x5d0] sm:$0xff] }
  0x46   : > { %585 = vst [vmem:[%s2058_s8 + $0x2e0] sm:$0xff] %v584_v28  ;;  %v588_v30 = vld [vmem:[%s2053_s7 + $0x5e0] sm:$0xff]  ;;  %v590_v31 = vld [vmem:[%s2053_s7 + $0x5f0] sm:$0xff]  ;;  %587 = vst [vmem:[%s2058_s8 + $0x2e8] sm:$0xff] %v586_v29 }
  0x47   : > { %589 = vst [vmem:[%s2058_s8 + $0x2f0] sm:$0xff] %v588_v30  ;;  %591 = vst [vmem:[%s2058_s8 + $0x2f8] sm:$0xff] %v590_v31 }
  0x48 PF: > { %p1603_p7 = scmp.ge.s32.totalorder %s1968_s18, 1  ;;  %p604_p8 = scmp.lt.s32.totalorder %s1968_s18, 13 }
  0x4a   : > { %p605_p9 = pnand %p1603_p7, %p604_p8 }
  0x4b   : > { %s611_s9 = sand.u32 (!%p605_p9), 1, %s1944_s12   ;;  %s650_s10 = smul.u32 (!%p605_p9), 6, %s1952_s14 }
  0x4c   : > { %608 = sbr.rel (%p605_p9) target bundleno = 436 (0x1b4), region = 66  ;;  %s1604_s21 = sshll.u32 (!%p605_p9), %s1956_s15, 1 }
  0x4d   : > { %s1709_s11 = smul.u32 (!%p605_p9), 768, %s611_s9  ;;  %p653_p10 = scmp.lt.s32.totalorder (!%p605_p9), %s650_s10, 35 }
  0x4e   : > { %p662_p11 = scmp.lt.s32.totalorder (!%p605_p9), %s1604_s21, 3  ;;  %p1607_p12 = scmp.ne.s32.totalorder (!%p605_p9), %s1952_s14, 0 }
  0x4f   : > { %s2272_s4 = scalar_lea.vmem (!%p605_p9), [#allocation3], %s1709_s11 }
  0x51   : > { %s2443_s10 = smov (!%p653_p10, %s650_s10), 35  ;;  %s2445_s21 = smov (!%p662_p11, %s1604_s21), 3 }
  0x52   : > { %s657_s24 = scalar_lea.vmem %s2426_s0, %s2443_s10  ;;  %s664_s12 = scalar_lea.vmem %s2428_s2, %s2445_s21 }
  0x53   : > { %s1606_s28 = sshll.u32 %s2445_s21, 1  ;;  %679 = sbr.rel (%p1607_p12) target bundleno = 90 (0x5a), region = 74 }
  0x54   : > { %s2270_s30 = scalar_lea.vmem %s2429_s3, %s1606_s28 }
  0x58   : > { %v1970_v32 = vmov 0.0  }
  0x59   : > { %680 = vst [vmem:[#allocation2] sm:$0xf] %v1970_v32 }
  0x5a PF: > { %v1769_v33 = vld [vmem:[%s2272_s4 + $0x74] ss:$8 sps:$4 sm:$0xff]   ;;  %v1773_v35 = vld [vmem:[%s2272_s4 + $0x70] ss:$8 sps:$4 sm:$0xff]   ;;  %v1775_v37 = vld [vmem:[%s2272_s4 + $0x64] ss:$8 sps:$4 sm:$0xff]   ;;  %v784_v7 = vlaneseq }
  0x5b   : > { %v1771_v34 = vld [vmem:[%s2272_s4 + $0x174] ss:$8 sps:$4 sm:$0xff]   ;;  %1313 = vmatprep.subr.bf16.mxu0 %v1769_v33  ;;  %v1774_v36 = vld [vmem:[%s2272_s4 + $0x170] ss:$8 sps:$4 sm:$0xff]   ;;  %v1777_v38 = vld [vmem:[%s2272_s4 + $0x164] ss:$8 sps:$4 sm:$0xff]  }
  0x5c   : > { %1354 = vmatprep.subr.bf16.mxu1 %v1771_v34  ;;  %1314 = vmatpush1.bf16.msra.mxu0 %v1773_v35  ;;  %v1779_v39 = vld [vmem:[%s2272_s4 + $0x60] ss:$8 sps:$4 sm:$0xff]   ;;  %v1781_v41 = vld [vmem:[%s2272_s4 + $0x54] ss:$8 sps:$4 sm:$0xff]   ;;  %v1785_v43 = vld [vmem:[%s2272_s4 + $0x50] ss:$8 sps:$4 sm:$0xff]  }
  0x5d   : > { %1355 = vmatpush1.bf16.msra.mxu1 %v1774_v36  ;;  %1315 = vmatprep.subr.bf16.mxu0 %v1775_v37  ;;  %v1780_v40 = vld [vmem:[%s2272_s4 + $0x160] ss:$8 sps:$4 sm:$0xff]   ;;  %v1783_v42 = vld [vmem:[%s2272_s4 + $0x154] ss:$8 sps:$4 sm:$0xff]   ;;  %v1786_v44 = vld [vmem:[%s2272_s4 + $0x150] ss:$8 sps:$4 sm:$0xff]  }
  0x5e   : > { %1356 = vmatprep.subr.bf16.mxu1 %v1777_v38  ;;  %v1787_v45 = vld [vmem:[%s2272_s4 + $0x44] ss:$8 sps:$4 sm:$0xff]   ;;  %v1791_v47 = vld [vmem:[%s2272_s4 + $0x40] ss:$8 sps:$4 sm:$0xff]   ;;  %v1793_v49 = vld [vmem:[%s2272_s4 + $0x34] ss:$8 sps:$4 sm:$0xff]  }
  0x5f   : > { %v1789_v46 = vld [vmem:[%s2272_s4 + $0x144] ss:$8 sps:$4 sm:$0xff]   ;;  %v1792_v48 = vld [vmem:[%s2272_s4 + $0x140] ss:$8 sps:$4 sm:$0xff]   ;;  %v1795_v50 = vld [vmem:[%s2272_s4 + $0x134] ss:$8 sps:$4 sm:$0xff]  }
  0x60   : > { %1316 = vmatpush1.bf16.msra.mxu0 %v1779_v39  ;;  %v1797_v51 = vld [vmem:[%s2272_s4 + $0x30] ss:$8 sps:$4 sm:$0xff]   ;;  %v1799_v53 = vld [vmem:[%s2272_s4 + $0x24] ss:$8 sps:$4 sm:$0xff]   ;;  %v1803_v55 = vld [vmem:[%s2272_s4 + $0x20] ss:$8 sps:$4 sm:$0xff]  }
  0x61   : > { %1357 = vmatpush1.bf16.msra.mxu1 %v1780_v40  ;;  %1317 = vmatprep.subr.bf16.mxu0 %v1781_v41  ;;  %v1798_v52 = vld [vmem:[%s2272_s4 + $0x130] ss:$8 sps:$4 sm:$0xff]   ;;  %v1801_v54 = vld [vmem:[%s2272_s4 + $0x124] ss:$8 sps:$4 sm:$0xff]   ;;  %v1804_v56 = vld [vmem:[%s2272_s4 + $0x120] ss:$8 sps:$4 sm:$0xff]  }
  0x62   : > { %1358 = vmatprep.subr.bf16.mxu1 %v1783_v42  ;;  %v1805_v57 = vld [vmem:[%s2272_s4 + $0x14] ss:$8 sps:$4 sm:$0xff]   ;;  %v1809_v59 = vld [vmem:[%s2272_s4 + $0x10] ss:$8 sps:$4 sm:$0xff]   ;;  %v1811_v61 = vld [vmem:[%s2272_s4 + $0x4] ss:$8 sps:$4 sm:$0xff]  }
  0x63   : > { %v1807_v58 = vld [vmem:[%s2272_s4 + $0x114] ss:$8 sps:$4 sm:$0xff]   ;;  %v1810_v60 = vld [vmem:[%s2272_s4 + $0x110] ss:$8 sps:$4 sm:$0xff]   ;;  %v1813_v62 = vld [vmem:[%s2272_s4 + $0x104] ss:$8 sps:$4 sm:$0xff]  }
  0x64   : > { %1318 = vmatpush1.bf16.msra.mxu0 %v1785_v43  ;;  %v1815_v63 = vld [vmem:[%s2272_s4] ss:$8 sps:$4 sm:$0xff]   ;;  %v1817_v1 = vld [vmem:[%s2272_s4 + $0xf4] ss:$8 sps:$4 sm:$0xff]   ;;  %v1821_v3 = vld [vmem:[%s2272_s4 + $0xf0] ss:$8 sps:$4 sm:$0xff]  }
  0x65   : > { %1359 = vmatpush1.bf16.msra.mxu1 %v1786_v44  ;;  %1319 = vmatprep.subr.bf16.mxu0 %v1787_v45  ;;  %v1816_v0 = vld [vmem:[%s2272_s4 + $0x100] ss:$8 sps:$4 sm:$0xff]   ;;  %v1819_v2 = vld [vmem:[%s2272_s4 + $0x1f4] ss:$8 sps:$4 sm:$0xff]   ;;  %v1822_v4 = vld [vmem:[%s2272_s4 + $0x1f0] ss:$8 sps:$4 sm:$0xff]  }
  0x66   : > { %1360 = vmatprep.subr.bf16.mxu1 %v1789_v46  ;;  %v1971_v5 = vmov 1966171168   ;;  %v1823_v8 = vld [vmem:[%s2272_s4 + $0xe4] ss:$8 sps:$4 sm:$0xff]   ;;  %v1827_v10 = vld [vmem:[%s2272_s4 + $0xe0] ss:$8 sps:$4 sm:$0xff]  }
  0x67   : > { %v782_v6 = vunpack.c.l.s4 %v1971_v5  ;;  %v1825_v9 = vld [vmem:[%s2272_s4 + $0x1e4] ss:$8 sps:$4 sm:$0xff]   ;;  %v2314_v12 = vshrl.u32 %v784_v7, 7  ;;  %v1828_v13 = vld [vmem:[%s2272_s4 + $0x1e0] ss:$8 sps:$4 sm:$0xff]   ;;  %p1704_p13 = scmp.ne.s32.totalorder %s1952_s14, 5 }
  0x68   : > { %1320 = vmatpush1.bf16.msra.mxu0 %v1791_v47  ;;  %v1829_v14 = vld [vmem:[%s2272_s4 + $0xd4] ss:$8 sps:$4 sm:$0xff]   ;;  %v1833_v16 = vld [vmem:[%s2272_s4 + $0xd0] ss:$8 sps:$4 sm:$0xff]   ;;  %v1835_v19 = vld [vmem:[%s2272_s4 + $0xc4] ss:$8 sps:$4 sm:$0xff]  }
  0x69   : > { %1361 = vmatpush1.bf16.msra.mxu1 %v1792_v48  ;;  %1321 = vmatprep.subr.bf16.mxu0 %v1793_v49  ;;  %v783_v11 = vunpack.c.0.s8 %v782_v6  ;;  %v1831_v15 = vld [vmem:[%s2272_s4 + $0x1d4] ss:$8 sps:$4 sm:$0xff]   ;;  %v1834_v17 = vld [vmem:[%s2272_s4 + $0x1d0] ss:$8 sps:$4 sm:$0xff]   ;;  %v1837_v20 = vld [vmem:[%s2272_s4 + $0x1c4] ss:$8 sps:$4 sm:$0xff]  }
  0x6a   : > { %1362 = vmatprep.subr.bf16.mxu1 %v1795_v50  ;;  %v682_v21 = vld [vmem:[%s657_s24] sm:$0x3f]  ;;  %v1845_v30 = vld [vmem:[%s2272_s4 + $0xb0] ss:$8 sps:$4 sm:$0xff]   ;;  %v1847_v34 = vld [vmem:[%s2272_s4 + $0xa4] ss:$8 sps:$4 sm:$0xff]  }
  0x6b   : > { %v2322_v18 = vsub.s32 %v783_v11, %v2314_v12  ;;  %v1839_v22 = vld [vmem:[%s2272_s4 + $0xc0] ss:$8 sps:$4 sm:$0xff]   ;;  %v780_v23 = vcombine.high %v682_v21, %v682_v21  ;;  %v1841_v26 = vld [vmem:[%s2272_s4 + $0xb4] ss:$8 sps:$4 sm:$0xff]   ;;  %v1846_v33 = vld [vmem:[%s2272_s4 + $0x1b0] ss:$8 sps:$4 sm:$0xff]  }
  0x6c   : > { %1322 = vmatpush1.bf16.msra.mxu0 %v1797_v51  ;;  %v1840_v25 = vld [vmem:[%s2272_s4 + $0x1c0] ss:$8 sps:$4 sm:$0xff]   ;;  %v1843_v27 = vld [vmem:[%s2272_s4 + $0x1b4] ss:$8 sps:$4 sm:$0xff]   ;;  %v1849_v35 = vld [vmem:[%s2272_s4 + $0x1a4] ss:$8 sps:$4 sm:$0xff]  }
  0x6d   : > { %1363 = vmatpush1.bf16.msra.mxu1 %v1798_v52  ;;  %1323 = vmatprep.subr.bf16.mxu0 %v1799_v53  ;;  %v787_v24 = vrot.slane %v682_v21, %v2322_v18  ;;  %v2337_v29 = vrot.slane %v780_v23, %v2322_v18  ;;  %v1851_v37 = vld [vmem:[%s2272_s4 + $0xa0] ss:$8 sps:$4 sm:$0xff]   ;;  %v1853_v39 = vld [vmem:[%s2272_s4 + $0x94] ss:$8 sps:$4 sm:$0xff]   ;;  %v1857_v41 = vld [vmem:[%s2272_s4 + $0x90] ss:$8 sps:$4 sm:$0xff]  }
  0x6e   : > { %1364 = vmatprep.subr.bf16.mxu1 %v1801_v54  ;;  %v1852_v38 = vld [vmem:[%s2272_s4 + $0x1a0] ss:$8 sps:$4 sm:$0xff]   ;;  %v1855_v40 = vld [vmem:[%s2272_s4 + $0x194] ss:$8 sps:$4 sm:$0xff]   ;;  %v1858_v42 = vld [vmem:[%s2272_s4 + $0x190] ss:$8 sps:$4 sm:$0xff]  }
  0x6f   : > { %v795_v28 = vcombine.high %v787_v24, %v787_v24  ;;  %v810_v32 = vrot.slane %v2337_v29, %v2322_v18  ;;  %v1859_v43 = vld [vmem:[%s2272_s4 + $0x84] ss:$8 sps:$4 sm:$0xff]   ;;  %v1863_v45 = vld [vmem:[%s2272_s4 + $0x80] ss:$8 sps:$4 sm:$0xff]   ;;  %v803_v46 = vrot.slane %v787_v24, %v2322_v18  ;;  %v796_v48 = vcombine.high %v2337_v29, %v2337_v29  ;;  %v1868_v49 = vld [vmem:[%s2272_s4 + $0x274] ss:$8 sps:$4 sm:$0xff]  }
  0x70   : > { %1324 = vmatpush1.bf16.msra.mxu0 %v1803_v55  ;;  %v1861_v44 = vld [vmem:[%s2272_s4 + $0x184] ss:$8 sps:$4 sm:$0xff]   ;;  %v1864_v47 = vld [vmem:[%s2272_s4 + $0x180] ss:$8 sps:$4 sm:$0xff]   ;;  %v1866_v51 = vld [vmem:[%s2272_s4 + $0x270] ss:$8 sps:$4 sm:$0xff]  }
  0x71   : > { %1365 = vmatpush1.bf16.msra.mxu1 %v1804_v56  ;;  %1325 = vmatprep.subr.bf16.mxu0 %v1805_v57  ;;  %v817_v31 = vrot.slane %v795_v28, %v2322_v18  ;;  %v825_v50 = vcombine.high %v803_v46, %v803_v46  ;;  %v824_v52 = vrot.slane %v796_v48, %v2322_v18  ;;  %v1871_v53 = vld [vmem:[%s2272_s4 + $0x264] ss:$8 sps:$4 sm:$0xff]   ;;  %v1869_v54 = vld [vmem:[%s2272_s4 + $0x260] ss:$8 sps:$4 sm:$0xff]   ;;  %v1874_v55 = vld [vmem:[%s2272_s4 + $0x254] ss:$8 sps:$4 sm:$0xff]  }
  0x72   : > { %1366 = vmatprep.subr.bf16.mxu1 %v1807_v58  ;;  %v1872_v56 = vld [vmem:[%s2272_s4 + $0x250] ss:$8 sps:$4 sm:$0xff]   ;;  %v1877_v57 = vld [vmem:[%s2272_s4 + $0x244] ss:$8 sps:$4 sm:$0xff]   ;;  %v1875_v58 = vld [vmem:[%s2272_s4 + $0x240] ss:$8 sps:$4 sm:$0xff]  }
  0x73   : > { %v826_v36 = vcombine.high %v817_v31, %v817_v31  ;;  %1345 = vmatprep.mubr.bf16.mxu0 %v817_v31  ;;  %v1895_v5 = vld [vmem:[%s2272_s4 + $0x2e4] ss:$8 sps:$4 sm:$0xff]   ;;  %v1893_v6 = vld [vmem:[%s2272_s4 + $0x2e0] ss:$8 sps:$4 sm:$0xff]   ;;  %v1898_v7 = vld [vmem:[%s2272_s4 + $0x2d4] ss:$8 sps:$4 sm:$0xff]  }
  0x74   : > { %1326 = vmatpush1.bf16.msra.mxu0 %v1809_v59  ;;  %v1880_v59 = vld [vmem:[%s2272_s4 + $0x234] ss:$8 sps:$4 sm:$0xff]   ;;  %v1972_v31 = vmov 1983009808  }
  0x75   : > { %1367 = vmatpush1.bf16.msra.mxu1 %v1810_v60  ;;  %1327 = vmatprep.subr.bf16.mxu0 %v1811_v61  ;;  %v1878_v60 = vld [vmem:[%s2272_s4 + $0x230] ss:$8 sps:$4 sm:$0xff]   ;;  %v1883_v61 = vld [vmem:[%s2272_s4 + $0x224] ss:$8 sps:$4 sm:$0xff]   ;;  %v1904_v11 = vld [vmem:[%s2272_s4 + $0x2b4] ss:$8 sps:$4 sm:$0xff]  }
  0x76   : > { %1368 = vmatprep.subr.bf16.mxu1 %v1813_v62  ;;  %1386 = vmatprep.mubr.bf16.mxu1 %v826_v36  ;;  %v1881_v62 = vld [vmem:[%s2272_s4 + $0x220] ss:$8 sps:$4 sm:$0xff]  }
  0x78   : > { %1328 = vmatpush1.bf16.msra.mxu0 %v1815_v63  ;;  %v1886_v63 = vld [vmem:[%s2272_s4 + $0x214] ss:$8 sps:$4 sm:$0xff]  }
  0x79   : > { %1369 = vmatpush1.bf16.msra.mxu1 %v1816_v0  ;;  %1329 = vmatprep.subr.bf16.mxu0 %v1817_v1  ;;  %v1884_v0 = vld [vmem:[%s2272_s4 + $0x210] ss:$8 sps:$4 sm:$0xff]   ;;  %v1889_v1 = vld [vmem:[%s2272_s4 + $0x204] ss:$8 sps:$4 sm:$0xff]  }
  0x7a   : > { %1370 = vmatprep.subr.bf16.mxu1 %v1819_v2  ;;  %v1887_v2 = vld [vmem:[%s2272_s4 + $0x200] ss:$8 sps:$4 sm:$0xff]  }
  0x7c   : > { %1330 = vmatpush2.bf16.msra.mxu0 %v1821_v3  ;;  %v1892_v3 = vld [vmem:[%s2272_s4 + $0x2f4] ss:$8 sps:$4 sm:$0xff]  }
  0x7d   : > { %1371 = vmatpush2.bf16.msra.mxu1 %v1822_v4  ;;  %1331 = vmatprep.subr.bf16.mxu0 %v1823_v8  ;;  %v1890_v4 = vld [vmem:[%s2272_s4 + $0x2f0] ss:$8 sps:$4 sm:$0xff]  }
  0x7e   : > { %1372 = vmatprep.subr.bf16.mxu1 %v1825_v9  ;;  %v1896_v8 = vld [vmem:[%s2272_s4 + $0x2d0] ss:$8 sps:$4 sm:$0xff]   ;;  %v1901_v9 = vld [vmem:[%s2272_s4 + $0x2c4] ss:$8 sps:$4 sm:$0xff]  }
  0x80   : > { %1332 = vmatpush2.bf16.msra.mxu0 %v1827_v10  ;;  %v1899_v10 = vld [vmem:[%s2272_s4 + $0x2c0] ss:$8 sps:$4 sm:$0xff]  }
  0x81   : > { %1373 = vmatpush2.bf16.msra.mxu1 %v1828_v13  ;;  %1333 = vmatprep.subr.bf16.mxu0 %v1829_v14  ;;  %v1902_v13 = vld [vmem:[%s2272_s4 + $0x2b0] ss:$8 sps:$4 sm:$0xff]   ;;  %v1907_v14 = vld [vmem:[%s2272_s4 + $0x2a4] ss:$8 sps:$4 sm:$0xff]  }
  0x82   : > { %1374 = vmatprep.subr.bf16.mxu1 %v1831_v15  ;;  %v1905_v15 = vld [vmem:[%s2272_s4 + $0x2a0] ss:$8 sps:$4 sm:$0xff]  }
  0x84   : > { %1334 = vmatpush2.bf16.msra.mxu0 %v1833_v16  ;;  %v1910_v16 = vld [vmem:[%s2272_s4 + $0x294] ss:$8 sps:$4 sm:$0xff]  }
  0x85   : > { %1375 = vmatpush2.bf16.msra.mxu1 %v1834_v17  ;;  %1335 = vmatprep.subr.bf16.mxu0 %v1835_v19  ;;  %v1908_v17 = vld [vmem:[%s2272_s4 + $0x290] ss:$8 sps:$4 sm:$0xff]   ;;  %v1913_v19 = vld [vmem:[%s2272_s4 + $0x284] ss:$8 sps:$4 sm:$0xff]  }
  0x86   : > { %1376 = vmatprep.subr.bf16.mxu1 %v1837_v20  ;;  %v1911_v20 = vld [vmem:[%s2272_s4 + $0x280] ss:$8 sps:$4 sm:$0xff]  }
  0x88   : > { %1336 = vmatpush2.bf16.msra.mxu0 %v1839_v22 }
  0x89   : > { %1377 = vmatpush2.bf16.msra.mxu1 %v1840_v25  ;;  %1337 = vmatprep.subr.bf16.mxu0 %v1841_v26 }
  0x8a   : > { %1378 = vmatprep.subr.bf16.mxu1 %v1843_v27 }
  0x8c   : > { %1338 = vmatpush2.bf16.msra.mxu0 %v1845_v30 }
  0x8d   : > { %1379 = vmatpush2.bf16.msra.mxu1 %v1846_v33  ;;  %1339 = vmatprep.subr.bf16.mxu0 %v1847_v34  ;;  %v1440_v33 = vunpack.c.l.s4 %v1972_v31 }
  0x8e   : > { %1380 = vmatprep.subr.bf16.mxu1 %v1849_v35 }
  0x8f   : > { %v1441_v34 = vunpack.c.0.s8 %v1440_v33 }
  0x90   : > { %1340 = vmatpush2.bf16.msra.mxu0 %v1851_v37 }
  0x91   : > { %1381 = vmatpush2.bf16.msra.mxu1 %v1852_v38  ;;  %1341 = vmatprep.subr.bf16.mxu0 %v1853_v39  ;;  %v1444_v18 = vsub.s32 %v1441_v34, %v2314_v12 }
  0x92   : > { %1382 = vmatprep.subr.bf16.mxu1 %v1855_v40  ;;  %v681_v40 = vld [vmem:[#allocation2] sm:$0xf] }
  0x94   : > { %1342 = vmatpush2.bf16.msra.mxu0 %v1857_v41 }
  0x95   : > { %1383 = vmatpush2.bf16.msra.mxu1 %v1858_v42  ;;  %1343 = vmatprep.subr.bf16.mxu0 %v1859_v43 }
  0x96   : > { %1384 = vmatprep.subr.bf16.mxu1 %v1861_v44 }
  0x98   : > { %1344 = vmatpush2.bf16.msra.mxu0 %v1863_v45 }
  0x99   : > { %1385 = vmatpush2.bf16.msra.mxu1 %v1864_v47  ;;  %1395 = vmatprep.subr.bf16.mxu0 %v1868_v49 }
  0x9b   : > { %1346 = vmatmul.mubr.bf16.vlgmr.msra.gmra.mxu0 %v803_v46 }
  0x9c   : > { %1387 = vmatmul.mubr.bf16.vlgmr.msra.gmra.mxu1 %v825_v50  ;;  %1396 = vmatpush1.bf16.msra.mxu0 %v1866_v51 }
  0x9d   : > { %1427 = vmatprep.mubr.bf16.mxu0 %v824_v52  ;;  %1397 = vmatprep.subr.bf16.mxu0 %v1871_v53 }
  0xa0   : > { %1398 = vmatpush1.bf16.msra.mxu0 %v1869_v54 }
  0xa1   : > { %1399 = vmatprep.subr.bf16.mxu0 %v1874_v55 }
  0xa4   : > { %1400 = vmatpush1.bf16.msra.mxu0 %v1872_v56 }
  0xa5   : > { %1401 = vmatprep.subr.bf16.mxu0 %v1877_v57 }
  0xa8   : > { %1402 = vmatpush1.bf16.msra.mxu0 %v1875_v58 }
  0xa9   : > { %1403 = vmatprep.subr.bf16.mxu0 %v1880_v59 }
  0xac   : > { %1404 = vmatpush1.bf16.msra.mxu0 %v1878_v60 }
  0xad   : > { %1405 = vmatprep.subr.bf16.mxu0 %v1883_v61 }
  0xb0   : > { %1406 = vmatpush1.bf16.msra.mxu0 %v1881_v62 }
  0xb1   : > { %1407 = vmatprep.subr.bf16.mxu0 %v1886_v63 }
  0xb4   : > { %1408 = vmatpush1.bf16.msra.mxu0 %v1884_v0 }
  0xb5   : > { %1409 = vmatprep.subr.bf16.mxu0 %v1889_v1 }
  0xb8   : > { %1410 = vmatpush1.bf16.msra.mxu0 %v1887_v2 }
  0xb9   : > { %1411 = vmatprep.subr.bf16.mxu0 %v1892_v3 }
  0xbc   : > { %1412 = vmatpush2.bf16.msra.mxu0 %v1890_v4 }
  0xbd   : > { %1413 = vmatprep.subr.bf16.mxu0 %v1895_v5 }
  0xc0   : > { %1414 = vmatpush2.bf16.msra.mxu0 %v1893_v6 }
  0xc1   : > { %1415 = vmatprep.subr.bf16.mxu0 %v1898_v7 }
  0xc4   : > { %1416 = vmatpush2.bf16.msra.mxu0 %v1896_v8 }
  0xc5   : > { %1417 = vmatprep.subr.bf16.mxu0 %v1901_v9 }
  0xc8   : > { %1418 = vmatpush2.bf16.msra.mxu0 %v1899_v10 }
  0xc9   : > { %1419 = vmatprep.subr.bf16.mxu0 %v1904_v11 }
  0xcc   : > { %1420 = vmatpush2.bf16.msra.mxu0 %v1902_v13 }
  0xcd   : > { %1421 = vmatprep.subr.bf16.mxu0 %v1907_v14 }
  0xd0   : > { %1422 = vmatpush2.bf16.msra.mxu0 %v1905_v15 }
  0xd1   : > { %1423 = vmatprep.subr.bf16.mxu0 %v1910_v16 }
  0xd4   : > { %1424 = vmatpush2.bf16.msra.mxu0 %v1908_v17 }
  0xd5   : > { %1425 = vmatprep.subr.bf16.mxu0 %v1913_v19 }
  0xd8   : > { %1426 = vmatpush2.bf16.msra.mxu0 %v1911_v20 }
  0xdb   : > { %1428 = vmatmul.mubr.bf16.vlgmr.msra.gmra.mxu0 %v810_v32 }
 0x15b   : > { %v1347_v21 = vpop.f32.mrf.mxu0 }
 0x15c   : > { %v1388_v22 = vpop.f32.mrf.mxu1 }
 0x15d   : > { %v1389_v23 = vadd.f32 %v1388_v22, %v1347_v21  ;;  %v1349_v24 = vpop.f32.mrf.mxu0 }
 0x15e   : > { %v1390_v25 = vpop.f32.mrf.mxu1 }
 0x15f   : > { %v1351_v26 = vpop.f32.mrf.mxu0  ;;  %v1391_v36 = vadd.f32 %v1390_v25, %v1349_v24 }
 0x160   : > { %v1392_v27 = vpop.f32.mrf.mxu1 }
 0x161   : > { %v1352_v28 = vpop.f32.mrf.mxu0 }
 0x162   : > { %v1393_v30 = vpop.f32.mrf.mxu1 }
 0x19b   : > { %v1429_v35 = vpop.f32.mrf.mxu0 }
 0x19c   : > { %v1430_v38 = vadd.f32 %v1429_v35, %v1389_v23 }
 0x19d   : > { %v1431_v37 = vpop.f32.mrf.mxu0 }
 0x19e   : > { %v1432_v39 = vadd.f32 %v1431_v37, %v1391_v36 }
 0x19f   : > { %v1433_v29 = vpop.f32.mrf.mxu0 }
 0x1a0   : > { %v1438_v32 = vcombine.low %v1430_v38, %v1432_v39 }
 0x1a1   : > { %v1434_v41 = vpop.f32.mrf.mxu0 }
 0x1a2   : > { %v1445_v42 = vrot.slane %v1438_v32, %v1444_v18  ;;  %1452 = sbr.rel (%p1704_p13) target bundleno = 436 (0x1b4), region = 78 }
 0x1a4   : > { %v1447_v43 = vadd.f32 %v1445_v42, %v681_v40 }
 0x1a6   : > { %1448 = vst [vmem:[#allocation2] sm:$0xf] %v1447_v43 }
 0x1a7   : > { %v1454_v44 = vld [vmem:[%s664_s12] sm:$0x3]  ;;  %v1458_v45 = vsub.s32 0, %v2314_v12  ;;  %v1462_v46 = vsub.s32 1, %v2314_v12 }
 0x1a9   : > { %v1459_v47 = vrot.slane %v1454_v44, %v1458_v45  ;;  %v1463_v48 = vrot.slane %v1454_v44, %v1462_v46 }
 0x1ab   : > { %v1464_v49 = vcombine.low %v1459_v47, %v1463_v48 }
 0x1ad   : > { %v1453_v50 = vld [vmem:[#allocation2] sm:$0xf]  ;;  %v1471_v51 = vrot.slane %v1464_v49, %v1444_v18 }
 0x1af   : > { %v1473_v52 = vadd.f32 %v1471_v51, %v1453_v50 }
 0x1b1   : > { %v1474_v53 = vmax.f32 %v1473_v52, 0.0 }
 0x1b3   : > { %1475 = vst [vmem:[%s2270_s30] sm:$0xf] %v1474_v53 }
 0x1b4 PF: > { %s13_s18 = sadd.s32 1, %s1968_s18   ;;  %s2430_s12 = smov %s1948_s13 }
 0x1b5   : > { %p10_p0 = scmp.ge.s32.totalorder %s13_s18, 14   ;;  %s2431_s13 = smov %s2044_s25 }
 0x1b6   : > { %s2432_s14 = smov %s1960_s16  ;;  %s2433_s15 = smov %s1964_s17 }
 0x1b7   : > { %s2434_s16 = smov %s2437_s19  ;;  %s2435_s17 = smov %s2441_s20 }
 0x1b8   :  { %12 = sbr.rel (!%p10_p0) target bundleno = 4 (0x4), region = 119 }

</bundles_post_ra>
